<compile_context>
chip_gen: v5e
topology: v5e:2x2
jax: 0.10.0
libtpu: 0.0.40
codegen_flags: <defaults>
</compile_context>

<pallas_src>
import functools

import jax
import jax.numpy as jnp
from jax.experimental import pallas as pl
from jax.experimental.pallas import tpu as pltpu


# -----------------------------------------------------------------------------
# Small helpers
# -----------------------------------------------------------------------------
def _round_up(x, m):
    return (x + m - 1) // m * m


def _pick_tile(dim_padded, candidates):
    """Largest candidate tile that evenly divides the padded dimension."""
    for t in candidates:
        if t <= dim_padded and dim_padded % t == 0:
            return t
    return dim_padded


# -----------------------------------------------------------------------------
# Tiled matmul kernel: O = act(A @ W + b), bf16 MXU operands, f32 accumulation
# -----------------------------------------------------------------------------
def _mm_kernel(a_ref, w_ref, b_ref, o_ref, acc_ref, *, act):
    @pl.when(pl.program_id(2) == 0)
    def _():
        acc_ref[...] = jnp.zeros_like(acc_ref)

    acc_ref[...] += jnp.dot(a_ref[...], w_ref[...],
                            preferred_element_type=jnp.float32)

    @pl.when(pl.program_id(2) == pl.num_programs(2) - 1)
    def _():
        acc = acc_ref[...] + b_ref[...]
        if act == "relu":
            acc = jnp.maximum(acc, 0.0)
        elif act == "gelu":
            acc = jax.nn.gelu(acc, approximate=True)
        o_ref[...] = acc.astype(o_ref.dtype)


def matmul(a, w, b=None, act="none", out_dtype=jnp.float32):
    """A:(M,K), W:(K,N), b:(N,) -> act(A @ W + b) as (M, N)."""
    M, K = a.shape
    Kw, N = w.shape
    assert K == Kw, (K, Kw)

    Mp = _round_up(M, 8)
    Kp = _round_up(K, 128)
    Np = _round_up(N, 128)
    tm = _pick_tile(Mp, (256, 128, 64, 32, 16, 8))
    tk = _pick_tile(Kp, (512, 384, 256, 128))
    tn = _pick_tile(Np, (256, 128))

    a_p = a.astype(jnp.bfloat16)
    if (Mp, Kp) != (M, K):
        a_p = jnp.pad(a_p, ((0, Mp - M), (0, Kp - K)))
    w_p = w.astype(jnp.bfloat16)
    if (Kp, Np) != (K, N):
        w_p = jnp.pad(w_p, ((0, Kp - K), (0, Np - N)))
    bias = jnp.zeros((N,), jnp.float32) if b is None else b.astype(jnp.float32)
    if Np != N:
        bias = jnp.pad(bias, (0, Np - N))
    bias = bias.reshape(1, Np)

    out = pl.pallas_call(
        functools.partial(_mm_kernel, act=act),
        out_shape=jax.ShapeDtypeStruct((Mp, Np), out_dtype),
        grid=(Mp // tm, Np // tn, Kp // tk),
        in_specs=[
            pl.BlockSpec((tm, tk), lambda i, j, k: (i, k)),
            pl.BlockSpec((tk, tn), lambda i, j, k: (k, j)),
            pl.BlockSpec((1, tn), lambda i, j, k: (0, j)),
        ],
        out_specs=pl.BlockSpec((tm, tn), lambda i, j, k: (i, j)),
        scratch_shapes=[pltpu.VMEM((tm, tn), jnp.float32)],
        compiler_params=pltpu.CompilerParams(
            dimension_semantics=("parallel", "parallel", "arbitrary"),
            vmem_limit_bytes=48 * 1024 * 1024),
    )(a_p, w_p, bias)

    if (Mp, Np) != (M, N):
        out = out[:M, :N]
    return out


# -----------------------------------------------------------------------------
# Flash attention kernel: all heads of a batch per block, KV-tiled online softmax
# -----------------------------------------------------------------------------
def _flash_attn_kernel(q_ref, k_ref, v_ref, o_ref, m_sc, l_sc, acc_sc, *, scale):
    kv = pl.program_id(1)

    @pl.when(kv == 0)
    def _():
        m_sc[...] = jnp.full_like(m_sc, -1e30)
        l_sc[...] = jnp.zeros_like(l_sc)
        acc_sc[...] = jnp.zeros_like(acc_sc)

    q = q_ref[0]          # (H, N, d) bf16
    k = k_ref[0]          # (H, tk, d)
    v = v_ref[0]
    s = jnp.einsum("hqd,hkd->hqk", q, k,
                   preferred_element_type=jnp.float32) * scale     # (H, N, tk)

    m_prev = m_sc[...]
    m_new = jnp.maximum(m_prev, jnp.max(s, axis=-1, keepdims=True))
    alpha = jnp.exp(m_prev - m_new)
    p = jnp.exp(s - m_new)
    l_sc[...] = alpha * l_sc[...] + jnp.sum(p, axis=-1, keepdims=True)
    acc_sc[...] = alpha * acc_sc[...] + jnp.einsum(
        "hqk,hkd->hqd", p.astype(v.dtype), v,
        preferred_element_type=jnp.float32)
    m_sc[...] = m_new

    @pl.when(kv == pl.num_programs(1) - 1)
    def _():
        inv_l = pl.reciprocal(l_sc[...], approx=True)
        o_ref[0] = (acc_sc[...] * inv_l).astype(o_ref.dtype)


def flash_attention(q, k, v, *, scale):
    """q,k,v: (B, H, N, d) bf16 -> (B, H, N, d) f32, softmax(qk^T*scale) v."""
    B, H, N, d = q.shape
    tk = _pick_tile(N, (512, 256, 128))
    return pl.pallas_call(
        functools.partial(_flash_attn_kernel, scale=scale),
        out_shape=jax.ShapeDtypeStruct((B, H, N, d), jnp.float32),
        grid=(B, N // tk),
        in_specs=[
            pl.BlockSpec((1, H, N, d), lambda b, kv: (b, 0, 0, 0)),
            pl.BlockSpec((1, H, tk, d), lambda b, kv: (b, 0, kv, 0)),
            pl.BlockSpec((1, H, tk, d), lambda b, kv: (b, 0, kv, 0)),
        ],
        out_specs=pl.BlockSpec((1, H, N, d), lambda b, kv: (b, 0, 0, 0)),
        scratch_shapes=[
            pltpu.VMEM((H, N, 1), jnp.float32),
            pltpu.VMEM((H, N, 1), jnp.float32),
            pltpu.VMEM((H, N, d), jnp.float32),
        ],
        compiler_params=pltpu.CompilerParams(
            dimension_semantics=("parallel", "arbitrary"),
            vmem_limit_bytes=48 * 1024 * 1024),
    )(q, k, v)


# -----------------------------------------------------------------------------
# Row-tiled LayerNorm kernel
# -----------------------------------------------------------------------------
def _ln_kernel(x_ref, g_ref, b_ref, o_ref):
    x = x_ref[...]
    mu = jnp.mean(x, axis=-1, keepdims=True)
    var = jnp.mean(jnp.square(x - mu), axis=-1, keepdims=True)
    o_ref[...] = (x - mu) * jax.lax.rsqrt(var + 1e-5) * g_ref[...] + b_ref[...]


def layernorm(x_tok, gamma, beta):
    """x_tok: (B, N, D), LayerNorm over D."""
    B, N, D = x_tok.shape
    R = B * N
    x2 = x_tok.reshape(R, D).astype(jnp.float32)
    Rp = _round_up(R, 8)
    tm = _pick_tile(Rp, (512, 256, 128, 64, 32, 16, 8))
    if Rp != R:
        x2 = jnp.pad(x2, ((0, Rp - R), (0, 0)))
    out = pl.pallas_call(
        _ln_kernel,
        out_shape=jax.ShapeDtypeStruct((Rp, D), jnp.float32),
        grid=(Rp // tm,),
        in_specs=[
            pl.BlockSpec((tm, D), lambda i: (i, 0)),
            pl.BlockSpec((1, D), lambda i: (0, 0)),
            pl.BlockSpec((1, D), lambda i: (0, 0)),
        ],
        out_specs=pl.BlockSpec((tm, D), lambda i: (i, 0)),
        compiler_params=pltpu.CompilerParams(dimension_semantics=("parallel",)),
    )(x2, gamma.reshape(1, D).astype(jnp.float32),
      beta.reshape(1, D).astype(jnp.float32))
    if Rp != R:
        out = out[:R]
    return out.reshape(B, N, D)


# -----------------------------------------------------------------------------
# Fused (per-branch global-avg-pool) + concat + fc1 kernel
# -----------------------------------------------------------------------------
def _pool_fc_kernel(n_ref, r_ref, wn_ref, wr_ref, b_ref, o_ref):
    n_mean = jnp.mean(n_ref[...], axis=1)        # (B, D)
    r_mean = jnp.mean(r_ref[...], axis=1)        # (B, D)
    acc = jnp.dot(n_mean, wn_ref[...], preferred_element_type=jnp.float32)
    acc = acc + jnp.dot(r_mean, wr_ref[...], preferred_element_type=jnp.float32)
    o_ref[...] = acc + b_ref[...]


def pool_concat_fc(n_feat, r_feat, w, b):
    """n_feat, r_feat: (B, L, D); w: (2D, C); b: (C,) -> (B, C)."""
    B, L, D = n_feat.shape
    nc = w.shape[1]
    wn, wr = w[:D], w[D:]
    return pl.pallas_call(
        _pool_fc_kernel,
        out_shape=jax.ShapeDtypeStruct((B, nc), jnp.float32),
        grid=(1,),
        in_specs=[
            pl.BlockSpec((B, L, D), lambda i: (0, 0, 0)),
            pl.BlockSpec((B, L, D), lambda i: (0, 0, 0)),
            pl.BlockSpec((D, nc), lambda i: (0, 0)),
            pl.BlockSpec((D, nc), lambda i: (0, 0)),
            pl.BlockSpec((1, nc), lambda i: (0, 0)),
        ],
        out_specs=pl.BlockSpec((B, nc), lambda i: (0, 0)),
    )(n_feat.astype(jnp.float32), r_feat.astype(jnp.float32),
      wn.astype(jnp.float32), wr.astype(jnp.float32),
      b.reshape(1, nc).astype(jnp.float32))


# -----------------------------------------------------------------------------
# Layers built on the Pallas kernels (glue in plain JAX, NHWC activations)
# -----------------------------------------------------------------------------
def conv2d(x_nhwc, w, b, *, kernel_size=3, stride=1, padding=1, act="none"):
    """x:(B,H,W,Cin), w:(Cin*k*k, Cout) -> (B,Ho,Wo,Cout). im2col + tiled matmul.

    Patch feature ordering of conv_general_dilated_patches is channel-major,
    (kh, kw)-minor, matching the weight row layout used in init_params.
    """
    B = x_nhwc.shape[0]
    patches = jax.lax.conv_general_dilated_patches(
        x_nhwc.astype(jnp.float32),
        filter_shape=(kernel_size, kernel_size),
        window_strides=(stride, stride),
        padding=((padding, padding), (padding, padding)),
        dimension_numbers=("NHWC", "HWIO", "NHWC"),
    )  # (B, Ho, Wo, Cin*k*k)
    _, Ho, Wo, CK = patches.shape
    a = patches.reshape(B * Ho * Wo, CK)
    out = matmul(a, w, b, act=act)               # (B*Ho*Wo, Cout)
    return out.reshape(B, Ho, Wo, out.shape[-1])


def mha(q_tok, kv_tok, p, heads, head_dim):
    """Cross multi-head attention: queries from q_tok, keys/values from kv_tok."""
    B, N, D = q_tok.shape
    q2 = q_tok.reshape(B * N, D)
    kv2 = kv_tok.reshape(B * N, D)
    # Q projection and fused K/V projection (one (D, 2D) matmul).
    q = matmul(q2, p["wq"], p["bq"], out_dtype=jnp.bfloat16)       # (BN, D)
    kv = matmul(kv2, p["wkv"], p["bkv"], out_dtype=jnp.bfloat16)   # (BN, 2D)

    qh = q.reshape(B, N, heads, head_dim).transpose(0, 2, 1, 3)            # (B,H,N,d)
    kvh = kv.reshape(B, N, 2, heads, head_dim).transpose(2, 0, 3, 1, 4)    # (2,B,H,N,d)
    kh, vh = kvh[0], kvh[1]

    o = flash_attention(qh, kh, vh, scale=1.0 / float(head_dim) ** 0.5)    # (B,H,N,d)
    o2 = o.transpose(0, 2, 1, 3).reshape(B * N, heads * head_dim)
    out = matmul(o2, p["wo"], p["bo"])
    return out.reshape(B, N, D)


def ffn(x_tok, p):
    B, N, D = x_tok.shape
    x2 = x_tok.reshape(B * N, D)
    h = matmul(x2, p["w1"], p["b1"], act="gelu")
    o = matmul(h, p["w2"], p["b2"])
    return o.reshape(B, N, D)


def cross_block(n_tok, r_tok, p, heads, head_dim):
    n_norm = layernorm(n_tok, *p["ln1n"])
    r_norm = layernorm(r_tok, *p["ln1r"])
    n = n_tok + mha(n_norm, r_norm, p["attn_n"], heads, head_dim)   # n attends to r
    r = r_tok + mha(r_norm, n_norm, p["attn_r"], heads, head_dim)   # r attends to n
    n = n + ffn(layernorm(n, *p["ln2n"]), p["ffn_n"])
    r = r + ffn(layernorm(r, *p["ln2r"]), p["ffn_r"])
    return n, r


def residual_block(x, p):
    y = conv2d(x, p["w1"], p["b1"], act="relu")
    y = conv2d(y, p["w2"], p["b2"], act="none")
    return jnp.maximum(x + y, 0.0)


def plain_block(x, p):
    y = conv2d(x, p["w1"], p["b1"], act="relu")
    y = conv2d(y, p["w2"], p["b2"], act="relu")
    return y


# -----------------------------------------------------------------------------
# Parameters (deterministic, synthetic)
# -----------------------------------------------------------------------------
def init_params(key, dim=256, hidden_dim=1024, depth=2):
    keys = iter(jax.random.split(key, 128))
    scale = 0.02

    def dense(cin, cout):
        return (jax.random.normal(next(keys), (cin, cout), jnp.float32) * scale,
                jnp.zeros((cout,), jnp.float32))

    def conv(cin, cout, k=3):
        return (jax.random.normal(next(keys), (cin * k * k, cout), jnp.float32) * scale,
                jnp.zeros((cout,), jnp.float32))

    def ln(d):
        return (jnp.ones((d,), jnp.float32), jnp.zeros((d,), jnp.float32))

    # Fixed SRM-style high-pass filter, applied depthwise on the 3 input channels.
    hp = jnp.array([[-1.0, 2.0, -1.0],
                    [2.0, -4.0, 2.0],
                    [-1.0, 2.0, -1.0]], jnp.float32) / 4.0
    srm = jnp.zeros((3 * 9, 3), jnp.float32)
    for c in range(3):
        srm = srm.at[c * 9:(c + 1) * 9, c].set(hp.reshape(-1))

    params = {"srm": srm}
    params["noise1"] = conv(3, 128)
    params["noise2"] = conv(128, dim)
    params["rgb1"] = conv(3, 128)
    params["rgb2"] = conv(128, dim)

    def attn_params():
        wq, bq = dense(dim, dim)
        wkv, bkv = dense(dim, 2 * dim)     # fused K/V projection
        wo, bo = dense(dim, dim)
        return dict(wq=wq, bq=bq, wkv=wkv, bkv=bkv, wo=wo, bo=bo)

    def ffn_params():
        w1, b1 = dense(dim, hidden_dim)
        w2, b2 = dense(hidden_dim, dim)
        return dict(w1=w1, b1=b1, w2=w2, b2=b2)

    params["ct"] = []
    for _ in range(depth):
        params["ct"].append(dict(
            ln1n=ln(dim), ln1r=ln(dim), ln2n=ln(dim), ln2r=ln(dim),
            attn_n=attn_params(), attn_r=attn_params(),
            ffn_n=ffn_params(), ffn_r=ffn_params(),
        ))

    def block_params():
        w1, b1 = conv(dim, dim)
        w2, b2 = conv(dim, dim)
        return dict(w1=w1, b1=b1, w2=w2, b2=b2)

    params["nres1"] = block_params()
    params["nres2"] = block_params()
    params["rpl1"] = block_params()
    params["rpl2"] = block_params()
    params["fc1"] = dense(2 * dim, 2)
    return params


# -----------------------------------------------------------------------------
# Forward pass
# -----------------------------------------------------------------------------
def dualnet_forward(params, x, heads=4, head_dim=64):
    # x: (B, 3, H, W) NCHW (PyTorch convention); single transpose to NHWC.
    B = x.shape[0]
    x_nhwc = jnp.transpose(x, (0, 2, 3, 1))

    # noise branch (Trans_Noise): fixed high-pass + conv stem -> (B, H/4, W/4, 256)
    n = conv2d(x_nhwc, params["srm"], None, act="none")
    n = conv2d(n, *params["noise1"], stride=2, act="relu")
    n = conv2d(n, *params["noise2"], stride=2, act="relu")

    # rgb branch (Pre2): conv stem -> (B, H/4, W/4, 256)
    r = conv2d(x_nhwc, *params["rgb1"], stride=2, act="relu")
    r = conv2d(r, *params["rgb2"], stride=2, act="relu")

    # crosstrans: tokens (B, N, 256), depth=2 cross-attention blocks
    _, Hn, Wn, D = n.shape
    n_tok = n.reshape(B, Hn * Wn, D)
    r_tok = r.reshape(B, Hn * Wn, D)
    for blk in params["ct"]:
        n_tok, r_tok = cross_block(n_tok, r_tok, blk, heads, head_dim)
    n = n_tok.reshape(B, Hn, Wn, D)
    r = r_tok.reshape(B, Hn, Wn, D)

    # n_elayers / r_elayers
    n = residual_block(n, params["nres1"])
    n = residual_block(n, params["nres2"])
    r = plain_block(r, params["rpl1"])
    r = plain_block(r, params["rpl2"])

    # per-branch global average pool + concat + fc1, fused in one kernel
    logits = pool_concat_fc(n.reshape(B, Hn * Wn, D),
                            r.reshape(B, Hn * Wn, D),
                            *params["fc1"])
    return logits


# -----------------------------------------------------------------------------
if __name__ == "__main__":
    key = jax.random.PRNGKey(0)
    pkey, xkey = jax.random.split(key)
    params = init_params(pkey)
    x = jax.random.normal(xkey, (2, 3, 16, 16), jnp.float32)

    fwd = jax.jit(dualnet_forward)
    out = fwd(params, x)
    out = jax.block_until_ready(out)

    assert out.shape == (2, 2), out.shape
    assert jnp.all(jnp.isfinite(out))
    print("KERNEL_OK")
</pallas_src>

<mosaic_0001>
module attributes {stable_mosaic.version = 11 : i64} {
  func.func @_mm_kernel(%arg0: i32, %arg1: i32, %arg2: i32, %arg3: memref<256x128xbf16, #tpu.memory_space<vmem>>, %arg4: memref<128x128xbf16, #tpu.memory_space<vmem>>, %arg5: memref<1x128xf32, #tpu.memory_space<vmem>>, %arg6: memref<256x128xf32, #tpu.memory_space<vmem>>, %arg7: memref<256x128xf32, #tpu.memory_space<vmem>>) attributes {dimension_semantics = [#tpu.dimension_semantics<parallel>, #tpu.dimension_semantics<parallel>, #tpu.dimension_semantics<arbitrary>], iteration_bounds = array<i64: 2, 1, 1>, scalar_prefetch = 0 : i64, scratch_operands = 1 : i64, tpu.core_type = #tpu.core_type<tc>, window_params = [{transform_indices = @transform_0, window_bounds = array<i64: 256, 128>}, {transform_indices = @transform_1, window_bounds = array<i64: 128, 128>}, {transform_indices = @transform_2, window_bounds = array<i64: 1, 128>}, {transform_indices = @transform_3, window_bounds = array<i64: 256, 128>}]} {
    %c0_i32 = arith.constant 0 : i32
    %0 = arith.cmpi eq, %arg2, %c0_i32 : i32
    %1 = arith.extui %0 : i1 to i32
    %c0_i32_0 = arith.constant 0 : i32
    %2 = arith.cmpi ne, %1, %c0_i32_0 : i32
    scf.if %2 {
      %cst_10 = arith.constant 0.000000e+00 : f32
      %12 = vector.broadcast %cst_10 : f32 to vector<256x128xf32>
      %c0_11 = arith.constant 0 : index
      %c0_12 = arith.constant 0 : index
      %13 = vector.load %arg7[%c0_11, %c0_12] : memref<256x128xf32, #tpu.memory_space<vmem>>, vector<256x128xf32>
      tpu.vector_store %arg7[%c0_11, %c0_12], %12 {strides = array<i32>} : memref<256x128xf32, #tpu.memory_space<vmem>>, vector<256x128xf32>,
    } else {
    }
    %c0 = arith.constant 0 : index
    %c0_1 = arith.constant 0 : index
    %3 = vector.load %arg7[%c0, %c0_1] : memref<256x128xf32, #tpu.memory_space<vmem>>, vector<256x128xf32>
    %c0_2 = arith.constant 0 : index
    %c0_3 = arith.constant 0 : index
    %4 = vector.load %arg3[%c0_2, %c0_3] : memref<256x128xbf16, #tpu.memory_space<vmem>>, vector<256x128xbf16>
    %c0_4 = arith.constant 0 : index
    %c0_5 = arith.constant 0 : index
    %5 = vector.load %arg4[%c0_4, %c0_5] : memref<128x128xbf16, #tpu.memory_space<vmem>>, vector<128x128xbf16>
    %cst = arith.constant dense<0.000000e+00> : vector<256x128xf32>
    %6 = tpu.matmul %4, %5, %cst {dimension_numbers = #tpu.dot_dimension_numbers<[1], [0], [0], [1], [0, 0, 1, 1], [], []>} : vector<256x128xbf16>, vector<128x128xbf16>, vector<256x128xf32> -> vector<256x128xf32>
    %7 = arith.addf %3, %6 : vector<256x128xf32>
    %c0_6 = arith.constant 0 : index
    %c0_7 = arith.constant 0 : index
    %8 = vector.load %arg7[%c0_6, %c0_7] : memref<256x128xf32, #tpu.memory_space<vmem>>, vector<256x128xf32>
    tpu.vector_store %arg7[%c0_6, %c0_7], %7 {strides = array<i32>} : memref<256x128xf32, #tpu.memory_space<vmem>>, vector<256x128xf32>,
    %c0_i32_8 = arith.constant 0 : i32
    %9 = arith.cmpi eq, %arg2, %c0_i32_8 : i32
    %10 = arith.extui %9 : i1 to i32
    %c0_i32_9 = arith.constant 0 : i32
    %11 = arith.cmpi ne, %10, %c0_i32_9 : i32
    scf.if %11 {
      %c0_10 = arith.constant 0 : index
      %c0_11 = arith.constant 0 : index
      %12 = vector.load %arg7[%c0_10, %c0_11] : memref<256x128xf32, #tpu.memory_space<vmem>>, vector<256x128xf32>
      %c0_12 = arith.constant 0 : index
      %c0_13 = arith.constant 0 : index
      %13 = vector.load %arg5[%c0_12, %c0_13] : memref<1x128xf32, #tpu.memory_space<vmem>>, vector<1x128xf32>
      %14 = vector.broadcast %13 : vector<1x128xf32> to vector<256x128xf32>
      %15 = arith.addf %12, %14 : vector<256x128xf32>
      %c0_14 = arith.constant 0 : index
      %c0_15 = arith.constant 0 : index
      %16 = vector.load %arg6[%c0_14, %c0_15] : memref<256x128xf32, #tpu.memory_space<vmem>>, vector<256x128xf32>
      tpu.vector_store %arg6[%c0_14, %c0_15], %15 {strides = array<i32>} : memref<256x128xf32, #tpu.memory_space<vmem>>, vector<256x128xf32>,
    } else {
    }
    return
  }
  func.func @transform_0(%arg0: i32, %arg1: i32, %arg2: i32) -> (i32, i32) {
    %c0_i32 = arith.constant 0 : i32
    return %arg0, %arg2 : i32, i32
  }
  func.func @transform_1(%arg0: i32, %arg1: i32, %arg2: i32) -> (i32, i32) {
    %c0_i32 = arith.constant 0 : i32
    return %arg2, %arg1 : i32, i32
  }
  func.func @transform_2(%arg0: i32, %arg1: i32, %arg2: i32) -> (i32, i32) {
    %c0_i32 = arith.constant 0 : i32
    %c0_i32_0 = arith.constant 0 : i32
    return %c0_i32, %arg1 : i32, i32
  }
  func.func @transform_3(%arg0: i32, %arg1: i32, %arg2: i32) -> (i32, i32) {
    %c0_i32 = arith.constant 0 : i32
    return %arg0, %arg1 : i32, i32
  }
}

module attributes {stable_mosaic.version = 11 : i64} {
  func.func @_mm_kernel(%arg0: i32, %arg1: i32, %arg2: i32, %arg3: memref<128x128xbf16, #tpu.memory_space<vmem>>, %arg4: memref<128x128xbf16, #tpu.memory_space<vmem>>, %arg5: memref<1x128xf32, #tpu.memory_space<vmem>>, %arg6: memref<128x128xf32, #tpu.memory_space<vmem>>, %arg7: memref<128x128xf32, #tpu.memory_space<vmem>>) attributes {dimension_semantics = [#tpu.dimension_semantics<parallel>, #tpu.dimension_semantics<parallel>, #tpu.dimension_semantics<arbitrary>], iteration_bounds = array<i64: 1, 1, 1>, scalar_prefetch = 0 : i64, scratch_operands = 1 : i64, tpu.core_type = #tpu.core_type<tc>, window_params = [{transform_indices = @transform_0, window_bounds = array<i64: 128, 128>}, {transform_indices = @transform_1, window_bounds = array<i64: 128, 128>}, {transform_indices = @transform_2, window_bounds = array<i64: 1, 128>}, {transform_indices = @transform_3, window_bounds = array<i64: 128, 128>}]} {
    %c0_i32 = arith.constant 0 : i32
    %0 = arith.cmpi eq, %arg2, %c0_i32 : i32
    %1 = arith.extui %0 : i1 to i32
    %c0_i32_0 = arith.constant 0 : i32
    %2 = arith.cmpi ne, %1, %c0_i32_0 : i32
    scf.if %2 {
      %cst_10 = arith.constant 0.000000e+00 : f32
      %12 = vector.broadcast %cst_10 : f32 to vector<128x128xf32>
      %c0_11 = arith.constant 0 : index
      %c0_12 = arith.constant 0 : index
      %13 = vector.load %arg7[%c0_11, %c0_12] : memref<128x128xf32, #tpu.memory_space<vmem>>, vector<128x128xf32>
      tpu.vector_store %arg7[%c0_11, %c0_12], %12 {strides = array<i32>} : memref<128x128xf32, #tpu.memory_space<vmem>>, vector<128x128xf32>,
    } else {
    }
    %c0 = arith.constant 0 : index
    %c0_1 = arith.constant 0 : index
    %3 = vector.load %arg7[%c0, %c0_1] : memref<128x128xf32, #tpu.memory_space<vmem>>, vector<128x128xf32>
    %c0_2 = arith.constant 0 : index
    %c0_3 = arith.constant 0 : index
    %4 = vector.load %arg3[%c0_2, %c0_3] : memref<128x128xbf16, #tpu.memory_space<vmem>>, vector<128x128xbf16>
    %c0_4 = arith.constant 0 : index
    %c0_5 = arith.constant 0 : index
    %5 = vector.load %arg4[%c0_4, %c0_5] : memref<128x128xbf16, #tpu.memory_space<vmem>>, vector<128x128xbf16>
    %cst = arith.constant dense<0.000000e+00> : vector<128x128xf32>
    %6 = tpu.matmul %4, %5, %cst {dimension_numbers = #tpu.dot_dimension_numbers<[1], [0], [0], [1], [0, 0, 1, 1], [], []>} : vector<128x128xbf16>, vector<128x128xbf16>, vector<128x128xf32> -> vector<128x128xf32>
    %7 = arith.addf %3, %6 : vector<128x128xf32>
    %c0_6 = arith.constant 0 : index
    %c0_7 = arith.constant 0 : index
    %8 = vector.load %arg7[%c0_6, %c0_7] : memref<128x128xf32, #tpu.memory_space<vmem>>, vector<128x128xf32>
    tpu.vector_store %arg7[%c0_6, %c0_7], %7 {strides = array<i32>} : memref<128x128xf32, #tpu.memory_space<vmem>>, vector<128x128xf32>,
    %c0_i32_8 = arith.constant 0 : i32
    %9 = arith.cmpi eq, %arg2, %c0_i32_8 : i32
    %10 = arith.extui %9 : i1 to i32
    %c0_i32_9 = arith.constant 0 : i32
    %11 = arith.cmpi ne, %10, %c0_i32_9 : i32
    scf.if %11 {
      %c0_10 = arith.constant 0 : index
      %c0_11 = arith.constant 0 : index
      %12 = vector.load %arg7[%c0_10, %c0_11] : memref<128x128xf32, #tpu.memory_space<vmem>>, vector<128x128xf32>
      %c0_12 = arith.constant 0 : index
      %c0_13 = arith.constant 0 : index
      %13 = vector.load %arg5[%c0_12, %c0_13] : memref<1x128xf32, #tpu.memory_space<vmem>>, vector<1x128xf32>
      %14 = vector.broadcast %13 : vector<1x128xf32> to vector<128x128xf32>
      %15 = arith.addf %12, %14 : vector<128x128xf32>
      %cst_14 = arith.constant 0.000000e+00 : f32
      %16 = vector.broadcast %cst_14 : f32 to vector<128x128xf32>
      %17 = arith.maximumf %15, %16 : vector<128x128xf32>
      %c0_15 = arith.constant 0 : index
      %c0_16 = arith.constant 0 : index
      %18 = vector.load %arg6[%c0_15, %c0_16] : memref<128x128xf32, #tpu.memory_space<vmem>>, vector<128x128xf32>
      tpu.vector_store %arg6[%c0_15, %c0_16], %17 {strides = array<i32>} : memref<128x128xf32, #tpu.memory_space<vmem>>, vector<128x128xf32>,
    } else {
    }
    return
  }
  func.func @transform_0(%arg0: i32, %arg1: i32, %arg2: i32) -> (i32, i32) {
    %c0_i32 = arith.constant 0 : i32
    return %arg0, %arg2 : i32, i32
  }
  func.func @transform_1(%arg0: i32, %arg1: i32, %arg2: i32) -> (i32, i32) {
    %c0_i32 = arith.constant 0 : i32
    return %arg2, %arg1 : i32, i32
  }
  func.func @transform_2(%arg0: i32, %arg1: i32, %arg2: i32) -> (i32, i32) {
    %c0_i32 = arith.constant 0 : i32
    %c0_i32_0 = arith.constant 0 : i32
    return %c0_i32, %arg1 : i32, i32
  }
  func.func @transform_3(%arg0: i32, %arg1: i32, %arg2: i32) -> (i32, i32) {
    %c0_i32 = arith.constant 0 : i32
    return %arg0, %arg1 : i32, i32
  }
}

module attributes {stable_mosaic.version = 11 : i64} {
  func.func @_mm_kernel(%arg0: i32, %arg1: i32, %arg2: i32, %arg3: memref<32x384xbf16, #tpu.memory_space<vmem>>, %arg4: memref<384x256xbf16, #tpu.memory_space<vmem>>, %arg5: memref<1x256xf32, #tpu.memory_space<vmem>>, %arg6: memref<32x256xf32, #tpu.memory_space<vmem>>, %arg7: memref<32x256xf32, #tpu.memory_space<vmem>>) attributes {dimension_semantics = [#tpu.dimension_semantics<parallel>, #tpu.dimension_semantics<parallel>, #tpu.dimension_semantics<arbitrary>], iteration_bounds = array<i64: 1, 1, 3>, scalar_prefetch = 0 : i64, scratch_operands = 1 : i64, tpu.core_type = #tpu.core_type<tc>, window_params = [{transform_indices = @transform_0, window_bounds = array<i64: 32, 384>}, {transform_indices = @transform_1, window_bounds = array<i64: 384, 256>}, {transform_indices = @transform_2, window_bounds = array<i64: 1, 256>}, {transform_indices = @transform_3, window_bounds = array<i64: 32, 256>}]} {
    %c0_i32 = arith.constant 0 : i32
    %0 = arith.cmpi eq, %arg2, %c0_i32 : i32
    %1 = arith.extui %0 : i1 to i32
    %c0_i32_0 = arith.constant 0 : i32
    %2 = arith.cmpi ne, %1, %c0_i32_0 : i32
    scf.if %2 {
      %cst_9 = arith.constant 0.000000e+00 : f32
      %12 = vector.broadcast %cst_9 : f32 to vector<32x256xf32>
      %c0_10 = arith.constant 0 : index
      %c0_11 = arith.constant 0 : index
      %13 = vector.load %arg7[%c0_10, %c0_11] : memref<32x256xf32, #tpu.memory_space<vmem>>, vector<32x256xf32>
      tpu.vector_store %arg7[%c0_10, %c0_11], %12 {strides = array<i32>} : memref<32x256xf32, #tpu.memory_space<vmem>>, vector<32x256xf32>,
    } else {
    }
    %c0 = arith.constant 0 : index
    %c0_1 = arith.constant 0 : index
    %3 = vector.load %arg7[%c0, %c0_1] : memref<32x256xf32, #tpu.memory_space<vmem>>, vector<32x256xf32>
    %c0_2 = arith.constant 0 : index
    %c0_3 = arith.constant 0 : index
    %4 = vector.load %arg3[%c0_2, %c0_3] : memref<32x384xbf16, #tpu.memory_space<vmem>>, vector<32x384xbf16>
    %c0_4 = arith.constant 0 : index
    %c0_5 = arith.constant 0 : index
    %5 = vector.load %arg4[%c0_4, %c0_5] : memref<384x256xbf16, #tpu.memory_space<vmem>>, vector<384x256xbf16>
    %cst = arith.constant dense<0.000000e+00> : vector<32x256xf32>
    %6 = tpu.matmul %4, %5, %cst {dimension_numbers = #tpu.dot_dimension_numbers<[1], [0], [0], [1], [0, 0, 1, 1], [], []>} : vector<32x384xbf16>, vector<384x256xbf16>, vector<32x256xf32> -> vector<32x256xf32>
    %7 = arith.addf %3, %6 : vector<32x256xf32>
    %c0_6 = arith.constant 0 : index
    %c0_7 = arith.constant 0 : index
    %8 = vector.load %arg7[%c0_6, %c0_7] : memref<32x256xf32, #tpu.memory_space<vmem>>, vector<32x256xf32>
    tpu.vector_store %arg7[%c0_6, %c0_7], %7 {strides = array<i32>} : memref<32x256xf32, #tpu.memory_space<vmem>>, vector<32x256xf32>,
    %c2_i32 = arith.constant 2 : i32
    %9 = arith.cmpi eq, %arg2, %c2_i32 : i32
    %10 = arith.extui %9 : i1 to i32
    %c0_i32_8 = arith.constant 0 : i32
    %11 = arith.cmpi ne, %10, %c0_i32_8 : i32
    scf.if %11 {
      %c0_9 = arith.constant 0 : index
      %c0_10 = arith.constant 0 : index
      %12 = vector.load %arg7[%c0_9, %c0_10] : memref<32x256xf32, #tpu.memory_space<vmem>>, vector<32x256xf32>
      %c0_11 = arith.constant 0 : index
      %c0_12 = arith.constant 0 : index
      %13 = vector.load %arg5[%c0_11, %c0_12] : memref<1x256xf32, #tpu.memory_space<vmem>>, vector<1x256xf32>
      %14 = vector.broadcast %13 : vector<1x256xf32> to vector<32x256xf32>
      %15 = arith.addf %12, %14 : vector<32x256xf32>
      %cst_13 = arith.constant 0.000000e+00 : f32
      %16 = vector.broadcast %cst_13 : f32 to vector<32x256xf32>
      %17 = arith.maximumf %15, %16 : vector<32x256xf32>
      %c0_14 = arith.constant 0 : index
      %c0_15 = arith.constant 0 : index
      %18 = vector.load %arg6[%c0_14, %c0_15] : memref<32x256xf32, #tpu.memory_space<vmem>>, vector<32x256xf32>
      tpu.vector_store %arg6[%c0_14, %c0_15], %17 {strides = array<i32>} : memref<32x256xf32, #tpu.memory_space<vmem>>, vector<32x256xf32>,
    } else {
    }
    return
  }
  func.func @transform_0(%arg0: i32, %arg1: i32, %arg2: i32) -> (i32, i32) {
    %c0_i32 = arith.constant 0 : i32
    return %arg0, %arg2 : i32, i32
  }
  func.func @transform_1(%arg0: i32, %arg1: i32, %arg2: i32) -> (i32, i32) {
    %c0_i32 = arith.constant 0 : i32
    return %arg2, %arg1 : i32, i32
  }
  func.func @transform_2(%arg0: i32, %arg1: i32, %arg2: i32) -> (i32, i32) {
    %c0_i32 = arith.constant 0 : i32
    %c0_i32_0 = arith.constant 0 : i32
    return %c0_i32, %arg1 : i32, i32
  }
  func.func @transform_3(%arg0: i32, %arg1: i32, %arg2: i32) -> (i32, i32) {
    %c0_i32 = arith.constant 0 : i32
    return %arg0, %arg1 : i32, i32
  }
}

module attributes {stable_mosaic.version = 11 : i64} {
  func.func @_ln_kernel(%arg0: i32, %arg1: memref<32x256xf32, #tpu.memory_space<vmem>>, %arg2: memref<1x256xf32, #tpu.memory_space<vmem>>, %arg3: memref<1x256xf32, #tpu.memory_space<vmem>>, %arg4: memref<32x256xf32, #tpu.memory_space<vmem>>) attributes {dimension_semantics = [#tpu.dimension_semantics<parallel>], iteration_bounds = array<i64: 1>, scalar_prefetch = 0 : i64, scratch_operands = 0 : i64, tpu.core_type = #tpu.core_type<tc>, window_params = [{transform_indices = @transform_0, window_bounds = array<i64: 32, 256>}, {pipeline_mode = #tpu.pipeline_mode<synchronous>, transform_indices = @transform_1, window_bounds = array<i64: 1, 256>}, {pipeline_mode = #tpu.pipeline_mode<synchronous>, transform_indices = @transform_2, window_bounds = array<i64: 1, 256>}, {transform_indices = @transform_3, window_bounds = array<i64: 32, 256>}]} {
    %c0 = arith.constant 0 : index
    %c0_0 = arith.constant 0 : index
    %0 = vector.load %arg1[%c0, %c0_0] : memref<32x256xf32, #tpu.memory_space<vmem>>, vector<32x256xf32>
    %cst = arith.constant dense<0.000000e+00> : vector<32xf32>
    %1 = vector.multi_reduction <add>, %0, %cst [1] : vector<32x256xf32> to vector<32xf32>
    %2 = vector.shape_cast %1 : vector<32xf32> to vector<32x1xf32>
    %cst_1 = arith.constant 2.560000e+02 : f32
    %3 = vector.broadcast %cst_1 : f32 to vector<32x1xf32>
    %4 = arith.divf %2, %3 : vector<32x1xf32>
    %5 = vector.broadcast %4 : vector<32x1xf32> to vector<32x256xf32>
    %6 = arith.subf %0, %5 : vector<32x256xf32>
    %7 = arith.mulf %6, %6 : vector<32x256xf32>
    %cst_2 = arith.constant dense<0.000000e+00> : vector<32xf32>
    %8 = vector.multi_reduction <add>, %7, %cst_2 [1] : vector<32x256xf32> to vector<32xf32>
    %9 = vector.shape_cast %8 : vector<32xf32> to vector<32x1xf32>
    %cst_3 = arith.constant 2.560000e+02 : f32
    %10 = vector.broadcast %cst_3 : f32 to vector<32x1xf32>
    %11 = arith.divf %9, %10 : vector<32x1xf32>
    %12 = vector.broadcast %4 : vector<32x1xf32> to vector<32x256xf32>
    %13 = arith.subf %0, %12 : vector<32x256xf32>
    %cst_4 = arith.constant 9.99999974E-6 : f32
    %14 = vector.broadcast %cst_4 : f32 to vector<32x1xf32>
    %15 = arith.addf %11, %14 : vector<32x1xf32>
    %16 = math.rsqrt %15 : vector<32x1xf32>
    %17 = vector.broadcast %16 : vector<32x1xf32> to vector<32x256xf32>
    %18 = arith.mulf %13, %17 : vector<32x256xf32>
    %c0_5 = arith.constant 0 : index
    %c0_6 = arith.constant 0 : index
    %19 = vector.load %arg2[%c0_5, %c0_6] : memref<1x256xf32, #tpu.memory_space<vmem>>, vector<1x256xf32>
    %20 = vector.broadcast %19 : vector<1x256xf32> to vector<32x256xf32>
    %21 = arith.mulf %18, %20 : vector<32x256xf32>
    %c0_7 = arith.constant 0 : index
    %c0_8 = arith.constant 0 : index
    %22 = vector.load %arg3[%c0_7, %c0_8] : memref<1x256xf32, #tpu.memory_space<vmem>>, vector<1x256xf32>
    %23 = vector.broadcast %22 : vector<1x256xf32> to vector<32x256xf32>
    %24 = arith.addf %21, %23 : vector<32x256xf32>
    %c0_9 = arith.constant 0 : index
    %c0_10 = arith.constant 0 : index
    %25 = vector.load %arg4[%c0_9, %c0_10] : memref<32x256xf32, #tpu.memory_space<vmem>>, vector<32x256xf32>
    tpu.vector_store %arg4[%c0_9, %c0_10], %24 {strides = array<i32>} : memref<32x256xf32, #tpu.memory_space<vmem>>, vector<32x256xf32>,
    return
  }
  func.func @transform_0(%arg0: i32) -> (i32, i32) {
    %c0_i32 = arith.constant 0 : i32
    %c0_i32_0 = arith.constant 0 : i32
    return %arg0, %c0_i32 : i32, i32
  }
  func.func @transform_1(%arg0: i32) -> (i32, i32) {
    %c0_i32 = arith.constant 0 : i32
    %c0_i32_0 = arith.constant 0 : i32
    %c0_i32_1 = arith.constant 0 : i32
    return %c0_i32, %c0_i32_0 : i32, i32
  }
  func.func @transform_2(%arg0: i32) -> (i32, i32) {
    %c0_i32 = arith.constant 0 : i32
    %c0_i32_0 = arith.constant 0 : i32
    %c0_i32_1 = arith.constant 0 : i32
    return %c0_i32, %c0_i32_0 : i32, i32
  }
  func.func @transform_3(%arg0: i32) -> (i32, i32) {
    %c0_i32 = arith.constant 0 : i32
    %c0_i32_0 = arith.constant 0 : i32
    return %arg0, %c0_i32 : i32, i32
  }
}

module attributes {stable_mosaic.version = 11 : i64} {
  func.func @_mm_kernel(%arg0: i32, %arg1: i32, %arg2: i32, %arg3: memref<32x256xbf16, #tpu.memory_space<vmem>>, %arg4: memref<256x256xbf16, #tpu.memory_space<vmem>>, %arg5: memref<1x256xf32, #tpu.memory_space<vmem>>, %arg6: memref<32x256xbf16, #tpu.memory_space<vmem>>, %arg7: memref<32x256xf32, #tpu.memory_space<vmem>>) attributes {dimension_semantics = [#tpu.dimension_semantics<parallel>, #tpu.dimension_semantics<parallel>, #tpu.dimension_semantics<arbitrary>], iteration_bounds = array<i64: 1, 1, 1>, scalar_prefetch = 0 : i64, scratch_operands = 1 : i64, tpu.core_type = #tpu.core_type<tc>, window_params = [{transform_indices = @transform_0, window_bounds = array<i64: 32, 256>}, {transform_indices = @transform_1, window_bounds = array<i64: 256, 256>}, {transform_indices = @transform_2, window_bounds = array<i64: 1, 256>}, {transform_indices = @transform_3, window_bounds = array<i64: 32, 256>}]} {
    %c0_i32 = arith.constant 0 : i32
    %0 = arith.cmpi eq, %arg2, %c0_i32 : i32
    %1 = arith.extui %0 : i1 to i32
    %c0_i32_0 = arith.constant 0 : i32
    %2 = arith.cmpi ne, %1, %c0_i32_0 : i32
    scf.if %2 {
      %cst_10 = arith.constant 0.000000e+00 : f32
      %12 = vector.broadcast %cst_10 : f32 to vector<32x256xf32>
      %c0_11 = arith.constant 0 : index
      %c0_12 = arith.constant 0 : index
      %13 = vector.load %arg7[%c0_11, %c0_12] : memref<32x256xf32, #tpu.memory_space<vmem>>, vector<32x256xf32>
      tpu.vector_store %arg7[%c0_11, %c0_12], %12 {strides = array<i32>} : memref<32x256xf32, #tpu.memory_space<vmem>>, vector<32x256xf32>,
    } else {
    }
    %c0 = arith.constant 0 : index
    %c0_1 = arith.constant 0 : index
    %3 = vector.load %arg7[%c0, %c0_1] : memref<32x256xf32, #tpu.memory_space<vmem>>, vector<32x256xf32>
    %c0_2 = arith.constant 0 : index
    %c0_3 = arith.constant 0 : index
    %4 = vector.load %arg3[%c0_2, %c0_3] : memref<32x256xbf16, #tpu.memory_space<vmem>>, vector<32x256xbf16>
    %c0_4 = arith.constant 0 : index
    %c0_5 = arith.constant 0 : index
    %5 = vector.load %arg4[%c0_4, %c0_5] : memref<256x256xbf16, #tpu.memory_space<vmem>>, vector<256x256xbf16>
    %cst = arith.constant dense<0.000000e+00> : vector<32x256xf32>
    %6 = tpu.matmul %4, %5, %cst {dimension_numbers = #tpu.dot_dimension_numbers<[1], [0], [0], [1], [0, 0, 1, 1], [], []>} : vector<32x256xbf16>, vector<256x256xbf16>, vector<32x256xf32> -> vector<32x256xf32>
    %7 = arith.addf %3, %6 : vector<32x256xf32>
    %c0_6 = arith.constant 0 : index
    %c0_7 = arith.constant 0 : index
    %8 = vector.load %arg7[%c0_6, %c0_7] : memref<32x256xf32, #tpu.memory_space<vmem>>, vector<32x256xf32>
    tpu.vector_store %arg7[%c0_6, %c0_7], %7 {strides = array<i32>} : memref<32x256xf32, #tpu.memory_space<vmem>>, vector<32x256xf32>,
    %c0_i32_8 = arith.constant 0 : i32
    %9 = arith.cmpi eq, %arg2, %c0_i32_8 : i32
    %10 = arith.extui %9 : i1 to i32
    %c0_i32_9 = arith.constant 0 : i32
    %11 = arith.cmpi ne, %10, %c0_i32_9 : i32
    scf.if %11 {
      %c0_10 = arith.constant 0 : index
      %c0_11 = arith.constant 0 : index
      %12 = vector.load %arg7[%c0_10, %c0_11] : memref<32x256xf32, #tpu.memory_space<vmem>>, vector<32x256xf32>
      %c0_12 = arith.constant 0 : index
      %c0_13 = arith.constant 0 : index
      %13 = vector.load %arg5[%c0_12, %c0_13] : memref<1x256xf32, #tpu.memory_space<vmem>>, vector<1x256xf32>
      %14 = vector.broadcast %13 : vector<1x256xf32> to vector<32x256xf32>
      %15 = arith.addf %12, %14 : vector<32x256xf32>
      %16 = arith.truncf %15 : vector<32x256xf32> to vector<32x256xbf16>
      %c0_14 = arith.constant 0 : index
      %c0_15 = arith.constant 0 : index
      %17 = vector.load %arg6[%c0_14, %c0_15] : memref<32x256xbf16, #tpu.memory_space<vmem>>, vector<32x256xbf16>
      tpu.vector_store %arg6[%c0_14, %c0_15], %16 {strides = array<i32>} : memref<32x256xbf16, #tpu.memory_space<vmem>>, vector<32x256xbf16>,
    } else {
    }
    return
  }
  func.func @transform_0(%arg0: i32, %arg1: i32, %arg2: i32) -> (i32, i32) {
    %c0_i32 = arith.constant 0 : i32
    return %arg0, %arg2 : i32, i32
  }
  func.func @transform_1(%arg0: i32, %arg1: i32, %arg2: i32) -> (i32, i32) {
    %c0_i32 = arith.constant 0 : i32
    return %arg2, %arg1 : i32, i32
  }
  func.func @transform_2(%arg0: i32, %arg1: i32, %arg2: i32) -> (i32, i32) {
    %c0_i32 = arith.constant 0 : i32
    %c0_i32_0 = arith.constant 0 : i32
    return %c0_i32, %arg1 : i32, i32
  }
  func.func @transform_3(%arg0: i32, %arg1: i32, %arg2: i32) -> (i32, i32) {
    %c0_i32 = arith.constant 0 : i32
    return %arg0, %arg1 : i32, i32
  }
}

module attributes {stable_mosaic.version = 11 : i64} {
  func.func @_mm_kernel(%arg0: i32, %arg1: i32, %arg2: i32, %arg3: memref<128x128xbf16, #tpu.memory_space<vmem>>, %arg4: memref<128x128xbf16, #tpu.memory_space<vmem>>, %arg5: memref<1x128xf32, #tpu.memory_space<vmem>>, %arg6: memref<128x128xf32, #tpu.memory_space<vmem>>, %arg7: memref<128x128xf32, #tpu.memory_space<vmem>>) attributes {dimension_semantics = [#tpu.dimension_semantics<parallel>, #tpu.dimension_semantics<parallel>, #tpu.dimension_semantics<arbitrary>], iteration_bounds = array<i64: 1, 1, 1>, scalar_prefetch = 0 : i64, scratch_operands = 1 : i64, tpu.core_type = #tpu.core_type<tc>, window_params = [{transform_indices = @transform_0, window_bounds = array<i64: 128, 128>}, {transform_indices = @transform_1, window_bounds = array<i64: 128, 128>}, {transform_indices = @transform_2, window_bounds = array<i64: 1, 128>}, {transform_indices = @transform_3, window_bounds = array<i64: 128, 128>}]} {
    %c0_i32 = arith.constant 0 : i32
    %0 = arith.cmpi eq, %arg2, %c0_i32 : i32
    %1 = arith.extui %0 : i1 to i32
    %c0_i32_0 = arith.constant 0 : i32
    %2 = arith.cmpi ne, %1, %c0_i32_0 : i32
    scf.if %2 {
      %cst_10 = arith.constant 0.000000e+00 : f32
      %12 = vector.broadcast %cst_10 : f32 to vector<128x128xf32>
      %c0_11 = arith.constant 0 : index
      %c0_12 = arith.constant 0 : index
      %13 = vector.load %arg7[%c0_11, %c0_12] : memref<128x128xf32, #tpu.memory_space<vmem>>, vector<128x128xf32>
      tpu.vector_store %arg7[%c0_11, %c0_12], %12 {strides = array<i32>} : memref<128x128xf32, #tpu.memory_space<vmem>>, vector<128x128xf32>,
    } else {
    }
    %c0 = arith.constant 0 : index
    %c0_1 = arith.constant 0 : index
    %3 = vector.load %arg7[%c0, %c0_1] : memref<128x128xf32, #tpu.memory_space<vmem>>, vector<128x128xf32>
    %c0_2 = arith.constant 0 : index
    %c0_3 = arith.constant 0 : index
    %4 = vector.load %arg3[%c0_2, %c0_3] : memref<128x128xbf16, #tpu.memory_space<vmem>>, vector<128x128xbf16>
    %c0_4 = arith.constant 0 : index
    %c0_5 = arith.constant 0 : index
    %5 = vector.load %arg4[%c0_4, %c0_5] : memref<128x128xbf16, #tpu.memory_space<vmem>>, vector<128x128xbf16>
    %cst = arith.constant dense<0.000000e+00> : vector<128x128xf32>
    %6 = tpu.matmul %4, %5, %cst {dimension_numbers = #tpu.dot_dimension_numbers<[1], [0], [0], [1], [0, 0, 1, 1], [], []>} : vector<128x128xbf16>, vector<128x128xbf16>, vector<128x128xf32> -> vector<128x128xf32>
    %7 = arith.addf %3, %6 : vector<128x128xf32>
    %c0_6 = arith.constant 0 : index
    %c0_7 = arith.constant 0 : index
    %8 = vector.load %arg7[%c0_6, %c0_7] : memref<128x128xf32, #tpu.memory_space<vmem>>, vector<128x128xf32>
    tpu.vector_store %arg7[%c0_6, %c0_7], %7 {strides = array<i32>} : memref<128x128xf32, #tpu.memory_space<vmem>>, vector<128x128xf32>,
    %c0_i32_8 = arith.constant 0 : i32
    %9 = arith.cmpi eq, %arg2, %c0_i32_8 : i32
    %10 = arith.extui %9 : i1 to i32
    %c0_i32_9 = arith.constant 0 : i32
    %11 = arith.cmpi ne, %10, %c0_i32_9 : i32
    scf.if %11 {
      %c0_10 = arith.constant 0 : index
      %c0_11 = arith.constant 0 : index
      %12 = vector.load %arg7[%c0_10, %c0_11] : memref<128x128xf32, #tpu.memory_space<vmem>>, vector<128x128xf32>
      %c0_12 = arith.constant 0 : index
      %c0_13 = arith.constant 0 : index
      %13 = vector.load %arg5[%c0_12, %c0_13] : memref<1x128xf32, #tpu.memory_space<vmem>>, vector<1x128xf32>
      %14 = vector.broadcast %13 : vector<1x128xf32> to vector<128x128xf32>
      %15 = arith.addf %12, %14 : vector<128x128xf32>
      %cst_14 = arith.constant 0.000000e+00 : f32
      %16 = vector.broadcast %cst_14 : f32 to vector<128x128xf32>
      %17 = arith.maximumf %15, %16 : vector<128x128xf32>
      %c0_15 = arith.constant 0 : index
      %c0_16 = arith.constant 0 : index
      %18 = vector.load %arg6[%c0_15, %c0_16] : memref<128x128xf32, #tpu.memory_space<vmem>>, vector<128x128xf32>
      tpu.vector_store %arg6[%c0_15, %c0_16], %17 {strides = array<i32>} : memref<128x128xf32, #tpu.memory_space<vmem>>, vector<128x128xf32>,
    } else {
    }
    return
  }
  func.func @transform_0(%arg0: i32, %arg1: i32, %arg2: i32) -> (i32, i32) {
    %c0_i32 = arith.constant 0 : i32
    return %arg0, %arg2 : i32, i32
  }
  func.func @transform_1(%arg0: i32, %arg1: i32, %arg2: i32) -> (i32, i32) {
    %c0_i32 = arith.constant 0 : i32
    return %arg2, %arg1 : i32, i32
  }
  func.func @transform_2(%arg0: i32, %arg1: i32, %arg2: i32) -> (i32, i32) {
    %c0_i32 = arith.constant 0 : i32
    %c0_i32_0 = arith.constant 0 : i32
    return %c0_i32, %arg1 : i32, i32
  }
  func.func @transform_3(%arg0: i32, %arg1: i32, %arg2: i32) -> (i32, i32) {
    %c0_i32 = arith.constant 0 : i32
    return %arg0, %arg1 : i32, i32
  }
}

module attributes {stable_mosaic.version = 11 : i64} {
  func.func @_mm_kernel(%arg0: i32, %arg1: i32, %arg2: i32, %arg3: memref<32x256xbf16, #tpu.memory_space<vmem>>, %arg4: memref<256x256xbf16, #tpu.memory_space<vmem>>, %arg5: memref<1x256xf32, #tpu.memory_space<vmem>>, %arg6: memref<32x256xbf16, #tpu.memory_space<vmem>>, %arg7: memref<32x256xf32, #tpu.memory_space<vmem>>) attributes {dimension_semantics = [#tpu.dimension_semantics<parallel>, #tpu.dimension_semantics<parallel>, #tpu.dimension_semantics<arbitrary>], iteration_bounds = array<i64: 1, 2, 1>, scalar_prefetch = 0 : i64, scratch_operands = 1 : i64, tpu.core_type = #tpu.core_type<tc>, window_params = [{transform_indices = @transform_0, window_bounds = array<i64: 32, 256>}, {transform_indices = @transform_1, window_bounds = array<i64: 256, 256>}, {transform_indices = @transform_2, window_bounds = array<i64: 1, 256>}, {transform_indices = @transform_3, window_bounds = array<i64: 32, 256>}]} {
    %c0_i32 = arith.constant 0 : i32
    %0 = arith.cmpi eq, %arg2, %c0_i32 : i32
    %1 = arith.extui %0 : i1 to i32
    %c0_i32_0 = arith.constant 0 : i32
    %2 = arith.cmpi ne, %1, %c0_i32_0 : i32
    scf.if %2 {
      %cst_10 = arith.constant 0.000000e+00 : f32
      %12 = vector.broadcast %cst_10 : f32 to vector<32x256xf32>
      %c0_11 = arith.constant 0 : index
      %c0_12 = arith.constant 0 : index
      %13 = vector.load %arg7[%c0_11, %c0_12] : memref<32x256xf32, #tpu.memory_space<vmem>>, vector<32x256xf32>
      tpu.vector_store %arg7[%c0_11, %c0_12], %12 {strides = array<i32>} : memref<32x256xf32, #tpu.memory_space<vmem>>, vector<32x256xf32>,
    } else {
    }
    %c0 = arith.constant 0 : index
    %c0_1 = arith.constant 0 : index
    %3 = vector.load %arg7[%c0, %c0_1] : memref<32x256xf32, #tpu.memory_space<vmem>>, vector<32x256xf32>
    %c0_2 = arith.constant 0 : index
    %c0_3 = arith.constant 0 : index
    %4 = vector.load %arg3[%c0_2, %c0_3] : memref<32x256xbf16, #tpu.memory_space<vmem>>, vector<32x256xbf16>
    %c0_4 = arith.constant 0 : index
    %c0_5 = arith.constant 0 : index
    %5 = vector.load %arg4[%c0_4, %c0_5] : memref<256x256xbf16, #tpu.memory_space<vmem>>, vector<256x256xbf16>
    %cst = arith.constant dense<0.000000e+00> : vector<32x256xf32>
    %6 = tpu.matmul %4, %5, %cst {dimension_numbers = #tpu.dot_dimension_numbers<[1], [0], [0], [1], [0, 0, 1, 1], [], []>} : vector<32x256xbf16>, vector<256x256xbf16>, vector<32x256xf32> -> vector<32x256xf32>
    %7 = arith.addf %3, %6 : vector<32x256xf32>
    %c0_6 = arith.constant 0 : index
    %c0_7 = arith.constant 0 : index
    %8 = vector.load %arg7[%c0_6, %c0_7] : memref<32x256xf32, #tpu.memory_space<vmem>>, vector<32x256xf32>
    tpu.vector_store %arg7[%c0_6, %c0_7], %7 {strides = array<i32>} : memref<32x256xf32, #tpu.memory_space<vmem>>, vector<32x256xf32>,
    %c0_i32_8 = arith.constant 0 : i32
    %9 = arith.cmpi eq, %arg2, %c0_i32_8 : i32
    %10 = arith.extui %9 : i1 to i32
    %c0_i32_9 = arith.constant 0 : i32
    %11 = arith.cmpi ne, %10, %c0_i32_9 : i32
    scf.if %11 {
      %c0_10 = arith.constant 0 : index
      %c0_11 = arith.constant 0 : index
      %12 = vector.load %arg7[%c0_10, %c0_11] : memref<32x256xf32, #tpu.memory_space<vmem>>, vector<32x256xf32>
      %c0_12 = arith.constant 0 : index
      %c0_13 = arith.constant 0 : index
      %13 = vector.load %arg5[%c0_12, %c0_13] : memref<1x256xf32, #tpu.memory_space<vmem>>, vector<1x256xf32>
      %14 = vector.broadcast %13 : vector<1x256xf32> to vector<32x256xf32>
      %15 = arith.addf %12, %14 : vector<32x256xf32>
      %16 = arith.truncf %15 : vector<32x256xf32> to vector<32x256xbf16>
      %c0_14 = arith.constant 0 : index
      %c0_15 = arith.constant 0 : index
      %17 = vector.load %arg6[%c0_14, %c0_15] : memref<32x256xbf16, #tpu.memory_space<vmem>>, vector<32x256xbf16>
      tpu.vector_store %arg6[%c0_14, %c0_15], %16 {strides = array<i32>} : memref<32x256xbf16, #tpu.memory_space<vmem>>, vector<32x256xbf16>,
    } else {
    }
    return
  }
  func.func @transform_0(%arg0: i32, %arg1: i32, %arg2: i32) -> (i32, i32) {
    %c0_i32 = arith.constant 0 : i32
    return %arg0, %arg2 : i32, i32
  }
  func.func @transform_1(%arg0: i32, %arg1: i32, %arg2: i32) -> (i32, i32) {
    %c0_i32 = arith.constant 0 : i32
    return %arg2, %arg1 : i32, i32
  }
  func.func @transform_2(%arg0: i32, %arg1: i32, %arg2: i32) -> (i32, i32) {
    %c0_i32 = arith.constant 0 : i32
    %c0_i32_0 = arith.constant 0 : i32
    return %c0_i32, %arg1 : i32, i32
  }
  func.func @transform_3(%arg0: i32, %arg1: i32, %arg2: i32) -> (i32, i32) {
    %c0_i32 = arith.constant 0 : i32
    return %arg0, %arg1 : i32, i32
  }
}

module attributes {stable_mosaic.version = 11 : i64} {
  func.func @_flash_attn_kernel(%arg0: i32, %arg1: i32, %arg2: memref<1x4x16x64xbf16, #tpu.memory_space<vmem>>, %arg3: memref<1x4x16x64xbf16, #tpu.memory_space<vmem>>, %arg4: memref<1x4x16x64xbf16, #tpu.memory_space<vmem>>, %arg5: memref<1x4x16x64xf32, #tpu.memory_space<vmem>>, %arg6: memref<4x16x1xf32, #tpu.memory_space<vmem>>, %arg7: memref<4x16x1xf32, #tpu.memory_space<vmem>>, %arg8: memref<4x16x64xf32, #tpu.memory_space<vmem>>) attributes {dimension_semantics = [#tpu.dimension_semantics<parallel>, #tpu.dimension_semantics<arbitrary>], iteration_bounds = array<i64: 2, 1>, scalar_prefetch = 0 : i64, scratch_operands = 3 : i64, tpu.core_type = #tpu.core_type<tc>, window_params = [{transform_indices = @transform_0, window_bounds = array<i64: 1, 4, 16, 64>}, {transform_indices = @transform_1, window_bounds = array<i64: 1, 4, 16, 64>}, {transform_indices = @transform_2, window_bounds = array<i64: 1, 4, 16, 64>}, {transform_indices = @transform_3, window_bounds = array<i64: 1, 4, 16, 64>}]} {
    %c0_i32 = arith.constant 0 : i32
    %0 = arith.cmpi eq, %arg1, %c0_i32 : i32
    %1 = arith.extui %0 : i1 to i32
    %c0_i32_0 = arith.constant 0 : i32
    %2 = arith.cmpi ne, %1, %c0_i32_0 : i32
    scf.if %2 {
      %cst_36 = arith.constant -1.000000e+30 : f32
      %38 = vector.broadcast %cst_36 : f32 to vector<4x16x1xf32>
      %c0_37 = arith.constant 0 : index
      %c0_38 = arith.constant 0 : index
      %c0_39 = arith.constant 0 : index
      %39 = vector.load %arg6[%c0_37, %c0_38, %c0_39] : memref<4x16x1xf32, #tpu.memory_space<vmem>>, vector<4x16x1xf32>
      tpu.vector_store %arg6[%c0_37, %c0_38, %c0_39], %38 {strides = array<i32>} : memref<4x16x1xf32, #tpu.memory_space<vmem>>, vector<4x16x1xf32>,
      %cst_40 = arith.constant 0.000000e+00 : f32
      %40 = vector.broadcast %cst_40 : f32 to vector<4x16x1xf32>
      %c0_41 = arith.constant 0 : index
      %c0_42 = arith.constant 0 : index
      %c0_43 = arith.constant 0 : index
      %41 = vector.load %arg7[%c0_41, %c0_42, %c0_43] : memref<4x16x1xf32, #tpu.memory_space<vmem>>, vector<4x16x1xf32>
      tpu.vector_store %arg7[%c0_41, %c0_42, %c0_43], %40 {strides = array<i32>} : memref<4x16x1xf32, #tpu.memory_space<vmem>>, vector<4x16x1xf32>,
      %cst_44 = arith.constant 0.000000e+00 : f32
      %42 = vector.broadcast %cst_44 : f32 to vector<4x16x64xf32>
      %c0_45 = arith.constant 0 : index
      %c0_46 = arith.constant 0 : index
      %c0_47 = arith.constant 0 : index
      %43 = vector.load %arg8[%c0_45, %c0_46, %c0_47] : memref<4x16x64xf32, #tpu.memory_space<vmem>>, vector<4x16x64xf32>
      tpu.vector_store %arg8[%c0_45, %c0_46, %c0_47], %42 {strides = array<i32>} : memref<4x16x64xf32, #tpu.memory_space<vmem>>, vector<4x16x64xf32>,
    } else {
    }
    %c0 = arith.constant 0 : index
    %c0_1 = arith.constant 0 : index
    %c0_2 = arith.constant 0 : index
    %c0_3 = arith.constant 0 : index
    %3 = vector.load %arg2[%c0, %c0_1, %c0_2, %c0_3] : memref<1x4x16x64xbf16, #tpu.memory_space<vmem>>, vector<1x4x16x64xbf16>
    %4 = vector.shape_cast %3 : vector<1x4x16x64xbf16> to vector<4x16x64xbf16>
    %c0_4 = arith.constant 0 : index
    %c0_5 = arith.constant 0 : index
    %c0_6 = arith.constant 0 : index
    %c0_7 = arith.constant 0 : index
    %5 = vector.load %arg3[%c0_4, %c0_5, %c0_6, %c0_7] : memref<1x4x16x64xbf16, #tpu.memory_space<vmem>>, vector<1x4x16x64xbf16>
    %6 = vector.shape_cast %5 : vector<1x4x16x64xbf16> to vector<4x16x64xbf16>
    %c0_8 = arith.constant 0 : index
    %c0_9 = arith.constant 0 : index
    %c0_10 = arith.constant 0 : index
    %c0_11 = arith.constant 0 : index
    %7 = vector.load %arg4[%c0_8, %c0_9, %c0_10, %c0_11] : memref<1x4x16x64xbf16, #tpu.memory_space<vmem>>, vector<1x4x16x64xbf16>
    %8 = vector.shape_cast %7 : vector<1x4x16x64xbf16> to vector<4x16x64xbf16>
    "tpu.trace_start"() <{level = 10 : i32, message = "hqd,hkd->hqk"}> : () -> ()
    %cst = arith.constant dense<0.000000e+00> : vector<4x16x16xf32>
    %9 = tpu.matmul %4, %6, %cst {dimension_numbers = #tpu.dot_dimension_numbers<[2], [2], [1], [1], [0, 0, 0, 1, 1, 1], [0], [0]>} : vector<4x16x64xbf16>, vector<4x16x64xbf16>, vector<4x16x16xf32> -> vector<4x16x16xf32>
    "tpu.trace_stop"() : () -> ()
    %cst_12 = arith.constant 1.250000e-01 : f32
    %10 = vector.broadcast %cst_12 : f32 to vector<4x16x16xf32>
    %11 = arith.mulf %9, %10 : vector<4x16x16xf32>
    %c0_13 = arith.constant 0 : index
    %c0_14 = arith.constant 0 : index
    %c0_15 = arith.constant 0 : index
    %12 = vector.load %arg6[%c0_13, %c0_14, %c0_15] : memref<4x16x1xf32, #tpu.memory_space<vmem>>, vector<4x16x1xf32>
    %cst_16 = arith.constant dense<0xFF800000> : vector<4x16xf32>
    %13 = vector.multi_reduction <maximumf>, %11, %cst_16 [2] : vector<4x16x16xf32> to vector<4x16xf32>
    %14 = vector.shape_cast %13 : vector<4x16xf32> to vector<4x16x1xf32>
    %15 = arith.maximumf %12, %14 : vector<4x16x1xf32>
    %16 = arith.subf %12, %15 : vector<4x16x1xf32>
    %17 = math.exp %16 : vector<4x16x1xf32>
    %18 = vector.broadcast %15 : vector<4x16x1xf32> to vector<4x16x16xf32>
    %19 = arith.subf %11, %18 : vector<4x16x16xf32>
    %20 = math.exp %19 : vector<4x16x16xf32>
    %c0_17 = arith.constant 0 : index
    %c0_18 = arith.constant 0 : index
    %c0_19 = arith.constant 0 : index
    %21 = vector.load %arg7[%c0_17, %c0_18, %c0_19] : memref<4x16x1xf32, #tpu.memory_space<vmem>>, vector<4x16x1xf32>
    %22 = arith.mulf %17, %21 : vector<4x16x1xf32>
    %cst_20 = arith.constant dense<0.000000e+00> : vector<4x16xf32>
    %23 = vector.multi_reduction <add>, %20, %cst_20 [2] : vector<4x16x16xf32> to vector<4x16xf32>
    %24 = vector.shape_cast %23 : vector<4x16xf32> to vector<4x16x1xf32>
    %25 = arith.addf %22, %24 : vector<4x16x1xf32>
    %c0_21 = arith.constant 0 : index
    %c0_22 = arith.constant 0 : index
    %c0_23 = arith.constant 0 : index
    %26 = vector.load %arg7[%c0_21, %c0_22, %c0_23] : memref<4x16x1xf32, #tpu.memory_space<vmem>>, vector<4x16x1xf32>
    tpu.vector_store %arg7[%c0_21, %c0_22, %c0_23], %25 {strides = array<i32>} : memref<4x16x1xf32, #tpu.memory_space<vmem>>, vector<4x16x1xf32>,
    %c0_24 = arith.constant 0 : index
    %c0_25 = arith.constant 0 : index
    %c0_26 = arith.constant 0 : index
    %27 = vector.load %arg8[%c0_24, %c0_25, %c0_26] : memref<4x16x64xf32, #tpu.memory_space<vmem>>, vector<4x16x64xf32>
    %28 = vector.broadcast %17 : vector<4x16x1xf32> to vector<4x16x64xf32>
    %29 = arith.mulf %28, %27 : vector<4x16x64xf32>
    %30 = arith.truncf %20 : vector<4x16x16xf32> to vector<4x16x16xbf16>
    "tpu.trace_start"() <{level = 10 : i32, message = "hqk,hkd->hqd"}> : () -> ()
    %cst_27 = arith.constant dense<0.000000e+00> : vector<4x16x64xf32>
    %31 = tpu.matmul %30, %8, %cst_27 {dimension_numbers = #tpu.dot_dimension_numbers<[2], [1], [1], [2], [0, 0, 0, 1, 1, 2], [0], [0]>} : vector<4x16x16xbf16>, vector<4x16x64xbf16>, vector<4x16x64xf32> -> vector<4x16x64xf32>
    "tpu.trace_stop"() : () -> ()
    %32 = arith.addf %29, %31 : vector<4x16x64xf32>
    %c0_28 = arith.constant 0 : index
    %c0_29 = arith.constant 0 : index
    %c0_30 = arith.constant 0 : index
    %33 = vector.load %arg8[%c0_28, %c0_29, %c0_30] : memref<4x16x64xf32, #tpu.memory_space<vmem>>, vector<4x16x64xf32>
    tpu.vector_store %arg8[%c0_28, %c0_29, %c0_30], %32 {strides = array<i32>} : memref<4x16x64xf32, #tpu.memory_space<vmem>>, vector<4x16x64xf32>,
    %c0_31 = arith.constant 0 : index
    %c0_32 = arith.constant 0 : index
    %c0_33 = arith.constant 0 : index
    %34 = vector.load %arg6[%c0_31, %c0_32, %c0_33] : memref<4x16x1xf32, #tpu.memory_space<vmem>>, vector<4x16x1xf32>
    tpu.vector_store %arg6[%c0_31, %c0_32, %c0_33], %15 {strides = array<i32>} : memref<4x16x1xf32, #tpu.memory_space<vmem>>, vector<4x16x1xf32>,
    %c0_i32_34 = arith.constant 0 : i32
    %35 = arith.cmpi eq, %arg1, %c0_i32_34 : i32
    %36 = arith.extui %35 : i1 to i32
    %c0_i32_35 = arith.constant 0 : i32
    %37 = arith.cmpi ne, %36, %c0_i32_35 : i32
    scf.if %37 {
      %c0_36 = arith.constant 0 : index
      %c0_37 = arith.constant 0 : index
      %c0_38 = arith.constant 0 : index
      %38 = vector.load %arg7[%c0_36, %c0_37, %c0_38] : memref<4x16x1xf32, #tpu.memory_space<vmem>>, vector<4x16x1xf32>
      %39 = tpu.reciprocal %38 {approx = true} : vector<4x16x1xf32> -> vector<4x16x1xf32>
      %c0_39 = arith.constant 0 : index
      %c0_40 = arith.constant 0 : index
      %c0_41 = arith.constant 0 : index
      %40 = vector.load %arg8[%c0_39, %c0_40, %c0_41] : memref<4x16x64xf32, #tpu.memory_space<vmem>>, vector<4x16x64xf32>
      %41 = vector.broadcast %39 : vector<4x16x1xf32> to vector<4x16x64xf32>
      %42 = arith.mulf %40, %41 : vector<4x16x64xf32>
      %c0_42 = arith.constant 0 : index
      %c0_43 = arith.constant 0 : index
      %c0_44 = arith.constant 0 : index
      %c0_45 = arith.constant 0 : index
      %43 = vector.load %arg5[%c0_42, %c0_43, %c0_44, %c0_45] : memref<1x4x16x64xf32, #tpu.memory_space<vmem>>, vector<1x4x16x64xf32>
      %44 = vector.shape_cast %43 : vector<1x4x16x64xf32> to vector<4x16x64xf32>
      %45 = vector.shape_cast %42 : vector<4x16x64xf32> to vector<1x4x16x64xf32>
      tpu.vector_store %arg5[%c0_42, %c0_43, %c0_44, %c0_45], %45 {strides = array<i32>} : memref<1x4x16x64xf32, #tpu.memory_space<vmem>>, vector<1x4x16x64xf32>,
    } else {
    }
    return
  }
  func.func @transform_0(%arg0: i32, %arg1: i32) -> (i32, i32, i32, i32) {
    %c0_i32 = arith.constant 0 : i32
    %c0_i32_0 = arith.constant 0 : i32
    %c0_i32_1 = arith.constant 0 : i32
    %c0_i32_2 = arith.constant 0 : i32
    return %arg0, %c0_i32, %c0_i32_0, %c0_i32_1 : i32, i32, i32, i32
  }
  func.func @transform_1(%arg0: i32, %arg1: i32) -> (i32, i32, i32, i32) {
    %c0_i32 = arith.constant 0 : i32
    %c0_i32_0 = arith.constant 0 : i32
    %c0_i32_1 = arith.constant 0 : i32
    return %arg0, %c0_i32, %arg1, %c0_i32_0 : i32, i32, i32, i32
  }
  func.func @transform_2(%arg0: i32, %arg1: i32) -> (i32, i32, i32, i32) {
    %c0_i32 = arith.constant 0 : i32
    %c0_i32_0 = arith.constant 0 : i32
    %c0_i32_1 = arith.constant 0 : i32
    return %arg0, %c0_i32, %arg1, %c0_i32_0 : i32, i32, i32, i32
  }
  func.func @transform_3(%arg0: i32, %arg1: i32) -> (i32, i32, i32, i32) {
    %c0_i32 = arith.constant 0 : i32
    %c0_i32_0 = arith.constant 0 : i32
    %c0_i32_1 = arith.constant 0 : i32
    %c0_i32_2 = arith.constant 0 : i32
    return %arg0, %c0_i32, %c0_i32_0, %c0_i32_1 : i32, i32, i32, i32
  }
}

module attributes {stable_mosaic.version = 11 : i64} {
  func.func @_mm_kernel(%arg0: i32, %arg1: i32, %arg2: i32, %arg3: memref<32x256xbf16, #tpu.memory_space<vmem>>, %arg4: memref<256x256xbf16, #tpu.memory_space<vmem>>, %arg5: memref<1x256xf32, #tpu.memory_space<vmem>>, %arg6: memref<32x256xf32, #tpu.memory_space<vmem>>, %arg7: memref<32x256xf32, #tpu.memory_space<vmem>>) attributes {dimension_semantics = [#tpu.dimension_semantics<parallel>, #tpu.dimension_semantics<parallel>, #tpu.dimension_semantics<arbitrary>], iteration_bounds = array<i64: 1, 1, 1>, scalar_prefetch = 0 : i64, scratch_operands = 1 : i64, tpu.core_type = #tpu.core_type<tc>, window_params = [{transform_indices = @transform_0, window_bounds = array<i64: 32, 256>}, {transform_indices = @transform_1, window_bounds = array<i64: 256, 256>}, {transform_indices = @transform_2, window_bounds = array<i64: 1, 256>}, {transform_indices = @transform_3, window_bounds = array<i64: 32, 256>}]} {
    %c0_i32 = arith.constant 0 : i32
    %0 = arith.cmpi eq, %arg2, %c0_i32 : i32
    %1 = arith.extui %0 : i1 to i32
    %c0_i32_0 = arith.constant 0 : i32
    %2 = arith.cmpi ne, %1, %c0_i32_0 : i32
    scf.if %2 {
      %cst_10 = arith.constant 0.000000e+00 : f32
      %12 = vector.broadcast %cst_10 : f32 to vector<32x256xf32>
      %c0_11 = arith.constant 0 : index
      %c0_12 = arith.constant 0 : index
      %13 = vector.load %arg7[%c0_11, %c0_12] : memref<32x256xf32, #tpu.memory_space<vmem>>, vector<32x256xf32>
      tpu.vector_store %arg7[%c0_11, %c0_12], %12 {strides = array<i32>} : memref<32x256xf32, #tpu.memory_space<vmem>>, vector<32x256xf32>,
    } else {
    }
    %c0 = arith.constant 0 : index
    %c0_1 = arith.constant 0 : index
    %3 = vector.load %arg7[%c0, %c0_1] : memref<32x256xf32, #tpu.memory_space<vmem>>, vector<32x256xf32>
    %c0_2 = arith.constant 0 : index
    %c0_3 = arith.constant 0 : index
    %4 = vector.load %arg3[%c0_2, %c0_3] : memref<32x256xbf16, #tpu.memory_space<vmem>>, vector<32x256xbf16>
    %c0_4 = arith.constant 0 : index
    %c0_5 = arith.constant 0 : index
    %5 = vector.load %arg4[%c0_4, %c0_5] : memref<256x256xbf16, #tpu.memory_space<vmem>>, vector<256x256xbf16>
    %cst = arith.constant dense<0.000000e+00> : vector<32x256xf32>
    %6 = tpu.matmul %4, %5, %cst {dimension_numbers = #tpu.dot_dimension_numbers<[1], [0], [0], [1], [0, 0, 1, 1], [], []>} : vector<32x256xbf16>, vector<256x256xbf16>, vector<32x256xf32> -> vector<32x256xf32>
    %7 = arith.addf %3, %6 : vector<32x256xf32>
    %c0_6 = arith.constant 0 : index
    %c0_7 = arith.constant 0 : index
    %8 = vector.load %arg7[%c0_6, %c0_7] : memref<32x256xf32, #tpu.memory_space<vmem>>, vector<32x256xf32>
    tpu.vector_store %arg7[%c0_6, %c0_7], %7 {strides = array<i32>} : memref<32x256xf32, #tpu.memory_space<vmem>>, vector<32x256xf32>,
    %c0_i32_8 = arith.constant 0 : i32
    %9 = arith.cmpi eq, %arg2, %c0_i32_8 : i32
    %10 = arith.extui %9 : i1 to i32
    %c0_i32_9 = arith.constant 0 : i32
    %11 = arith.cmpi ne, %10, %c0_i32_9 : i32
    scf.if %11 {
      %c0_10 = arith.constant 0 : index
      %c0_11 = arith.constant 0 : index
      %12 = vector.load %arg7[%c0_10, %c0_11] : memref<32x256xf32, #tpu.memory_space<vmem>>, vector<32x256xf32>
      %c0_12 = arith.constant 0 : index
      %c0_13 = arith.constant 0 : index
      %13 = vector.load %arg5[%c0_12, %c0_13] : memref<1x256xf32, #tpu.memory_space<vmem>>, vector<1x256xf32>
      %14 = vector.broadcast %13 : vector<1x256xf32> to vector<32x256xf32>
      %15 = arith.addf %12, %14 : vector<32x256xf32>
      %c0_14 = arith.constant 0 : index
      %c0_15 = arith.constant 0 : index
      %16 = vector.load %arg6[%c0_14, %c0_15] : memref<32x256xf32, #tpu.memory_space<vmem>>, vector<32x256xf32>
      tpu.vector_store %arg6[%c0_14, %c0_15], %15 {strides = array<i32>} : memref<32x256xf32, #tpu.memory_space<vmem>>, vector<32x256xf32>,
    } else {
    }
    return
  }
  func.func @transform_0(%arg0: i32, %arg1: i32, %arg2: i32) -> (i32, i32) {
    %c0_i32 = arith.constant 0 : i32
    return %arg0, %arg2 : i32, i32
  }
  func.func @transform_1(%arg0: i32, %arg1: i32, %arg2: i32) -> (i32, i32) {
    %c0_i32 = arith.constant 0 : i32
    return %arg2, %arg1 : i32, i32
  }
  func.func @transform_2(%arg0: i32, %arg1: i32, %arg2: i32) -> (i32, i32) {
    %c0_i32 = arith.constant 0 : i32
    %c0_i32_0 = arith.constant 0 : i32
    return %c0_i32, %arg1 : i32, i32
  }
  func.func @transform_3(%arg0: i32, %arg1: i32, %arg2: i32) -> (i32, i32) {
    %c0_i32 = arith.constant 0 : i32
    return %arg0, %arg1 : i32, i32
  }
}

module attributes {stable_mosaic.version = 11 : i64} {
  func.func @_mm_kernel(%arg0: i32, %arg1: i32, %arg2: i32, %arg3: memref<32x256xbf16, #tpu.memory_space<vmem>>, %arg4: memref<256x256xbf16, #tpu.memory_space<vmem>>, %arg5: memref<1x256xf32, #tpu.memory_space<vmem>>, %arg6: memref<32x256xf32, #tpu.memory_space<vmem>>, %arg7: memref<32x256xf32, #tpu.memory_space<vmem>>) attributes {dimension_semantics = [#tpu.dimension_semantics<parallel>, #tpu.dimension_semantics<parallel>, #tpu.dimension_semantics<arbitrary>], iteration_bounds = array<i64: 1, 4, 1>, scalar_prefetch = 0 : i64, scratch_operands = 1 : i64, tpu.core_type = #tpu.core_type<tc>, window_params = [{transform_indices = @transform_0, window_bounds = array<i64: 32, 256>}, {transform_indices = @transform_1, window_bounds = array<i64: 256, 256>}, {transform_indices = @transform_2, window_bounds = array<i64: 1, 256>}, {transform_indices = @transform_3, window_bounds = array<i64: 32, 256>}]} {
    %c0_i32 = arith.constant 0 : i32
    %0 = arith.cmpi eq, %arg2, %c0_i32 : i32
    %1 = arith.extui %0 : i1 to i32
    %c0_i32_0 = arith.constant 0 : i32
    %2 = arith.cmpi ne, %1, %c0_i32_0 : i32
    scf.if %2 {
      %cst_10 = arith.constant 0.000000e+00 : f32
      %12 = vector.broadcast %cst_10 : f32 to vector<32x256xf32>
      %c0_11 = arith.constant 0 : index
      %c0_12 = arith.constant 0 : index
      %13 = vector.load %arg7[%c0_11, %c0_12] : memref<32x256xf32, #tpu.memory_space<vmem>>, vector<32x256xf32>
      tpu.vector_store %arg7[%c0_11, %c0_12], %12 {strides = array<i32>} : memref<32x256xf32, #tpu.memory_space<vmem>>, vector<32x256xf32>,
    } else {
    }
    %c0 = arith.constant 0 : index
    %c0_1 = arith.constant 0 : index
    %3 = vector.load %arg7[%c0, %c0_1] : memref<32x256xf32, #tpu.memory_space<vmem>>, vector<32x256xf32>
    %c0_2 = arith.constant 0 : index
    %c0_3 = arith.constant 0 : index
    %4 = vector.load %arg3[%c0_2, %c0_3] : memref<32x256xbf16, #tpu.memory_space<vmem>>, vector<32x256xbf16>
    %c0_4 = arith.constant 0 : index
    %c0_5 = arith.constant 0 : index
    %5 = vector.load %arg4[%c0_4, %c0_5] : memref<256x256xbf16, #tpu.memory_space<vmem>>, vector<256x256xbf16>
    %cst = arith.constant dense<0.000000e+00> : vector<32x256xf32>
    %6 = tpu.matmul %4, %5, %cst {dimension_numbers = #tpu.dot_dimension_numbers<[1], [0], [0], [1], [0, 0, 1, 1], [], []>} : vector<32x256xbf16>, vector<256x256xbf16>, vector<32x256xf32> -> vector<32x256xf32>
    %7 = arith.addf %3, %6 : vector<32x256xf32>
    %c0_6 = arith.constant 0 : index
    %c0_7 = arith.constant 0 : index
    %8 = vector.load %arg7[%c0_6, %c0_7] : memref<32x256xf32, #tpu.memory_space<vmem>>, vector<32x256xf32>
    tpu.vector_store %arg7[%c0_6, %c0_7], %7 {strides = array<i32>} : memref<32x256xf32, #tpu.memory_space<vmem>>, vector<32x256xf32>,
    %c0_i32_8 = arith.constant 0 : i32
    %9 = arith.cmpi eq, %arg2, %c0_i32_8 : i32
    %10 = arith.extui %9 : i1 to i32
    %c0_i32_9 = arith.constant 0 : i32
    %11 = arith.cmpi ne, %10, %c0_i32_9 : i32
    scf.if %11 {
      %c0_10 = arith.constant 0 : index
      %c0_11 = arith.constant 0 : index
      %12 = vector.load %arg7[%c0_10, %c0_11] : memref<32x256xf32, #tpu.memory_space<vmem>>, vector<32x256xf32>
      %c0_12 = arith.constant 0 : index
      %c0_13 = arith.constant 0 : index
      %13 = vector.load %arg5[%c0_12, %c0_13] : memref<1x256xf32, #tpu.memory_space<vmem>>, vector<1x256xf32>
      %14 = vector.broadcast %13 : vector<1x256xf32> to vector<32x256xf32>
      %15 = arith.addf %12, %14 : vector<32x256xf32>
      %16 = arith.mulf %15, %15 : vector<32x256xf32>
      %17 = arith.mulf %15, %16 : vector<32x256xf32>
      %cst_14 = arith.constant 4.471500e-02 : f32
      %18 = vector.broadcast %cst_14 : f32 to vector<32x256xf32>
      %19 = arith.mulf %18, %17 : vector<32x256xf32>
      %20 = arith.addf %15, %19 : vector<32x256xf32>
      %cst_15 = arith.constant 0.797884583 : f32
      %21 = vector.broadcast %cst_15 : f32 to vector<32x256xf32>
      %22 = arith.mulf %21, %20 : vector<32x256xf32>
      %23 = math.tanh %22 : vector<32x256xf32>
      %cst_16 = arith.constant 1.000000e+00 : f32
      %24 = vector.broadcast %cst_16 : f32 to vector<32x256xf32>
      %25 = arith.addf %24, %23 : vector<32x256xf32>
      %cst_17 = arith.constant 5.000000e-01 : f32
      %26 = vector.broadcast %cst_17 : f32 to vector<32x256xf32>
      %27 = arith.mulf %26, %25 : vector<32x256xf32>
      %28 = arith.mulf %15, %27 : vector<32x256xf32>
      %c0_18 = arith.constant 0 : index
      %c0_19 = arith.constant 0 : index
      %29 = vector.load %arg6[%c0_18, %c0_19] : memref<32x256xf32, #tpu.memory_space<vmem>>, vector<32x256xf32>
      tpu.vector_store %arg6[%c0_18, %c0_19], %28 {strides = array<i32>} : memref<32x256xf32, #tpu.memory_space<vmem>>, vector<32x256xf32>,
    } else {
    }
    return
  }
  func.func @transform_0(%arg0: i32, %arg1: i32, %arg2: i32) -> (i32, i32) {
    %c0_i32 = arith.constant 0 : i32
    return %arg0, %arg2 : i32, i32
  }
  func.func @transform_1(%arg0: i32, %arg1: i32, %arg2: i32) -> (i32, i32) {
    %c0_i32 = arith.constant 0 : i32
    return %arg2, %arg1 : i32, i32
  }
  func.func @transform_2(%arg0: i32, %arg1: i32, %arg2: i32) -> (i32, i32) {
    %c0_i32 = arith.constant 0 : i32
    %c0_i32_0 = arith.constant 0 : i32
    return %c0_i32, %arg1 : i32, i32
  }
  func.func @transform_3(%arg0: i32, %arg1: i32, %arg2: i32) -> (i32, i32) {
    %c0_i32 = arith.constant 0 : i32
    return %arg0, %arg1 : i32, i32
  }
}

module attributes {stable_mosaic.version = 11 : i64} {
  func.func @_mm_kernel(%arg0: i32, %arg1: i32, %arg2: i32, %arg3: memref<32x512xbf16, #tpu.memory_space<vmem>>, %arg4: memref<512x256xbf16, #tpu.memory_space<vmem>>, %arg5: memref<1x256xf32, #tpu.memory_space<vmem>>, %arg6: memref<32x256xf32, #tpu.memory_space<vmem>>, %arg7: memref<32x256xf32, #tpu.memory_space<vmem>>) attributes {dimension_semantics = [#tpu.dimension_semantics<parallel>, #tpu.dimension_semantics<parallel>, #tpu.dimension_semantics<arbitrary>], iteration_bounds = array<i64: 1, 1, 2>, scalar_prefetch = 0 : i64, scratch_operands = 1 : i64, tpu.core_type = #tpu.core_type<tc>, window_params = [{transform_indices = @transform_0, window_bounds = array<i64: 32, 512>}, {transform_indices = @transform_1, window_bounds = array<i64: 512, 256>}, {transform_indices = @transform_2, window_bounds = array<i64: 1, 256>}, {transform_indices = @transform_3, window_bounds = array<i64: 32, 256>}]} {
    %c0_i32 = arith.constant 0 : i32
    %0 = arith.cmpi eq, %arg2, %c0_i32 : i32
    %1 = arith.extui %0 : i1 to i32
    %c0_i32_0 = arith.constant 0 : i32
    %2 = arith.cmpi ne, %1, %c0_i32_0 : i32
    scf.if %2 {
      %cst_9 = arith.constant 0.000000e+00 : f32
      %12 = vector.broadcast %cst_9 : f32 to vector<32x256xf32>
      %c0_10 = arith.constant 0 : index
      %c0_11 = arith.constant 0 : index
      %13 = vector.load %arg7[%c0_10, %c0_11] : memref<32x256xf32, #tpu.memory_space<vmem>>, vector<32x256xf32>
      tpu.vector_store %arg7[%c0_10, %c0_11], %12 {strides = array<i32>} : memref<32x256xf32, #tpu.memory_space<vmem>>, vector<32x256xf32>,
    } else {
    }
    %c0 = arith.constant 0 : index
    %c0_1 = arith.constant 0 : index
    %3 = vector.load %arg7[%c0, %c0_1] : memref<32x256xf32, #tpu.memory_space<vmem>>, vector<32x256xf32>
    %c0_2 = arith.constant 0 : index
    %c0_3 = arith.constant 0 : index
    %4 = vector.load %arg3[%c0_2, %c0_3] : memref<32x512xbf16, #tpu.memory_space<vmem>>, vector<32x512xbf16>
    %c0_4 = arith.constant 0 : index
    %c0_5 = arith.constant 0 : index
    %5 = vector.load %arg4[%c0_4, %c0_5] : memref<512x256xbf16, #tpu.memory_space<vmem>>, vector<512x256xbf16>
    %cst = arith.constant dense<0.000000e+00> : vector<32x256xf32>
    %6 = tpu.matmul %4, %5, %cst {dimension_numbers = #tpu.dot_dimension_numbers<[1], [0], [0], [1], [0, 0, 1, 1], [], []>} : vector<32x512xbf16>, vector<512x256xbf16>, vector<32x256xf32> -> vector<32x256xf32>
    %7 = arith.addf %3, %6 : vector<32x256xf32>
    %c0_6 = arith.constant 0 : index
    %c0_7 = arith.constant 0 : index
    %8 = vector.load %arg7[%c0_6, %c0_7] : memref<32x256xf32, #tpu.memory_space<vmem>>, vector<32x256xf32>
    tpu.vector_store %arg7[%c0_6, %c0_7], %7 {strides = array<i32>} : memref<32x256xf32, #tpu.memory_space<vmem>>, vector<32x256xf32>,
    %c1_i32 = arith.constant 1 : i32
    %9 = arith.cmpi eq, %arg2, %c1_i32 : i32
    %10 = arith.extui %9 : i1 to i32
    %c0_i32_8 = arith.constant 0 : i32
    %11 = arith.cmpi ne, %10, %c0_i32_8 : i32
    scf.if %11 {
      %c0_9 = arith.constant 0 : index
      %c0_10 = arith.constant 0 : index
      %12 = vector.load %arg7[%c0_9, %c0_10] : memref<32x256xf32, #tpu.memory_space<vmem>>, vector<32x256xf32>
      %c0_11 = arith.constant 0 : index
      %c0_12 = arith.constant 0 : index
      %13 = vector.load %arg5[%c0_11, %c0_12] : memref<1x256xf32, #tpu.memory_space<vmem>>, vector<1x256xf32>
      %14 = vector.broadcast %13 : vector<1x256xf32> to vector<32x256xf32>
      %15 = arith.addf %12, %14 : vector<32x256xf32>
      %c0_13 = arith.constant 0 : index
      %c0_14 = arith.constant 0 : index
      %16 = vector.load %arg6[%c0_13, %c0_14] : memref<32x256xf32, #tpu.memory_space<vmem>>, vector<32x256xf32>
      tpu.vector_store %arg6[%c0_13, %c0_14], %15 {strides = array<i32>} : memref<32x256xf32, #tpu.memory_space<vmem>>, vector<32x256xf32>,
    } else {
    }
    return
  }
  func.func @transform_0(%arg0: i32, %arg1: i32, %arg2: i32) -> (i32, i32) {
    %c0_i32 = arith.constant 0 : i32
    return %arg0, %arg2 : i32, i32
  }
  func.func @transform_1(%arg0: i32, %arg1: i32, %arg2: i32) -> (i32, i32) {
    %c0_i32 = arith.constant 0 : i32
    return %arg2, %arg1 : i32, i32
  }
  func.func @transform_2(%arg0: i32, %arg1: i32, %arg2: i32) -> (i32, i32) {
    %c0_i32 = arith.constant 0 : i32
    %c0_i32_0 = arith.constant 0 : i32
    return %c0_i32, %arg1 : i32, i32
  }
  func.func @transform_3(%arg0: i32, %arg1: i32, %arg2: i32) -> (i32, i32) {
    %c0_i32 = arith.constant 0 : i32
    return %arg0, %arg1 : i32, i32
  }
}

module attributes {stable_mosaic.version = 11 : i64} {
  func.func @_mm_kernel(%arg0: i32, %arg1: i32, %arg2: i32, %arg3: memref<32x384xbf16, #tpu.memory_space<vmem>>, %arg4: memref<384x256xbf16, #tpu.memory_space<vmem>>, %arg5: memref<1x256xf32, #tpu.memory_space<vmem>>, %arg6: memref<32x256xf32, #tpu.memory_space<vmem>>, %arg7: memref<32x256xf32, #tpu.memory_space<vmem>>) attributes {dimension_semantics = [#tpu.dimension_semantics<parallel>, #tpu.dimension_semantics<parallel>, #tpu.dimension_semantics<arbitrary>], iteration_bounds = array<i64: 1, 1, 6>, scalar_prefetch = 0 : i64, scratch_operands = 1 : i64, tpu.core_type = #tpu.core_type<tc>, window_params = [{transform_indices = @transform_0, window_bounds = array<i64: 32, 384>}, {transform_indices = @transform_1, window_bounds = array<i64: 384, 256>}, {transform_indices = @transform_2, window_bounds = array<i64: 1, 256>}, {transform_indices = @transform_3, window_bounds = array<i64: 32, 256>}]} {
    %c0_i32 = arith.constant 0 : i32
    %0 = arith.cmpi eq, %arg2, %c0_i32 : i32
    %1 = arith.extui %0 : i1 to i32
    %c0_i32_0 = arith.constant 0 : i32
    %2 = arith.cmpi ne, %1, %c0_i32_0 : i32
    scf.if %2 {
      %cst_9 = arith.constant 0.000000e+00 : f32
      %12 = vector.broadcast %cst_9 : f32 to vector<32x256xf32>
      %c0_10 = arith.constant 0 : index
      %c0_11 = arith.constant 0 : index
      %13 = vector.load %arg7[%c0_10, %c0_11] : memref<32x256xf32, #tpu.memory_space<vmem>>, vector<32x256xf32>
      tpu.vector_store %arg7[%c0_10, %c0_11], %12 {strides = array<i32>} : memref<32x256xf32, #tpu.memory_space<vmem>>, vector<32x256xf32>,
    } else {
    }
    %c0 = arith.constant 0 : index
    %c0_1 = arith.constant 0 : index
    %3 = vector.load %arg7[%c0, %c0_1] : memref<32x256xf32, #tpu.memory_space<vmem>>, vector<32x256xf32>
    %c0_2 = arith.constant 0 : index
    %c0_3 = arith.constant 0 : index
    %4 = vector.load %arg3[%c0_2, %c0_3] : memref<32x384xbf16, #tpu.memory_space<vmem>>, vector<32x384xbf16>
    %c0_4 = arith.constant 0 : index
    %c0_5 = arith.constant 0 : index
    %5 = vector.load %arg4[%c0_4, %c0_5] : memref<384x256xbf16, #tpu.memory_space<vmem>>, vector<384x256xbf16>
    %cst = arith.constant dense<0.000000e+00> : vector<32x256xf32>
    %6 = tpu.matmul %4, %5, %cst {dimension_numbers = #tpu.dot_dimension_numbers<[1], [0], [0], [1], [0, 0, 1, 1], [], []>} : vector<32x384xbf16>, vector<384x256xbf16>, vector<32x256xf32> -> vector<32x256xf32>
    %7 = arith.addf %3, %6 : vector<32x256xf32>
    %c0_6 = arith.constant 0 : index
    %c0_7 = arith.constant 0 : index
    %8 = vector.load %arg7[%c0_6, %c0_7] : memref<32x256xf32, #tpu.memory_space<vmem>>, vector<32x256xf32>
    tpu.vector_store %arg7[%c0_6, %c0_7], %7 {strides = array<i32>} : memref<32x256xf32, #tpu.memory_space<vmem>>, vector<32x256xf32>,
    %c5_i32 = arith.constant 5 : i32
    %9 = arith.cmpi eq, %arg2, %c5_i32 : i32
    %10 = arith.extui %9 : i1 to i32
    %c0_i32_8 = arith.constant 0 : i32
    %11 = arith.cmpi ne, %10, %c0_i32_8 : i32
    scf.if %11 {
      %c0_9 = arith.constant 0 : index
      %c0_10 = arith.constant 0 : index
      %12 = vector.load %arg7[%c0_9, %c0_10] : memref<32x256xf32, #tpu.memory_space<vmem>>, vector<32x256xf32>
      %c0_11 = arith.constant 0 : index
      %c0_12 = arith.constant 0 : index
      %13 = vector.load %arg5[%c0_11, %c0_12] : memref<1x256xf32, #tpu.memory_space<vmem>>, vector<1x256xf32>
      %14 = vector.broadcast %13 : vector<1x256xf32> to vector<32x256xf32>
      %15 = arith.addf %12, %14 : vector<32x256xf32>
      %cst_13 = arith.constant 0.000000e+00 : f32
      %16 = vector.broadcast %cst_13 : f32 to vector<32x256xf32>
      %17 = arith.maximumf %15, %16 : vector<32x256xf32>
      %c0_14 = arith.constant 0 : index
      %c0_15 = arith.constant 0 : index
      %18 = vector.load %arg6[%c0_14, %c0_15] : memref<32x256xf32, #tpu.memory_space<vmem>>, vector<32x256xf32>
      tpu.vector_store %arg6[%c0_14, %c0_15], %17 {strides = array<i32>} : memref<32x256xf32, #tpu.memory_space<vmem>>, vector<32x256xf32>,
    } else {
    }
    return
  }
  func.func @transform_0(%arg0: i32, %arg1: i32, %arg2: i32) -> (i32, i32) {
    %c0_i32 = arith.constant 0 : i32
    return %arg0, %arg2 : i32, i32
  }
  func.func @transform_1(%arg0: i32, %arg1: i32, %arg2: i32) -> (i32, i32) {
    %c0_i32 = arith.constant 0 : i32
    return %arg2, %arg1 : i32, i32
  }
  func.func @transform_2(%arg0: i32, %arg1: i32, %arg2: i32) -> (i32, i32) {
    %c0_i32 = arith.constant 0 : i32
    %c0_i32_0 = arith.constant 0 : i32
    return %c0_i32, %arg1 : i32, i32
  }
  func.func @transform_3(%arg0: i32, %arg1: i32, %arg2: i32) -> (i32, i32) {
    %c0_i32 = arith.constant 0 : i32
    return %arg0, %arg1 : i32, i32
  }
}

module attributes {stable_mosaic.version = 11 : i64} {
  func.func @_mm_kernel(%arg0: i32, %arg1: i32, %arg2: i32, %arg3: memref<32x384xbf16, #tpu.memory_space<vmem>>, %arg4: memref<384x256xbf16, #tpu.memory_space<vmem>>, %arg5: memref<1x256xf32, #tpu.memory_space<vmem>>, %arg6: memref<32x256xf32, #tpu.memory_space<vmem>>, %arg7: memref<32x256xf32, #tpu.memory_space<vmem>>) attributes {dimension_semantics = [#tpu.dimension_semantics<parallel>, #tpu.dimension_semantics<parallel>, #tpu.dimension_semantics<arbitrary>], iteration_bounds = array<i64: 1, 1, 6>, scalar_prefetch = 0 : i64, scratch_operands = 1 : i64, tpu.core_type = #tpu.core_type<tc>, window_params = [{transform_indices = @transform_0, window_bounds = array<i64: 32, 384>}, {transform_indices = @transform_1, window_bounds = array<i64: 384, 256>}, {transform_indices = @transform_2, window_bounds = array<i64: 1, 256>}, {transform_indices = @transform_3, window_bounds = array<i64: 32, 256>}]} {
    %c0_i32 = arith.constant 0 : i32
    %0 = arith.cmpi eq, %arg2, %c0_i32 : i32
    %1 = arith.extui %0 : i1 to i32
    %c0_i32_0 = arith.constant 0 : i32
    %2 = arith.cmpi ne, %1, %c0_i32_0 : i32
    scf.if %2 {
      %cst_9 = arith.constant 0.000000e+00 : f32
      %12 = vector.broadcast %cst_9 : f32 to vector<32x256xf32>
      %c0_10 = arith.constant 0 : index
      %c0_11 = arith.constant 0 : index
      %13 = vector.load %arg7[%c0_10, %c0_11] : memref<32x256xf32, #tpu.memory_space<vmem>>, vector<32x256xf32>
      tpu.vector_store %arg7[%c0_10, %c0_11], %12 {strides = array<i32>} : memref<32x256xf32, #tpu.memory_space<vmem>>, vector<32x256xf32>,
    } else {
    }
    %c0 = arith.constant 0 : index
    %c0_1 = arith.constant 0 : index
    %3 = vector.load %arg7[%c0, %c0_1] : memref<32x256xf32, #tpu.memory_space<vmem>>, vector<32x256xf32>
    %c0_2 = arith.constant 0 : index
    %c0_3 = arith.constant 0 : index
    %4 = vector.load %arg3[%c0_2, %c0_3] : memref<32x384xbf16, #tpu.memory_space<vmem>>, vector<32x384xbf16>
    %c0_4 = arith.constant 0 : index
    %c0_5 = arith.constant 0 : index
    %5 = vector.load %arg4[%c0_4, %c0_5] : memref<384x256xbf16, #tpu.memory_space<vmem>>, vector<384x256xbf16>
    %cst = arith.constant dense<0.000000e+00> : vector<32x256xf32>
    %6 = tpu.matmul %4, %5, %cst {dimension_numbers = #tpu.dot_dimension_numbers<[1], [0], [0], [1], [0, 0, 1, 1], [], []>} : vector<32x384xbf16>, vector<384x256xbf16>, vector<32x256xf32> -> vector<32x256xf32>
    %7 = arith.addf %3, %6 : vector<32x256xf32>
    %c0_6 = arith.constant 0 : index
    %c0_7 = arith.constant 0 : index
    %8 = vector.load %arg7[%c0_6, %c0_7] : memref<32x256xf32, #tpu.memory_space<vmem>>, vector<32x256xf32>
    tpu.vector_store %arg7[%c0_6, %c0_7], %7 {strides = array<i32>} : memref<32x256xf32, #tpu.memory_space<vmem>>, vector<32x256xf32>,
    %c5_i32 = arith.constant 5 : i32
    %9 = arith.cmpi eq, %arg2, %c5_i32 : i32
    %10 = arith.extui %9 : i1 to i32
    %c0_i32_8 = arith.constant 0 : i32
    %11 = arith.cmpi ne, %10, %c0_i32_8 : i32
    scf.if %11 {
      %c0_9 = arith.constant 0 : index
      %c0_10 = arith.constant 0 : index
      %12 = vector.load %arg7[%c0_9, %c0_10] : memref<32x256xf32, #tpu.memory_space<vmem>>, vector<32x256xf32>
      %c0_11 = arith.constant 0 : index
      %c0_12 = arith.constant 0 : index
      %13 = vector.load %arg5[%c0_11, %c0_12] : memref<1x256xf32, #tpu.memory_space<vmem>>, vector<1x256xf32>
      %14 = vector.broadcast %13 : vector<1x256xf32> to vector<32x256xf32>
      %15 = arith.addf %12, %14 : vector<32x256xf32>
      %c0_13 = arith.constant 0 : index
      %c0_14 = arith.constant 0 : index
      %16 = vector.load %arg6[%c0_13, %c0_14] : memref<32x256xf32, #tpu.memory_space<vmem>>, vector<32x256xf32>
      tpu.vector_store %arg6[%c0_13, %c0_14], %15 {strides = array<i32>} : memref<32x256xf32, #tpu.memory_space<vmem>>, vector<32x256xf32>,
    } else {
    }
    return
  }
  func.func @transform_0(%arg0: i32, %arg1: i32, %arg2: i32) -> (i32, i32) {
    %c0_i32 = arith.constant 0 : i32
    return %arg0, %arg2 : i32, i32
  }
  func.func @transform_1(%arg0: i32, %arg1: i32, %arg2: i32) -> (i32, i32) {
    %c0_i32 = arith.constant 0 : i32
    return %arg2, %arg1 : i32, i32
  }
  func.func @transform_2(%arg0: i32, %arg1: i32, %arg2: i32) -> (i32, i32) {
    %c0_i32 = arith.constant 0 : i32
    %c0_i32_0 = arith.constant 0 : i32
    return %c0_i32, %arg1 : i32, i32
  }
  func.func @transform_3(%arg0: i32, %arg1: i32, %arg2: i32) -> (i32, i32) {
    %c0_i32 = arith.constant 0 : i32
    return %arg0, %arg1 : i32, i32
  }
}

module attributes {stable_mosaic.version = 11 : i64} {
  func.func @_pool_fc_kernel(%arg0: i32, %arg1: memref<2x16x256xf32, #tpu.memory_space<vmem>>, %arg2: memref<2x16x256xf32, #tpu.memory_space<vmem>>, %arg3: memref<256x2xf32, #tpu.memory_space<vmem>>, %arg4: memref<256x2xf32, #tpu.memory_space<vmem>>, %arg5: memref<1x2xf32, #tpu.memory_space<vmem>>, %arg6: memref<2x2xf32, #tpu.memory_space<vmem>>) attributes {dimension_semantics = [#tpu.dimension_semantics<arbitrary>], iteration_bounds = array<i64: 1>, scalar_prefetch = 0 : i64, scratch_operands = 0 : i64, tpu.core_type = #tpu.core_type<tc>, window_params = [{pipeline_mode = #tpu.pipeline_mode<synchronous>, transform_indices = @transform_0, window_bounds = array<i64: 2, 16, 256>}, {pipeline_mode = #tpu.pipeline_mode<synchronous>, transform_indices = @transform_1, window_bounds = array<i64: 2, 16, 256>}, {pipeline_mode = #tpu.pipeline_mode<synchronous>, transform_indices = @transform_2, window_bounds = array<i64: 256, 2>}, {pipeline_mode = #tpu.pipeline_mode<synchronous>, transform_indices = @transform_3, window_bounds = array<i64: 256, 2>}, {pipeline_mode = #tpu.pipeline_mode<synchronous>, transform_indices = @transform_4, window_bounds = array<i64: 1, 2>}, {pipeline_mode = #tpu.pipeline_mode<synchronous>, transform_indices = @transform_5, window_bounds = array<i64: 2, 2>}]} {
    %c0 = arith.constant 0 : index
    %c0_0 = arith.constant 0 : index
    %c0_1 = arith.constant 0 : index
    %0 = vector.load %arg1[%c0, %c0_0, %c0_1] : memref<2x16x256xf32, #tpu.memory_space<vmem>>, vector<2x16x256xf32>
    %cst = arith.constant dense<0.000000e+00> : vector<2x256xf32>
    %1 = vector.multi_reduction <add>, %0, %cst [1] : vector<2x16x256xf32> to vector<2x256xf32>
    %cst_2 = arith.constant 1.600000e+01 : f32
    %2 = vector.broadcast %cst_2 : f32 to vector<2x256xf32>
    %3 = arith.divf %1, %2 : vector<2x256xf32>
    %c0_3 = arith.constant 0 : index
    %c0_4 = arith.constant 0 : index
    %c0_5 = arith.constant 0 : index
    %4 = vector.load %arg2[%c0_3, %c0_4, %c0_5] : memref<2x16x256xf32, #tpu.memory_space<vmem>>, vector<2x16x256xf32>
    %cst_6 = arith.constant dense<0.000000e+00> : vector<2x256xf32>
    %5 = vector.multi_reduction <add>, %4, %cst_6 [1] : vector<2x16x256xf32> to vector<2x256xf32>
    %cst_7 = arith.constant 1.600000e+01 : f32
    %6 = vector.broadcast %cst_7 : f32 to vector<2x256xf32>
    %7 = arith.divf %5, %6 : vector<2x256xf32>
    %c0_8 = arith.constant 0 : index
    %c0_9 = arith.constant 0 : index
    %8 = vector.load %arg3[%c0_8, %c0_9] : memref<256x2xf32, #tpu.memory_space<vmem>>, vector<256x2xf32>
    %cst_10 = arith.constant dense<0.000000e+00> : vector<2x2xf32>
    %9 = tpu.matmul %3, %8, %cst_10 {dimension_numbers = #tpu.dot_dimension_numbers<[1], [0], [0], [1], [0, 0, 1, 1], [], []>} : vector<2x256xf32>, vector<256x2xf32>, vector<2x2xf32> -> vector<2x2xf32>
    %c0_11 = arith.constant 0 : index
    %c0_12 = arith.constant 0 : index
    %10 = vector.load %arg4[%c0_11, %c0_12] : memref<256x2xf32, #tpu.memory_space<vmem>>, vector<256x2xf32>
    %cst_13 = arith.constant dense<0.000000e+00> : vector<2x2xf32>
    %11 = tpu.matmul %7, %10, %cst_13 {dimension_numbers = #tpu.dot_dimension_numbers<[1], [0], [0], [1], [0, 0, 1, 1], [], []>} : vector<2x256xf32>, vector<256x2xf32>, vector<2x2xf32> -> vector<2x2xf32>
    %12 = arith.addf %9, %11 : vector<2x2xf32>
    %c0_14 = arith.constant 0 : index
    %c0_15 = arith.constant 0 : index
    %13 = vector.load %arg5[%c0_14, %c0_15] : memref<1x2xf32, #tpu.memory_space<vmem>>, vector<1x2xf32>
    %14 = vector.broadcast %13 : vector<1x2xf32> to vector<2x2xf32>
    %15 = arith.addf %12, %14 : vector<2x2xf32>
    %c0_16 = arith.constant 0 : index
    %c0_17 = arith.constant 0 : index
    %16 = vector.load %arg6[%c0_16, %c0_17] : memref<2x2xf32, #tpu.memory_space<vmem>>, vector<2x2xf32>
    tpu.vector_store %arg6[%c0_16, %c0_17], %15 {strides = array<i32>} : memref<2x2xf32, #tpu.memory_space<vmem>>, vector<2x2xf32>,
    return
  }
  func.func @transform_0(%arg0: i32) -> (i32, i32, i32) {
    %c0_i32 = arith.constant 0 : i32
    %c0_i32_0 = arith.constant 0 : i32
    %c0_i32_1 = arith.constant 0 : i32
    %c0_i32_2 = arith.constant 0 : i32
    return %c0_i32, %c0_i32_0, %c0_i32_1 : i32, i32, i32
  }
  func.func @transform_1(%arg0: i32) -> (i32, i32, i32) {
    %c0_i32 = arith.constant 0 : i32
    %c0_i32_0 = arith.constant 0 : i32
    %c0_i32_1 = arith.constant 0 : i32
    %c0_i32_2 = arith.constant 0 : i32
    return %c0_i32, %c0_i32_0, %c0_i32_1 : i32, i32, i32
  }
  func.func @transform_2(%arg0: i32) -> (i32, i32) {
    %c0_i32 = arith.constant 0 : i32
    %c0_i32_0 = arith.constant 0 : i32
    %c0_i32_1 = arith.constant 0 : i32
    return %c0_i32, %c0_i32_0 : i32, i32
  }
  func.func @transform_3(%arg0: i32) -> (i32, i32) {
    %c0_i32 = arith.constant 0 : i32
    %c0_i32_0 = arith.constant 0 : i32
    %c0_i32_1 = arith.constant 0 : i32
    return %c0_i32, %c0_i32_0 : i32, i32
  }
  func.func @transform_4(%arg0: i32) -> (i32, i32) {
    %c0_i32 = arith.constant 0 : i32
    %c0_i32_0 = arith.constant 0 : i32
    %c0_i32_1 = arith.constant 0 : i32
    return %c0_i32, %c0_i32_0 : i32, i32
  }
  func.func @transform_5(%arg0: i32) -> (i32, i32) {
    %c0_i32 = arith.constant 0 : i32
    %c0_i32_0 = arith.constant 0 : i32
    %c0_i32_1 = arith.constant 0 : i32
    return %c0_i32, %c0_i32_0 : i32, i32
  }
}

</mosaic_0001>

<bundles_post_ra>
// kernel: dualnet_forward.46
= control target key start
LH: loop header
LB: loop body
LE: loop exit
PB: predicated region body
PF: predicated region fallthrough
CT: control target
= control target key end

     0   :  { %s1112_s12 = smov 0   ;;  %s1114_s13 = smov 0   ;;  %s1265_s0 = inlined_call_operand.vmem [shape: bf16[512,128], index: 0, kind: input, shape index: {}]   ;;  %s1266_s1 = inlined_call_operand.vmem [shape: bf16[128,128], index: 1, kind: input, shape index: {}]   ;;  %s1267_s2 = inlined_call_operand.vmem [shape: f32[1,128], index: 2, kind: input, shape index: {}]   ;;  %s1268_s3 = inlined_call_operand.vmem [shape: f32[512,128], index: 3, kind: output, shape index: {}]  }
   0x1   :  { %s1116_s14 = smov 0  }
   0x2 LB: > { %s32_s15 = sadd.s32 1, %s1086_s13  ;;  %p892_p0 = scmp.ge.s32.totalorder %s1090_s14, 1  ;;  %s1090_s14 = sphi %s1116_s14, %s13_s14   ;;  %s1086_s13 = sphi %s1114_s13, %s1270_s13   ;;  %s1082_s12 = sphi %s1112_s12, %s1269_s12  }
   0x3   : > { %p34_p1 = scmp.ge.s32.totalorder %s32_s15, 2  ;;  %p188_p2 = scmp.lt.s32.totalorder %s1090_s14, 3 }
   0x5   : > { %s1272_s15 = smov (%p34_p1, %s32_s15), 0  ;;  %p189_p3 = pnand %p892_p0, %p188_p2 }
   0x6   : > { %s893_s24 = sshll.u32 (!%p189_p3), %s1082_s12, 5 }
   0x7   : > { %192 = sbr.rel (%p189_p3) target bundleno = 237 (0xed), region = 32  ;;  %p230_p4 = scmp.lt.s32.totalorder (!%p189_p3), %s893_s24, 63 }
   0xc   : > { %v1018_v0 = vld [vmem:[%s1266_s1 + $0x38] sm:$0xff]  ;;  %v1017_v1 = vld [vmem:[%s1266_s1 + $0x30] sm:$0xff]  ;;  %v1016_v2 = vld [vmem:[%s1266_s1 + $0x28] sm:$0xff]  ;;  %s1274_s24 = smov (!%p230_p4, %s893_s24), 63 }
   0xd   : > { %519 = vmatpush.bf16.msra.mxu0 %v1018_v0  ;;  %1019 = vmatpush.bf16.msra.mxu1 %v1018_v0  ;;  %v1015_v3 = vld [vmem:[%s1266_s1 + $0x20] sm:$0xff]  ;;  %v1014_v4 = vld [vmem:[%s1266_s1 + $0x18] sm:$0xff]  ;;  %v1013_v5 = vld [vmem:[%s1266_s1 + $0x10] sm:$0xff]  ;;  %s894_s4 = sshll.u32 %s1274_s24, 2  ;;  %s896_s10 = sshll.u32 %s1274_s24, 3 }
   0xe   : > { %1020 = vmatpush.bf16.msra.mxu2 %v1018_v0  ;;  %1021 = vmatpush.bf16.msra.mxu3 %v1018_v0  ;;  %v1012_v6 = vld [vmem:[%s1266_s1 + $0x8] sm:$0xff]  ;;  %v1011_v7 = vld [vmem:[%s1266_s1] sm:$0xff]  ;;  %s1163_s9 = scalar_lea.vmem %s1265_s0, %s894_s4  ;;  %s1190_s18 = scalar_lea.vmem %s1268_s3, %s896_s10 }
   0xf   : > { %v995_v8 = vld [vmem:[%s1163_s9] sm:$0xff]  ;;  %v996_v12 = vld [vmem:[%s1163_s9 + $0x8] sm:$0xff]  ;;  %v997_v16 = vld [vmem:[%s1163_s9 + $0x10] sm:$0xff] }
  0x10   : > { %v999_v9 = vld [vmem:[%s1163_s9 + $0x20] sm:$0xff]  ;;  %v1000_v13 = vld [vmem:[%s1163_s9 + $0x28] sm:$0xff]  ;;  %v1001_v17 = vld [vmem:[%s1163_s9 + $0x30] sm:$0xff] }
  0x11   : > { %520 = vmatpush.bf16.msra.mxu0 %v1017_v1  ;;  %1022 = vmatpush.bf16.msra.mxu1 %v1017_v1  ;;  %v1003_v10 = vld [vmem:[%s1163_s9 + $0x40] sm:$0xff]  ;;  %v1004_v14 = vld [vmem:[%s1163_s9 + $0x48] sm:$0xff]  ;;  %v1005_v18 = vld [vmem:[%s1163_s9 + $0x50] sm:$0xff] }
  0x12   : > { %1023 = vmatpush.bf16.msra.mxu2 %v1017_v1  ;;  %1024 = vmatpush.bf16.msra.mxu3 %v1017_v1  ;;  %v1007_v11 = vld [vmem:[%s1163_s9 + $0x60] sm:$0xff]  ;;  %v1008_v15 = vld [vmem:[%s1163_s9 + $0x68] sm:$0xff]  ;;  %v1009_v19 = vld [vmem:[%s1163_s9 + $0x70] sm:$0xff] }
  0x13   : > { %v998_v20 = vld [vmem:[%s1163_s9 + $0x18] sm:$0xff]  ;;  %v1185_v24 = vld [vmem:[%s1267_s2] ss:$0 sm:$0xff] }
  0x14   : > { %v1002_v21 = vld [vmem:[%s1163_s9 + $0x38] sm:$0xff] }
  0x15   : > { %521 = vmatpush.bf16.msra.mxu0 %v1016_v2  ;;  %1025 = vmatpush.bf16.msra.mxu1 %v1016_v2  ;;  %v1006_v22 = vld [vmem:[%s1163_s9 + $0x58] sm:$0xff] }
  0x16   : > { %1026 = vmatpush.bf16.msra.mxu2 %v1016_v2  ;;  %1027 = vmatpush.bf16.msra.mxu3 %v1016_v2  ;;  %v1010_v23 = vld [vmem:[%s1163_s9 + $0x78] sm:$0xff] }
  0x19   : > { %522 = vmatpush.bf16.msra.mxu0 %v1015_v3  ;;  %1028 = vmatpush.bf16.msra.mxu1 %v1015_v3 }
  0x1a   : > { %1029 = vmatpush.bf16.msra.mxu2 %v1015_v3  ;;  %1030 = vmatpush.bf16.msra.mxu3 %v1015_v3 }
  0x1d   : > { %523 = vmatpush.bf16.msra.mxu0 %v1014_v4  ;;  %1031 = vmatpush.bf16.msra.mxu1 %v1014_v4 }
  0x1e   : > { %1032 = vmatpush.bf16.msra.mxu2 %v1014_v4  ;;  %1033 = vmatpush.bf16.msra.mxu3 %v1014_v4 }
  0x21   : > { %524 = vmatpush.bf16.msra.mxu0 %v1013_v5  ;;  %1034 = vmatpush.bf16.msra.mxu1 %v1013_v5 }
  0x22   : > { %1035 = vmatpush.bf16.msra.mxu2 %v1013_v5  ;;  %1036 = vmatpush.bf16.msra.mxu3 %v1013_v5 }
  0x25   : > { %525 = vmatpush.bf16.msra.mxu0 %v1012_v6  ;;  %1037 = vmatpush.bf16.msra.mxu1 %v1012_v6 }
  0x26   : > { %1038 = vmatpush.bf16.msra.mxu2 %v1012_v6  ;;  %1039 = vmatpush.bf16.msra.mxu3 %v1012_v6 }
  0x29   : > { %526 = vmatpush.bf16.msra.mxu0 %v1011_v7  ;;  %1040 = vmatpush.bf16.msra.mxu1 %v1011_v7 }
  0x2a   : > { %1041 = vmatpush.bf16.msra.mxu2 %v1011_v7  ;;  %1042 = vmatpush.bf16.msra.mxu3 %v1011_v7 }
  0x2c   : > { %527 = vmatmul.bf16.vlgmr.msra.gmra.mxu0 %v995_v8  ;;  %547 = vmatmul.bf16.vlgmr.msra.gmra.mxu1 %v999_v9 }
  0x2d   : > { %567 = vmatmul.bf16.vlgmr.msra.gmra.mxu2 %v1003_v10  ;;  %587 = vmatmul.bf16.vlgmr.msra.gmra.mxu3 %v1007_v11 }
  0x3c   : > { %532 = vmatmul.bf16.gmra.mxu0 %v996_v12  ;;  %552 = vmatmul.bf16.gmra.mxu1 %v1000_v13 }
  0x3d   : > { %572 = vmatmul.bf16.gmra.mxu2 %v1004_v14  ;;  %592 = vmatmul.bf16.gmra.mxu3 %v1008_v15 }
  0x4c   : > { %537 = vmatmul.bf16.gmra.mxu0 %v997_v16  ;;  %557 = vmatmul.bf16.gmra.mxu1 %v1001_v17 }
  0x4d   : > { %577 = vmatmul.bf16.gmra.mxu2 %v1005_v18  ;;  %597 = vmatmul.bf16.gmra.mxu3 %v1009_v19 }
  0x5c   : > { %542 = vmatmul.bf16.gmra.mxu0 %v998_v20  ;;  %562 = vmatmul.bf16.gmra.mxu1 %v1002_v21 }
  0x5d   : > { %582 = vmatmul.bf16.gmra.mxu2 %v1006_v22  ;;  %602 = vmatmul.bf16.gmra.mxu3 %v1010_v23 }
  0xa9   : > { %v528_v25 = vpop.f32.mrf.mxu0  ;;  %v548_v26 = vpop.f32.mrf.mxu1 }
  0xaa   : > { %v711_v27 = vadd.f32 %v1185_v24, %v528_v25  ;;  %v719_v28 = vadd.f32 %v1185_v24, %v548_v26 }
  0xac   : > { %743 = vst [vmem:[%s1190_s18] sm:$0xff] %v711_v27 }
  0xad   : > { %751 = vst [vmem:[%s1190_s18 + $0x40] sm:$0xff] %v719_v28 }
  0xb0   : > { %v568_v29 = vpop.f32.mrf.mxu2  ;;  %v588_v30 = vpop.f32.mrf.mxu3 }
  0xb1   : > { %v727_v31 = vadd.f32 %v1185_v24, %v568_v29  ;;  %v735_v32 = vadd.f32 %v1185_v24, %v588_v30  ;;  %v530_v33 = vpop.f32.mrf.mxu0  ;;  %v550_v34 = vpop.f32.mrf.mxu1 }
  0xb2   : > { %v712_v35 = vadd.f32 %v1185_v24, %v530_v33  ;;  %v720_v36 = vadd.f32 %v1185_v24, %v550_v34 }
  0xb3   : > { %759 = vst [vmem:[%s1190_s18 + $0x80] sm:$0xff] %v727_v31 }
  0xb4   : > { %767 = vst [vmem:[%s1190_s18 + $0xc0] sm:$0xff] %v735_v32 }
  0xb5   : > { %744 = vst [vmem:[%s1190_s18 + $0x8] sm:$0xff] %v712_v35 }
  0xb6   : > { %752 = vst [vmem:[%s1190_s18 + $0x48] sm:$0xff] %v720_v36 }
  0xb8   : > { %v570_v37 = vpop.f32.mrf.mxu2  ;;  %v590_v38 = vpop.f32.mrf.mxu3 }
  0xb9   : > { %v728_v39 = vadd.f32 %v1185_v24, %v570_v37  ;;  %v736_v40 = vadd.f32 %v1185_v24, %v590_v38  ;;  %v533_v41 = vpop.f32.mrf.mxu0  ;;  %v553_v42 = vpop.f32.mrf.mxu1 }
  0xba   : > { %v713_v43 = vadd.f32 %v1185_v24, %v533_v41  ;;  %v721_v44 = vadd.f32 %v1185_v24, %v553_v42 }
  0xbb   : > { %760 = vst [vmem:[%s1190_s18 + $0x88] sm:$0xff] %v728_v39 }
  0xbc   : > { %768 = vst [vmem:[%s1190_s18 + $0xc8] sm:$0xff] %v736_v40 }
  0xbd   : > { %745 = vst [vmem:[%s1190_s18 + $0x10] sm:$0xff] %v713_v43 }
  0xbe   : > { %753 = vst [vmem:[%s1190_s18 + $0x50] sm:$0xff] %v721_v44 }
  0xc0   : > { %v573_v45 = vpop.f32.mrf.mxu2  ;;  %v593_v46 = vpop.f32.mrf.mxu3 }
  0xc1   : > { %v729_v47 = vadd.f32 %v1185_v24, %v573_v45  ;;  %v737_v48 = vadd.f32 %v1185_v24, %v593_v46  ;;  %v535_v49 = vpop.f32.mrf.mxu0  ;;  %v555_v50 = vpop.f32.mrf.mxu1 }
  0xc2   : > { %v714_v51 = vadd.f32 %v1185_v24, %v535_v49  ;;  %v722_v52 = vadd.f32 %v1185_v24, %v555_v50 }
  0xc3   : > { %761 = vst [vmem:[%s1190_s18 + $0x90] sm:$0xff] %v729_v47 }
  0xc4   : > { %769 = vst [vmem:[%s1190_s18 + $0xd0] sm:$0xff] %v737_v48 }
  0xc5   : > { %746 = vst [vmem:[%s1190_s18 + $0x18] sm:$0xff] %v714_v51 }
  0xc6   : > { %754 = vst [vmem:[%s1190_s18 + $0x58] sm:$0xff] %v722_v52 }
  0xc8   : > { %v575_v53 = vpop.f32.mrf.mxu2  ;;  %v595_v54 = vpop.f32.mrf.mxu3 }
  0xc9   : > { %v730_v55 = vadd.f32 %v1185_v24, %v575_v53  ;;  %v738_v56 = vadd.f32 %v1185_v24, %v595_v54  ;;  %v538_v57 = vpop.f32.mrf.mxu0  ;;  %v558_v58 = vpop.f32.mrf.mxu1 }
  0xca   : > { %v715_v59 = vadd.f32 %v1185_v24, %v538_v57  ;;  %v723_v60 = vadd.f32 %v1185_v24, %v558_v58 }
  0xcb   : > { %762 = vst [vmem:[%s1190_s18 + $0x98] sm:$0xff] %v730_v55 }
  0xcc   : > { %770 = vst [vmem:[%s1190_s18 + $0xd8] sm:$0xff] %v738_v56 }
  0xcd   : > { %747 = vst [vmem:[%s1190_s18 + $0x20] sm:$0xff] %v715_v59 }
  0xce   : > { %755 = vst [vmem:[%s1190_s18 + $0x60] sm:$0xff] %v723_v60 }
  0xd0   : > { %v578_v61 = vpop.f32.mrf.mxu2  ;;  %v598_v62 = vpop.f32.mrf.mxu3 }
  0xd1   : > { %v731_v63 = vadd.f32 %v1185_v24, %v578_v61  ;;  %v739_v0 = vadd.f32 %v1185_v24, %v598_v62  ;;  %v540_v1 = vpop.f32.mrf.mxu0  ;;  %v560_v2 = vpop.f32.mrf.mxu1 }
  0xd2   : > { %v716_v3 = vadd.f32 %v1185_v24, %v540_v1  ;;  %v724_v4 = vadd.f32 %v1185_v24, %v560_v2 }
  0xd3   : > { %763 = vst [vmem:[%s1190_s18 + $0xa0] sm:$0xff] %v731_v63 }
  0xd4   : > { %771 = vst [vmem:[%s1190_s18 + $0xe0] sm:$0xff] %v739_v0 }
  0xd5   : > { %748 = vst [vmem:[%s1190_s18 + $0x28] sm:$0xff] %v716_v3 }
  0xd6   : > { %756 = vst [vmem:[%s1190_s18 + $0x68] sm:$0xff] %v724_v4 }
  0xd8   : > { %v580_v5 = vpop.f32.mrf.mxu2  ;;  %v600_v6 = vpop.f32.mrf.mxu3 }
  0xd9   : > { %v732_v7 = vadd.f32 %v1185_v24, %v580_v5  ;;  %v740_v8 = vadd.f32 %v1185_v24, %v600_v6  ;;  %v543_v9 = vpop.f32.mrf.mxu0  ;;  %v563_v10 = vpop.f32.mrf.mxu1 }
  0xda   : > { %v717_v11 = vadd.f32 %v1185_v24, %v543_v9  ;;  %v725_v12 = vadd.f32 %v1185_v24, %v563_v10 }
  0xdb   : > { %764 = vst [vmem:[%s1190_s18 + $0xa8] sm:$0xff] %v732_v7 }
  0xdc   : > { %772 = vst [vmem:[%s1190_s18 + $0xe8] sm:$0xff] %v740_v8 }
  0xdd   : > { %749 = vst [vmem:[%s1190_s18 + $0x30] sm:$0xff] %v717_v11 }
  0xde   : > { %757 = vst [vmem:[%s1190_s18 + $0x70] sm:$0xff] %v725_v12 }
  0xe0   : > { %v583_v13 = vpop.f32.mrf.mxu2  ;;  %v603_v14 = vpop.f32.mrf.mxu3 }
  0xe1   : > { %v733_v15 = vadd.f32 %v1185_v24, %v583_v13  ;;  %v741_v16 = vadd.f32 %v1185_v24, %v603_v14  ;;  %v545_v17 = vpop.f32.mrf.mxu0  ;;  %v565_v18 = vpop.f32.mrf.mxu1 }
  0xe2   : > { %v718_v19 = vadd.f32 %v1185_v24, %v545_v17  ;;  %v726_v20 = vadd.f32 %v1185_v24, %v565_v18 }
  0xe3   : > { %765 = vst [vmem:[%s1190_s18 + $0xb0] sm:$0xff] %v733_v15 }
  0xe4   : > { %773 = vst [vmem:[%s1190_s18 + $0xf0] sm:$0xff] %v741_v16 }
  0xe5   : > { %750 = vst [vmem:[%s1190_s18 + $0x38] sm:$0xff] %v718_v19 }
  0xe6   : > { %758 = vst [vmem:[%s1190_s18 + $0x78] sm:$0xff] %v726_v20 }
  0xe8   : > { %v585_v21 = vpop.f32.mrf.mxu2  ;;  %v605_v22 = vpop.f32.mrf.mxu3 }
  0xe9   : > { %v734_v23 = vadd.f32 %v1185_v24, %v585_v21  ;;  %v742_v25 = vadd.f32 %v1185_v24, %v605_v22 }
  0xeb   : > { %766 = vst [vmem:[%s1190_s18 + $0xb8] sm:$0xff] %v734_v23 }
  0xec   : > { %774 = vst [vmem:[%s1190_s18 + $0xf8] sm:$0xff] %v742_v25 }
  0xed PF: > { %s13_s14 = sadd.s32 1, %s1090_s14   ;;  %s1269_s12 = smov %s1086_s13 }
  0xee   : > { %p10_p5 = scmp.ge.s32.totalorder %s13_s14, 4   ;;  %s1270_s13 = smov %s1272_s15 }
  0xf0   :  { %12 = sbr.rel (!%p10_p5) target bundleno = 2 (0x2), region = 76 }

// kernel: dualnet_forward.47
= control target key start
LH: loop header
LB: loop body
LE: loop exit
PB: predicated region body
PF: predicated region fallthrough
CT: control target
= control target key end

     0   :  { %8 = vsyncpa [#allocation4], 0  ;;  %s481_s15 = smov [#allocation3]   ;;  %s601_s0 = inlined_call_operand.vmem [shape: bf16[128,128], index: 0, kind: input, shape index: {}]   ;;  %s602_s1 = inlined_call_operand.vmem [shape: bf16[128,128], index: 1, kind: input, shape index: {}]   ;;  %s603_s2 = inlined_call_operand.hbm [shape: f32[1,128], index: 2, kind: input, shape index: {}]   ;;  %s604_s3 = inlined_call_operand.vmem [shape: f32[128,128], index: 3, kind: output, shape index: {}]  }
   0x1   :  { %s18_s14 = sshll.u32 %s603_s2, 4  ;;  %s20_s16 = sshll.u32 %s481_s15, 4  ;;  %s19_s14 = int_to_ptr.hbm [resolvable:$true] %s18_s14  ;;  %s21_s16 = int_to_ptr.vmem [resolvable:$true] %s20_s16 }
   0x2   :  { %23 = dma.hbm_to_vmem [thread:$0]  %s19_s14, 16, %s21_s16, [#allocation4]  }
   0x3   :  { %479 = dma.done.wait [#allocation4], 16  }
   0x4   :  { %480 = vsyncadd [#allocation4], 4294967280  ;;  %v428_v0 = vld [vmem:[%s602_s1 + $0x38] sm:$0xff]  ;;  %v427_v1 = vld [vmem:[%s602_s1 + $0x30] sm:$0xff] }
   0x5   :  { %192 = vmatpush.bf16.msra.mxu0 %v428_v0  ;;  %429 = vmatpush.bf16.msra.mxu1 %v428_v0  ;;  %v426_v2 = vld [vmem:[%s602_s1 + $0x28] sm:$0xff]  ;;  %v425_v3 = vld [vmem:[%s602_s1 + $0x20] sm:$0xff]  ;;  %v424_v4 = vld [vmem:[%s602_s1 + $0x18] sm:$0xff] }
   0x6   :  { %430 = vmatpush.bf16.msra.mxu2 %v428_v0  ;;  %431 = vmatpush.bf16.msra.mxu3 %v428_v0  ;;  %v423_v5 = vld [vmem:[%s602_s1 + $0x10] sm:$0xff]  ;;  %v422_v6 = vld [vmem:[%s602_s1 + $0x8] sm:$0xff]  ;;  %v421_v7 = vld [vmem:[%s602_s1] sm:$0xff] }
   0x7   :  { %v413_v8 = vld [vmem:[%s601_s0] sm:$0xff]  ;;  %v415_v9 = vld [vmem:[%s601_s0 + $0x10] sm:$0xff]  ;;  %v414_v12 = vld [vmem:[%s601_s0 + $0x8] sm:$0xff] }
   0x8   :  { %v417_v10 = vld [vmem:[%s601_s0 + $0x20] sm:$0xff]  ;;  %v419_v11 = vld [vmem:[%s601_s0 + $0x30] sm:$0xff]  ;;  %v416_v13 = vld [vmem:[%s601_s0 + $0x18] sm:$0xff] }
   0x9   :  { %193 = vmatpush.bf16.msra.mxu0 %v427_v1  ;;  %432 = vmatpush.bf16.msra.mxu1 %v427_v1  ;;  %v418_v14 = vld [vmem:[%s601_s0 + $0x28] sm:$0xff]  ;;  %v420_v15 = vld [vmem:[%s601_s0 + $0x38] sm:$0xff]  ;;  %v454_v16 = vld [vmem:[#allocation3] ss:$0 sm:$0xff] }
   0xa   :  { %433 = vmatpush.bf16.msra.mxu2 %v427_v1  ;;  %434 = vmatpush.bf16.msra.mxu3 %v427_v1 }
   0xd   :  { %194 = vmatpush.bf16.msra.mxu0 %v426_v2  ;;  %435 = vmatpush.bf16.msra.mxu1 %v426_v2 }
   0xe   :  { %436 = vmatpush.bf16.msra.mxu2 %v426_v2  ;;  %437 = vmatpush.bf16.msra.mxu3 %v426_v2 }
  0x11   :  { %195 = vmatpush.bf16.msra.mxu0 %v425_v3  ;;  %438 = vmatpush.bf16.msra.mxu1 %v425_v3 }
  0x12   :  { %439 = vmatpush.bf16.msra.mxu2 %v425_v3  ;;  %440 = vmatpush.bf16.msra.mxu3 %v425_v3 }
  0x15   :  { %196 = vmatpush.bf16.msra.mxu0 %v424_v4  ;;  %441 = vmatpush.bf16.msra.mxu1 %v424_v4 }
  0x16   :  { %442 = vmatpush.bf16.msra.mxu2 %v424_v4  ;;  %443 = vmatpush.bf16.msra.mxu3 %v424_v4 }
  0x19   :  { %197 = vmatpush.bf16.msra.mxu0 %v423_v5  ;;  %444 = vmatpush.bf16.msra.mxu1 %v423_v5 }
  0x1a   :  { %445 = vmatpush.bf16.msra.mxu2 %v423_v5  ;;  %446 = vmatpush.bf16.msra.mxu3 %v423_v5 }
  0x1d   :  { %198 = vmatpush.bf16.msra.mxu0 %v422_v6  ;;  %447 = vmatpush.bf16.msra.mxu1 %v422_v6 }
  0x1e   :  { %448 = vmatpush.bf16.msra.mxu2 %v422_v6  ;;  %449 = vmatpush.bf16.msra.mxu3 %v422_v6 }
  0x21   :  { %199 = vmatpush.bf16.msra.mxu0 %v421_v7  ;;  %450 = vmatpush.bf16.msra.mxu1 %v421_v7 }
  0x22   :  { %451 = vmatpush.bf16.msra.mxu2 %v421_v7  ;;  %452 = vmatpush.bf16.msra.mxu3 %v421_v7 }
  0x24   :  { %200 = vmatmul.bf16.vlgmr.msra.gmra.mxu0 %v413_v8  ;;  %210 = vmatmul.bf16.vlgmr.msra.gmra.mxu1 %v415_v9 }
  0x25   :  { %220 = vmatmul.bf16.vlgmr.msra.gmra.mxu2 %v417_v10  ;;  %230 = vmatmul.bf16.vlgmr.msra.gmra.mxu3 %v419_v11 }
  0x34   :  { %205 = vmatmul.bf16.gmra.mxu0 %v414_v12  ;;  %215 = vmatmul.bf16.gmra.mxu1 %v416_v13 }
  0x35   :  { %225 = vmatmul.bf16.gmra.mxu2 %v418_v14  ;;  %235 = vmatmul.bf16.gmra.mxu3 %v420_v15 }
  0xa1   :  { %v201_v17 = vpop.f32.mrf.mxu0  ;;  %v211_v18 = vpop.f32.mrf.mxu1 }
  0xa2   :  { %v296_v19 = vadd.f32 %v454_v16, %v201_v17  ;;  %v300_v20 = vadd.f32 %v454_v16, %v211_v18 }
  0xa4   :  { %v312_v21 = vmax.f32 %v296_v19, 0.0  ;;  %v316_v22 = vmax.f32 %v300_v20, 0.0 }
  0xa6   :  { %328 = vst [vmem:[%s604_s3] sm:$0xff] %v312_v21 }
  0xa7   :  { %332 = vst [vmem:[%s604_s3 + $0x20] sm:$0xff] %v316_v22 }
  0xa8   :  { %v221_v23 = vpop.f32.mrf.mxu2  ;;  %v231_v24 = vpop.f32.mrf.mxu3 }
  0xa9   :  { %v304_v25 = vadd.f32 %v454_v16, %v221_v23  ;;  %v308_v26 = vadd.f32 %v454_v16, %v231_v24  ;;  %v203_v27 = vpop.f32.mrf.mxu0  ;;  %v213_v28 = vpop.f32.mrf.mxu1 }
  0xaa   :  { %v297_v29 = vadd.f32 %v454_v16, %v203_v27  ;;  %v301_v30 = vadd.f32 %v454_v16, %v213_v28 }
  0xab   :  { %v320_v31 = vmax.f32 %v304_v25, 0.0  ;;  %v324_v32 = vmax.f32 %v308_v26, 0.0 }
  0xac   :  { %v313_v33 = vmax.f32 %v297_v29, 0.0  ;;  %v317_v34 = vmax.f32 %v301_v30, 0.0 }
  0xad   :  { %336 = vst [vmem:[%s604_s3 + $0x40] sm:$0xff] %v320_v31 }
  0xae   :  { %340 = vst [vmem:[%s604_s3 + $0x60] sm:$0xff] %v324_v32 }
  0xaf   :  { %329 = vst [vmem:[%s604_s3 + $0x8] sm:$0xff] %v313_v33 }
  0xb0   :  { %333 = vst [vmem:[%s604_s3 + $0x28] sm:$0xff] %v317_v34  ;;  %v223_v35 = vpop.f32.mrf.mxu2  ;;  %v233_v36 = vpop.f32.mrf.mxu3 }
  0xb1   :  { %v305_v37 = vadd.f32 %v454_v16, %v223_v35  ;;  %v309_v38 = vadd.f32 %v454_v16, %v233_v36  ;;  %v206_v39 = vpop.f32.mrf.mxu0  ;;  %v216_v40 = vpop.f32.mrf.mxu1 }
  0xb2   :  { %v298_v41 = vadd.f32 %v454_v16, %v206_v39  ;;  %v302_v42 = vadd.f32 %v454_v16, %v216_v40 }
  0xb3   :  { %v321_v43 = vmax.f32 %v305_v37, 0.0  ;;  %v325_v44 = vmax.f32 %v309_v38, 0.0 }
  0xb4   :  { %v314_v45 = vmax.f32 %v298_v41, 0.0  ;;  %v318_v46 = vmax.f32 %v302_v42, 0.0 }
  0xb5   :  { %337 = vst [vmem:[%s604_s3 + $0x48] sm:$0xff] %v321_v43 }
  0xb6   :  { %341 = vst [vmem:[%s604_s3 + $0x68] sm:$0xff] %v325_v44 }
  0xb7   :  { %330 = vst [vmem:[%s604_s3 + $0x10] sm:$0xff] %v314_v45 }
  0xb8   :  { %334 = vst [vmem:[%s604_s3 + $0x30] sm:$0xff] %v318_v46  ;;  %v226_v47 = vpop.f32.mrf.mxu2  ;;  %v236_v48 = vpop.f32.mrf.mxu3 }
  0xb9   :  { %v306_v49 = vadd.f32 %v454_v16, %v226_v47  ;;  %v310_v50 = vadd.f32 %v454_v16, %v236_v48  ;;  %v208_v51 = vpop.f32.mrf.mxu0  ;;  %v218_v52 = vpop.f32.mrf.mxu1 }
  0xba   :  { %v299_v53 = vadd.f32 %v454_v16, %v208_v51  ;;  %v303_v54 = vadd.f32 %v454_v16, %v218_v52 }
  0xbb   :  { %v322_v55 = vmax.f32 %v306_v49, 0.0  ;;  %v326_v56 = vmax.f32 %v310_v50, 0.0 }
  0xbc   :  { %v315_v57 = vmax.f32 %v299_v53, 0.0  ;;  %v319_v58 = vmax.f32 %v303_v54, 0.0 }
  0xbd   :  { %338 = vst [vmem:[%s604_s3 + $0x50] sm:$0xff] %v322_v55 }
  0xbe   :  { %342 = vst [vmem:[%s604_s3 + $0x70] sm:$0xff] %v326_v56 }
  0xbf   :  { %331 = vst [vmem:[%s604_s3 + $0x18] sm:$0xff] %v315_v57 }
  0xc0   :  { %335 = vst [vmem:[%s604_s3 + $0x38] sm:$0xff] %v319_v58  ;;  %v228_v59 = vpop.f32.mrf.mxu2  ;;  %v238_v60 = vpop.f32.mrf.mxu3 }
  0xc1   :  { %v307_v61 = vadd.f32 %v454_v16, %v228_v59  ;;  %v311_v62 = vadd.f32 %v454_v16, %v238_v60 }
  0xc3   :  { %v323_v63 = vmax.f32 %v307_v61, 0.0  ;;  %v327_v0 = vmax.f32 %v311_v62, 0.0 }
  0xc5   :  { %339 = vst [vmem:[%s604_s3 + $0x58] sm:$0xff] %v323_v63 }
  0xc6   :  { %343 = vst [vmem:[%s604_s3 + $0x78] sm:$0xff] %v327_v0 }
  0xc7   :  { %348 = vsyncpa [#allocation4], 1 }

// kernel: dualnet_forward.48
= control target key start
LH: loop header
LB: loop body
LE: loop exit
PB: predicated region body
PF: predicated region fallthrough
CT: control target
= control target key end

     0   :  { %s1376_s12 = smov 0   ;;  %s1378_s13 = smov 0   ;;  %s1590_s0 = inlined_call_operand.vmem [shape: bf16[32,1152], index: 0, kind: input, shape index: {}]   ;;  %s1591_s1 = inlined_call_operand.vmem [shape: bf16[1152,256], index: 1, kind: input, shape index: {}]   ;;  %s1592_s2 = inlined_call_operand.vmem [shape: f32[1,256], index: 2, kind: input, shape index: {}]   ;;  %s1593_s3 = inlined_call_operand.vmem [shape: f32[32,256], index: 3, kind: output, shape index: {}]  }
   0x1   :  { %s1380_s14 = smov 0   ;;  %s1382_s15 = smov 0  }
   0x2   :  { %s1384_s16 = smov 0  }
   0x3 LB: > { %s25_s17 = sadd.s32 1, %s1349_s15  ;;  %p48_p1 = scmp.ne.s32.totalorder %s1341_s13, %s1337_s12  ;;  %s1353_s16 = sphi %s1384_s16, %s13_s16   ;;  %s1349_s15 = sphi %s1382_s15, %s1597_s15   ;;  %s1345_s14 = sphi %s1380_s14, %s1596_s14   ;;  %s1341_s13 = sphi %s1378_s13, %s1595_s13   ;;  %s1337_s12 = sphi %s1376_s12, %s1594_s12  }
   0x4   : > { %p26_p0 = scmp.ge.s32.totalorder %s25_s17, 3  ;;  %p49_p2 = scmp.eq.s32.totalorder %s1353_s16, 0 }
   0x5   : > { %s41_s19 = sadd.s32 1, %s1341_s13  ;;  %p965_p5 = scmp.ge.s32.totalorder %s1353_s16, 3 }
   0x6   : > { %s1599_s17 = smov (%p26_p0, %s25_s17), 0  ;;  %p50_p3 = por %p49_p2, %p48_p1 }
   0x7   : > { %s37_s18 = ssub.s32 %s1349_s15, %s1599_s17  ;;  %164 = sbr.rel (%p965_p5) target bundleno = 25 (0x19), region = 20 }
   0x8   : > { %p39_p4 = scmp.eq.s32.totalorder %s37_s18, 0 }
   0xa   : > { %s1411_s20 = scalar_select %p39_p4, %s1341_s13, %s41_s19  }
   0xc   : > { %167 = sbr.rel (!%p50_p3) target bundleno = 25 (0x19), region = 24  ;;  %s169_s21 = sand.u32 (%p50_p3), 1, %s1341_s13  }
   0xd   : > { %s1200_s22 = smul.u32 (%p50_p3), 12, %s1349_s15 }
   0xe   : > { %s1272_s23 = smul.u32 (%p50_p3), 48, %s169_s21 }
   0xf   : > { %s177_s26 = scalar_lea.vmem (%p50_p3), %s1590_s0, %s1200_s22 }
  0x10   : > { %v192_v0 = vld [vmem:[%s177_s26] sm:$0xff] (%p50_p3)  ;;  %v196_v2 = vld [vmem:[%s177_s26 + $0x48] sm:$0xff] (%p50_p3)  ;;  %s171_s27 = scalar_lea.vmem (%p50_p3), [#allocation3], %s1272_s23  ;;  %v971_v6 = vld [vmem:[%s177_s26 + $0x50] sm:$0xf] (%p50_p3) }
  0x11   : > { %v194_v1 = vld [vmem:[%s177_s26 + $0x24] sm:$0xff]  ;;  %193 = vst [vmem:[%s171_s27] sm:$0xff] %v192_v0  ;;  %v198_v3 = vld [vmem:[%s177_s26 + $0x6c] sm:$0xff]  ;;  %v973_v7 = vld [vmem:[%s177_s26 + $0x74] sm:$0xf] }
  0x12   : > { %195 = vst [vmem:[%s171_s27 + $0xc] sm:$0xff] %v194_v1  ;;  %v967_v4 = vld [vmem:[%s177_s26 + $0x8] sm:$0xf]  ;;  %v969_v5 = vld [vmem:[%s177_s26 + $0x2c] sm:$0xf] }
  0x13   : > { %197 = vst [vmem:[%s171_s27 + $0x18] sm:$0xff] %v196_v2 }
  0x14   : > { %199 = vst [vmem:[%s171_s27 + $0x24] sm:$0xff] %v198_v3 }
  0x15   : > { %968 = vst [vmem:[%s171_s27 + $0x8] sm:$0xf] %v967_v4 }
  0x16   : > { %970 = vst [vmem:[%s171_s27 + $0x14] sm:$0xf] %v969_v5 }
  0x17   : > { %972 = vst [vmem:[%s171_s27 + $0x20] sm:$0xf] %v971_v6 }
  0x18   : > { %974 = vst [vmem:[%s171_s27 + $0x2c] sm:$0xf] %v973_v7 }
  0x19 PF: > { %p975_p6 = scmp.ge.s32.totalorder %s1353_s16, 1  ;;  %p235_p7 = scmp.lt.s32.totalorder %s1353_s16, 4 }
  0x1b   : > { %p236_p8 = pnand %p975_p6, %p235_p7 }
  0x1c   : > { %s242_s28 = sand.u32 (!%p236_p8), 1, %s1337_s12   ;;  %s286_s29 = smul.u32 (!%p236_p8), 48, %s1345_s14 }
  0x1d   : > { %239 = sbr.rel (%p236_p8) target bundleno = 278 (0x116), region = 54  ;;  %p978_p10 = scmp.ne.s32.totalorder (!%p236_p8), %s1345_s14, 0 }
  0x1e   : > { %s1273_s30 = smul.u32 (!%p236_p8), 48, %s242_s28  ;;  %p288_p9 = scmp.lt.s32.totalorder (!%p236_p8), %s286_s29, 143 }
  0x20   : > { %s1428_s8 = scalar_lea.vmem (!%p236_p8), [#allocation3], %s1273_s30 }
  0x22   : > { %s1601_s29 = smov (!%p288_p9, %s286_s29), 143  ;;  %318 = sbr.rel (%p978_p10) target bundleno = 48 (0x30), region = 62 }
  0x23   : > { %s1201_s4 = sshll.u32 %s1601_s29, 3 }
  0x24   : > { %s1426_s7 = scalar_lea.vmem %s1591_s1, %s1201_s4 }
  0x27   : > { %v1355_v8 = vmov 0.0  }
  0x28   : > { %319 = vst [vmem:[#allocation2 + $0x30] sm:$0xff] %v1355_v8 }
  0x29   : > { %320 = vst [vmem:[#allocation2] sm:$0xff] %v1355_v8 }
  0x2a   : > { %321 = vst [vmem:[#allocation2 + $0x18] sm:$0xff] %v1355_v8 }
  0x2b   : > { %322 = vst [vmem:[#allocation2 + $0x10] sm:$0xff] %v1355_v8 }
  0x2c   : > { %323 = vst [vmem:[#allocation2 + $0x8] sm:$0xff] %v1355_v8 }
  0x2d   : > { %324 = vst [vmem:[#allocation2 + $0x20] sm:$0xff] %v1355_v8 }
  0x2e   : > { %325 = vst [vmem:[#allocation2 + $0x28] sm:$0xff] %v1355_v8 }
  0x2f   : > { %326 = vst [vmem:[#allocation2 + $0x38] sm:$0xff] %v1355_v8 }
  0x30 PF: > { %v1061_v9 = vld [vmem:[%s1426_s7 + $0x70] sm:$0xf]  ;;  %v1223_v10 = vld [vmem:[%s1426_s7 + $0x74] sm:$0xf0]  ;;  %v1222_v18 = vld [vmem:[%s1426_s7 + $0x74] sm:$0xf] }
  0x31   : > { %v1125_v11 = vld [vmem:[%s1426_s7 + $0xf0] sm:$0xf]  ;;  %v1062_v12 = vor.u32 %v1223_v10, %v1061_v9  ;;  %v1239_v13 = vld [vmem:[%s1426_s7 + $0xf4] sm:$0xf0]  ;;  %v1063_v19 = vld [vmem:[%s1426_s7 + $0x78] sm:$0xf0] }
  0x32   : > { %v1189_v14 = vld [vmem:[%s1426_s7 + $0x170] sm:$0xf]  ;;  %v1255_v15 = vld [vmem:[%s1426_s7 + $0x174] sm:$0xf0]  ;;  %v1126_v16 = vor.u32 %v1239_v13, %v1125_v11  ;;  %v1053_v20 = vld [vmem:[%s1426_s7 + $0x60] sm:$0xf]  ;;  %v1066_v21 = vor.u32 %v1222_v18, %v1063_v19 }
  0x33   : > { %v1190_v17 = vor.u32 %v1255_v15, %v1189_v14  ;;  %663 = vmatpush.bf16.msra.mxu0 %v1062_v12  ;;  %v1221_v22 = vld [vmem:[%s1426_s7 + $0x64] sm:$0xf0]  ;;  %v1117_v23 = vld [vmem:[%s1426_s7 + $0xe0] sm:$0xf]  ;;  %v1220_v29 = vld [vmem:[%s1426_s7 + $0x64] sm:$0xf] }
  0x34   : > { %v1237_v24 = vld [vmem:[%s1426_s7 + $0xe4] sm:$0xf0]  ;;  %682 = vmatpush.bf16.msra.mxu1 %v1126_v16  ;;  %v1054_v25 = vor.u32 %v1221_v22, %v1053_v20  ;;  %v1181_v27 = vld [vmem:[%s1426_s7 + $0x160] sm:$0xf]  ;;  %720 = vmatpush.bf16.msra.mxu3 %v1066_v21  ;;  %v1055_v31 = vld [vmem:[%s1426_s7 + $0x68] sm:$0xf0] }
  0x35   : > { %701 = vmatpush.bf16.msra.mxu2 %v1190_v17  ;;  %v1118_v26 = vor.u32 %v1237_v24, %v1117_v23  ;;  %v1253_v28 = vld [vmem:[%s1426_s7 + $0x164] sm:$0xf0]  ;;  %v1045_v32 = vld [vmem:[%s1426_s7 + $0x50] sm:$0xf]  ;;  %v1219_v33 = vld [vmem:[%s1426_s7 + $0x54] sm:$0xf0]  ;;  %v1058_v34 = vor.u32 %v1220_v29, %v1055_v31 }
  0x36   : > { %v1182_v30 = vor.u32 %v1253_v28, %v1181_v27  ;;  %v1109_v35 = vld [vmem:[%s1426_s7 + $0xd0] sm:$0xf]  ;;  %v1235_v36 = vld [vmem:[%s1426_s7 + $0xd4] sm:$0xf0]  ;;  %v1046_v38 = vor.u32 %v1219_v33, %v1045_v32  ;;  %v1218_v40 = vld [vmem:[%s1426_s7 + $0x54] sm:$0xf] }
  0x37   : > { %v1173_v37 = vld [vmem:[%s1426_s7 + $0x150] sm:$0xf]  ;;  %664 = vmatpush.bf16.msra.mxu0 %v1054_v25  ;;  %v1251_v39 = vld [vmem:[%s1426_s7 + $0x154] sm:$0xf0]  ;;  %v1047_v41 = vld [vmem:[%s1426_s7 + $0x58] sm:$0xf0]  ;;  %v1110_v42 = vor.u32 %v1235_v36, %v1109_v35 }
  0x38   : > { %683 = vmatpush.bf16.msra.mxu1 %v1118_v26  ;;  %v1174_v43 = vor.u32 %v1251_v39, %v1173_v37  ;;  %v1037_v44 = vld [vmem:[%s1426_s7 + $0x40] sm:$0xf]  ;;  %v1217_v45 = vld [vmem:[%s1426_s7 + $0x44] sm:$0xf0]  ;;  %721 = vmatpush.bf16.msra.mxu3 %v1058_v34  ;;  %v1050_v47 = vor.u32 %v1218_v40, %v1047_v41  ;;  %v1216_v51 = vld [vmem:[%s1426_s7 + $0x44] sm:$0xf] }
  0x39   : > { %702 = vmatpush.bf16.msra.mxu2 %v1182_v30  ;;  %v1101_v46 = vld [vmem:[%s1426_s7 + $0xc0] sm:$0xf]  ;;  %v1233_v48 = vld [vmem:[%s1426_s7 + $0xc4] sm:$0xf0]  ;;  %v1039_v52 = vld [vmem:[%s1426_s7 + $0x48] sm:$0xf0]  ;;  %v1038_v53 = vor.u32 %v1217_v45, %v1037_v44 }
  0x3a   : > { %v1165_v49 = vld [vmem:[%s1426_s7 + $0x140] sm:$0xf]  ;;  %v1249_v50 = vld [vmem:[%s1426_s7 + $0x144] sm:$0xf0]  ;;  %v1102_v54 = vor.u32 %v1233_v48, %v1101_v46  ;;  %v1029_v56 = vld [vmem:[%s1426_s7 + $0x30] sm:$0xf]  ;;  %v1042_v59 = vor.u32 %v1216_v51, %v1039_v52 }
  0x3b   : > { %665 = vmatpush.bf16.msra.mxu0 %v1046_v38  ;;  %v1166_v55 = vor.u32 %v1249_v50, %v1165_v49  ;;  %v1215_v57 = vld [vmem:[%s1426_s7 + $0x34] sm:$0xf0]  ;;  %v1093_v58 = vld [vmem:[%s1426_s7 + $0xb0] sm:$0xf]  ;;  %v1214_v63 = vld [vmem:[%s1426_s7 + $0x34] sm:$0xf] }
  0x3c   : > { %684 = vmatpush.bf16.msra.mxu1 %v1110_v42  ;;  %722 = vmatpush.bf16.msra.mxu3 %v1050_v47  ;;  %v1231_v60 = vld [vmem:[%s1426_s7 + $0xb4] sm:$0xf0]  ;;  %v1157_v61 = vld [vmem:[%s1426_s7 + $0x130] sm:$0xf]  ;;  %v1031_v0 = vld [vmem:[%s1426_s7 + $0x38] sm:$0xf0]  ;;  %v1030_v1 = vor.u32 %v1215_v57, %v1029_v56 }
  0x3d   : > { %703 = vmatpush.bf16.msra.mxu2 %v1174_v43  ;;  %v1247_v62 = vld [vmem:[%s1426_s7 + $0x134] sm:$0xf0]  ;;  %v1094_v2 = vor.u32 %v1231_v60, %v1093_v58  ;;  %v1021_v4 = vld [vmem:[%s1426_s7 + $0x20] sm:$0xf]  ;;  %v1213_v5 = vld [vmem:[%s1426_s7 + $0x24] sm:$0xf0]  ;;  %v1034_v7 = vor.u32 %v1214_v63, %v1031_v0 }
  0x3e   : > { %v1158_v3 = vor.u32 %v1247_v62, %v1157_v61  ;;  %v1085_v6 = vld [vmem:[%s1426_s7 + $0xa0] sm:$0xf]  ;;  %v1229_v8 = vld [vmem:[%s1426_s7 + $0xa4] sm:$0xf0]  ;;  %v1212_v11 = vld [vmem:[%s1426_s7 + $0x24] sm:$0xf]  ;;  %v1022_v13 = vor.u32 %v1213_v5, %v1021_v4 }
  0x3f   : > { %666 = vmatpush.bf16.msra.mxu0 %v1038_v53  ;;  %v1149_v9 = vld [vmem:[%s1426_s7 + $0x120] sm:$0xf]  ;;  %v1245_v10 = vld [vmem:[%s1426_s7 + $0x124] sm:$0xf0]  ;;  %v1023_v12 = vld [vmem:[%s1426_s7 + $0x28] sm:$0xf0]  ;;  %v1086_v14 = vor.u32 %v1229_v8, %v1085_v6 }
  0x40   : > { %685 = vmatpush.bf16.msra.mxu1 %v1102_v54  ;;  %723 = vmatpush.bf16.msra.mxu3 %v1042_v59  ;;  %v1150_v15 = vor.u32 %v1245_v10, %v1149_v9  ;;  %v1013_v16 = vld [vmem:[%s1426_s7 + $0x10] sm:$0xf]  ;;  %v1211_v17 = vld [vmem:[%s1426_s7 + $0x14] sm:$0xf0]  ;;  %v1026_v19 = vor.u32 %v1212_v11, %v1023_v12  ;;  %v1210_v23 = vld [vmem:[%s1426_s7 + $0x14] sm:$0xf] }
  0x41   : > { %704 = vmatpush.bf16.msra.mxu2 %v1166_v55  ;;  %v1077_v18 = vld [vmem:[%s1426_s7 + $0x90] sm:$0xf]  ;;  %v1227_v20 = vld [vmem:[%s1426_s7 + $0x94] sm:$0xf0]  ;;  %v1015_v24 = vld [vmem:[%s1426_s7 + $0x18] sm:$0xf0]  ;;  %v1014_v25 = vor.u32 %v1211_v17, %v1013_v16 }
  0x42   : > { %v1141_v21 = vld [vmem:[%s1426_s7 + $0x110] sm:$0xf]  ;;  %v1243_v22 = vld [vmem:[%s1426_s7 + $0x114] sm:$0xf0]  ;;  %v1005_v26 = vld [vmem:[%s1426_s7] sm:$0xf]  ;;  %v1078_v29 = vor.u32 %v1227_v20, %v1077_v18  ;;  %v1018_v34 = vor.u32 %v1210_v23, %v1015_v24 }
  0x43   : > { %667 = vmatpush.bf16.msra.mxu0 %v1030_v1  ;;  %v1209_v27 = vld [vmem:[%s1426_s7 + $0x4] sm:$0xf0]  ;;  %v1069_v28 = vld [vmem:[%s1426_s7 + $0x80] sm:$0xf]  ;;  %v1142_v30 = vor.u32 %v1243_v22, %v1141_v21  ;;  %v1208_v35 = vld [vmem:[%s1426_s7 + $0x4] sm:$0xf] }
  0x44   : > { %686 = vmatpush.bf16.msra.mxu1 %v1094_v2  ;;  %724 = vmatpush.bf16.msra.mxu3 %v1034_v7  ;;  %v1225_v31 = vld [vmem:[%s1426_s7 + $0x84] sm:$0xf0]  ;;  %v1133_v32 = vld [vmem:[%s1426_s7 + $0x100] sm:$0xf]  ;;  %v1007_v36 = vld [vmem:[%s1426_s7 + $0x8] sm:$0xf0]  ;;  %v1006_v41 = vor.u32 %v1209_v27, %v1005_v26 }
  0x45   : > { %705 = vmatpush.bf16.msra.mxu2 %v1158_v3  ;;  %v1241_v33 = vld [vmem:[%s1426_s7 + $0x104] sm:$0xf0]  ;;  %v981_v37 = vld [vmem:[%s1428_s8] sm:$0xf]  ;;  %v1203_v38 = vld [vmem:[%s1428_s8 + $0x8] sm:$0xf0]  ;;  %v1070_v45 = vor.u32 %v1225_v31, %v1069_v28  ;;  %v1010_v50 = vor.u32 %v1208_v35, %v1007_v36 }
  0x46   : > { %v1238_v39 = vld [vmem:[%s1426_s7 + $0xf4] sm:$0xf]  ;;  %v1127_v40 = vld [vmem:[%s1426_s7 + $0xf8] sm:$0xf0]  ;;  %v1134_v46 = vor.u32 %v1241_v33, %v1133_v32  ;;  %v983_v47 = vld [vmem:[%s1428_s8 + $0xc] sm:$0xf0]  ;;  %v982_v52 = vor.u32 %v1203_v38, %v981_v37 }
  0x47   : > { %668 = vmatpush.bf16.msra.mxu0 %v1022_v13  ;;  %v1202_v42 = vld [vmem:[%s1428_s8 + $0x4] sm:$0xf]  ;;  %v1191_v44 = vld [vmem:[%s1426_s7 + $0x178] sm:$0xf0]  ;;  %v989_v48 = vld [vmem:[%s1428_s8 + $0x8] sm:$0xf]  ;;  %v1130_v51 = vor.u32 %v1238_v39, %v1127_v40 }
  0x48   : > { %687 = vmatpush.bf16.msra.mxu1 %v1086_v14  ;;  %725 = vmatpush.bf16.msra.mxu3 %v1026_v19  ;;  %v1254_v43 = vld [vmem:[%s1426_s7 + $0x174] sm:$0xf]  ;;  %v1236_v54 = vld [vmem:[%s1426_s7 + $0xe4] sm:$0xf]  ;;  %v1119_v55 = vld [vmem:[%s1426_s7 + $0xe8] sm:$0xf0]  ;;  %v1507_v56 = vor.u32 %v1202_v42, %v983_v47 }
  0x49   : > { %706 = vmatpush.bf16.msra.mxu2 %v1150_v15  ;;  %v1204_v49 = vld [vmem:[%s1428_s8 + $0x10] sm:$0xf0]  ;;  %v1194_v53 = vor.u32 %v1254_v43, %v1191_v44  ;;  %v1183_v59 = vld [vmem:[%s1426_s7 + $0x168] sm:$0xf0]  ;;  %v1122_v60 = vor.u32 %v1236_v54, %v1119_v55  ;;  %v1111_v63 = vld [vmem:[%s1426_s7 + $0xd8] sm:$0xf0] }
  0x4a   : > { %v1509_v57 = vor.u32 %v1204_v49, %v989_v48  ;;  %v1252_v58 = vld [vmem:[%s1426_s7 + $0x164] sm:$0xf]  ;;  %v1234_v62 = vld [vmem:[%s1426_s7 + $0xd4] sm:$0xf]  ;;  %v1175_v1 = vld [vmem:[%s1426_s7 + $0x158] sm:$0xf0] }
  0x4b   : > { %669 = vmatpush.bf16.msra.mxu0 %v1014_v25  ;;  %v1186_v61 = vor.u32 %v1252_v58, %v1183_v59  ;;  %v1250_v0 = vld [vmem:[%s1426_s7 + $0x154] sm:$0xf]  ;;  %v1114_v2 = vor.u32 %v1234_v62, %v1111_v63  ;;  %v1232_v4 = vld [vmem:[%s1426_s7 + $0xc4] sm:$0xf]  ;;  %v1103_v5 = vld [vmem:[%s1426_s7 + $0xc8] sm:$0xf0] }
  0x4c   : > { %688 = vmatpush.bf16.msra.mxu1 %v1078_v29  ;;  %726 = vmatpush.bf16.msra.mxu3 %v1018_v34  ;;  %v1178_v3 = vor.u32 %v1250_v0, %v1175_v1  ;;  %v1248_v6 = vld [vmem:[%s1426_s7 + $0x144] sm:$0xf]  ;;  %v1167_v7 = vld [vmem:[%s1426_s7 + $0x148] sm:$0xf0]  ;;  %v1106_v8 = vor.u32 %v1232_v4, %v1103_v5  ;;  %v993_v9 = vld [vmem:[%s1428_s8 + $0x18] sm:$0xf] }
  0x4d   : > { %707 = vmatpush.bf16.msra.mxu2 %v1142_v30  ;;  %v1170_v10 = vor.u32 %v1248_v6, %v1167_v7  ;;  %v1206_v11 = vld [vmem:[%s1428_s8 + $0x20] sm:$0xf0]  ;;  %v1095_v13 = vld [vmem:[%s1426_s7 + $0xb8] sm:$0xf0]  ;;  %v995_v17 = vld [vmem:[%s1428_s8 + $0x24] sm:$0xf0] }
  0x4e   : > { %v1230_v12 = vld [vmem:[%s1426_s7 + $0xb4] sm:$0xf]  ;;  %v1205_v14 = vld [vmem:[%s1428_s8 + $0x1c] sm:$0xf]  ;;  %v1001_v18 = vld [vmem:[%s1428_s8 + $0x20] sm:$0xf]  ;;  %v994_v21 = vor.u32 %v1206_v11, %v993_v9 }
  0x4f   : > { %670 = vmatpush.bf16.msra.mxu0 %v1006_v41  ;;  %v1246_v15 = vld [vmem:[%s1426_s7 + $0x134] sm:$0xf]  ;;  %v1159_v16 = vld [vmem:[%s1426_s7 + $0x138] sm:$0xf0]  ;;  %v1098_v20 = vor.u32 %v1230_v12, %v1095_v13  ;;  %v1228_v23 = vld [vmem:[%s1426_s7 + $0xa4] sm:$0xf]  ;;  %v998_v25 = vor.u32 %v1205_v14, %v995_v17 }
  0x50   : > { %689 = vmatpush.bf16.msra.mxu1 %v1070_v45  ;;  %727 = vmatpush.bf16.msra.mxu3 %v1010_v50  ;;  %v1207_v19 = vld [vmem:[%s1428_s8 + $0x28] sm:$0xf0]  ;;  %v1162_v22 = vor.u32 %v1246_v15, %v1159_v16  ;;  %v1244_v27 = vld [vmem:[%s1426_s7 + $0x124] sm:$0xf]  ;;  %v1226_v31 = vld [vmem:[%s1426_s7 + $0x94] sm:$0xf] }
  0x51   : > { %708 = vmatpush.bf16.msra.mxu2 %v1134_v46  ;;  %v1087_v24 = vld [vmem:[%s1426_s7 + $0xa8] sm:$0xf0]  ;;  %v1002_v26 = vor.u32 %v1207_v19, %v1001_v18  ;;  %v1079_v32 = vld [vmem:[%s1426_s7 + $0x98] sm:$0xf0]  ;;  %v1242_v33 = vld [vmem:[%s1426_s7 + $0x114] sm:$0xf] }
  0x52   : > { %671 = vmatmul.bf16.vlgmr.msra.gmra.mxu0 %v982_v52  ;;  %v1151_v28 = vld [vmem:[%s1426_s7 + $0x128] sm:$0xf0]  ;;  %v1090_v29 = vor.u32 %v1228_v23, %v1087_v24  ;;  %v1143_v34 = vld [vmem:[%s1426_s7 + $0x118] sm:$0xf0]  ;;  %v1082_v35 = vor.u32 %v1226_v31, %v1079_v32  ;;  %v1224_v37 = vld [vmem:[%s1426_s7 + $0x84] sm:$0xf] }
  0x53   : > { %690 = vmatmul.bf16.vlgmr.msra.gmra.mxu1 %v1507_v56  ;;  %728 = vmatmul.bf16.vlgmr.msra.gmra.mxu3 %v982_v52  ;;  %v1154_v30 = vor.u32 %v1244_v27, %v1151_v28  ;;  %v1146_v36 = vor.u32 %v1242_v33, %v1143_v34  ;;  %v1071_v38 = vld [vmem:[%s1426_s7 + $0x88] sm:$0xf0]  ;;  %v1240_v39 = vld [vmem:[%s1426_s7 + $0x104] sm:$0xf]  ;;  %v327_v46 = vld [vmem:[#allocation2 + $0x30] sm:$0xff]  ;;  %p1195_p11 = scmp.ne.s32.totalorder %s1345_s14, 2 }
  0x54   : > { %758 = vmatpush.bf16.msrb.mxu1 %v1194_v53  ;;  %709 = vmatmul.bf16.vlgmr.msra.gmra.mxu2 %v1509_v57  ;;  %v1135_v40 = vld [vmem:[%s1426_s7 + $0x108] sm:$0xf0]  ;;  %v1074_v41 = vor.u32 %v1224_v37, %v1071_v38  ;;  %v329_v54 = vld [vmem:[#allocation2 + $0x18] sm:$0xff]  ;;  %v328_v14 = vld [vmem:[#allocation2] sm:$0xff] }
  0x55   : > { %1256 = vmatpush.bf16.msrb.mxu2 %v1130_v51  ;;  %739 = vmatpush.bf16.msrb.mxu0 %v1130_v51  ;;  %v1138_v42 = vor.u32 %v1240_v39, %v1135_v40  ;;  %v331_v62 = vld [vmem:[#allocation2 + $0x8] sm:$0xff]  ;;  %v330_v24 = vld [vmem:[#allocation2 + $0x10] sm:$0xff]  ;;  %v334_v31 = vld [vmem:[#allocation2 + $0x38] sm:$0xff] }
  0x56   : > { %1264 = vmatpush.bf16.msrb.mxu3 %v1194_v53  ;;  %v333_v6 = vld [vmem:[#allocation2 + $0x28] sm:$0xff] }
  0x58   : > { %759 = vmatpush.bf16.msrb.mxu1 %v1186_v61 }
  0x59   : > { %1257 = vmatpush.bf16.msrb.mxu2 %v1122_v60  ;;  %740 = vmatpush.bf16.msrb.mxu0 %v1122_v60 }
  0x5a   : > { %1265 = vmatpush.bf16.msrb.mxu3 %v1186_v61 }
  0x5c   : > { %760 = vmatpush.bf16.msrb.mxu1 %v1178_v3 }
  0x5d   : > { %1258 = vmatpush.bf16.msrb.mxu2 %v1114_v2  ;;  %741 = vmatpush.bf16.msrb.mxu0 %v1114_v2 }
  0x5e   : > { %1266 = vmatpush.bf16.msrb.mxu3 %v1178_v3 }
  0x60   : > { %761 = vmatpush.bf16.msrb.mxu1 %v1170_v10 }
  0x61   : > { %1259 = vmatpush.bf16.msrb.mxu2 %v1106_v8  ;;  %742 = vmatpush.bf16.msrb.mxu0 %v1106_v8 }
  0x62   : > { %1267 = vmatpush.bf16.msrb.mxu3 %v1170_v10  ;;  %676 = vmatmul.bf16.gmra.mxu0 %v994_v21 }
  0x63   : > { %695 = vmatmul.bf16.gmra.mxu1 %v998_v25  ;;  %733 = vmatmul.bf16.gmra.mxu3 %v994_v21 }
  0x64   : > { %762 = vmatpush.bf16.msrb.mxu1 %v1162_v22  ;;  %714 = vmatmul.bf16.gmra.mxu2 %v1002_v26 }
  0x65   : > { %1260 = vmatpush.bf16.msrb.mxu2 %v1098_v20  ;;  %743 = vmatpush.bf16.msrb.mxu0 %v1098_v20  ;;  %v332_v20 = vld [vmem:[#allocation2 + $0x20] sm:$0xff] }
  0x66   : > { %1268 = vmatpush.bf16.msrb.mxu3 %v1162_v22 }
  0x68   : > { %763 = vmatpush.bf16.msrb.mxu1 %v1154_v30 }
  0x69   : > { %1261 = vmatpush.bf16.msrb.mxu2 %v1090_v29  ;;  %744 = vmatpush.bf16.msrb.mxu0 %v1090_v29 }
  0x6a   : > { %1269 = vmatpush.bf16.msrb.mxu3 %v1154_v30 }
  0x6c   : > { %764 = vmatpush.bf16.msrb.mxu1 %v1146_v36 }
  0x6d   : > { %1262 = vmatpush.bf16.msrb.mxu2 %v1082_v35  ;;  %745 = vmatpush.bf16.msrb.mxu0 %v1082_v35 }
  0x6e   : > { %1270 = vmatpush.bf16.msrb.mxu3 %v1146_v36 }
  0x70   : > { %765 = vmatpush.bf16.msrb.mxu1 %v1138_v42 }
  0x71   : > { %1263 = vmatpush.bf16.msrb.mxu2 %v1074_v41  ;;  %746 = vmatpush.bf16.msrb.mxu0 %v1074_v41 }
  0x72   : > { %1271 = vmatpush.bf16.msrb.mxu3 %v1138_v42 }
  0x73   : > { %766 = vmatmul.bf16.vlgmr.msrb.gmra.mxu1 %v1509_v57 }
  0x74   : > { %747 = vmatmul.bf16.vlgmr.msrb.gmra.mxu0 %v1507_v56  ;;  %752 = vmatmul.bf16.vlgmr.msrb.gmra.mxu2 %v998_v25 }
  0x75   : > { %771 = vmatmul.bf16.vlgmr.msrb.gmra.mxu3 %v1002_v26 }
  0xcf   : > { %v672_v43 = vpop.f32.mrf.mxu0 }
  0xd0   : > { %v691_v44 = vpop.f32.mrf.mxu1 }
  0xd1   : > { %v692_v45 = vadd.f32 %v691_v44, %v672_v43 }
  0xd6   : > { %v729_v49 = vpop.f32.mrf.mxu3 }
  0xd7   : > { %v710_v47 = vpop.f32.mrf.mxu2  ;;  %v674_v50 = vpop.f32.mrf.mxu0 }
  0xd8   : > { %v711_v48 = vadd.f32 %v710_v47, %v692_v45  ;;  %v693_v51 = vpop.f32.mrf.mxu1 }
  0xd9   : > { %v694_v53 = vadd.f32 %v693_v51, %v674_v50 }
  0xda   : > { %v777_v52 = vadd.f32 %v711_v48, %v327_v46 }
  0xdc   : > { %785 = vst [vmem:[#allocation2 + $0x30] sm:$0xff] %v777_v52 }
  0xde   : > { %v731_v56 = vpop.f32.mrf.mxu3 }
  0xdf   : > { %v712_v55 = vpop.f32.mrf.mxu2  ;;  %v677_v59 = vpop.f32.mrf.mxu0 }
  0xe0   : > { %v713_v58 = vadd.f32 %v712_v55, %v694_v53  ;;  %v696_v60 = vpop.f32.mrf.mxu1 }
  0xe1   : > { %v697_v61 = vadd.f32 %v696_v60, %v677_v59 }
  0xe2   : > { %v779_v57 = vadd.f32 %v713_v58, %v329_v54 }
  0xe4   : > { %787 = vst [vmem:[#allocation2 + $0x18] sm:$0xff] %v779_v57 }
  0xe6   : > { %v734_v1 = vpop.f32.mrf.mxu3 }
  0xe7   : > { %v715_v63 = vpop.f32.mrf.mxu2  ;;  %v679_v2 = vpop.f32.mrf.mxu0 }
  0xe8   : > { %v716_v0 = vadd.f32 %v715_v63, %v697_v61  ;;  %v698_v3 = vpop.f32.mrf.mxu1 }
  0xe9   : > { %v699_v5 = vadd.f32 %v698_v3, %v679_v2 }
  0xea   : > { %v781_v4 = vadd.f32 %v716_v0, %v331_v62 }
  0xec   : > { %789 = vst [vmem:[#allocation2 + $0x8] sm:$0xff] %v781_v4 }
  0xee   : > { %v736_v9 = vpop.f32.mrf.mxu3 }
  0xef   : > { %v717_v7 = vpop.f32.mrf.mxu2 }
  0xf0   : > { %v718_v8 = vadd.f32 %v717_v7, %v699_v5  ;;  %v767_v13 = vpop.f32.mrf.mxu1 }
  0xf1   : > { %v748_v10 = vpop.f32.mrf.mxu0 }
  0xf2   : > { %v783_v11 = vadd.f32 %v718_v8, %v333_v6  ;;  %v749_v12 = vadd.f32 %v748_v10, %v729_v49 }
  0xf4   : > { %791 = vst [vmem:[#allocation2 + $0x28] sm:$0xff] %v783_v11  ;;  %v768_v15 = vadd.f32 %v767_v13, %v749_v12 }
  0xf6   : > { %v778_v16 = vadd.f32 %v768_v15, %v328_v14 }
  0xf7   : > { %v753_v17 = vpop.f32.mrf.mxu2 }
  0xf8   : > { %786 = vst [vmem:[#allocation2] sm:$0xff] %v778_v16  ;;  %v754_v18 = vadd.f32 %v753_v17, %v734_v1  ;;  %v772_v19 = vpop.f32.mrf.mxu3  ;;  %v769_v25 = vpop.f32.mrf.mxu1 }
  0xf9   : > { %v750_v21 = vpop.f32.mrf.mxu0 }
  0xfa   : > { %v773_v22 = vadd.f32 %v772_v19, %v754_v18  ;;  %v751_v23 = vadd.f32 %v750_v21, %v731_v56 }
  0xfc   : > { %v782_v26 = vadd.f32 %v773_v22, %v332_v20  ;;  %v770_v27 = vadd.f32 %v769_v25, %v751_v23 }
  0xfe   : > { %790 = vst [vmem:[#allocation2 + $0x20] sm:$0xff] %v782_v26  ;;  %v780_v28 = vadd.f32 %v770_v27, %v330_v24 }
  0xff   : > { %v755_v29 = vpop.f32.mrf.mxu2 }
 0x100   : > { %788 = vst [vmem:[#allocation2 + $0x10] sm:$0xff] %v780_v28  ;;  %v756_v30 = vadd.f32 %v755_v29, %v736_v9  ;;  %v774_v32 = vpop.f32.mrf.mxu3 }
 0x102   : > { %v775_v33 = vadd.f32 %v774_v32, %v756_v30  ;;  %796 = sbr.rel (%p1195_p11) target bundleno = 278 (0x116), region = 66 }
 0x104   : > { %v784_v34 = vadd.f32 %v775_v33, %v334_v31 }
 0x106   : > { %792 = vst [vmem:[#allocation2 + $0x38] sm:$0xff] %v784_v34 }
 0x107   : > { %v797_v35 = vld [vmem:[#allocation2 + $0x30] sm:$0xff]  ;;  %v805_v36 = vld [vmem:[%s1592_s2] sm:$0x3]  ;;  %v799_v40 = vld [vmem:[#allocation2 + $0x18] sm:$0xff] }
 0x108   : > { %v798_v37 = vld [vmem:[#allocation2] sm:$0xff]  ;;  %v807_v38 = vperm.slane %v805_v36, 0  ;;  %v808_v39 = vperm.slane %v805_v36, 1  ;;  %v800_v41 = vld [vmem:[#allocation2 + $0x10] sm:$0xff]  ;;  %v801_v42 = vld [vmem:[#allocation2 + $0x8] sm:$0xff] }
 0x109   : > { %v802_v43 = vld [vmem:[#allocation2 + $0x20] sm:$0xff]  ;;  %v803_v44 = vld [vmem:[#allocation2 + $0x28] sm:$0xff] }
 0x10a   : > { %v811_v45 = vadd.f32 %v807_v38, %v797_v35  ;;  %v812_v46 = vadd.f32 %v808_v39, %v798_v37  ;;  %v813_v47 = vadd.f32 %v807_v38, %v799_v40  ;;  %v814_v48 = vadd.f32 %v808_v39, %v800_v41 }
 0x10b   : > { %v815_v50 = vadd.f32 %v807_v38, %v801_v42  ;;  %v816_v51 = vadd.f32 %v808_v39, %v802_v43  ;;  %v817_v55 = vadd.f32 %v807_v38, %v803_v44 }
 0x10c   : > { %v819_v52 = vmax.f32 %v811_v45, 0.0  ;;  %v820_v53 = vmax.f32 %v812_v46, 0.0  ;;  %v821_v54 = vmax.f32 %v813_v47, 0.0  ;;  %v822_v58 = vmax.f32 %v814_v48, 0.0 }
 0x10d   : > { %v804_v49 = vld [vmem:[#allocation2 + $0x38] sm:$0xff]  ;;  %v823_v59 = vmax.f32 %v815_v50, 0.0  ;;  %v824_v60 = vmax.f32 %v816_v51, 0.0  ;;  %v825_v57 = vmax.f32 %v817_v55, 0.0 }
 0x10e   : > { %v818_v56 = vadd.f32 %v808_v39, %v804_v49  ;;  %827 = vst [vmem:[%s1593_s3] sm:$0xff] %v819_v52 }
 0x10f   : > { %828 = vst [vmem:[%s1593_s3 + $0x8] sm:$0xff] %v820_v53 }
 0x110   : > { %829 = vst [vmem:[%s1593_s3 + $0x10] sm:$0xff] %v821_v54  ;;  %v826_v61 = vmax.f32 %v818_v56, 0.0 }
 0x111   : > { %830 = vst [vmem:[%s1593_s3 + $0x18] sm:$0xff] %v822_v58 }
 0x112   : > { %831 = vst [vmem:[%s1593_s3 + $0x20] sm:$0xff] %v823_v59 }
 0x113   : > { %832 = vst [vmem:[%s1593_s3 + $0x28] sm:$0xff] %v824_v60 }
 0x114   : > { %833 = vst [vmem:[%s1593_s3 + $0x30] sm:$0xff] %v825_v57 }
 0x115   : > { %834 = vst [vmem:[%s1593_s3 + $0x38] sm:$0xff] %v826_v61 }
 0x116 PF: > { %s13_s16 = sadd.s32 1, %s1353_s16   ;;  %s1594_s12 = smov %s1341_s13 }
 0x117   : > { %p10_p12 = scmp.ge.s32.totalorder %s13_s16, 5   ;;  %s1595_s13 = smov %s1411_s20 }
 0x118   : > { %s1596_s14 = smov %s1349_s15  ;;  %s1597_s15 = smov %s1599_s17 }
 0x119   :  { %12 = sbr.rel (!%p10_p12) target bundleno = 3 (0x3), region = 113 }

// kernel: dualnet_forward.51
= control target key start
LH: loop header
LB: loop body
LE: loop exit
PB: predicated region body
PF: predicated region fallthrough
CT: control target
= control target key end

     0   :  { %v180_v12 = vmov 256.0   ;;  %s295_s0 = inlined_call_operand.vmem [shape: f32[32,256], index: 0, kind: input, shape index: {}]   ;;  %s296_s1 = inlined_call_operand.vmem [shape: f32[1,256], index: 1, kind: input, shape index: {}]   ;;  %s297_s2 = inlined_call_operand.vmem [shape: f32[1,256], index: 2, kind: input, shape index: {}]   ;;  %s298_s3 = inlined_call_operand.vmem [shape: f32[32,256], index: 3, kind: output, shape index: {}]  }
   0x1   :  { %v18_v0 = vld [vmem:[%s295_s0 + $0x20] sm:$0xff]  ;;  %v19_v1 = vld [vmem:[%s295_s0 + $0x28] sm:$0xff]  ;;  %v20_v6 = vld [vmem:[%s295_s0 + $0x30] sm:$0xff]  ;;  %170 = vrcp.f32 %v180_v12 }
   0x2   :  { %v14_v2 = vld [vmem:[%s295_s0] sm:$0xff]  ;;  %v28_v3 = vadd.f32 %v19_v1, %v18_v0  ;;  %v15_v4 = vld [vmem:[%s295_s0 + $0x8] sm:$0xff]  ;;  %v21_v7 = vld [vmem:[%s295_s0 + $0x38] sm:$0xff] }
   0x3   :  { %v22_v5 = vadd.f32 %v15_v4, %v14_v2  ;;  %v16_v8 = vld [vmem:[%s295_s0 + $0x10] sm:$0xff]  ;;  %v17_v9 = vld [vmem:[%s295_s0 + $0x18] sm:$0xff]  ;;  %v31_v10 = vadd.f32 %v21_v7, %v20_v6 }
   0x4   :  { %29 = vadd.xlane.f32.xlu1 %v28_v3  ;;  %v25_v11 = vadd.f32 %v17_v9, %v16_v8 }
   0x5   :  { %23 = vadd.xlane.f32.xlu0 %v22_v5 }
   0x7   :  { %v171_v13 = vpop.eup %170 }
   0x8   :  { %v35_v14 = vmul.f32 256.0, %v171_v13  ;;  %vm39_vm0 = vweird.f32 %v171_v13 }
   0xa   :  { %v36_v15 = vsub.f32 1.0, %v35_v14 }
   0xc   :  { %32 = vadd.xlane.f32.xlu1 %v31_v10  ;;  %v37_v16 = vmul.f32 %v171_v13, %v36_v15 }
   0xd   :  { %26 = vadd.xlane.f32.xlu0 %v25_v11 }
   0xe   :  { %v38_v17 = vadd.f32 %v171_v13, %v37_v16 }
  0x10   :  { %v40_v18 = vsel %vm39_vm0, %v171_v13, %v38_v17 }
  0x77   :  { %v30_v19 = vpop.xlane.xlu1 %29 }
  0x78   :  { %v43_v20 = vmul.f32 %v40_v18, %v30_v19  ;;  %v24_v21 = vpop.xlane.xlu0 %23 }
  0x79   :  { %v41_v22 = vmul.f32 %v40_v18, %v24_v21 }
  0x7a   :  { %v225_v23 = vsub.f32 %v18_v0, %v43_v20  ;;  %v227_v24 = vsub.f32 %v19_v1, %v43_v20 }
  0x7b   :  { %v229_v25 = vsub.f32 %v14_v2, %v41_v22  ;;  %v231_v26 = vsub.f32 %v15_v4, %v41_v22  ;;  %v129_v2 = vld [vmem:[%s296_s1] sm:$0x3] }
  0x7c   :  { %v57_v27 = vmul.f32 %v225_v23, %v225_v23  ;;  %v58_v28 = vmul.f32 %v227_v24, %v227_v24  ;;  %v132_v12 = vperm.slane %v129_v2, 1 }
  0x7d   :  { %v53_v29 = vmul.f32 %v229_v25, %v229_v25  ;;  %v54_v30 = vmul.f32 %v231_v26, %v231_v26 }
  0x7e   :  { %v67_v31 = vadd.f32 %v58_v28, %v57_v27 }
  0x7f   :  { %v33_v32 = vpop.xlane.xlu1 %32  ;;  %v61_v33 = vadd.f32 %v54_v30, %v53_v29 }
  0x80   :  { %v44_v34 = vmul.f32 %v40_v18, %v33_v32  ;;  %v27_v35 = vpop.xlane.xlu0 %26  ;;  %68 = vadd.xlane.f32.xlu0 %v67_v31 }
  0x81   :  { %v42_v36 = vmul.f32 %v40_v18, %v27_v35  ;;  %62 = vadd.xlane.f32.xlu2 %v61_v33 }
  0x82   :  { %v241_v37 = vsub.f32 %v20_v6, %v44_v34  ;;  %v243_v38 = vsub.f32 %v21_v7, %v44_v34  ;;  %v143_v6 = vld [vmem:[%s297_s2] sm:$0x3] }
  0x83   :  { %v245_v39 = vsub.f32 %v16_v8, %v42_v36  ;;  %v247_v40 = vsub.f32 %v17_v9, %v42_v36  ;;  %v131_v9 = vperm.slane %v129_v2, 0  ;;  %v145_v15 = vperm.slane %v143_v6, 0 }
  0x84   :  { %v59_v41 = vmul.f32 %v241_v37, %v241_v37  ;;  %v60_v42 = vmul.f32 %v243_v38, %v243_v38  ;;  %v146_v22 = vperm.slane %v143_v6, 1 }
  0x85   :  { %v55_v43 = vmul.f32 %v245_v39, %v245_v39  ;;  %v56_v44 = vmul.f32 %v247_v40, %v247_v40 }
  0x86   :  { %v70_v45 = vadd.f32 %v60_v42, %v59_v41 }
  0x87   :  { %v64_v46 = vadd.f32 %v56_v44, %v55_v43 }
  0x88   :  { %71 = vadd.xlane.f32.xlu1 %v70_v45 }
  0x89   :  { %65 = vadd.xlane.f32.xlu2 %v64_v46 }
  0xf3   :  { %v69_v47 = vpop.xlane.xlu0 %68 }
  0xf4   :  { %v63_v48 = vpop.xlane.xlu2 %62  ;;  %v75_v49 = vmul.f32 %v69_v47, %v40_v18 }
  0xf5   :  { %v73_v50 = vmul.f32 %v63_v48, %v40_v18 }
  0xf6   :  { %v79_v51 = vadd.f32 1e-05, %v75_v49 }
  0xf7   :  { %v77_v52 = vadd.f32 1e-05, %v73_v50 }
  0xf8   :  { %172 = vrsqrt.f32 %v79_v51  ;;  %vm107_vm3 = vweird.f32 %v79_v51 }
  0xf9   :  { %174 = vrsqrt.f32 %v77_v52  ;;  %vm87_vm4 = vweird.f32 %v77_v52 }
  0xfb   :  { %v72_v53 = vpop.xlane.xlu1 %71 }
  0xfc   :  { %v76_v54 = vmul.f32 %v72_v53, %v40_v18  ;;  %v66_v55 = vpop.xlane.xlu2 %65 }
  0xfd   :  { %v74_v56 = vmul.f32 %v66_v55, %v40_v18 }
  0xfe   :  { %v173_v57 = vpop.eup %172  ;;  %v80_v58 = vadd.f32 1e-05, %v76_v54 }
  0xff   :  { %v175_v59 = vpop.eup %174  ;;  %v102_v60 = vmul.f32 %v173_v57, %v79_v51  ;;  %v78_v61 = vadd.f32 1e-05, %v74_v56  ;;  %vm108_vm1 = vweird.f32 %v173_v57 }
 0x100   :  { %v82_v62 = vmul.f32 %v175_v59, %v77_v52  ;;  %176 = vrsqrt.f32 %v80_v58  ;;  %vm88_vm2 = vweird.f32 %v175_v59  ;;  %vm109_vm5 = vmor %vm107_vm3, %vm108_vm1  ;;  %vm117_vm8 = vweird.f32 %v80_v58 }
 0x101   :  { %v103_v63 = vmul.f32 %v173_v57, %v102_v60  ;;  %178 = vrsqrt.f32 %v78_v61  ;;  %vm89_vm6 = vmor %vm87_vm4, %vm88_vm2  ;;  %vm97_vm11 = vweird.f32 %v78_v61 }
 0x102   :  { %v83_v0 = vmul.f32 %v175_v59, %v82_v62 }
 0x103   :  { %v104_v1 = vmul.f32 0.5, %v103_v63 }
 0x104   :  { %v84_v3 = vmul.f32 0.5, %v83_v0 }
 0x105   :  { %v105_v4 = vsub.f32 1.5, %v104_v1 }
 0x106   :  { %v177_v5 = vpop.eup %176  ;;  %v85_v7 = vsub.f32 1.5, %v84_v3 }
 0x107   :  { %v179_v8 = vpop.eup %178  ;;  %v106_v10 = vmul.f32 %v173_v57, %v105_v4  ;;  %v112_v11 = vmul.f32 %v177_v5, %v80_v58  ;;  %vm118_vm7 = vweird.f32 %v177_v5 }
 0x108   :  { %v86_v13 = vmul.f32 %v175_v59, %v85_v7  ;;  %v92_v14 = vmul.f32 %v179_v8, %v78_v61  ;;  %vm98_vm9 = vweird.f32 %v179_v8  ;;  %vm119_vm10 = vmor %vm117_vm8, %vm118_vm7 }
 0x109   :  { %v110_v16 = vsel %vm109_vm5, %v173_v57, %v106_v10  ;;  %v113_v17 = vmul.f32 %v177_v5, %v112_v11  ;;  %vm99_vm12 = vmor %vm97_vm11, %vm98_vm9 }
 0x10a   :  { %v90_v18 = vsel %vm89_vm6, %v175_v59, %v86_v13  ;;  %v125_v19 = vmul.f32 %v110_v16, %v225_v23  ;;  %v126_v20 = vmul.f32 %v110_v16, %v227_v24  ;;  %v93_v21 = vmul.f32 %v179_v8, %v92_v14 }
 0x10b   :  { %v121_v27 = vmul.f32 %v90_v18, %v229_v25  ;;  %v122_v28 = vmul.f32 %v90_v18, %v231_v26  ;;  %v114_v29 = vmul.f32 0.5, %v113_v17 }
 0x10c   :  { %v139_v30 = vmul.f32 %v131_v9, %v125_v19  ;;  %v140_v31 = vmul.f32 %v132_v12, %v126_v20  ;;  %v94_v32 = vmul.f32 0.5, %v93_v21 }
 0x10d   :  { %v135_v33 = vmul.f32 %v131_v9, %v121_v27  ;;  %v136_v34 = vmul.f32 %v132_v12, %v122_v28  ;;  %v115_v35 = vsub.f32 1.5, %v114_v29 }
 0x10e   :  { %v153_v36 = vadd.f32 %v145_v15, %v139_v30  ;;  %v95_v41 = vsub.f32 1.5, %v94_v32  ;;  %v154_v42 = vadd.f32 %v146_v22, %v140_v31 }
 0x10f   :  { %v149_v23 = vadd.f32 %v145_v15, %v135_v33  ;;  %v150_v24 = vadd.f32 %v146_v22, %v136_v34  ;;  %v116_v43 = vmul.f32 %v177_v5, %v115_v35 }
 0x110   :  { %161 = vst [vmem:[%s298_s3 + $0x20] sm:$0xff] %v153_v36  ;;  %v96_v25 = vmul.f32 %v179_v8, %v95_v41 }
 0x111   :  { %157 = vst [vmem:[%s298_s3] sm:$0xff] %v149_v23  ;;  %v120_v26 = vsel %vm119_vm10, %v177_v5, %v116_v43 }
 0x112   :  { %158 = vst [vmem:[%s298_s3 + $0x8] sm:$0xff] %v150_v24  ;;  %v127_v44 = vmul.f32 %v120_v26, %v241_v37  ;;  %v128_v45 = vmul.f32 %v120_v26, %v243_v38  ;;  %v100_v46 = vsel %vm99_vm12, %v179_v8, %v96_v25 }
 0x113   :  { %162 = vst [vmem:[%s298_s3 + $0x28] sm:$0xff] %v154_v42  ;;  %v123_v47 = vmul.f32 %v100_v46, %v245_v39  ;;  %v124_v48 = vmul.f32 %v100_v46, %v247_v40 }
 0x114   :  { %v141_v49 = vmul.f32 %v131_v9, %v127_v44  ;;  %v142_v50 = vmul.f32 %v132_v12, %v128_v45 }
 0x115   :  { %v137_v51 = vmul.f32 %v131_v9, %v123_v47  ;;  %v138_v52 = vmul.f32 %v132_v12, %v124_v48 }
 0x116   :  { %v155_v53 = vadd.f32 %v145_v15, %v141_v49  ;;  %v156_v54 = vadd.f32 %v146_v22, %v142_v50 }
 0x117   :  { %v151_v55 = vadd.f32 %v145_v15, %v137_v51  ;;  %v152_v56 = vadd.f32 %v146_v22, %v138_v52 }
 0x118   :  { %163 = vst [vmem:[%s298_s3 + $0x30] sm:$0xff] %v155_v53 }
 0x119   :  { %164 = vst [vmem:[%s298_s3 + $0x38] sm:$0xff] %v156_v54 }
 0x11a   :  { %159 = vst [vmem:[%s298_s3 + $0x10] sm:$0xff] %v151_v55 }
 0x11b   :  { %160 = vst [vmem:[%s298_s3 + $0x18] sm:$0xff] %v152_v56 }

// kernel: dualnet_forward.53
= control target key start
LH: loop header
LB: loop body
LE: loop exit
PB: predicated region body
PF: predicated region fallthrough
CT: control target
= control target key end

     0   :  { %s810_s1 = inlined_call_operand.vmem [shape: bf16[256,256], index: 1, kind: input, shape index: {}]   ;;  %s811_s0 = inlined_call_operand.vmem [shape: bf16[32,256], index: 0, kind: input, shape index: {}]   ;;  %s812_s2 = inlined_call_operand.vmem [shape: f32[1,256], index: 2, kind: input, shape index: {}]   ;;  %s813_s3 = inlined_call_operand.vmem [shape: bf16[32,256], index: 3, kind: output, shape index: {}]  }
   0x1   :  { %v453_v0 = vld [vmem:[%s810_s1 + $0x70] sm:$0xf]  ;;  %v542_v1 = vld [vmem:[%s810_s1 + $0x74] sm:$0xf0]  ;;  %v541_v5 = vld [vmem:[%s810_s1 + $0x74] sm:$0xf] }
   0x2   :  { %v517_v2 = vld [vmem:[%s810_s1 + $0xf0] sm:$0xf]  ;;  %v454_v3 = vor.u32 %v542_v1, %v453_v0  ;;  %v558_v4 = vld [vmem:[%s810_s1 + $0xf4] sm:$0xf0]  ;;  %v455_v6 = vld [vmem:[%s810_s1 + $0x78] sm:$0xf0] }
   0x3   :  { %v518_v7 = vor.u32 %v558_v4, %v517_v2  ;;  %v458_v8 = vor.u32 %v541_v5, %v455_v6  ;;  %v557_v9 = vld [vmem:[%s810_s1 + $0xf4] sm:$0xf]  ;;  %v519_v10 = vld [vmem:[%s810_s1 + $0xf8] sm:$0xf0]  ;;  %v445_v11 = vld [vmem:[%s810_s1 + $0x60] sm:$0xf] }
   0x4   :  { %250 = vmatpush.bf16.msra.mxu0 %v454_v3  ;;  %v522_v12 = vor.u32 %v557_v9, %v519_v10  ;;  %v540_v13 = vld [vmem:[%s810_s1 + $0x64] sm:$0xf0]  ;;  %v509_v14 = vld [vmem:[%s810_s1 + $0xe0] sm:$0xf]  ;;  %v539_v18 = vld [vmem:[%s810_s1 + $0x64] sm:$0xf] }
   0x5   :  { %v556_v15 = vld [vmem:[%s810_s1 + $0xe4] sm:$0xf0]  ;;  %269 = vmatpush.bf16.msra.mxu1 %v518_v7  ;;  %288 = vmatpush.bf16.msra.mxu2 %v458_v8  ;;  %v446_v16 = vor.u32 %v540_v13, %v445_v11  ;;  %v447_v19 = vld [vmem:[%s810_s1 + $0x68] sm:$0xf0]  ;;  %v555_v20 = vld [vmem:[%s810_s1 + $0xe4] sm:$0xf] }
   0x6   :  { %v510_v17 = vor.u32 %v556_v15, %v509_v14  ;;  %307 = vmatpush.bf16.msra.mxu3 %v522_v12  ;;  %v450_v21 = vor.u32 %v539_v18, %v447_v19  ;;  %v511_v22 = vld [vmem:[%s810_s1 + $0xe8] sm:$0xf0]  ;;  %v437_v23 = vld [vmem:[%s810_s1 + $0x50] sm:$0xf]  ;;  %v538_v24 = vld [vmem:[%s810_s1 + $0x54] sm:$0xf0] }
   0x7   :  { %v514_v25 = vor.u32 %v555_v20, %v511_v22  ;;  %v501_v26 = vld [vmem:[%s810_s1 + $0xd0] sm:$0xf]  ;;  %v554_v27 = vld [vmem:[%s810_s1 + $0xd4] sm:$0xf0]  ;;  %v537_v28 = vld [vmem:[%s810_s1 + $0x54] sm:$0xf]  ;;  %v438_v29 = vor.u32 %v538_v24, %v437_v23 }
   0x8   :  { %251 = vmatpush.bf16.msra.mxu0 %v446_v16  ;;  %v439_v30 = vld [vmem:[%s810_s1 + $0x58] sm:$0xf0]  ;;  %v553_v31 = vld [vmem:[%s810_s1 + $0xd4] sm:$0xf]  ;;  %v502_v33 = vor.u32 %v554_v27, %v501_v26  ;;  %v429_v35 = vld [vmem:[%s810_s1 + $0x40] sm:$0xf] }
   0x9   :  { %v503_v32 = vld [vmem:[%s810_s1 + $0xd8] sm:$0xf0]  ;;  %270 = vmatpush.bf16.msra.mxu1 %v510_v17  ;;  %289 = vmatpush.bf16.msra.mxu2 %v450_v21  ;;  %v442_v34 = vor.u32 %v537_v28, %v439_v30  ;;  %v536_v36 = vld [vmem:[%s810_s1 + $0x44] sm:$0xf0]  ;;  %v493_v37 = vld [vmem:[%s810_s1 + $0xc0] sm:$0xf] }
   0xa   :  { %308 = vmatpush.bf16.msra.mxu3 %v514_v25  ;;  %v506_v38 = vor.u32 %v553_v31, %v503_v32  ;;  %v552_v39 = vld [vmem:[%s810_s1 + $0xc4] sm:$0xf0]  ;;  %v535_v40 = vld [vmem:[%s810_s1 + $0x44] sm:$0xf]  ;;  %v431_v41 = vld [vmem:[%s810_s1 + $0x48] sm:$0xf0]  ;;  %v430_v44 = vor.u32 %v536_v36, %v429_v35 }
   0xb   :  { %v551_v42 = vld [vmem:[%s810_s1 + $0xc4] sm:$0xf]  ;;  %v495_v43 = vld [vmem:[%s810_s1 + $0xc8] sm:$0xf0]  ;;  %v494_v45 = vor.u32 %v552_v39, %v493_v37  ;;  %v434_v46 = vor.u32 %v535_v40, %v431_v41  ;;  %v421_v47 = vld [vmem:[%s810_s1 + $0x30] sm:$0xf] }
   0xc   :  { %252 = vmatpush.bf16.msra.mxu0 %v438_v29  ;;  %v534_v48 = vld [vmem:[%s810_s1 + $0x34] sm:$0xf0]  ;;  %v485_v49 = vld [vmem:[%s810_s1 + $0xb0] sm:$0xf]  ;;  %v498_v50 = vor.u32 %v551_v42, %v495_v43  ;;  %v533_v52 = vld [vmem:[%s810_s1 + $0x34] sm:$0xf] }
   0xd   :  { %271 = vmatpush.bf16.msra.mxu1 %v502_v33  ;;  %290 = vmatpush.bf16.msra.mxu2 %v442_v34  ;;  %v550_v51 = vld [vmem:[%s810_s1 + $0xb4] sm:$0xf0]  ;;  %v423_v53 = vld [vmem:[%s810_s1 + $0x38] sm:$0xf0]  ;;  %v549_v54 = vld [vmem:[%s810_s1 + $0xb4] sm:$0xf]  ;;  %v422_v56 = vor.u32 %v534_v48, %v421_v47 }
   0xe   :  { %309 = vmatpush.bf16.msra.mxu3 %v506_v38  ;;  %v487_v55 = vld [vmem:[%s810_s1 + $0xb8] sm:$0xf0]  ;;  %v486_v57 = vor.u32 %v550_v51, %v485_v49  ;;  %v426_v58 = vor.u32 %v533_v52, %v423_v53  ;;  %v413_v59 = vld [vmem:[%s810_s1 + $0x20] sm:$0xf]  ;;  %v532_v60 = vld [vmem:[%s810_s1 + $0x24] sm:$0xf0] }
   0xf   :  { %v477_v61 = vld [vmem:[%s810_s1 + $0xa0] sm:$0xf]  ;;  %v490_v62 = vor.u32 %v549_v54, %v487_v55  ;;  %v548_v63 = vld [vmem:[%s810_s1 + $0xa4] sm:$0xf0]  ;;  %v531_v0 = vld [vmem:[%s810_s1 + $0x24] sm:$0xf]  ;;  %v414_v4 = vor.u32 %v532_v60, %v413_v59 }
  0x10   :  { %253 = vmatpush.bf16.msra.mxu0 %v430_v44  ;;  %v415_v1 = vld [vmem:[%s810_s1 + $0x28] sm:$0xf0]  ;;  %v547_v2 = vld [vmem:[%s810_s1 + $0xa4] sm:$0xf]  ;;  %v478_v5 = vor.u32 %v548_v63, %v477_v61  ;;  %v405_v7 = vld [vmem:[%s810_s1 + $0x10] sm:$0xf] }
  0x11   :  { %272 = vmatpush.bf16.msra.mxu1 %v494_v45  ;;  %291 = vmatpush.bf16.msra.mxu2 %v434_v46  ;;  %v479_v3 = vld [vmem:[%s810_s1 + $0xa8] sm:$0xf0]  ;;  %v418_v6 = vor.u32 %v531_v0, %v415_v1  ;;  %v530_v8 = vld [vmem:[%s810_s1 + $0x14] sm:$0xf0]  ;;  %v469_v9 = vld [vmem:[%s810_s1 + $0x90] sm:$0xf] }
  0x12   :  { %310 = vmatpush.bf16.msra.mxu3 %v498_v50  ;;  %v482_v10 = vor.u32 %v547_v2, %v479_v3  ;;  %v546_v11 = vld [vmem:[%s810_s1 + $0x94] sm:$0xf0]  ;;  %v529_v12 = vld [vmem:[%s810_s1 + $0x14] sm:$0xf]  ;;  %v407_v13 = vld [vmem:[%s810_s1 + $0x18] sm:$0xf0]  ;;  %v406_v16 = vor.u32 %v530_v8, %v405_v7 }
  0x13   :  { %v545_v14 = vld [vmem:[%s810_s1 + $0x94] sm:$0xf]  ;;  %v471_v15 = vld [vmem:[%s810_s1 + $0x98] sm:$0xf0]  ;;  %v470_v17 = vor.u32 %v546_v11, %v469_v9  ;;  %v410_v18 = vor.u32 %v529_v12, %v407_v13  ;;  %v397_v19 = vld [vmem:[%s810_s1] sm:$0xf] }
  0x14   :  { %254 = vmatpush.bf16.msra.mxu0 %v422_v56  ;;  %v528_v20 = vld [vmem:[%s810_s1 + $0x4] sm:$0xf0]  ;;  %v461_v21 = vld [vmem:[%s810_s1 + $0x80] sm:$0xf]  ;;  %v474_v22 = vor.u32 %v545_v14, %v471_v15  ;;  %v527_v24 = vld [vmem:[%s810_s1 + $0x4] sm:$0xf] }
  0x15   :  { %273 = vmatpush.bf16.msra.mxu1 %v486_v57  ;;  %292 = vmatpush.bf16.msra.mxu2 %v426_v58  ;;  %v544_v23 = vld [vmem:[%s810_s1 + $0x84] sm:$0xf0]  ;;  %v399_v25 = vld [vmem:[%s810_s1 + $0x8] sm:$0xf0]  ;;  %v543_v26 = vld [vmem:[%s810_s1 + $0x84] sm:$0xf]  ;;  %v398_v28 = vor.u32 %v528_v20, %v397_v19 }
  0x16   :  { %311 = vmatpush.bf16.msra.mxu3 %v490_v62  ;;  %v463_v27 = vld [vmem:[%s810_s1 + $0x88] sm:$0xf0]  ;;  %v381_v29 = vld [vmem:[%s811_s0] sm:$0xf]  ;;  %v524_v30 = vld [vmem:[%s811_s0 + $0x4] sm:$0xf0]  ;;  %v462_v31 = vor.u32 %v544_v23, %v461_v21  ;;  %v402_v32 = vor.u32 %v527_v24, %v399_v25 }
  0x17   :  { %v523_v33 = vld [vmem:[%s811_s0 + $0x4] sm:$0xf]  ;;  %v383_v34 = vld [vmem:[%s811_s0 + $0x8] sm:$0xf0]  ;;  %v466_v35 = vor.u32 %v543_v26, %v463_v27  ;;  %v382_v36 = vor.u32 %v524_v30, %v381_v29  ;;  %v389_v38 = vld [vmem:[%s811_s0 + $0x10] sm:$0xf] }
  0x18   :  { %255 = vmatpush.bf16.msra.mxu0 %v414_v4  ;;  %v386_v37 = vor.u32 %v523_v33, %v383_v34  ;;  %v526_v39 = vld [vmem:[%s811_s0 + $0x14] sm:$0xf0]  ;;  %v525_v40 = vld [vmem:[%s811_s0 + $0x14] sm:$0xf]  ;;  %v391_v41 = vld [vmem:[%s811_s0 + $0x18] sm:$0xf0] }
  0x19   :  { %274 = vmatpush.bf16.msra.mxu1 %v478_v5  ;;  %293 = vmatpush.bf16.msra.mxu2 %v418_v6  ;;  %v390_v42 = vor.u32 %v526_v39, %v389_v38  ;;  %v394_v43 = vor.u32 %v525_v40, %v391_v41  ;;  %v353_v46 = vld [vmem:[%s812_s2] sm:$0x3] }
  0x1a   :  { %312 = vmatpush.bf16.msra.mxu3 %v482_v10  ;;  %v355_v48 = vperm.slane %v353_v46, 0  ;;  %v356_v50 = vperm.slane %v353_v46, 1 }
  0x1c   :  { %256 = vmatpush.bf16.msra.mxu0 %v406_v16 }
  0x1d   :  { %275 = vmatpush.bf16.msra.mxu1 %v470_v17  ;;  %294 = vmatpush.bf16.msra.mxu2 %v410_v18 }
  0x1e   :  { %313 = vmatpush.bf16.msra.mxu3 %v474_v22 }
  0x20   :  { %257 = vmatpush.bf16.msra.mxu0 %v398_v28 }
  0x21   :  { %276 = vmatpush.bf16.msra.mxu1 %v462_v31  ;;  %295 = vmatpush.bf16.msra.mxu2 %v402_v32 }
  0x22   :  { %314 = vmatpush.bf16.msra.mxu3 %v466_v35 }
  0x23   :  { %258 = vmatmul.bf16.vlgmr.msra.gmra.mxu0 %v382_v36 }
  0x24   :  { %277 = vmatmul.bf16.vlgmr.msra.gmra.mxu1 %v386_v37  ;;  %296 = vmatmul.bf16.vlgmr.msra.gmra.mxu2 %v382_v36 }
  0x25   :  { %315 = vmatmul.bf16.vlgmr.msra.gmra.mxu3 %v386_v37 }
  0x33   :  { %263 = vmatmul.bf16.gmra.mxu0 %v390_v42 }
  0x34   :  { %282 = vmatmul.bf16.gmra.mxu1 %v394_v43  ;;  %301 = vmatmul.bf16.gmra.mxu2 %v390_v42 }
  0x35   :  { %320 = vmatmul.bf16.gmra.mxu3 %v394_v43 }
  0xa0   :  { %v259_v44 = vpop.f32.mrf.mxu0 }
  0xa1   :  { %v278_v45 = vpop.f32.mrf.mxu1 }
  0xa2   :  { %v279_v47 = vadd.f32 %v278_v45, %v259_v44 }
  0xa4   :  { %v359_v53 = vadd.f32 %v355_v48, %v279_v47 }
  0xa7   :  { %v297_v49 = vpop.f32.mrf.mxu2 }
  0xa8   :  { %v316_v51 = vpop.f32.mrf.mxu3  ;;  %v261_v52 = vpop.f32.mrf.mxu0 }
  0xa9   :  { %v317_v54 = vadd.f32 %v316_v51, %v297_v49  ;;  %v280_v55 = vpop.f32.mrf.mxu1 }
  0xaa   :  { %v281_v58 = vadd.f32 %v280_v55, %v261_v52 }
  0xab   :  { %v360_v56 = vadd.f32 %v356_v50, %v317_v54 }
  0xac   :  { %v361_v0 = vadd.f32 %v355_v48, %v281_v58 }
  0xad   :  { %v367_v57 = vpack.c.bf16 %v360_v56, %v359_v53 }
  0xaf   :  { %371 = vst [vmem:[%s813_s3] sm:$0xff] %v367_v57  ;;  %v299_v59 = vpop.f32.mrf.mxu2 }
  0xb0   :  { %v318_v60 = vpop.f32.mrf.mxu3  ;;  %v264_v62 = vpop.f32.mrf.mxu0 }
  0xb1   :  { %v319_v61 = vadd.f32 %v318_v60, %v299_v59  ;;  %v283_v63 = vpop.f32.mrf.mxu1 }
  0xb2   :  { %v284_v3 = vadd.f32 %v283_v63, %v264_v62 }
  0xb3   :  { %v362_v1 = vadd.f32 %v356_v50, %v319_v61 }
  0xb4   :  { %v363_v6 = vadd.f32 %v355_v48, %v284_v3 }
  0xb5   :  { %v368_v2 = vpack.c.bf16 %v362_v1, %v361_v0 }
  0xb7   :  { %372 = vst [vmem:[%s813_s3 + $0x8] sm:$0xff] %v368_v2  ;;  %v302_v4 = vpop.f32.mrf.mxu2 }
  0xb8   :  { %v321_v5 = vpop.f32.mrf.mxu3  ;;  %v266_v9 = vpop.f32.mrf.mxu0 }
  0xb9   :  { %v322_v7 = vadd.f32 %v321_v5, %v302_v4  ;;  %v285_v10 = vpop.f32.mrf.mxu1 }
  0xba   :  { %v286_v12 = vadd.f32 %v285_v10, %v266_v9 }
  0xbb   :  { %v364_v8 = vadd.f32 %v356_v50, %v322_v7 }
  0xbc   :  { %v365_v16 = vadd.f32 %v355_v48, %v286_v12 }
  0xbd   :  { %v369_v11 = vpack.c.bf16 %v364_v8, %v363_v6 }
  0xbf   :  { %373 = vst [vmem:[%s813_s3 + $0x10] sm:$0xff] %v369_v11  ;;  %v304_v13 = vpop.f32.mrf.mxu2 }
  0xc0   :  { %v323_v14 = vpop.f32.mrf.mxu3 }
  0xc1   :  { %v324_v15 = vadd.f32 %v323_v14, %v304_v13 }
  0xc3   :  { %v366_v17 = vadd.f32 %v356_v50, %v324_v15 }
  0xc5   :  { %v370_v18 = vpack.c.bf16 %v366_v17, %v365_v16 }
  0xc7   :  { %374 = vst [vmem:[%s813_s3 + $0x18] sm:$0xff] %v370_v18 }

// kernel: dualnet_forward.49
= control target key start
LH: loop header
LB: loop body
LE: loop exit
PB: predicated region body
PF: predicated region fallthrough
CT: control target
= control target key end

     0   :  { %s558_s1 = inlined_call_operand.vmem [shape: bf16[128,128], index: 1, kind: input, shape index: {}]   ;;  %s559_s2 = inlined_call_operand.vmem [shape: f32[1,128], index: 2, kind: input, shape index: {}]   ;;  %s560_s0 = inlined_call_operand.vmem [shape: bf16[128,128], index: 0, kind: input, shape index: {}]   ;;  %s561_s3 = inlined_call_operand.vmem [shape: f32[128,128], index: 3, kind: output, shape index: {}]  }
   0x1   :  { %v413_v0 = vld [vmem:[%s558_s1 + $0x38] sm:$0xff]  ;;  %v412_v1 = vld [vmem:[%s558_s1 + $0x30] sm:$0xff]  ;;  %v411_v2 = vld [vmem:[%s558_s1 + $0x28] sm:$0xff] }
   0x2   :  { %178 = vmatpush.bf16.msra.mxu0 %v413_v0  ;;  %414 = vmatpush.bf16.msra.mxu1 %v413_v0  ;;  %v410_v3 = vld [vmem:[%s558_s1 + $0x20] sm:$0xff]  ;;  %v409_v4 = vld [vmem:[%s558_s1 + $0x18] sm:$0xff]  ;;  %v408_v5 = vld [vmem:[%s558_s1 + $0x10] sm:$0xff] }
   0x3   :  { %415 = vmatpush.bf16.msra.mxu2 %v413_v0  ;;  %416 = vmatpush.bf16.msra.mxu3 %v413_v0  ;;  %v407_v6 = vld [vmem:[%s558_s1 + $0x8] sm:$0xff]  ;;  %v406_v7 = vld [vmem:[%s558_s1] sm:$0xff]  ;;  %v400_v9 = vld [vmem:[%s560_s0 + $0x10] sm:$0xff] }
   0x4   :  { %v398_v8 = vld [vmem:[%s560_s0] sm:$0xff]  ;;  %v404_v11 = vld [vmem:[%s560_s0 + $0x30] sm:$0xff]  ;;  %v399_v12 = vld [vmem:[%s560_s0 + $0x8] sm:$0xff] }
   0x5   :  { %v402_v10 = vld [vmem:[%s560_s0 + $0x20] sm:$0xff]  ;;  %v401_v13 = vld [vmem:[%s560_s0 + $0x18] sm:$0xff]  ;;  %v403_v14 = vld [vmem:[%s560_s0 + $0x28] sm:$0xff] }
   0x6   :  { %179 = vmatpush.bf16.msra.mxu0 %v412_v1  ;;  %417 = vmatpush.bf16.msra.mxu1 %v412_v1  ;;  %v405_v15 = vld [vmem:[%s560_s0 + $0x38] sm:$0xff]  ;;  %v438_v16 = vld [vmem:[%s559_s2] ss:$0 sm:$0xff] }
   0x7   :  { %418 = vmatpush.bf16.msra.mxu2 %v412_v1  ;;  %419 = vmatpush.bf16.msra.mxu3 %v412_v1 }
   0xa   :  { %180 = vmatpush.bf16.msra.mxu0 %v411_v2  ;;  %420 = vmatpush.bf16.msra.mxu1 %v411_v2 }
   0xb   :  { %421 = vmatpush.bf16.msra.mxu2 %v411_v2  ;;  %422 = vmatpush.bf16.msra.mxu3 %v411_v2 }
   0xe   :  { %181 = vmatpush.bf16.msra.mxu0 %v410_v3  ;;  %423 = vmatpush.bf16.msra.mxu1 %v410_v3 }
   0xf   :  { %424 = vmatpush.bf16.msra.mxu2 %v410_v3  ;;  %425 = vmatpush.bf16.msra.mxu3 %v410_v3 }
  0x12   :  { %182 = vmatpush.bf16.msra.mxu0 %v409_v4  ;;  %426 = vmatpush.bf16.msra.mxu1 %v409_v4 }
  0x13   :  { %427 = vmatpush.bf16.msra.mxu2 %v409_v4  ;;  %428 = vmatpush.bf16.msra.mxu3 %v409_v4 }
  0x16   :  { %183 = vmatpush.bf16.msra.mxu0 %v408_v5  ;;  %429 = vmatpush.bf16.msra.mxu1 %v408_v5 }
  0x17   :  { %430 = vmatpush.bf16.msra.mxu2 %v408_v5  ;;  %431 = vmatpush.bf16.msra.mxu3 %v408_v5 }
  0x1a   :  { %184 = vmatpush.bf16.msra.mxu0 %v407_v6  ;;  %432 = vmatpush.bf16.msra.mxu1 %v407_v6 }
  0x1b   :  { %433 = vmatpush.bf16.msra.mxu2 %v407_v6  ;;  %434 = vmatpush.bf16.msra.mxu3 %v407_v6 }
  0x1e   :  { %185 = vmatpush.bf16.msra.mxu0 %v406_v7  ;;  %435 = vmatpush.bf16.msra.mxu1 %v406_v7 }
  0x1f   :  { %436 = vmatpush.bf16.msra.mxu2 %v406_v7  ;;  %437 = vmatpush.bf16.msra.mxu3 %v406_v7 }
  0x21   :  { %186 = vmatmul.bf16.vlgmr.msra.gmra.mxu0 %v398_v8  ;;  %196 = vmatmul.bf16.vlgmr.msra.gmra.mxu1 %v400_v9 }
  0x22   :  { %206 = vmatmul.bf16.vlgmr.msra.gmra.mxu2 %v402_v10  ;;  %216 = vmatmul.bf16.vlgmr.msra.gmra.mxu3 %v404_v11 }
  0x31   :  { %191 = vmatmul.bf16.gmra.mxu0 %v399_v12  ;;  %201 = vmatmul.bf16.gmra.mxu1 %v401_v13 }
  0x32   :  { %211 = vmatmul.bf16.gmra.mxu2 %v403_v14  ;;  %221 = vmatmul.bf16.gmra.mxu3 %v405_v15 }
  0x9e   :  { %v187_v17 = vpop.f32.mrf.mxu0  ;;  %v197_v18 = vpop.f32.mrf.mxu1 }
  0x9f   :  { %v282_v19 = vadd.f32 %v438_v16, %v187_v17  ;;  %v286_v20 = vadd.f32 %v438_v16, %v197_v18 }
  0xa1   :  { %v298_v21 = vmax.f32 %v282_v19, 0.0  ;;  %v302_v22 = vmax.f32 %v286_v20, 0.0 }
  0xa3   :  { %314 = vst [vmem:[%s561_s3] sm:$0xff] %v298_v21 }
  0xa4   :  { %318 = vst [vmem:[%s561_s3 + $0x20] sm:$0xff] %v302_v22 }
  0xa5   :  { %v207_v23 = vpop.f32.mrf.mxu2  ;;  %v217_v24 = vpop.f32.mrf.mxu3 }
  0xa6   :  { %v290_v25 = vadd.f32 %v438_v16, %v207_v23  ;;  %v294_v26 = vadd.f32 %v438_v16, %v217_v24  ;;  %v189_v27 = vpop.f32.mrf.mxu0  ;;  %v199_v28 = vpop.f32.mrf.mxu1 }
  0xa7   :  { %v283_v29 = vadd.f32 %v438_v16, %v189_v27  ;;  %v287_v30 = vadd.f32 %v438_v16, %v199_v28 }
  0xa8   :  { %v306_v31 = vmax.f32 %v290_v25, 0.0  ;;  %v310_v32 = vmax.f32 %v294_v26, 0.0 }
  0xa9   :  { %v299_v33 = vmax.f32 %v283_v29, 0.0  ;;  %v303_v34 = vmax.f32 %v287_v30, 0.0 }
  0xaa   :  { %322 = vst [vmem:[%s561_s3 + $0x40] sm:$0xff] %v306_v31 }
  0xab   :  { %326 = vst [vmem:[%s561_s3 + $0x60] sm:$0xff] %v310_v32 }
  0xac   :  { %315 = vst [vmem:[%s561_s3 + $0x8] sm:$0xff] %v299_v33 }
  0xad   :  { %319 = vst [vmem:[%s561_s3 + $0x28] sm:$0xff] %v303_v34  ;;  %v209_v35 = vpop.f32.mrf.mxu2  ;;  %v219_v36 = vpop.f32.mrf.mxu3 }
  0xae   :  { %v291_v37 = vadd.f32 %v438_v16, %v209_v35  ;;  %v295_v38 = vadd.f32 %v438_v16, %v219_v36  ;;  %v192_v39 = vpop.f32.mrf.mxu0  ;;  %v202_v40 = vpop.f32.mrf.mxu1 }
  0xaf   :  { %v284_v41 = vadd.f32 %v438_v16, %v192_v39  ;;  %v288_v42 = vadd.f32 %v438_v16, %v202_v40 }
  0xb0   :  { %v307_v43 = vmax.f32 %v291_v37, 0.0  ;;  %v311_v44 = vmax.f32 %v295_v38, 0.0 }
  0xb1   :  { %v300_v45 = vmax.f32 %v284_v41, 0.0  ;;  %v304_v46 = vmax.f32 %v288_v42, 0.0 }
  0xb2   :  { %323 = vst [vmem:[%s561_s3 + $0x48] sm:$0xff] %v307_v43 }
  0xb3   :  { %327 = vst [vmem:[%s561_s3 + $0x68] sm:$0xff] %v311_v44 }
  0xb4   :  { %316 = vst [vmem:[%s561_s3 + $0x10] sm:$0xff] %v300_v45 }
  0xb5   :  { %320 = vst [vmem:[%s561_s3 + $0x30] sm:$0xff] %v304_v46  ;;  %v212_v47 = vpop.f32.mrf.mxu2  ;;  %v222_v48 = vpop.f32.mrf.mxu3 }
  0xb6   :  { %v292_v49 = vadd.f32 %v438_v16, %v212_v47  ;;  %v296_v50 = vadd.f32 %v438_v16, %v222_v48  ;;  %v194_v51 = vpop.f32.mrf.mxu0  ;;  %v204_v52 = vpop.f32.mrf.mxu1 }
  0xb7   :  { %v285_v53 = vadd.f32 %v438_v16, %v194_v51  ;;  %v289_v54 = vadd.f32 %v438_v16, %v204_v52 }
  0xb8   :  { %v308_v55 = vmax.f32 %v292_v49, 0.0  ;;  %v312_v56 = vmax.f32 %v296_v50, 0.0 }
  0xb9   :  { %v301_v57 = vmax.f32 %v285_v53, 0.0  ;;  %v305_v58 = vmax.f32 %v289_v54, 0.0 }
  0xba   :  { %324 = vst [vmem:[%s561_s3 + $0x50] sm:$0xff] %v308_v55 }
  0xbb   :  { %328 = vst [vmem:[%s561_s3 + $0x70] sm:$0xff] %v312_v56 }
  0xbc   :  { %317 = vst [vmem:[%s561_s3 + $0x18] sm:$0xff] %v301_v57 }
  0xbd   :  { %321 = vst [vmem:[%s561_s3 + $0x38] sm:$0xff] %v305_v58  ;;  %v214_v59 = vpop.f32.mrf.mxu2  ;;  %v224_v60 = vpop.f32.mrf.mxu3 }
  0xbe   :  { %v293_v61 = vadd.f32 %v438_v16, %v214_v59  ;;  %v297_v62 = vadd.f32 %v438_v16, %v224_v60 }
  0xc0   :  { %v309_v63 = vmax.f32 %v293_v61, 0.0  ;;  %v313_v0 = vmax.f32 %v297_v62, 0.0 }
  0xc2   :  { %325 = vst [vmem:[%s561_s3 + $0x58] sm:$0xff] %v309_v63 }
  0xc3   :  { %329 = vst [vmem:[%s561_s3 + $0x78] sm:$0xff] %v313_v0 }

// kernel: dualnet_forward.54
= control target key start
LH: loop header
LB: loop body
LE: loop exit
PB: predicated region body
PF: predicated region fallthrough
CT: control target
= control target key end

     0   :  { %s1237_s12 = smov 0   ;;  %s1239_s13 = smov 0   ;;  %s1485_s0 = inlined_call_operand.vmem [shape: bf16[32,256], index: 0, kind: input, shape index: {}]   ;;  %s1486_s1 = inlined_call_operand.vmem [shape: bf16[256,512], index: 1, kind: input, shape index: {}]   ;;  %s1487_s2 = inlined_call_operand.vmem [shape: f32[1,512], index: 2, kind: input, shape index: {}]   ;;  %s1488_s3 = inlined_call_operand.vmem [shape: bf16[32,512], index: 3, kind: output, shape index: {}]  }
   0x1   :  { %s1241_s14 = smov 0   ;;  %s1243_s15 = smov 0  }
   0x2   :  { %s1245_s16 = smov 0  }
   0x3 LB: > { %s28_s17 = sadd.s32 1, %s1211_s15  ;;  %s938_s18 = sadd.s32 4294967295, %s1215_s16   ;;  %s1215_s16 = sphi %s1245_s16, %s13_s16   ;;  %s1211_s15 = sphi %s1243_s15, %s1493_s15   ;;  %s1207_s14 = sphi %s1241_s14, %s1492_s14   ;;  %s1203_s13 = sphi %s1239_s13, %s1491_s13   ;;  %s1199_s12 = sphi %s1237_s12, %s1490_s12  }
   0x4   : > { %p30_p0 = scmp.ge.s32.totalorder %s28_s17, 2  ;;  %p76_p1 = scmp.ne.s32.totalorder %s1203_s13, %s1199_s12 }
   0x5   : > { %p77_p2 = scmp.eq.s32.totalorder %s1215_s16, 0  ;;  %p134_p4 = scmp.eq.s32.totalorder %s938_s18, 1 }
   0x6   : > { %s1495_s17 = smov (%p30_p0, %s28_s17), 0  ;;  %s69_s20 = sadd.s32 1, %s1203_s13 }
   0x7   : > { %p78_p3 = por %p77_p2, %p76_p1  ;;  %s65_s19 = ssub.s32 %s1211_s15, %s1495_s17 }
   0x8   : > { %p67_p5 = scmp.eq.s32.totalorder %s65_s19, 0  ;;  %p1272_p6 = por %p134_p4, %p76_p1 }
   0x9   : > { %p942_p7 = scmp.ge.s32.totalorder %s1215_s16, 2 }
   0xa   : > { %s1277_s22 = scalar_select %p67_p5, %s1203_s13, %s69_s20  }
   0xb   : > { %171 = sbr.rel (%p942_p7) target bundleno = 52 (0x34), region = 20 }
  0x10   : > { %174 = sbr.rel (!%p78_p3) target bundleno = 52 (0x34), region = 24  ;;  %s176_s23 = sand.u32 (%p78_p3), 1, %s1203_s13  }
  0x11   : > { %s1099_s24 = sshll.u32 (%p78_p3), %s1211_s15, 3  ;;  %s943_s25 = sshll.u32 (%p78_p3), %s176_s23, 8 }
  0x12   : > { %s1285_s28 = scalar_lea.vmem (%p78_p3), %s1486_s1, %s1099_s24  ;;  %s1290_s29 = scalar_lea.vmem (%p78_p3), [#allocation3], %s943_s25 }
  0x13   : > { %v275_v0 = vld [vmem:[%s1285_s28] sm:$0xff] (%p78_p3)  ;;  %v277_v1 = vld [vmem:[%s1285_s28 + $0x10] sm:$0xff] (%p78_p3) }
  0x14   : > { %v279_v2 = vld [vmem:[%s1285_s28 + $0x20] sm:$0xff] (%p78_p3)  ;;  %276 = vst [vmem:[%s1290_s29] sm:$0xff] (%p78_p3), %v275_v0  ;;  %v281_v3 = vld [vmem:[%s1285_s28 + $0x30] sm:$0xff] (%p78_p3) }
  0x15   : > { %278 = vst [vmem:[%s1290_s29 + $0x8] sm:$0xff] %v277_v1  ;;  %v283_v4 = vld [vmem:[%s1285_s28 + $0x40] sm:$0xff]  ;;  %v285_v5 = vld [vmem:[%s1285_s28 + $0x50] sm:$0xff] }
  0x16   : > { %280 = vst [vmem:[%s1290_s29 + $0x10] sm:$0xff] %v279_v2  ;;  %v287_v6 = vld [vmem:[%s1285_s28 + $0x60] sm:$0xff]  ;;  %v289_v7 = vld [vmem:[%s1285_s28 + $0x70] sm:$0xff] }
  0x17   : > { %282 = vst [vmem:[%s1290_s29 + $0x18] sm:$0xff] %v281_v3  ;;  %v291_v8 = vld [vmem:[%s1285_s28 + $0x80] sm:$0xff]  ;;  %v293_v9 = vld [vmem:[%s1285_s28 + $0x90] sm:$0xff] }
  0x18   : > { %284 = vst [vmem:[%s1290_s29 + $0x20] sm:$0xff] %v283_v4  ;;  %v295_v10 = vld [vmem:[%s1285_s28 + $0xa0] sm:$0xff]  ;;  %v297_v11 = vld [vmem:[%s1285_s28 + $0xb0] sm:$0xff] }
  0x19   : > { %286 = vst [vmem:[%s1290_s29 + $0x28] sm:$0xff] %v285_v5  ;;  %v299_v12 = vld [vmem:[%s1285_s28 + $0xc0] sm:$0xff]  ;;  %v301_v13 = vld [vmem:[%s1285_s28 + $0xd0] sm:$0xff] }
  0x1a   : > { %288 = vst [vmem:[%s1290_s29 + $0x30] sm:$0xff] %v287_v6  ;;  %v303_v14 = vld [vmem:[%s1285_s28 + $0xe0] sm:$0xff]  ;;  %v305_v15 = vld [vmem:[%s1285_s28 + $0xf0] sm:$0xff] }
  0x1b   : > { %290 = vst [vmem:[%s1290_s29 + $0x38] sm:$0xff] %v289_v7  ;;  %v307_v16 = vld [vmem:[%s1285_s28 + $0x100] sm:$0xff]  ;;  %v309_v17 = vld [vmem:[%s1285_s28 + $0x110] sm:$0xff] }
  0x1c   : > { %292 = vst [vmem:[%s1290_s29 + $0x40] sm:$0xff] %v291_v8  ;;  %v311_v18 = vld [vmem:[%s1285_s28 + $0x120] sm:$0xff]  ;;  %v313_v19 = vld [vmem:[%s1285_s28 + $0x130] sm:$0xff] }
  0x1d   : > { %294 = vst [vmem:[%s1290_s29 + $0x48] sm:$0xff] %v293_v9  ;;  %v315_v20 = vld [vmem:[%s1285_s28 + $0x140] sm:$0xff]  ;;  %v317_v21 = vld [vmem:[%s1285_s28 + $0x150] sm:$0xff] }
  0x1e   : > { %296 = vst [vmem:[%s1290_s29 + $0x50] sm:$0xff] %v295_v10  ;;  %v319_v22 = vld [vmem:[%s1285_s28 + $0x160] sm:$0xff]  ;;  %v321_v23 = vld [vmem:[%s1285_s28 + $0x170] sm:$0xff] }
  0x1f   : > { %298 = vst [vmem:[%s1290_s29 + $0x58] sm:$0xff] %v297_v11  ;;  %v323_v24 = vld [vmem:[%s1285_s28 + $0x180] sm:$0xff]  ;;  %v325_v25 = vld [vmem:[%s1285_s28 + $0x190] sm:$0xff] }
  0x20   : > { %300 = vst [vmem:[%s1290_s29 + $0x60] sm:$0xff] %v299_v12  ;;  %v327_v26 = vld [vmem:[%s1285_s28 + $0x1a0] sm:$0xff]  ;;  %v329_v27 = vld [vmem:[%s1285_s28 + $0x1b0] sm:$0xff] }
  0x21   : > { %302 = vst [vmem:[%s1290_s29 + $0x68] sm:$0xff] %v301_v13  ;;  %v331_v28 = vld [vmem:[%s1285_s28 + $0x1c0] sm:$0xff]  ;;  %v333_v29 = vld [vmem:[%s1285_s28 + $0x1d0] sm:$0xff] }
  0x22   : > { %304 = vst [vmem:[%s1290_s29 + $0x70] sm:$0xff] %v303_v14  ;;  %v335_v30 = vld [vmem:[%s1285_s28 + $0x1e0] sm:$0xff]  ;;  %v337_v31 = vld [vmem:[%s1285_s28 + $0x1f0] sm:$0xff] }
  0x23   : > { %306 = vst [vmem:[%s1290_s29 + $0x78] sm:$0xff] %v305_v15 }
  0x24   : > { %308 = vst [vmem:[%s1290_s29 + $0x80] sm:$0xff] %v307_v16 }
  0x25   : > { %310 = vst [vmem:[%s1290_s29 + $0x88] sm:$0xff] %v309_v17 }
  0x26   : > { %312 = vst [vmem:[%s1290_s29 + $0x90] sm:$0xff] %v311_v18 }
  0x27   : > { %314 = vst [vmem:[%s1290_s29 + $0x98] sm:$0xff] %v313_v19 }
  0x28   : > { %316 = vst [vmem:[%s1290_s29 + $0xa0] sm:$0xff] %v315_v20 }
  0x29   : > { %318 = vst [vmem:[%s1290_s29 + $0xa8] sm:$0xff] %v317_v21 }
  0x2a   : > { %320 = vst [vmem:[%s1290_s29 + $0xb0] sm:$0xff] %v319_v22 }
  0x2b   : > { %322 = vst [vmem:[%s1290_s29 + $0xb8] sm:$0xff] %v321_v23 }
  0x2c   : > { %324 = vst [vmem:[%s1290_s29 + $0xc0] sm:$0xff] %v323_v24 }
  0x2d   : > { %326 = vst [vmem:[%s1290_s29 + $0xc8] sm:$0xff] %v325_v25 }
  0x2e   : > { %328 = vst [vmem:[%s1290_s29 + $0xd0] sm:$0xff] %v327_v26 }
  0x2f   : > { %330 = vst [vmem:[%s1290_s29 + $0xd8] sm:$0xff] %v329_v27 }
  0x30   : > { %332 = vst [vmem:[%s1290_s29 + $0xe0] sm:$0xff] %v331_v28 }
  0x31   : > { %334 = vst [vmem:[%s1290_s29 + $0xe8] sm:$0xff] %v333_v29 }
  0x32   : > { %336 = vst [vmem:[%s1290_s29 + $0xf0] sm:$0xff] %v335_v30 }
  0x33   : > { %338 = vst [vmem:[%s1290_s29 + $0xf8] sm:$0xff] %v337_v31 }
  0x34 PF: > { %p946_p8 = scmp.ge.s32.totalorder %s1215_s16, 1  ;;  %p351_p9 = scmp.lt.s32.totalorder %s1215_s16, 3 }
  0x36   : > { %p352_p10 = pnand %p946_p8, %p351_p9 }
  0x37   : > { %s358_s30 = sand.u32 (!%p352_p10), 1, %s1199_s12  }
  0x38   : > { %355 = sbr.rel (%p352_p10) target bundleno = 268 (0x10c), region = 66  ;;  %s947_s4 = sshll.u32 (!%p352_p10), %s358_s30, 8 }
  0x39   : > { %s1358_s5 = scalar_lea.vmem (!%p352_p10), [#allocation3], %s947_s4  ;;  %s949_s4 = sshll.u32 (!%p352_p10), %s1207_s14, 1 }
  0x3a   : > { %p409_p11 = scmp.lt.s32.totalorder (!%p352_p10), %s949_s4, 3  ;;  %s948_s8 = sshll.u32 (!%p352_p10), %s358_s30, 5 }
  0x3b   : > { %s1454_s9 = scalar_lea.vmem (!%p352_p10), [#allocation4], %s948_s8 }
  0x3d   : > { %v1024_v32 = vld [vmem:[%s1358_s5 + $0x70] sm:$0xf]  ;;  %v1119_v33 = vld [vmem:[%s1358_s5 + $0x74] sm:$0xf0]  ;;  %v1118_v37 = vld [vmem:[%s1358_s5 + $0x74] sm:$0xf] }
  0x3e   : > { %v1088_v34 = vld [vmem:[%s1358_s5 + $0xf0] sm:$0xf]  ;;  %v1025_v35 = vor.u32 %v1119_v33, %v1024_v32  ;;  %v1135_v36 = vld [vmem:[%s1358_s5 + $0xf4] sm:$0xf0]  ;;  %v1026_v38 = vld [vmem:[%s1358_s5 + $0x78] sm:$0xf0] }
  0x3f   : > { %v1089_v39 = vor.u32 %v1135_v36, %v1088_v34  ;;  %v1029_v40 = vor.u32 %v1118_v37, %v1026_v38  ;;  %v1134_v41 = vld [vmem:[%s1358_s5 + $0xf4] sm:$0xf]  ;;  %v1090_v42 = vld [vmem:[%s1358_s5 + $0xf8] sm:$0xf0]  ;;  %v1016_v43 = vld [vmem:[%s1358_s5 + $0x60] sm:$0xf] }
  0x40   : > { %651 = vmatpush.bf16.msra.mxu0 %v1025_v35  ;;  %v1093_v44 = vor.u32 %v1134_v41, %v1090_v42  ;;  %v1117_v45 = vld [vmem:[%s1358_s5 + $0x64] sm:$0xf0]  ;;  %v1080_v46 = vld [vmem:[%s1358_s5 + $0xe0] sm:$0xf]  ;;  %v1116_v50 = vld [vmem:[%s1358_s5 + $0x64] sm:$0xf] }
  0x41   : > { %v1133_v47 = vld [vmem:[%s1358_s5 + $0xe4] sm:$0xf0]  ;;  %670 = vmatpush.bf16.msra.mxu1 %v1089_v39  ;;  %689 = vmatpush.bf16.msra.mxu2 %v1029_v40  ;;  %v1017_v48 = vor.u32 %v1117_v45, %v1016_v43  ;;  %v1018_v51 = vld [vmem:[%s1358_s5 + $0x68] sm:$0xf0]  ;;  %v1132_v52 = vld [vmem:[%s1358_s5 + $0xe4] sm:$0xf] }
  0x42   : > { %v1081_v49 = vor.u32 %v1133_v47, %v1080_v46  ;;  %708 = vmatpush.bf16.msra.mxu3 %v1093_v44  ;;  %v1021_v53 = vor.u32 %v1116_v50, %v1018_v51  ;;  %v1082_v54 = vld [vmem:[%s1358_s5 + $0xe8] sm:$0xf0]  ;;  %v1008_v55 = vld [vmem:[%s1358_s5 + $0x50] sm:$0xf]  ;;  %v1115_v56 = vld [vmem:[%s1358_s5 + $0x54] sm:$0xf0] }
  0x43   : > { %v1085_v57 = vor.u32 %v1132_v52, %v1082_v54  ;;  %v1072_v58 = vld [vmem:[%s1358_s5 + $0xd0] sm:$0xf]  ;;  %v1131_v59 = vld [vmem:[%s1358_s5 + $0xd4] sm:$0xf0]  ;;  %v1114_v60 = vld [vmem:[%s1358_s5 + $0x54] sm:$0xf]  ;;  %v1009_v61 = vor.u32 %v1115_v56, %v1008_v55 }
  0x44   : > { %652 = vmatpush.bf16.msra.mxu0 %v1017_v48  ;;  %v1010_v62 = vld [vmem:[%s1358_s5 + $0x58] sm:$0xf0]  ;;  %v1130_v63 = vld [vmem:[%s1358_s5 + $0xd4] sm:$0xf]  ;;  %v1073_v1 = vor.u32 %v1131_v59, %v1072_v58  ;;  %v1000_v3 = vld [vmem:[%s1358_s5 + $0x40] sm:$0xf] }
  0x45   : > { %v1074_v0 = vld [vmem:[%s1358_s5 + $0xd8] sm:$0xf0]  ;;  %671 = vmatpush.bf16.msra.mxu1 %v1081_v49  ;;  %690 = vmatpush.bf16.msra.mxu2 %v1021_v53  ;;  %v1013_v2 = vor.u32 %v1114_v60, %v1010_v62  ;;  %v1113_v4 = vld [vmem:[%s1358_s5 + $0x44] sm:$0xf0]  ;;  %v1064_v5 = vld [vmem:[%s1358_s5 + $0xc0] sm:$0xf] }
  0x46   : > { %709 = vmatpush.bf16.msra.mxu3 %v1085_v57  ;;  %v1077_v6 = vor.u32 %v1130_v63, %v1074_v0  ;;  %v1129_v7 = vld [vmem:[%s1358_s5 + $0xc4] sm:$0xf0]  ;;  %v1112_v8 = vld [vmem:[%s1358_s5 + $0x44] sm:$0xf]  ;;  %v1002_v9 = vld [vmem:[%s1358_s5 + $0x48] sm:$0xf0]  ;;  %v1001_v12 = vor.u32 %v1113_v4, %v1000_v3 }
  0x47   : > { %v1128_v10 = vld [vmem:[%s1358_s5 + $0xc4] sm:$0xf]  ;;  %v1066_v11 = vld [vmem:[%s1358_s5 + $0xc8] sm:$0xf0]  ;;  %v1065_v13 = vor.u32 %v1129_v7, %v1064_v5  ;;  %v1005_v14 = vor.u32 %v1112_v8, %v1002_v9  ;;  %v992_v15 = vld [vmem:[%s1358_s5 + $0x30] sm:$0xf] }
  0x48   : > { %653 = vmatpush.bf16.msra.mxu0 %v1009_v61  ;;  %v1111_v16 = vld [vmem:[%s1358_s5 + $0x34] sm:$0xf0]  ;;  %v1056_v17 = vld [vmem:[%s1358_s5 + $0xb0] sm:$0xf]  ;;  %v1069_v18 = vor.u32 %v1128_v10, %v1066_v11  ;;  %v1110_v20 = vld [vmem:[%s1358_s5 + $0x34] sm:$0xf] }
  0x49   : > { %672 = vmatpush.bf16.msra.mxu1 %v1073_v1  ;;  %691 = vmatpush.bf16.msra.mxu2 %v1013_v2  ;;  %v1127_v19 = vld [vmem:[%s1358_s5 + $0xb4] sm:$0xf0]  ;;  %v994_v21 = vld [vmem:[%s1358_s5 + $0x38] sm:$0xf0]  ;;  %v1126_v22 = vld [vmem:[%s1358_s5 + $0xb4] sm:$0xf]  ;;  %v993_v24 = vor.u32 %v1111_v16, %v992_v15 }
  0x4a   : > { %710 = vmatpush.bf16.msra.mxu3 %v1077_v6  ;;  %v1058_v23 = vld [vmem:[%s1358_s5 + $0xb8] sm:$0xf0]  ;;  %v1057_v25 = vor.u32 %v1127_v19, %v1056_v17  ;;  %v997_v26 = vor.u32 %v1110_v20, %v994_v21  ;;  %v984_v27 = vld [vmem:[%s1358_s5 + $0x20] sm:$0xf]  ;;  %v1109_v28 = vld [vmem:[%s1358_s5 + $0x24] sm:$0xf0] }
  0x4b   : > { %v1048_v29 = vld [vmem:[%s1358_s5 + $0xa0] sm:$0xf]  ;;  %v1061_v30 = vor.u32 %v1126_v22, %v1058_v23  ;;  %v1125_v31 = vld [vmem:[%s1358_s5 + $0xa4] sm:$0xf0]  ;;  %v1108_v32 = vld [vmem:[%s1358_s5 + $0x24] sm:$0xf]  ;;  %v985_v36 = vor.u32 %v1109_v28, %v984_v27 }
  0x4c   : > { %654 = vmatpush.bf16.msra.mxu0 %v1001_v12  ;;  %v986_v33 = vld [vmem:[%s1358_s5 + $0x28] sm:$0xf0]  ;;  %v1124_v34 = vld [vmem:[%s1358_s5 + $0xa4] sm:$0xf]  ;;  %v1049_v37 = vor.u32 %v1125_v31, %v1048_v29  ;;  %v976_v39 = vld [vmem:[%s1358_s5 + $0x10] sm:$0xf] }
  0x4d   : > { %673 = vmatpush.bf16.msra.mxu1 %v1065_v13  ;;  %692 = vmatpush.bf16.msra.mxu2 %v1005_v14  ;;  %v1050_v35 = vld [vmem:[%s1358_s5 + $0xa8] sm:$0xf0]  ;;  %v989_v38 = vor.u32 %v1108_v32, %v986_v33  ;;  %v1107_v40 = vld [vmem:[%s1358_s5 + $0x14] sm:$0xf0]  ;;  %v1040_v41 = vld [vmem:[%s1358_s5 + $0x90] sm:$0xf] }
  0x4e   : > { %711 = vmatpush.bf16.msra.mxu3 %v1069_v18  ;;  %v1053_v42 = vor.u32 %v1124_v34, %v1050_v35  ;;  %v1123_v43 = vld [vmem:[%s1358_s5 + $0x94] sm:$0xf0]  ;;  %v1106_v44 = vld [vmem:[%s1358_s5 + $0x14] sm:$0xf]  ;;  %v978_v45 = vld [vmem:[%s1358_s5 + $0x18] sm:$0xf0]  ;;  %v977_v48 = vor.u32 %v1107_v40, %v976_v39 }
  0x4f   : > { %v1122_v46 = vld [vmem:[%s1358_s5 + $0x94] sm:$0xf]  ;;  %v1042_v47 = vld [vmem:[%s1358_s5 + $0x98] sm:$0xf0]  ;;  %v1041_v49 = vor.u32 %v1123_v43, %v1040_v41  ;;  %v981_v50 = vor.u32 %v1106_v44, %v978_v45  ;;  %v968_v51 = vld [vmem:[%s1358_s5] sm:$0xf] }
  0x50   : > { %655 = vmatpush.bf16.msra.mxu0 %v993_v24  ;;  %v1105_v52 = vld [vmem:[%s1358_s5 + $0x4] sm:$0xf0]  ;;  %v1032_v53 = vld [vmem:[%s1358_s5 + $0x80] sm:$0xf]  ;;  %v1045_v54 = vor.u32 %v1122_v46, %v1042_v47  ;;  %v1104_v56 = vld [vmem:[%s1358_s5 + $0x4] sm:$0xf] }
  0x51   : > { %674 = vmatpush.bf16.msra.mxu1 %v1057_v25  ;;  %693 = vmatpush.bf16.msra.mxu2 %v997_v26  ;;  %v1121_v55 = vld [vmem:[%s1358_s5 + $0x84] sm:$0xf0]  ;;  %v970_v57 = vld [vmem:[%s1358_s5 + $0x8] sm:$0xf0]  ;;  %v1120_v58 = vld [vmem:[%s1358_s5 + $0x84] sm:$0xf]  ;;  %v969_v60 = vor.u32 %v1105_v52, %v968_v51 }
  0x52   : > { %712 = vmatpush.bf16.msra.mxu3 %v1061_v30  ;;  %v1034_v59 = vld [vmem:[%s1358_s5 + $0x88] sm:$0xf0]  ;;  %v952_v61 = vld [vmem:[%s1485_s0] sm:$0xf]  ;;  %v1101_v62 = vld [vmem:[%s1485_s0 + $0x4] sm:$0xf0]  ;;  %v1033_v63 = vor.u32 %v1121_v55, %v1032_v53  ;;  %v973_v0 = vor.u32 %v1104_v56, %v970_v57 }
  0x53   : > { %v1100_v1 = vld [vmem:[%s1485_s0 + $0x4] sm:$0xf]  ;;  %v954_v2 = vld [vmem:[%s1485_s0 + $0x8] sm:$0xf0]  ;;  %v1037_v3 = vor.u32 %v1120_v58, %v1034_v59  ;;  %v953_v4 = vor.u32 %v1101_v62, %v952_v61  ;;  %v960_v6 = vld [vmem:[%s1485_s0 + $0x10] sm:$0xf] }
  0x54   : > { %656 = vmatpush.bf16.msra.mxu0 %v985_v36  ;;  %v957_v5 = vor.u32 %v1100_v1, %v954_v2  ;;  %v1103_v7 = vld [vmem:[%s1485_s0 + $0x14] sm:$0xf0]  ;;  %v1102_v8 = vld [vmem:[%s1485_s0 + $0x14] sm:$0xf]  ;;  %v962_v9 = vld [vmem:[%s1485_s0 + $0x18] sm:$0xf0] }
  0x55   : > { %675 = vmatpush.bf16.msra.mxu1 %v1049_v37  ;;  %694 = vmatpush.bf16.msra.mxu2 %v989_v38  ;;  %v961_v10 = vor.u32 %v1103_v7, %v960_v6  ;;  %v965_v11 = vor.u32 %v1102_v8, %v962_v9  ;;  %s1497_s4 = smov (!%p409_p11, %s949_s4), 3  ;;  %s1136_s12 = sshll.u32 (%p1272_p6), %s1207_s14, 3 }
  0x56   : > { %713 = vmatpush.bf16.msra.mxu3 %v1053_v42  ;;  %s411_s7 = scalar_lea.vmem %s1487_s2, %s1497_s4  ;;  %s788_s11 = scalar_lea.vmem (%p1272_p6), %s1488_s3, %s1136_s12 }
  0x57   : > { %v754_v14 = vld [vmem:[%s411_s7] sm:$0x3] }
  0x58   : > { %657 = vmatpush.bf16.msra.mxu0 %v977_v48  ;;  %v756_v16 = vperm.slane %v754_v14, 0  ;;  %v757_v18 = vperm.slane %v754_v14, 1 }
  0x59   : > { %676 = vmatpush.bf16.msra.mxu1 %v1041_v49  ;;  %695 = vmatpush.bf16.msra.mxu2 %v981_v50 }
  0x5a   : > { %714 = vmatpush.bf16.msra.mxu3 %v1045_v54 }
  0x5c   : > { %658 = vmatpush.bf16.msra.mxu0 %v969_v60 }
  0x5d   : > { %677 = vmatpush.bf16.msra.mxu1 %v1033_v63  ;;  %696 = vmatpush.bf16.msra.mxu2 %v973_v0 }
  0x5e   : > { %715 = vmatpush.bf16.msra.mxu3 %v1037_v3 }
  0x5f   : > { %659 = vmatmul.bf16.vlgmr.msra.gmra.mxu0 %v953_v4 }
  0x60   : > { %678 = vmatmul.bf16.vlgmr.msra.gmra.mxu1 %v957_v5  ;;  %697 = vmatmul.bf16.vlgmr.msra.gmra.mxu2 %v953_v4 }
  0x61   : > { %716 = vmatmul.bf16.vlgmr.msra.gmra.mxu3 %v957_v5 }
  0x6f   : > { %664 = vmatmul.bf16.gmra.mxu0 %v961_v10 }
  0x70   : > { %683 = vmatmul.bf16.gmra.mxu1 %v965_v11  ;;  %702 = vmatmul.bf16.gmra.mxu2 %v961_v10 }
  0x71   : > { %721 = vmatmul.bf16.gmra.mxu3 %v965_v11 }
  0xdc   : > { %v660_v12 = vpop.f32.mrf.mxu0 }
  0xdd   : > { %v679_v13 = vpop.f32.mrf.mxu1 }
  0xde   : > { %v680_v15 = vadd.f32 %v679_v13, %v660_v12 }
  0xe0   : > { %v760_v21 = vadd.f32 %v756_v16, %v680_v15 }
  0xe3   : > { %v698_v17 = vpop.f32.mrf.mxu2 }
  0xe4   : > { %v717_v19 = vpop.f32.mrf.mxu3  ;;  %v662_v20 = vpop.f32.mrf.mxu0 }
  0xe5   : > { %v718_v22 = vadd.f32 %v717_v19, %v698_v17  ;;  %v681_v23 = vpop.f32.mrf.mxu1 }
  0xe6   : > { %v682_v26 = vadd.f32 %v681_v23, %v662_v20 }
  0xe7   : > { %v761_v24 = vadd.f32 %v757_v18, %v718_v22 }
  0xe8   : > { %v762_v32 = vadd.f32 %v756_v16, %v682_v26 }
  0xe9   : > { %v768_v25 = vpack.c.bf16 %v761_v24, %v760_v21 }
  0xeb   : > { %772 = vst [vmem:[%s1454_s9] sm:$0xff] %v768_v25  ;;  %v700_v27 = vpop.f32.mrf.mxu2 }
  0xec   : > { %v719_v28 = vpop.f32.mrf.mxu3  ;;  %v665_v30 = vpop.f32.mrf.mxu0 }
  0xed   : > { %v720_v29 = vadd.f32 %v719_v28, %v700_v27  ;;  %v684_v31 = vpop.f32.mrf.mxu1 }
  0xee   : > { %v685_v35 = vadd.f32 %v684_v31, %v665_v30 }
  0xef   : > { %v763_v33 = vadd.f32 %v757_v18, %v720_v29 }
  0xf0   : > { %v764_v38 = vadd.f32 %v756_v16, %v685_v35 }
  0xf1   : > { %v769_v34 = vpack.c.bf16 %v763_v33, %v762_v32 }
  0xf2   : > { %v823_v51 = vld [vmem:[%s1454_s9] sm:$0xff] (%p1272_p6) }
  0xf3   : > { %773 = vst [vmem:[%s1454_s9 + $0x8] sm:$0xff] %v769_v34  ;;  %v703_v36 = vpop.f32.mrf.mxu2 }
  0xf4   : > { %v722_v37 = vpop.f32.mrf.mxu3  ;;  %v667_v41 = vpop.f32.mrf.mxu0  ;;  %824 = vst [vmem:[%s788_s11] sm:$0xff] (%p1272_p6), %v823_v51 }
  0xf5   : > { %v723_v39 = vadd.f32 %v722_v37, %v703_v36  ;;  %v686_v42 = vpop.f32.mrf.mxu1 }
  0xf6   : > { %v687_v44 = vadd.f32 %v686_v42, %v667_v41 }
  0xf7   : > { %v765_v40 = vadd.f32 %v757_v18, %v723_v39 }
  0xf8   : > { %v766_v48 = vadd.f32 %v756_v16, %v687_v44 }
  0xf9   : > { %v770_v43 = vpack.c.bf16 %v765_v40, %v764_v38 }
  0xfa   : > { %v825_v52 = vld [vmem:[%s1454_s9 + $0x8] sm:$0xff] (%p1272_p6) }
  0xfb   : > { %774 = vst [vmem:[%s1454_s9 + $0x10] sm:$0xff] %v770_v43  ;;  %v705_v45 = vpop.f32.mrf.mxu2 }
  0xfc   : > { %v724_v46 = vpop.f32.mrf.mxu3  ;;  %826 = vst [vmem:[%s788_s11 + $0x10] sm:$0xff] (%p1272_p6), %v825_v52 }
  0xfd   : > { %v725_v47 = vadd.f32 %v724_v46, %v705_v45 }
  0xff   : > { %v767_v49 = vadd.f32 %v757_v18, %v725_v47  ;;  %782 = sbr.rel (!%p1272_p6) target bundleno = 268 (0x10c), region = 82 }
 0x101   : > { %v771_v50 = vpack.c.bf16 %v767_v49, %v766_v48 }
 0x102   : > { %v827_v53 = vld [vmem:[%s1454_s9 + $0x10] sm:$0xff] (%p1272_p6) }
 0x103   : > { %775 = vst [vmem:[%s1454_s9 + $0x18] sm:$0xff] %v771_v50 }
 0x104   : > { %828 = vst [vmem:[%s788_s11 + $0x20] sm:$0xff] %v827_v53 }
 0x10a   : > { %v829_v54 = vld [vmem:[%s1454_s9 + $0x18] sm:$0xff] }
 0x10b   : > { %830 = vst [vmem:[%s788_s11 + $0x30] sm:$0xff] %v829_v54 }
 0x10c PF: > { %s13_s16 = sadd.s32 1, %s1215_s16   ;;  %s1490_s12 = smov %s1203_s13 }
 0x10d   : > { %p10_p12 = scmp.ge.s32.totalorder %s13_s16, 4   ;;  %s1491_s13 = smov %s1277_s22 }
 0x10e   : > { %s1492_s14 = smov %s1211_s15  ;;  %s1493_s15 = smov %s1495_s17 }
 0x10f   :  { %12 = sbr.rel (!%p10_p12) target bundleno = 3 (0x3), region = 157 }

// kernel: dualnet_forward.55
= control target key start
LH: loop header
LB: loop body
LE: loop exit
PB: predicated region body
PF: predicated region fallthrough
CT: control target
= control target key end

     0   :  { %s1219_s12 = smov 0   ;;  %s1221_s13 = smov 0   ;;  %s1451_s0 = inlined_call_operand.vmem [shape: bf16[2,4,16,64], index: 0, kind: input, shape index: {}]   ;;  %s1452_s1 = inlined_call_operand.vmem [shape: bf16[2,4,16,64], index: 1, kind: input, shape index: {}]   ;;  %s1453_s2 = inlined_call_operand.vmem [shape: bf16[2,4,16,64], index: 2, kind: input, shape index: {}]   ;;  %s1454_s3 = inlined_call_operand.vmem [shape: f32[2,4,16,64], index: 3, kind: output, shape index: {}]  }
   0x1   :  { %s1223_s14 = smov 0  }
   0x2 LB: > { %s25_s15 = sadd.s32 1, %s1190_s13  ;;  %p1011_p0 = scmp.ge.s32.totalorder %s1194_s14, 1  ;;  %s1194_s14 = sphi %s1223_s14, %s13_s14   ;;  %s1190_s13 = sphi %s1221_s13, %s1456_s13   ;;  %s1186_s12 = sphi %s1219_s12, %s1455_s12  }
   0x3   : > { %p27_p1 = scmp.ge.s32.totalorder %s25_s15, 2  ;;  %p183_p2 = scmp.lt.s32.totalorder %s1194_s14, 3 }
   0x5   : > { %s1458_s15 = smov (%p27_p1, %s25_s15), 0  ;;  %p184_p3 = pnand %p1011_p0, %p183_p2 }
   0x6   : > { %p225_p4 = scmp.lt.s32.totalorder (!%p184_p3), %s1186_s12, 1 }
   0x7   : > { %187 = sbr.rel (%p184_p3) target bundleno = 672 (0x2a0), region = 32 }
   0xc   : > { %s1460_s12 = smov (!%p225_p4, %s1186_s12), 1  ;;  %vm277_vm0 = vcmask 523264   ;;  %vm260_vm1 = vcmask 7168   ;;  %v1196_v12 = vmov -1e+30   ;;  %vm447_vm2 = vcmask 130048  }
   0xd   : > { %s1240_s16 = sshll.u32 %s1460_s12, 5  ;;  %263 = vst.msk [vmem:[#allocation2 + $0x10] sm:$0xff] %vm260_vm1, %v1196_v12  ;;  %v1197_v37 = vmov 0   ;;  %v1198_v38 = vmov 0.0   ;;  %s1081_s26 = sshll.u32 %s1460_s12, 6 }
   0xe   : > { %s238_s19 = scalar_lea.vmem %s1452_s1, %s1240_s16  ;;  %s229_s22 = scalar_lea.vmem %s1451_s0, %s1240_s16  ;;  %261 = vst.msk [vmem:[#allocation2] sm:$0xff] %vm260_vm1, %v1196_v12  ;;  %1123 = vset.pattern.permute.xlu1 %v1197_v37  ;;  %1121 = vset.pattern.permute.xlu2 %v1197_v37 }
   0xf   : > { %v1086_v0 = vld [vmem:[%s238_s19] sm:$0xff]  ;;  %v1087_v1 = vld [vmem:[%s238_s19 + $0x8] sm:$0xff]  ;;  %v1088_v2 = vld [vmem:[%s238_s19 + $0x10] sm:$0xff]  ;;  %262 = vst.msk [vmem:[#allocation2 + $0x8] sm:$0xff] %vm260_vm1, %v1196_v12  ;;  %1122 = vset.pattern.permute.xlu0 %v1197_v37  ;;  %s248_s25 = scalar_lea.vmem %s1453_s2, %s1240_s16  ;;  %s1424_s29 = scalar_lea.vmem %s1454_s3, %s1081_s26 }
  0x10   : > { %v1089_v3 = vld [vmem:[%s238_s19 + $0x18] sm:$0xff]  ;;  %v325_v4 = vsel %vm277_vm0, %v1086_v0, 0  ;;  %v355_v5 = vsel %vm277_vm0, %v1087_v1, 0  ;;  %v385_v6 = vsel %vm277_vm0, %v1088_v2, 0  ;;  %v1082_v8 = vld [vmem:[%s229_s22] sm:$0xff]  ;;  %v1083_v9 = vld [vmem:[%s229_s22 + $0x8] sm:$0xff] }
  0x11   : > { %334 = vmatpush.bf16.xpose.msra.mxu0 %v325_v4  ;;  %364 = vmatpush.bf16.xpose.msra.mxu1 %v355_v5  ;;  %v415_v7 = vsel %vm277_vm0, %v1089_v3, 0  ;;  %v1084_v10 = vld [vmem:[%s229_s22 + $0x10] sm:$0xff]  ;;  %v1085_v11 = vld [vmem:[%s229_s22 + $0x18] sm:$0xff]  ;;  %264 = vst.msk [vmem:[#allocation2 + $0x18] sm:$0xff] %vm260_vm1, %v1196_v12 }
  0x12   : > { %394 = vmatpush.bf16.xpose.msra.mxu2 %v385_v6  ;;  %424 = vmatpush.bf16.xpose.msra.mxu3 %v415_v7  ;;  %265 = vst.msk [vmem:[#allocation2 + $0x20] sm:$0xff] %vm260_vm1, %v1196_v12 }
  0x13   : > { %266 = vst.msk [vmem:[#allocation2 + $0x28] sm:$0xff] %vm260_vm1, %v1196_v12 }
  0x14   : > { %267 = vst.msk [vmem:[#allocation2 + $0x30] sm:$0xff] %vm260_vm1, %v1196_v12  ;;  %v441_v39 = vld [vmem:[#allocation2 + $0x10] sm:$0xff] }
  0x15   : > { %268 = vst.msk [vmem:[#allocation2 + $0x38] sm:$0xff] %vm260_vm1, %v1196_v12  ;;  %v439_v40 = vld [vmem:[#allocation2] sm:$0xff] }
  0x16   : > { %279 = vst.msk [vmem:[#allocation4 + $0x8] sm:$0xff] %vm277_vm0, %v1198_v38  ;;  %v440_v47 = vld [vmem:[#allocation2 + $0x8] sm:$0xff] }
  0x17   : > { %269 = vst.msk [vmem:[#allocation3] sm:$0xff] %vm260_vm1, %v1198_v38 }
  0x18   : > { %1028 = vmatmul.msk.bf16.vlgmr.msra.gmra.mxu0 %vm277_vm0, %v1082_v8  ;;  %1037 = vmatmul.msk.bf16.vlgmr.msra.gmra.mxu1 %vm277_vm0, %v1083_v9  ;;  %270 = vst.msk [vmem:[#allocation3 + $0x8] sm:$0xff] %vm260_vm1, %v1198_v38  ;;  %v442_v55 = vld [vmem:[#allocation2 + $0x18] sm:$0xff] }
  0x19   : > { %1046 = vmatmul.msk.bf16.vlgmr.msra.gmra.mxu2 %vm277_vm0, %v1084_v10  ;;  %1055 = vmatmul.msk.bf16.vlgmr.msra.gmra.mxu3 %vm277_vm0, %v1085_v11  ;;  %271 = vst.msk [vmem:[#allocation3 + $0x10] sm:$0xff] %vm260_vm1, %v1198_v38  ;;  %v443_v46 = vld [vmem:[#allocation2 + $0x20] sm:$0xff] }
  0x1a   : > { %272 = vst.msk [vmem:[#allocation3 + $0x18] sm:$0xff] %vm260_vm1, %v1198_v38  ;;  %v444_v56 = vld [vmem:[#allocation2 + $0x28] sm:$0xff] }
  0x1b   : > { %273 = vst.msk [vmem:[#allocation3 + $0x20] sm:$0xff] %vm260_vm1, %v1198_v38  ;;  %v445_v45 = vld [vmem:[#allocation2 + $0x30] sm:$0xff] }
  0x1c   : > { %274 = vst.msk [vmem:[#allocation3 + $0x28] sm:$0xff] %vm260_vm1, %v1198_v38  ;;  %v1321_v0 = vld [vmem:[#allocation2 + $0x38] sm:$0xff] }
  0x1d   : > { %275 = vst.msk [vmem:[#allocation3 + $0x30] sm:$0xff] %vm260_vm1, %v1198_v38 }
  0x1e   : > { %276 = vst.msk [vmem:[#allocation3 + $0x38] sm:$0xff] %vm260_vm1, %v1198_v38 }
  0x1f   : > { %278 = vst.msk [vmem:[#allocation4] sm:$0xff] %vm277_vm0, %v1198_v38 }
  0x20   : > { %280 = vst.msk [vmem:[#allocation4 + $0x10] sm:$0xff] %vm277_vm0, %v1198_v38 }
  0x21   : > { %281 = vst.msk [vmem:[#allocation4 + $0x18] sm:$0xff] %vm277_vm0, %v1198_v38 }
  0x22   : > { %282 = vst.msk [vmem:[#allocation4 + $0x20] sm:$0xff] %vm277_vm0, %v1198_v38 }
  0x23   : > { %283 = vst.msk [vmem:[#allocation4 + $0x28] sm:$0xff] %vm277_vm0, %v1198_v38 }
  0x24   : > { %284 = vst.msk [vmem:[#allocation4 + $0x30] sm:$0xff] %vm277_vm0, %v1198_v38 }
  0x25   : > { %285 = vst.msk [vmem:[#allocation4 + $0x38] sm:$0xff] %vm277_vm0, %v1198_v38 }
  0x95   : > { %v336_v13 = vpop.f32.mrf.mxu0  ;;  %v366_v14 = vpop.f32.mrf.mxu1 }
  0x96   : > { %v1263_v15 = vmul.f32 0.125, %v336_v13  ;;  %v1265_v16 = vmul.f32 0.125, %v366_v14 }
  0x98   : > { %v454_v17 = vsel %vm447_vm2, %v1265_v16, -inf  ;;  %v448_v18 = vsel %vm447_vm2, %v1263_v15, -inf }
  0x99   : > { %455 = vmax.xlane.f32.xlu0 %v454_v17  ;;  %449 = vmax.xlane.f32.xlu2 %v448_v18 }
  0x9c   : > { %v396_v19 = vpop.f32.mrf.mxu2  ;;  %v426_v20 = vpop.f32.mrf.mxu3 }
  0x9d   : > { %v1274_v21 = vmul.f32 0.125, %v396_v19  ;;  %v1276_v22 = vmul.f32 0.125, %v426_v20  ;;  %v338_v23 = vpop.f32.mrf.mxu0  ;;  %v368_v27 = vpop.f32.mrf.mxu1 }
  0x9e   : > { %v1278_v24 = vmul.f32 0.125, %v338_v23  ;;  %v1286_v29 = vmul.f32 0.125, %v368_v27  ;;  %v1093_v27 = vld [vmem:[%s248_s25 + $0x18] sm:$0xff] }
  0x9f   : > { %v466_v25 = vsel %vm447_vm2, %v1276_v22, -inf  ;;  %v460_v26 = vsel %vm447_vm2, %v1274_v21, -inf  ;;  %794 = vmatpush.bf16.msrb.mxu3 %v1093_v27 }
  0xa0   : > { %467 = vmax.xlane.f32.xlu1 %v466_v25  ;;  %v451_v28 = vsel %vm447_vm2, %v1278_v24, -inf  ;;  %v457_v32 = vsel %vm447_vm2, %v1286_v29, -inf }
  0xa1   : > { %461 = vmax.xlane.f32.xlu0 %v460_v26  ;;  %452 = vmax.xlane.f32.xlu2 %v451_v28 }
  0xa4   : > { %v398_v30 = vpop.f32.mrf.mxu2  ;;  %v428_v33 = vpop.f32.mrf.mxu3 }
  0xa5   : > { %v1288_v31 = vmul.f32 0.125, %v398_v30  ;;  %v1294_v35 = vmul.f32 0.125, %v428_v33 }
  0xa7   : > { %v463_v34 = vsel %vm447_vm2, %v1288_v31, -inf  ;;  %v469_v36 = vsel %vm447_vm2, %v1294_v35, -inf }
  0xa8   : > { %458 = vmax.xlane.f32.xlu1 %v457_v32 }
  0xa9   : > { %464 = vmax.xlane.f32.xlu0 %v463_v34  ;;  %v1090_v34 = vld [vmem:[%s248_s25] sm:$0xff] }
  0xaa   : > { %710 = vmatpush.bf16.msrb.mxu0 %v1090_v34 }
  0xb0   : > { %470 = vmax.xlane.f32.xlu1 %v469_v36  ;;  %v1092_v36 = vld [vmem:[%s248_s25 + $0x10] sm:$0xff] }
  0xb1   : > { %766 = vmatpush.bf16.msrb.mxu2 %v1092_v36 }
 0x10c   : > { %v456_v41 = vpop.xlane.xlu0 %455  ;;  %v450_v42 = vpop.xlane.xlu2 %449 }
 0x10d   : > { %v474_v43 = vmax.f32 %v441_v39, %v456_v41  ;;  %v472_v44 = vmax.f32 %v439_v40, %v450_v42 }
 0x10f   : > { %819 = vst.msk [vmem:[#allocation2 + $0x10] sm:$0xff] %vm260_vm1, %v474_v43  ;;  %v482_v54 = vsub.f32 %v441_v39, %v474_v43  ;;  %v480_v62 = vsub.f32 %v439_v40, %v472_v44 }
 0x110   : > { %817 = vst.msk [vmem:[#allocation2] sm:$0xff] %vm260_vm1, %v472_v44 }
 0x111   : > { %v492_v58 = vmul.f32 1.442695, %v482_v54  ;;  %v488_v1 = vmul.f32 1.442695, %v480_v62 }
 0x113   : > { %v468_v48 = vpop.xlane.xlu1 %467  ;;  %1124 = vpow2.f32 %v492_v58 }
 0x114   : > { %v478_v49 = vmax.f32 %v445_v45, %v468_v48  ;;  %v462_v50 = vpop.xlane.xlu0 %461  ;;  %v453_v51 = vpop.xlane.xlu2 %452  ;;  %1126 = vpow2.f32 %v488_v1 }
 0x115   : > { %v476_v52 = vmax.f32 %v443_v46, %v462_v50  ;;  %v473_v53 = vmax.f32 %v440_v47, %v453_v51 }
 0x116   : > { %823 = vst.msk [vmem:[#allocation2 + $0x30] sm:$0xff] %vm260_vm1, %v478_v49  ;;  %536 = vperm.xlu1 %1123, %v478_v49   ;;  %v486_v7 = vsub.f32 %v445_v45, %v478_v49 }
 0x117   : > { %821 = vst.msk [vmem:[#allocation2 + $0x20] sm:$0xff] %vm260_vm1, %v476_v52  ;;  %526 = vperm.xlu2 %1121, %v476_v52   ;;  %v484_v63 = vsub.f32 %v443_v46, %v476_v52  ;;  %v481_v8 = vsub.f32 %v440_v47, %v473_v53 }
 0x118   : > { %818 = vst.msk [vmem:[#allocation2 + $0x8] sm:$0xff] %vm260_vm1, %v473_v53  ;;  %v500_v9 = vmul.f32 1.442695, %v486_v7 }
 0x119   : > { %v496_v3 = vmul.f32 1.442695, %v484_v63  ;;  %v1326_v5 = vpop.eup %1124  ;;  %v490_v10 = vmul.f32 1.442695, %v481_v8 }
 0x11a   : > { %v1334_v11 = vpop.eup %1126 }
 0x11b   : > { %v459_v57 = vpop.xlane.xlu1 %458  ;;  %1128 = vpow2.f32 %v496_v3 }
 0x11c   : > { %v475_v59 = vmax.f32 %v442_v55, %v459_v57  ;;  %v465_v60 = vpop.xlane.xlu0 %464  ;;  %1130 = vpow2.f32 %v500_v9 }
 0x11d   : > { %v477_v61 = vmax.f32 %v444_v56, %v465_v60  ;;  %1132 = vpow2.f32 %v490_v10 }
 0x11e   : > { %820 = vst.msk [vmem:[#allocation2 + $0x18] sm:$0xff] %vm260_vm1, %v475_v59  ;;  %511 = vperm.xlu1 %1123, %v473_v53   ;;  %v483_v13 = vsub.f32 %v442_v55, %v475_v59 }
 0x11f   : > { %822 = vst.msk [vmem:[#allocation2 + $0x28] sm:$0xff] %vm260_vm1, %v477_v61  ;;  %531 = vperm.xlu0 %1122, %v477_v61   ;;  %506 = vperm.xlu2 %1121, %v472_v44   ;;  %v485_v14 = vsub.f32 %v444_v56, %v477_v61 }
 0x120   : > { %v494_v17 = vmul.f32 1.442695, %v483_v13 }
 0x121   : > { %v1336_v12 = vpop.eup %1128  ;;  %v498_v18 = vmul.f32 1.442695, %v485_v14 }
 0x122   : > { %v1340_v19 = vpop.eup %1130  ;;  %1134 = vpow2.f32 %v494_v17 }
 0x123   : > { %v471_v2 = vpop.xlane.xlu1 %470  ;;  %v1342_v20 = vpop.eup %1132  ;;  %1136 = vpow2.f32 %v498_v18 }
 0x124   : > { %v1324_v4 = vmax.f32 %v1321_v0, %v471_v2 }
 0x126   : > { %v487_v6 = vsub.f32 %v1321_v0, %v1324_v4  ;;  %824 = vst.msk [vmem:[#allocation2 + $0x38] sm:$0xff] %vm260_vm1, %v1324_v4  ;;  %521 = vperm.xlu1 %1123, %v475_v59  }
 0x127   : > { %645 = vperm.xlu0 %1122, %v1326_v5   ;;  %541 = vperm.xlu2 %1121, %v1324_v4  }
 0x128   : > { %v1346_v23 = vpop.eup %1134 }
 0x129   : > { %v1348_v25 = vpop.eup %1136 }
 0x12e   : > { %635 = vperm.xlu1 %1123, %v1334_v11  }
 0x12f   : > { %655 = vperm.xlu0 %1122, %v1336_v12   ;;  %516 = vperm.xlu2 %1121, %v474_v43   ;;  %v1091_v43 = vld [vmem:[%s248_s25 + $0x8] sm:$0xff] }
 0x130   : > { %738 = vmatpush.bf16.msrb.mxu1 %v1091_v43 }
 0x136   : > { %665 = vperm.xlu1 %1123, %v1340_v19  }
 0x137   : > { %640 = vperm.xlu2 %1121, %v1342_v20  }
 0x13e   : > { %650 = vperm.xlu1 %1123, %v1346_v23  }
 0x13f   : > { %660 = vperm.xlu2 %1121, %v1348_v25  }
 0x171   : > { %v527_v26 = vpop.permute.xlu2 %526 }
 0x172   : > { %v548_v32 = vsub.f32 %v1274_v21, %v527_v26 }
 0x174   : > { %v560_v37 = vmul.f32 1.442695, %v548_v32 }
 0x179   : > { %v507_v28 = vpop.permute.xlu2 %506 }
 0x17a   : > { %v544_v30 = vsub.f32 %v1263_v15, %v507_v28 }
 0x17c   : > { %v552_v33 = vmul.f32 1.442695, %v544_v30 }
 0x17e   : > { %1138 = vpow2.f32 %v552_v33 }
 0x17f   : > { %1140 = vpow2.f32 %v560_v37 }
 0x181   : > { %v542_v38 = vpop.permute.xlu2 %541 }
 0x182   : > { %v551_v39 = vsub.f32 %v1294_v35, %v542_v38 }
 0x184   : > { %v1139_v40 = vpop.eup %1138  ;;  %v566_v41 = vmul.f32 1.442695, %v551_v39 }
 0x185   : > { %v584_v42 = vsel %vm447_vm2, %v1139_v40, 0.0  ;;  %v1141_v45 = vpop.eup %1140  ;;  %v681_v1 = vpack.c.bf16 %v1139_v40, %v1139_v40 }
 0x186   : > { %585 = vadd.xlane.f32.xlu0 %v584_v42  ;;  %1142 = vpow2.f32 %v566_v41  ;;  %v596_v35 = vsel %vm447_vm2, %v1141_v45, 0.0  ;;  %v685_v3 = vpack.c.bf16 %v1141_v45, %v1141_v45  ;;  %v568_v41 = vld [vmem:[#allocation3] sm:$0xff] }
 0x187   : > { %v691_v17 = vunpack.c.l.b16 %v681_v1  ;;  %v572_v45 = vld [vmem:[#allocation3 + $0x20] sm:$0xff] }
 0x188   : > { %v537_v15 = vpop.permute.xlu1 %536  ;;  %v747_v26 = vunpack.c.l.b16 %v685_v3  ;;  %v571_v3 = vld [vmem:[#allocation3 + $0x18] sm:$0xff] }
 0x189   : > { %v550_v21 = vsub.f32 %v1276_v22, %v537_v15  ;;  %v517_v44 = vpop.permute.xlu2 %516  ;;  %v576_v15 = vmul.f32 %v1334_v11, %v568_v41  ;;  %v570_v11 = vld [vmem:[#allocation3 + $0x10] sm:$0xff] }
 0x18a   : > { %v546_v46 = vsub.f32 %v1265_v16, %v517_v44 }
 0x18b   : > { %v564_v47 = vmul.f32 1.442695, %v550_v21 }
 0x18c   : > { %v556_v48 = vmul.f32 1.442695, %v546_v46  ;;  %v1143_v49 = vpop.eup %1142 }
 0x18d   : > { %1144 = vpow2.f32 %v564_v47  ;;  %v688_v53 = vpack.c.bf16 %v1143_v49, %v1143_v49  ;;  %v605_v59 = vsel %vm447_vm2, %v1143_v49, 0.0  ;;  %v580_v47 = vmul.f32 %v1336_v12, %v572_v45 }
 0x18e   : > { %1146 = vpow2.f32 %v556_v48  ;;  %597 = vadd.xlane.f32.xlu0 %v596_v35 }
 0x18f   : > { %v776_v61 = vunpack.c.l.b16 %v688_v53 }
 0x190   : > { %v512_v50 = vpop.permute.xlu1 %511 }
 0x191   : > { %v545_v51 = vsub.f32 %v1278_v24, %v512_v50  ;;  %v532_v52 = vpop.permute.xlu0 %531  ;;  %v1385_v42 = vpop.permute.xlu2 %640 }
 0x192   : > { %v549_v54 = vsub.f32 %v1288_v31, %v532_v52  ;;  %v575_v52 = vld [vmem:[#allocation3 + $0x38] sm:$0xff] }
 0x193   : > { %v1145_v22 = vpop.eup %1144  ;;  %v554_v55 = vmul.f32 1.442695, %v545_v51  ;;  %v574_v51 = vld [vmem:[#allocation3 + $0x30] sm:$0xff] }
 0x194   : > { %v1147_v56 = vpop.eup %1146  ;;  %v687_v57 = vpack.c.bf16 %v1145_v22, %v1145_v22  ;;  %v562_v16 = vmul.f32 1.442695, %v549_v54  ;;  %v602_v58 = vsel %vm447_vm2, %v1145_v22, 0.0  ;;  %v582_v53 = vmul.f32 %v1340_v19, %v574_v51  ;;  %v573_v19 = vld [vmem:[#allocation3 + $0x28] sm:$0xff] }
 0x195   : > { %1148 = vpow2.f32 %v554_v55  ;;  %603 = vadd.xlane.f32.xlu2 %v602_v58  ;;  %v590_v60 = vsel %vm447_vm2, %v1147_v56, 0.0  ;;  %v683_v32 = vpack.c.bf16 %v1147_v56, %v1147_v56  ;;  %v578_v55 = vmul.f32 %v1326_v5, %v570_v11 }
 0x196   : > { %v775_v62 = vunpack.c.l.b16 %v687_v57  ;;  %1150 = vpow2.f32 %v562_v16  ;;  %606 = vadd.xlane.f32.xlu0 %v605_v59  ;;  %591 = vadd.xlane.f32.xlu1 %v590_v60 }
 0x197   : > { %v719_v37 = vunpack.c.l.b16 %v683_v32 }
 0x198   : > { %v522_v24 = vpop.permute.xlu1 %521  ;;  %v777_v31 = vpack.c.b16 %v776_v61, %v775_v62  ;;  %v569_v61 = vld [vmem:[#allocation3 + $0x8] sm:$0xff] }
 0x199   : > { %v547_v63 = vsub.f32 %v1286_v29, %v522_v24  ;;  %v502_v29 = vmul.f32 1.442695, %v487_v6  ;;  %v1379_v4 = vpop.permute.xlu0 %645  ;;  %v1389_v46 = vpop.permute.xlu2 %660  ;;  %v577_v62 = vmul.f32 %v1342_v20, %v569_v61  ;;  %v581_v24 = vmul.f32 %v1348_v25, %v573_v19  ;;  %v625_v25 = vld [vmem:[#allocation4] sm:$0xff] }
 0x19a   : > { %1075 = vmatmul.msk.bf16.vlgmr.msrb.gmra.mxu3 %vm447_vm2, %v777_v31 }
 0x19b   : > { %v1149_v2 = vpop.eup %1148  ;;  %v558_v7 = vmul.f32 1.442695, %v547_v63 }
 0x19c   : > { %v1151_v8 = vpop.eup %1150  ;;  %v682_v9 = vpack.c.bf16 %v1149_v2, %v1149_v2  ;;  %v587_v10 = vsel %vm447_vm2, %v1149_v2, 0.0 }
 0x19d   : > { %v686_v13 = vpack.c.bf16 %v1151_v8, %v1151_v8  ;;  %1152 = vpow2.f32 %v558_v7  ;;  %588 = vadd.xlane.f32.xlu2 %v587_v10  ;;  %v599_v14 = vsel %vm447_vm2, %v1151_v8, 0.0  ;;  %v579_v8 = vmul.f32 %v1346_v23, %v571_v3  ;;  %v631_v10 = vld [vmem:[#allocation4 + $0x30] sm:$0xff] }
 0x19e   : > { %v692_v18 = vunpack.c.l.b16 %v682_v9  ;;  %600 = vadd.xlane.f32.xlu1 %v599_v14  ;;  %1154 = vpow2.f32 %v502_v29 }
 0x19f   : > { %v748_v27 = vunpack.c.l.b16 %v686_v13 }
 0x1a0   : > { %v693_v28 = vpack.c.b16 %v692_v18, %v691_v17  ;;  %v1381_v6 = vpop.permute.xlu1 %635 }
 0x1a1   : > { %v749_v30 = vpack.c.b16 %v748_v27, %v747_v26  ;;  %v1383_v40 = vpop.permute.xlu0 %655  ;;  %v673_v26 = vmul.f32 %v1381_v6, %v625_v25 }
 0x1a2   : > { %1060 = vmatmul.msk.bf16.vlgmr.msrb.gmra.mxu0 %vm447_vm2, %v693_v28 }
 0x1a3   : > { %v1153_v33 = vpop.eup %1152  ;;  %1070 = vmatmul.msk.bf16.vlgmr.msrb.gmra.mxu2 %vm447_vm2, %v749_v30 }
 0x1a4   : > { %v684_v34 = vpack.c.bf16 %v1153_v33, %v1153_v33  ;;  %v593_v36 = vsel %vm447_vm2, %v1153_v33, 0.0  ;;  %v1155_v0 = vpop.eup %1154  ;;  %v632_v33 = vld [vmem:[#allocation4 + $0x38] sm:$0xff] }
 0x1a5   : > { %594 = vadd.xlane.f32.xlu2 %v593_v36  ;;  %v583_v22 = vmul.f32 %v1155_v0, %v575_v52 }
 0x1a6   : > { %v720_v38 = vunpack.c.l.b16 %v684_v34 }
 0x1a8   : > { %v721_v39 = vpack.c.b16 %v720_v38, %v719_v37  ;;  %v666_v43 = vpop.permute.xlu1 %665  ;;  %v629_v37 = vld [vmem:[#allocation4 + $0x20] sm:$0xff] }
 0x1a9   : > { %v679_v18 = vmul.f32 %v666_v43, %v631_v10  ;;  %v677_v41 = vmul.f32 %v1383_v40, %v629_v37  ;;  %v630_v40 = vld [vmem:[#allocation4 + $0x28] sm:$0xff] }
 0x1aa   : > { %1065 = vmatmul.msk.bf16.vlgmr.msrb.gmra.mxu1 %vm447_vm2, %v721_v39  ;;  %670 = vperm.xlu0 %1122, %v1155_v0   ;;  %v626_v39 = vld [vmem:[#allocation4 + $0x8] sm:$0xff]  ;;  %v627_v0 = vld [vmem:[#allocation4 + $0x10] sm:$0xff] }
 0x1b0   : > { %v1392_v48 = vpop.permute.xlu1 %650 }
 0x1f9   : > { %v586_v21 = vpop.xlane.xlu0 %585 }
 0x1fa   : > { %v608_v44 = vadd.f32 %v586_v21, %v576_v15  ;;  %v674_v15 = vmul.f32 %v1385_v42, %v626_v39  ;;  %v675_v21 = vmul.f32 %v1379_v4, %v627_v0  ;;  %v628_v4 = vld [vmem:[#allocation4 + $0x18] sm:$0xff]  ;;  %v678_v42 = vmul.f32 %v1389_v46, %v630_v40 }
 0x1fc   : > { %617 = vst.msk [vmem:[#allocation3] sm:$0xff] %vm260_vm1, %v608_v44 }
 0x201   : > { %v598_v35 = vpop.xlane.xlu0 %597 }
 0x202   : > { %v612_v49 = vadd.f32 %v598_v35, %v580_v47 }
 0x203   : > { %v828_v50 = vld [vmem:[#allocation3] sm:$0xff] }
 0x204   : > { %621 = vst.msk [vmem:[#allocation3 + $0x20] sm:$0xff] %vm260_vm1, %v612_v49  ;;  %1156 = vrcp.f32 %v828_v50 }
 0x208   : > { %v604_v54 = vpop.xlane.xlu2 %603 }
 0x209   : > { %v614_v56 = vadd.f32 %v604_v54, %v582_v53  ;;  %v607_v57 = vpop.xlane.xlu0 %606  ;;  %v592_v12 = vpop.xlane.xlu1 %591  ;;  %v676_v54 = vmul.f32 %v1392_v48, %v628_v4 }
 0x20a   : > { %v1157_v16 = vpop.eup %1156  ;;  %v615_v58 = vadd.f32 %v607_v57, %v583_v22  ;;  %v610_v59 = vadd.f32 %v592_v12, %v578_v55 }
 0x20b   : > { %623 = vst.msk [vmem:[#allocation3 + $0x30] sm:$0xff] %vm260_vm1, %v614_v56  ;;  %854 = vperm.xlu2 %1121, %v1157_v16   ;;  %v832_v60 = vld [vmem:[#allocation3 + $0x20] sm:$0xff] }
 0x20c   : > { %624 = vst.msk [vmem:[#allocation3 + $0x38] sm:$0xff] %vm260_vm1, %v615_v58  ;;  %1158 = vrcp.f32 %v832_v60 }
 0x20d   : > { %619 = vst.msk [vmem:[#allocation3 + $0x10] sm:$0xff] %vm260_vm1, %v610_v59 }
 0x210   : > { %v589_v5 = vpop.xlane.xlu2 %588 }
 0x211   : > { %v609_v31 = vadd.f32 %v589_v5, %v577_v62  ;;  %v601_v63 = vpop.xlane.xlu1 %600 }
 0x212   : > { %v1159_v1 = vpop.eup %1158  ;;  %v613_v2 = vadd.f32 %v601_v63, %v581_v24  ;;  %v834_v11 = vld [vmem:[#allocation3 + $0x30] sm:$0xff] }
 0x213   : > { %618 = vst.msk [vmem:[#allocation3 + $0x8] sm:$0xff] %vm260_vm1, %v609_v31  ;;  %874 = vperm.xlu1 %1123, %v1159_v1   ;;  %v835_v30 = vld [vmem:[#allocation3 + $0x38] sm:$0xff] }
 0x214   : > { %622 = vst.msk [vmem:[#allocation3 + $0x28] sm:$0xff] %vm260_vm1, %v613_v2  ;;  %v830_v7 = vld [vmem:[#allocation3 + $0x10] sm:$0xff] }
 0x215   : > { %1160 = vrcp.f32 %v830_v7 }
 0x218   : > { %v595_v9 = vpop.xlane.xlu2 %594 }
 0x219   : > { %v611_v20 = vadd.f32 %v595_v9, %v579_v8 }
 0x21a   : > { %v829_v13 = vld [vmem:[#allocation3 + $0x8] sm:$0xff] }
 0x21b   : > { %v1161_v14 = vpop.eup %1160  ;;  %620 = vst.msk [vmem:[#allocation3 + $0x18] sm:$0xff] %vm260_vm1, %v611_v20  ;;  %1162 = vrcp.f32 %v829_v13  ;;  %v833_v17 = vld [vmem:[#allocation3 + $0x28] sm:$0xff] }
 0x21c   : > { %864 = vperm.xlu0 %1122, %v1161_v14   ;;  %1164 = vrcp.f32 %v833_v17  ;;  %v671_v34 = vpop.permute.xlu0 %670 }
 0x21d   : > { %v796_v29 = vpop.f32.mrf.mxu3  ;;  %1166 = vrcp.f32 %v835_v30  ;;  %v680_v6 = vmul.f32 %v671_v34, %v632_v33 }
 0x21e   : > { %v807_v27 = vadd.f32 %v796_v29, %v679_v18 }
 0x21f   : > { %v712_v28 = vpop.f32.mrf.mxu0 }
 0x220   : > { %815 = vst.msk [vmem:[#allocation4 + $0x30] sm:$0xff] %vm277_vm0, %v807_v27  ;;  %v801_v23 = vadd.f32 %v712_v28, %v673_v26 }
 0x221   : > { %v1163_v32 = vpop.eup %1162 }
 0x222   : > { %v1165_v36 = vpop.eup %1164  ;;  %809 = vst.msk [vmem:[#allocation4] sm:$0xff] %vm277_vm0, %v801_v23  ;;  %859 = vperm.xlu1 %1123, %v1163_v32   ;;  %v831_v38 = vld [vmem:[#allocation3 + $0x18] sm:$0xff] }
 0x223   : > { %1168 = vrcp.f32 %v831_v38  ;;  %v1167_v50 = vpop.eup %1166 }
 0x224   : > { %879 = vperm.xlu0 %1122, %v1165_v36   ;;  %1170 = vrcp.f32 %v834_v11 }
 0x225   : > { %v798_v43 = vpop.f32.mrf.mxu3 }
 0x226   : > { %v808_v44 = vadd.f32 %v798_v43, %v680_v6  ;;  %v768_v45 = vpop.f32.mrf.mxu2 }
 0x227   : > { %v714_v47 = vpop.f32.mrf.mxu0  ;;  %v740_v35 = vpop.f32.mrf.mxu1  ;;  %v805_v49 = vadd.f32 %v768_v45, %v677_v41  ;;  %v850_v5 = vld [vmem:[#allocation4 + $0x30] sm:$0xff] }
 0x228   : > { %816 = vst.msk [vmem:[#allocation4 + $0x38] sm:$0xff] %vm277_vm0, %v808_v44  ;;  %v802_v51 = vadd.f32 %v714_v47, %v674_v15  ;;  %v803_v52 = vadd.f32 %v740_v35, %v675_v21 }
 0x229   : > { %v1169_v53 = vpop.eup %1168  ;;  %813 = vst.msk [vmem:[#allocation4 + $0x20] sm:$0xff] %vm277_vm0, %v805_v49  ;;  %v844_v46 = vld [vmem:[#allocation4] sm:$0xff] }
 0x22a   : > { %810 = vst.msk [vmem:[#allocation4 + $0x8] sm:$0xff] %vm277_vm0, %v802_v51  ;;  %889 = vperm.xlu1 %1123, %v1167_v50   ;;  %869 = vperm.xlu2 %1121, %v1169_v53   ;;  %v1171_v12 = vpop.eup %1170 }
 0x22b   : > { %811 = vst.msk [vmem:[#allocation4 + $0x10] sm:$0xff] %vm277_vm0, %v803_v52 }
 0x22e   : > { %v770_v22 = vpop.f32.mrf.mxu2 }
 0x22f   : > { %v742_v55 = vpop.f32.mrf.mxu1  ;;  %v806_v56 = vadd.f32 %v770_v22, %v678_v42  ;;  %v851_v13 = vld [vmem:[#allocation4 + $0x38] sm:$0xff] }
 0x230   : > { %v804_v57 = vadd.f32 %v742_v55, %v676_v54  ;;  %v848_v61 = vld [vmem:[#allocation4 + $0x20] sm:$0xff] }
 0x231   : > { %814 = vst.msk [vmem:[#allocation4 + $0x28] sm:$0xff] %vm277_vm0, %v806_v56  ;;  %v845_v3 = vld [vmem:[#allocation4 + $0x8] sm:$0xff] }
 0x232   : > { %812 = vst.msk [vmem:[#allocation4 + $0x18] sm:$0xff] %vm277_vm0, %v804_v57  ;;  %884 = vperm.xlu2 %1121, %v1171_v12   ;;  %v846_v63 = vld [vmem:[#allocation4 + $0x10] sm:$0xff] }
 0x238   : > { %v849_v10 = vld [vmem:[#allocation4 + $0x28] sm:$0xff] }
 0x239   : > { %v847_v58 = vld [vmem:[#allocation4 + $0x18] sm:$0xff] }
 0x265   : > { %v855_v48 = vpop.permute.xlu2 %854 }
 0x266   : > { %v892_v16 = vmul.f32 %v855_v48, %v844_v46 }
 0x268   : > { %900 = vst.msk [vmem:[%s1424_s29] sm:$0xff] %vm277_vm0, %v892_v16 }
 0x284   : > { %v870_v59 = vpop.permute.xlu2 %869 }
 0x285   : > { %v895_v60 = vmul.f32 %v870_v59, %v847_v58  ;;  %v875_v19 = vpop.permute.xlu1 %874 }
 0x286   : > { %v896_v62 = vmul.f32 %v875_v19, %v848_v61 }
 0x287   : > { %903 = vst.msk [vmem:[%s1424_s29 + $0x18] sm:$0xff] %vm277_vm0, %v895_v60 }
 0x288   : > { %904 = vst.msk [vmem:[%s1424_s29 + $0x20] sm:$0xff] %vm277_vm0, %v896_v62 }
 0x28c   : > { %v885_v24 = vpop.permute.xlu2 %884 }
 0x28d   : > { %v898_v31 = vmul.f32 %v885_v24, %v850_v5 }
 0x28e   : > { %v865_v1 = vpop.permute.xlu0 %864 }
 0x28f   : > { %906 = vst.msk [vmem:[%s1424_s29 + $0x30] sm:$0xff] %vm277_vm0, %v898_v31  ;;  %v894_v2 = vmul.f32 %v865_v1, %v846_v63 }
 0x291   : > { %902 = vst.msk [vmem:[%s1424_s29 + $0x10] sm:$0xff] %vm277_vm0, %v894_v2 }
 0x294   : > { %v860_v7 = vpop.permute.xlu1 %859 }
 0x295   : > { %v893_v8 = vmul.f32 %v860_v7, %v845_v3 }
 0x296   : > { %v880_v9 = vpop.permute.xlu0 %879 }
 0x297   : > { %901 = vst.msk [vmem:[%s1424_s29 + $0x8] sm:$0xff] %vm277_vm0, %v893_v8  ;;  %v897_v20 = vmul.f32 %v880_v9, %v849_v10 }
 0x299   : > { %905 = vst.msk [vmem:[%s1424_s29 + $0x28] sm:$0xff] %vm277_vm0, %v897_v20 }
 0x29c   : > { %v890_v14 = vpop.permute.xlu1 %889 }
 0x29d   : > { %v899_v25 = vmul.f32 %v890_v14, %v851_v13 }
 0x29f   : > { %907 = vst.msk [vmem:[%s1424_s29 + $0x38] sm:$0xff] %vm277_vm0, %v899_v25 }
 0x2a0 PF: > { %s13_s14 = sadd.s32 1, %s1194_s14   ;;  %s1455_s12 = smov %s1190_s13 }
 0x2a1   : > { %p10_p5 = scmp.ge.s32.totalorder %s13_s14, 4   ;;  %s1456_s13 = smov %s1458_s15 }
 0x2a3   :  { %12 = sbr.rel (!%p10_p5) target bundleno = 2 (0x2), region = 76 }

// kernel: dualnet_forward.56
= control target key start
LH: loop header
LB: loop body
LE: loop exit
PB: predicated region body
PF: predicated region fallthrough
CT: control target
= control target key end

     0   :  { %s822_s1 = inlined_call_operand.vmem [shape: bf16[256,256], index: 1, kind: input, shape index: {}]   ;;  %s823_s0 = inlined_call_operand.vmem [shape: bf16[32,256], index: 0, kind: input, shape index: {}]   ;;  %s824_s2 = inlined_call_operand.vmem [shape: f32[1,256], index: 2, kind: input, shape index: {}]   ;;  %s825_s3 = inlined_call_operand.vmem [shape: f32[32,256], index: 3, kind: output, shape index: {}]  }
   0x1   :  { %v453_v0 = vld [vmem:[%s822_s1 + $0x70] sm:$0xf]  ;;  %v542_v1 = vld [vmem:[%s822_s1 + $0x74] sm:$0xf0]  ;;  %v541_v5 = vld [vmem:[%s822_s1 + $0x74] sm:$0xf] }
   0x2   :  { %v517_v2 = vld [vmem:[%s822_s1 + $0xf0] sm:$0xf]  ;;  %v454_v3 = vor.u32 %v542_v1, %v453_v0  ;;  %v558_v4 = vld [vmem:[%s822_s1 + $0xf4] sm:$0xf0]  ;;  %v455_v6 = vld [vmem:[%s822_s1 + $0x78] sm:$0xf0] }
   0x3   :  { %v518_v7 = vor.u32 %v558_v4, %v517_v2  ;;  %v458_v8 = vor.u32 %v541_v5, %v455_v6  ;;  %v557_v9 = vld [vmem:[%s822_s1 + $0xf4] sm:$0xf]  ;;  %v519_v10 = vld [vmem:[%s822_s1 + $0xf8] sm:$0xf0]  ;;  %v445_v11 = vld [vmem:[%s822_s1 + $0x60] sm:$0xf] }
   0x4   :  { %250 = vmatpush.bf16.msra.mxu0 %v454_v3  ;;  %v522_v12 = vor.u32 %v557_v9, %v519_v10  ;;  %v540_v13 = vld [vmem:[%s822_s1 + $0x64] sm:$0xf0]  ;;  %v509_v14 = vld [vmem:[%s822_s1 + $0xe0] sm:$0xf]  ;;  %v539_v18 = vld [vmem:[%s822_s1 + $0x64] sm:$0xf] }
   0x5   :  { %v556_v15 = vld [vmem:[%s822_s1 + $0xe4] sm:$0xf0]  ;;  %269 = vmatpush.bf16.msra.mxu1 %v518_v7  ;;  %288 = vmatpush.bf16.msra.mxu2 %v458_v8  ;;  %v446_v16 = vor.u32 %v540_v13, %v445_v11  ;;  %v447_v19 = vld [vmem:[%s822_s1 + $0x68] sm:$0xf0]  ;;  %v555_v20 = vld [vmem:[%s822_s1 + $0xe4] sm:$0xf] }
   0x6   :  { %v510_v17 = vor.u32 %v556_v15, %v509_v14  ;;  %307 = vmatpush.bf16.msra.mxu3 %v522_v12  ;;  %v450_v21 = vor.u32 %v539_v18, %v447_v19  ;;  %v511_v22 = vld [vmem:[%s822_s1 + $0xe8] sm:$0xf0]  ;;  %v437_v23 = vld [vmem:[%s822_s1 + $0x50] sm:$0xf]  ;;  %v538_v24 = vld [vmem:[%s822_s1 + $0x54] sm:$0xf0] }
   0x7   :  { %v514_v25 = vor.u32 %v555_v20, %v511_v22  ;;  %v501_v26 = vld [vmem:[%s822_s1 + $0xd0] sm:$0xf]  ;;  %v554_v27 = vld [vmem:[%s822_s1 + $0xd4] sm:$0xf0]  ;;  %v537_v28 = vld [vmem:[%s822_s1 + $0x54] sm:$0xf]  ;;  %v438_v29 = vor.u32 %v538_v24, %v437_v23 }
   0x8   :  { %251 = vmatpush.bf16.msra.mxu0 %v446_v16  ;;  %v439_v30 = vld [vmem:[%s822_s1 + $0x58] sm:$0xf0]  ;;  %v553_v31 = vld [vmem:[%s822_s1 + $0xd4] sm:$0xf]  ;;  %v502_v33 = vor.u32 %v554_v27, %v501_v26  ;;  %v429_v35 = vld [vmem:[%s822_s1 + $0x40] sm:$0xf] }
   0x9   :  { %v503_v32 = vld [vmem:[%s822_s1 + $0xd8] sm:$0xf0]  ;;  %270 = vmatpush.bf16.msra.mxu1 %v510_v17  ;;  %289 = vmatpush.bf16.msra.mxu2 %v450_v21  ;;  %v442_v34 = vor.u32 %v537_v28, %v439_v30  ;;  %v536_v36 = vld [vmem:[%s822_s1 + $0x44] sm:$0xf0]  ;;  %v493_v37 = vld [vmem:[%s822_s1 + $0xc0] sm:$0xf] }
   0xa   :  { %308 = vmatpush.bf16.msra.mxu3 %v514_v25  ;;  %v506_v38 = vor.u32 %v553_v31, %v503_v32  ;;  %v552_v39 = vld [vmem:[%s822_s1 + $0xc4] sm:$0xf0]  ;;  %v535_v40 = vld [vmem:[%s822_s1 + $0x44] sm:$0xf]  ;;  %v431_v41 = vld [vmem:[%s822_s1 + $0x48] sm:$0xf0]  ;;  %v430_v44 = vor.u32 %v536_v36, %v429_v35 }
   0xb   :  { %v551_v42 = vld [vmem:[%s822_s1 + $0xc4] sm:$0xf]  ;;  %v495_v43 = vld [vmem:[%s822_s1 + $0xc8] sm:$0xf0]  ;;  %v494_v45 = vor.u32 %v552_v39, %v493_v37  ;;  %v434_v46 = vor.u32 %v535_v40, %v431_v41  ;;  %v421_v47 = vld [vmem:[%s822_s1 + $0x30] sm:$0xf] }
   0xc   :  { %252 = vmatpush.bf16.msra.mxu0 %v438_v29  ;;  %v534_v48 = vld [vmem:[%s822_s1 + $0x34] sm:$0xf0]  ;;  %v485_v49 = vld [vmem:[%s822_s1 + $0xb0] sm:$0xf]  ;;  %v498_v50 = vor.u32 %v551_v42, %v495_v43  ;;  %v533_v52 = vld [vmem:[%s822_s1 + $0x34] sm:$0xf] }
   0xd   :  { %271 = vmatpush.bf16.msra.mxu1 %v502_v33  ;;  %290 = vmatpush.bf16.msra.mxu2 %v442_v34  ;;  %v550_v51 = vld [vmem:[%s822_s1 + $0xb4] sm:$0xf0]  ;;  %v423_v53 = vld [vmem:[%s822_s1 + $0x38] sm:$0xf0]  ;;  %v549_v54 = vld [vmem:[%s822_s1 + $0xb4] sm:$0xf]  ;;  %v422_v56 = vor.u32 %v534_v48, %v421_v47 }
   0xe   :  { %309 = vmatpush.bf16.msra.mxu3 %v506_v38  ;;  %v487_v55 = vld [vmem:[%s822_s1 + $0xb8] sm:$0xf0]  ;;  %v486_v57 = vor.u32 %v550_v51, %v485_v49  ;;  %v426_v58 = vor.u32 %v533_v52, %v423_v53  ;;  %v413_v59 = vld [vmem:[%s822_s1 + $0x20] sm:$0xf]  ;;  %v532_v60 = vld [vmem:[%s822_s1 + $0x24] sm:$0xf0] }
   0xf   :  { %v477_v61 = vld [vmem:[%s822_s1 + $0xa0] sm:$0xf]  ;;  %v490_v62 = vor.u32 %v549_v54, %v487_v55  ;;  %v548_v63 = vld [vmem:[%s822_s1 + $0xa4] sm:$0xf0]  ;;  %v531_v0 = vld [vmem:[%s822_s1 + $0x24] sm:$0xf]  ;;  %v414_v4 = vor.u32 %v532_v60, %v413_v59 }
  0x10   :  { %253 = vmatpush.bf16.msra.mxu0 %v430_v44  ;;  %v415_v1 = vld [vmem:[%s822_s1 + $0x28] sm:$0xf0]  ;;  %v547_v2 = vld [vmem:[%s822_s1 + $0xa4] sm:$0xf]  ;;  %v478_v5 = vor.u32 %v548_v63, %v477_v61  ;;  %v405_v7 = vld [vmem:[%s822_s1 + $0x10] sm:$0xf] }
  0x11   :  { %272 = vmatpush.bf16.msra.mxu1 %v494_v45  ;;  %291 = vmatpush.bf16.msra.mxu2 %v434_v46  ;;  %v479_v3 = vld [vmem:[%s822_s1 + $0xa8] sm:$0xf0]  ;;  %v418_v6 = vor.u32 %v531_v0, %v415_v1  ;;  %v530_v8 = vld [vmem:[%s822_s1 + $0x14] sm:$0xf0]  ;;  %v469_v9 = vld [vmem:[%s822_s1 + $0x90] sm:$0xf] }
  0x12   :  { %310 = vmatpush.bf16.msra.mxu3 %v498_v50  ;;  %v482_v10 = vor.u32 %v547_v2, %v479_v3  ;;  %v546_v11 = vld [vmem:[%s822_s1 + $0x94] sm:$0xf0]  ;;  %v529_v12 = vld [vmem:[%s822_s1 + $0x14] sm:$0xf]  ;;  %v407_v13 = vld [vmem:[%s822_s1 + $0x18] sm:$0xf0]  ;;  %v406_v16 = vor.u32 %v530_v8, %v405_v7 }
  0x13   :  { %v545_v14 = vld [vmem:[%s822_s1 + $0x94] sm:$0xf]  ;;  %v471_v15 = vld [vmem:[%s822_s1 + $0x98] sm:$0xf0]  ;;  %v470_v17 = vor.u32 %v546_v11, %v469_v9  ;;  %v410_v18 = vor.u32 %v529_v12, %v407_v13  ;;  %v397_v19 = vld [vmem:[%s822_s1] sm:$0xf] }
  0x14   :  { %254 = vmatpush.bf16.msra.mxu0 %v422_v56  ;;  %v528_v20 = vld [vmem:[%s822_s1 + $0x4] sm:$0xf0]  ;;  %v461_v21 = vld [vmem:[%s822_s1 + $0x80] sm:$0xf]  ;;  %v474_v22 = vor.u32 %v545_v14, %v471_v15  ;;  %v527_v24 = vld [vmem:[%s822_s1 + $0x4] sm:$0xf] }
  0x15   :  { %273 = vmatpush.bf16.msra.mxu1 %v486_v57  ;;  %292 = vmatpush.bf16.msra.mxu2 %v426_v58  ;;  %v544_v23 = vld [vmem:[%s822_s1 + $0x84] sm:$0xf0]  ;;  %v399_v25 = vld [vmem:[%s822_s1 + $0x8] sm:$0xf0]  ;;  %v543_v26 = vld [vmem:[%s822_s1 + $0x84] sm:$0xf]  ;;  %v398_v28 = vor.u32 %v528_v20, %v397_v19 }
  0x16   :  { %311 = vmatpush.bf16.msra.mxu3 %v490_v62  ;;  %v463_v27 = vld [vmem:[%s822_s1 + $0x88] sm:$0xf0]  ;;  %v381_v29 = vld [vmem:[%s823_s0] sm:$0xf]  ;;  %v524_v30 = vld [vmem:[%s823_s0 + $0x4] sm:$0xf0]  ;;  %v462_v31 = vor.u32 %v544_v23, %v461_v21  ;;  %v402_v32 = vor.u32 %v527_v24, %v399_v25 }
  0x17   :  { %v523_v33 = vld [vmem:[%s823_s0 + $0x4] sm:$0xf]  ;;  %v383_v34 = vld [vmem:[%s823_s0 + $0x8] sm:$0xf0]  ;;  %v466_v35 = vor.u32 %v543_v26, %v463_v27  ;;  %v382_v36 = vor.u32 %v524_v30, %v381_v29  ;;  %v389_v38 = vld [vmem:[%s823_s0 + $0x10] sm:$0xf] }
  0x18   :  { %255 = vmatpush.bf16.msra.mxu0 %v414_v4  ;;  %v386_v37 = vor.u32 %v523_v33, %v383_v34  ;;  %v526_v39 = vld [vmem:[%s823_s0 + $0x14] sm:$0xf0]  ;;  %v525_v40 = vld [vmem:[%s823_s0 + $0x14] sm:$0xf]  ;;  %v391_v41 = vld [vmem:[%s823_s0 + $0x18] sm:$0xf0] }
  0x19   :  { %274 = vmatpush.bf16.msra.mxu1 %v478_v5  ;;  %293 = vmatpush.bf16.msra.mxu2 %v418_v6  ;;  %v390_v42 = vor.u32 %v526_v39, %v389_v38  ;;  %v394_v43 = vor.u32 %v525_v40, %v391_v41  ;;  %v353_v44 = vld [vmem:[%s824_s2] sm:$0x3] }
  0x1a   :  { %312 = vmatpush.bf16.msra.mxu3 %v482_v10  ;;  %v355_v46 = vperm.slane %v353_v44, 0  ;;  %v356_v51 = vperm.slane %v353_v44, 1 }
  0x1c   :  { %256 = vmatpush.bf16.msra.mxu0 %v406_v16 }
  0x1d   :  { %275 = vmatpush.bf16.msra.mxu1 %v470_v17  ;;  %294 = vmatpush.bf16.msra.mxu2 %v410_v18 }
  0x1e   :  { %313 = vmatpush.bf16.msra.mxu3 %v474_v22 }
  0x20   :  { %257 = vmatpush.bf16.msra.mxu0 %v398_v28 }
  0x21   :  { %276 = vmatpush.bf16.msra.mxu1 %v462_v31  ;;  %295 = vmatpush.bf16.msra.mxu2 %v402_v32 }
  0x22   :  { %314 = vmatpush.bf16.msra.mxu3 %v466_v35 }
  0x23   :  { %258 = vmatmul.bf16.vlgmr.msra.gmra.mxu0 %v382_v36 }
  0x24   :  { %277 = vmatmul.bf16.vlgmr.msra.gmra.mxu1 %v386_v37  ;;  %296 = vmatmul.bf16.vlgmr.msra.gmra.mxu2 %v382_v36 }
  0x25   :  { %315 = vmatmul.bf16.vlgmr.msra.gmra.mxu3 %v386_v37 }
  0x33   :  { %263 = vmatmul.bf16.gmra.mxu0 %v390_v42 }
  0x34   :  { %282 = vmatmul.bf16.gmra.mxu1 %v394_v43  ;;  %301 = vmatmul.bf16.gmra.mxu2 %v390_v42 }
  0x35   :  { %320 = vmatmul.bf16.gmra.mxu3 %v394_v43 }
  0xa0   :  { %v259_v45 = vpop.f32.mrf.mxu0 }
  0xa1   :  { %v278_v47 = vpop.f32.mrf.mxu1 }
  0xa2   :  { %v279_v48 = vadd.f32 %v278_v47, %v259_v45 }
  0xa4   :  { %v359_v49 = vadd.f32 %v355_v46, %v279_v48 }
  0xa6   :  { %367 = vst [vmem:[%s825_s3] sm:$0xff] %v359_v49 }
  0xa7   :  { %v297_v50 = vpop.f32.mrf.mxu2 }
  0xa8   :  { %v316_v52 = vpop.f32.mrf.mxu3  ;;  %v261_v53 = vpop.f32.mrf.mxu0 }
  0xa9   :  { %v317_v54 = vadd.f32 %v316_v52, %v297_v50  ;;  %v280_v55 = vpop.f32.mrf.mxu1 }
  0xaa   :  { %v281_v56 = vadd.f32 %v280_v55, %v261_v53 }
  0xab   :  { %v360_v57 = vadd.f32 %v356_v51, %v317_v54 }
  0xac   :  { %v361_v58 = vadd.f32 %v355_v46, %v281_v56 }
  0xad   :  { %368 = vst [vmem:[%s825_s3 + $0x8] sm:$0xff] %v360_v57 }
  0xae   :  { %369 = vst [vmem:[%s825_s3 + $0x10] sm:$0xff] %v361_v58 }
  0xaf   :  { %v299_v59 = vpop.f32.mrf.mxu2 }
  0xb0   :  { %v318_v60 = vpop.f32.mrf.mxu3  ;;  %v264_v61 = vpop.f32.mrf.mxu0 }
  0xb1   :  { %v319_v62 = vadd.f32 %v318_v60, %v299_v59  ;;  %v283_v63 = vpop.f32.mrf.mxu1 }
  0xb2   :  { %v284_v0 = vadd.f32 %v283_v63, %v264_v61 }
  0xb3   :  { %v362_v1 = vadd.f32 %v356_v51, %v319_v62 }
  0xb4   :  { %v363_v2 = vadd.f32 %v355_v46, %v284_v0 }
  0xb5   :  { %370 = vst [vmem:[%s825_s3 + $0x18] sm:$0xff] %v362_v1 }
  0xb6   :  { %371 = vst [vmem:[%s825_s3 + $0x20] sm:$0xff] %v363_v2 }
  0xb7   :  { %v302_v3 = vpop.f32.mrf.mxu2 }
  0xb8   :  { %v321_v4 = vpop.f32.mrf.mxu3  ;;  %v266_v5 = vpop.f32.mrf.mxu0 }
  0xb9   :  { %v322_v6 = vadd.f32 %v321_v4, %v302_v3  ;;  %v285_v7 = vpop.f32.mrf.mxu1 }
  0xba   :  { %v286_v8 = vadd.f32 %v285_v7, %v266_v5 }
  0xbb   :  { %v364_v9 = vadd.f32 %v356_v51, %v322_v6 }
  0xbc   :  { %v365_v10 = vadd.f32 %v355_v46, %v286_v8 }
  0xbd   :  { %372 = vst [vmem:[%s825_s3 + $0x28] sm:$0xff] %v364_v9 }
  0xbe   :  { %373 = vst [vmem:[%s825_s3 + $0x30] sm:$0xff] %v365_v10 }
  0xbf   :  { %v304_v11 = vpop.f32.mrf.mxu2 }
  0xc0   :  { %v323_v12 = vpop.f32.mrf.mxu3 }
  0xc1   :  { %v324_v13 = vadd.f32 %v323_v12, %v304_v11 }
  0xc3   :  { %v366_v14 = vadd.f32 %v356_v51, %v324_v13 }
  0xc5   :  { %374 = vst [vmem:[%s825_s3 + $0x38] sm:$0xff] %v366_v14 }

// kernel: dualnet_forward.62
= control target key start
LH: loop header
LB: loop body
LE: loop exit
PB: predicated region body
PF: predicated region fallthrough
CT: control target
= control target key end

     0   :  { %s1311_s12 = smov 0   ;;  %s1313_s13 = smov 0   ;;  %s1601_s0 = inlined_call_operand.vmem [shape: bf16[32,256], index: 0, kind: input, shape index: {}]   ;;  %s1602_s1 = inlined_call_operand.vmem [shape: bf16[256,1024], index: 1, kind: input, shape index: {}]   ;;  %s1603_s2 = inlined_call_operand.vmem [shape: f32[1,1024], index: 2, kind: input, shape index: {}]   ;;  %s1604_s3 = inlined_call_operand.vmem [shape: f32[32,1024], index: 3, kind: output, shape index: {}]  }
   0x1   :  { %s1315_s14 = smov 0   ;;  %s1317_s15 = smov 0  }
   0x2   :  { %s1319_s16 = smov 0  }
   0x3 LB: > { %s28_s17 = sadd.s32 1, %s1285_s15  ;;  %s996_s18 = sadd.s32 4294967295, %s1289_s16   ;;  %s1289_s16 = sphi %s1319_s16, %s13_s16   ;;  %s1285_s15 = sphi %s1317_s15, %s1609_s15   ;;  %s1281_s14 = sphi %s1315_s14, %s1608_s14   ;;  %s1277_s13 = sphi %s1313_s13, %s1607_s13   ;;  %s1273_s12 = sphi %s1311_s12, %s1606_s12  }
   0x4   : > { %p30_p0 = scmp.ge.s32.totalorder %s28_s17, 4  ;;  %p76_p1 = scmp.ne.s32.totalorder %s1277_s13, %s1273_s12 }
   0x5   : > { %p77_p2 = scmp.eq.s32.totalorder %s1289_s16, 0  ;;  %p134_p4 = scmp.eq.s32.totalorder %s996_s18, 3 }
   0x6   : > { %s1611_s17 = smov (%p30_p0, %s28_s17), 0  ;;  %s69_s20 = sadd.s32 1, %s1277_s13 }
   0x7   : > { %p78_p3 = por %p77_p2, %p76_p1  ;;  %s65_s19 = ssub.s32 %s1285_s15, %s1611_s17 }
   0x8   : > { %p67_p5 = scmp.eq.s32.totalorder %s65_s19, 0  ;;  %p1346_p6 = por %p134_p4, %p76_p1 }
   0x9   : > { %p1000_p7 = scmp.ge.s32.totalorder %s1289_s16, 4 }
   0xa   : > { %s1351_s22 = scalar_select %p67_p5, %s1277_s13, %s69_s20  }
   0xb   : > { %171 = sbr.rel (%p1000_p7) target bundleno = 52 (0x34), region = 20 }
  0x10   : > { %174 = sbr.rel (!%p78_p3) target bundleno = 52 (0x34), region = 24  ;;  %s176_s23 = sand.u32 (%p78_p3), 1, %s1277_s13  }
  0x11   : > { %s1157_s24 = sshll.u32 (%p78_p3), %s1285_s15, 3  ;;  %s1001_s25 = sshll.u32 (%p78_p3), %s176_s23, 8 }
  0x12   : > { %s1359_s28 = scalar_lea.vmem (%p78_p3), %s1602_s1, %s1157_s24  ;;  %s1364_s29 = scalar_lea.vmem (%p78_p3), [#allocation3], %s1001_s25 }
  0x13   : > { %v275_v0 = vld [vmem:[%s1359_s28] sm:$0xff] (%p78_p3) }
  0x14   : > { %v277_v1 = vld [vmem:[%s1359_s28 + $0x20] sm:$0xff] (%p78_p3)  ;;  %276 = vst [vmem:[%s1364_s29] sm:$0xff] (%p78_p3), %v275_v0 }
  0x15   : > { %v279_v2 = vld [vmem:[%s1359_s28 + $0x40] sm:$0xff]  ;;  %278 = vst [vmem:[%s1364_s29 + $0x8] sm:$0xff] %v277_v1 }
  0x16   : > { %v281_v3 = vld [vmem:[%s1359_s28 + $0x60] sm:$0xff]  ;;  %280 = vst [vmem:[%s1364_s29 + $0x10] sm:$0xff] %v279_v2 }
  0x17   : > { %v283_v4 = vld [vmem:[%s1359_s28 + $0x80] sm:$0xff]  ;;  %282 = vst [vmem:[%s1364_s29 + $0x18] sm:$0xff] %v281_v3 }
  0x18   : > { %v285_v5 = vld [vmem:[%s1359_s28 + $0xa0] sm:$0xff]  ;;  %284 = vst [vmem:[%s1364_s29 + $0x20] sm:$0xff] %v283_v4 }
  0x19   : > { %v287_v6 = vld [vmem:[%s1359_s28 + $0xc0] sm:$0xff]  ;;  %286 = vst [vmem:[%s1364_s29 + $0x28] sm:$0xff] %v285_v5 }
  0x1a   : > { %v289_v7 = vld [vmem:[%s1359_s28 + $0xe0] sm:$0xff]  ;;  %288 = vst [vmem:[%s1364_s29 + $0x30] sm:$0xff] %v287_v6 }
  0x1b   : > { %v291_v8 = vld [vmem:[%s1359_s28 + $0x100] sm:$0xff]  ;;  %290 = vst [vmem:[%s1364_s29 + $0x38] sm:$0xff] %v289_v7 }
  0x1c   : > { %v293_v9 = vld [vmem:[%s1359_s28 + $0x120] sm:$0xff]  ;;  %292 = vst [vmem:[%s1364_s29 + $0x40] sm:$0xff] %v291_v8 }
  0x1d   : > { %v295_v10 = vld [vmem:[%s1359_s28 + $0x140] sm:$0xff]  ;;  %294 = vst [vmem:[%s1364_s29 + $0x48] sm:$0xff] %v293_v9 }
  0x1e   : > { %v297_v11 = vld [vmem:[%s1359_s28 + $0x160] sm:$0xff]  ;;  %296 = vst [vmem:[%s1364_s29 + $0x50] sm:$0xff] %v295_v10 }
  0x1f   : > { %v299_v12 = vld [vmem:[%s1359_s28 + $0x180] sm:$0xff]  ;;  %298 = vst [vmem:[%s1364_s29 + $0x58] sm:$0xff] %v297_v11 }
  0x20   : > { %v301_v13 = vld [vmem:[%s1359_s28 + $0x1a0] sm:$0xff]  ;;  %300 = vst [vmem:[%s1364_s29 + $0x60] sm:$0xff] %v299_v12 }
  0x21   : > { %v303_v14 = vld [vmem:[%s1359_s28 + $0x1c0] sm:$0xff]  ;;  %302 = vst [vmem:[%s1364_s29 + $0x68] sm:$0xff] %v301_v13 }
  0x22   : > { %v305_v15 = vld [vmem:[%s1359_s28 + $0x1e0] sm:$0xff]  ;;  %304 = vst [vmem:[%s1364_s29 + $0x70] sm:$0xff] %v303_v14 }
  0x23   : > { %v307_v16 = vld [vmem:[%s1359_s28 + $0x200] sm:$0xff]  ;;  %306 = vst [vmem:[%s1364_s29 + $0x78] sm:$0xff] %v305_v15 }
  0x24   : > { %v309_v17 = vld [vmem:[%s1359_s28 + $0x220] sm:$0xff]  ;;  %308 = vst [vmem:[%s1364_s29 + $0x80] sm:$0xff] %v307_v16 }
  0x25   : > { %v311_v18 = vld [vmem:[%s1359_s28 + $0x240] sm:$0xff]  ;;  %310 = vst [vmem:[%s1364_s29 + $0x88] sm:$0xff] %v309_v17 }
  0x26   : > { %v313_v19 = vld [vmem:[%s1359_s28 + $0x260] sm:$0xff]  ;;  %312 = vst [vmem:[%s1364_s29 + $0x90] sm:$0xff] %v311_v18 }
  0x27   : > { %v315_v20 = vld [vmem:[%s1359_s28 + $0x280] sm:$0xff]  ;;  %314 = vst [vmem:[%s1364_s29 + $0x98] sm:$0xff] %v313_v19 }
  0x28   : > { %v317_v21 = vld [vmem:[%s1359_s28 + $0x2a0] sm:$0xff]  ;;  %316 = vst [vmem:[%s1364_s29 + $0xa0] sm:$0xff] %v315_v20 }
  0x29   : > { %v319_v22 = vld [vmem:[%s1359_s28 + $0x2c0] sm:$0xff]  ;;  %318 = vst [vmem:[%s1364_s29 + $0xa8] sm:$0xff] %v317_v21 }
  0x2a   : > { %v321_v23 = vld [vmem:[%s1359_s28 + $0x2e0] sm:$0xff]  ;;  %320 = vst [vmem:[%s1364_s29 + $0xb0] sm:$0xff] %v319_v22 }
  0x2b   : > { %v323_v24 = vld [vmem:[%s1359_s28 + $0x300] sm:$0xff]  ;;  %322 = vst [vmem:[%s1364_s29 + $0xb8] sm:$0xff] %v321_v23 }
  0x2c   : > { %v325_v25 = vld [vmem:[%s1359_s28 + $0x320] sm:$0xff]  ;;  %324 = vst [vmem:[%s1364_s29 + $0xc0] sm:$0xff] %v323_v24 }
  0x2d   : > { %v327_v26 = vld [vmem:[%s1359_s28 + $0x340] sm:$0xff]  ;;  %326 = vst [vmem:[%s1364_s29 + $0xc8] sm:$0xff] %v325_v25 }
  0x2e   : > { %v329_v27 = vld [vmem:[%s1359_s28 + $0x360] sm:$0xff]  ;;  %328 = vst [vmem:[%s1364_s29 + $0xd0] sm:$0xff] %v327_v26 }
  0x2f   : > { %v331_v28 = vld [vmem:[%s1359_s28 + $0x380] sm:$0xff]  ;;  %330 = vst [vmem:[%s1364_s29 + $0xd8] sm:$0xff] %v329_v27 }
  0x30   : > { %v333_v29 = vld [vmem:[%s1359_s28 + $0x3a0] sm:$0xff]  ;;  %332 = vst [vmem:[%s1364_s29 + $0xe0] sm:$0xff] %v331_v28 }
  0x31   : > { %v335_v30 = vld [vmem:[%s1359_s28 + $0x3c0] sm:$0xff]  ;;  %334 = vst [vmem:[%s1364_s29 + $0xe8] sm:$0xff] %v333_v29 }
  0x32   : > { %v337_v31 = vld [vmem:[%s1359_s28 + $0x3e0] sm:$0xff]  ;;  %336 = vst [vmem:[%s1364_s29 + $0xf0] sm:$0xff] %v335_v30 }
  0x33   : > { %338 = vst [vmem:[%s1364_s29 + $0xf8] sm:$0xff] %v337_v31 }
  0x34 PF: > { %p1004_p8 = scmp.ge.s32.totalorder %s1289_s16, 1  ;;  %p351_p9 = scmp.lt.s32.totalorder %s1289_s16, 5 }
  0x36   : > { %p352_p10 = pnand %p1004_p8, %p351_p9 }
  0x37   : > { %s358_s30 = sand.u32 (!%p352_p10), 1, %s1273_s12  }
  0x38   : > { %355 = sbr.rel (%p352_p10) target bundleno = 289 (0x121), region = 66  ;;  %s1005_s4 = sshll.u32 (!%p352_p10), %s358_s30, 8 }
  0x39   : > { %s1432_s5 = scalar_lea.vmem (!%p352_p10), [#allocation3], %s1005_s4  ;;  %s1007_s4 = sshll.u32 (!%p352_p10), %s1281_s14, 1 }
  0x3a   : > { %p409_p11 = scmp.lt.s32.totalorder (!%p352_p10), %s1007_s4, 7  ;;  %s1006_s8 = sshll.u32 (!%p352_p10), %s358_s30, 6 }
  0x3b   : > { %s1557_s12 = scalar_lea.vmem (!%p352_p10), [#allocation4], %s1006_s8 }
  0x3d   : > { %v1082_v32 = vld [vmem:[%s1432_s5 + $0x70] sm:$0xf]  ;;  %v1177_v33 = vld [vmem:[%s1432_s5 + $0x74] sm:$0xf0]  ;;  %v1176_v37 = vld [vmem:[%s1432_s5 + $0x74] sm:$0xf] }
  0x3e   : > { %v1146_v34 = vld [vmem:[%s1432_s5 + $0xf0] sm:$0xf]  ;;  %v1083_v35 = vor.u32 %v1177_v33, %v1082_v32  ;;  %v1193_v36 = vld [vmem:[%s1432_s5 + $0xf4] sm:$0xf0]  ;;  %v1084_v38 = vld [vmem:[%s1432_s5 + $0x78] sm:$0xf0] }
  0x3f   : > { %v1147_v39 = vor.u32 %v1193_v36, %v1146_v34  ;;  %v1087_v40 = vor.u32 %v1176_v37, %v1084_v38  ;;  %v1192_v41 = vld [vmem:[%s1432_s5 + $0xf4] sm:$0xf]  ;;  %v1148_v42 = vld [vmem:[%s1432_s5 + $0xf8] sm:$0xf0]  ;;  %v1074_v43 = vld [vmem:[%s1432_s5 + $0x60] sm:$0xf] }
  0x40   : > { %651 = vmatpush.bf16.msra.mxu0 %v1083_v35  ;;  %v1151_v44 = vor.u32 %v1192_v41, %v1148_v42  ;;  %v1175_v45 = vld [vmem:[%s1432_s5 + $0x64] sm:$0xf0]  ;;  %v1138_v46 = vld [vmem:[%s1432_s5 + $0xe0] sm:$0xf]  ;;  %v1174_v50 = vld [vmem:[%s1432_s5 + $0x64] sm:$0xf] }
  0x41   : > { %v1191_v47 = vld [vmem:[%s1432_s5 + $0xe4] sm:$0xf0]  ;;  %670 = vmatpush.bf16.msra.mxu1 %v1147_v39  ;;  %689 = vmatpush.bf16.msra.mxu2 %v1087_v40  ;;  %v1075_v48 = vor.u32 %v1175_v45, %v1074_v43  ;;  %v1076_v51 = vld [vmem:[%s1432_s5 + $0x68] sm:$0xf0]  ;;  %v1190_v52 = vld [vmem:[%s1432_s5 + $0xe4] sm:$0xf] }
  0x42   : > { %v1139_v49 = vor.u32 %v1191_v47, %v1138_v46  ;;  %708 = vmatpush.bf16.msra.mxu3 %v1151_v44  ;;  %v1079_v53 = vor.u32 %v1174_v50, %v1076_v51  ;;  %v1140_v54 = vld [vmem:[%s1432_s5 + $0xe8] sm:$0xf0]  ;;  %v1066_v55 = vld [vmem:[%s1432_s5 + $0x50] sm:$0xf]  ;;  %v1173_v56 = vld [vmem:[%s1432_s5 + $0x54] sm:$0xf0] }
  0x43   : > { %v1143_v57 = vor.u32 %v1190_v52, %v1140_v54  ;;  %v1130_v58 = vld [vmem:[%s1432_s5 + $0xd0] sm:$0xf]  ;;  %v1189_v59 = vld [vmem:[%s1432_s5 + $0xd4] sm:$0xf0]  ;;  %v1172_v60 = vld [vmem:[%s1432_s5 + $0x54] sm:$0xf]  ;;  %v1067_v61 = vor.u32 %v1173_v56, %v1066_v55 }
  0x44   : > { %652 = vmatpush.bf16.msra.mxu0 %v1075_v48  ;;  %v1068_v62 = vld [vmem:[%s1432_s5 + $0x58] sm:$0xf0]  ;;  %v1188_v63 = vld [vmem:[%s1432_s5 + $0xd4] sm:$0xf]  ;;  %v1131_v1 = vor.u32 %v1189_v59, %v1130_v58  ;;  %v1058_v3 = vld [vmem:[%s1432_s5 + $0x40] sm:$0xf] }
  0x45   : > { %v1132_v0 = vld [vmem:[%s1432_s5 + $0xd8] sm:$0xf0]  ;;  %671 = vmatpush.bf16.msra.mxu1 %v1139_v49  ;;  %690 = vmatpush.bf16.msra.mxu2 %v1079_v53  ;;  %v1071_v2 = vor.u32 %v1172_v60, %v1068_v62  ;;  %v1171_v4 = vld [vmem:[%s1432_s5 + $0x44] sm:$0xf0]  ;;  %v1122_v5 = vld [vmem:[%s1432_s5 + $0xc0] sm:$0xf] }
  0x46   : > { %709 = vmatpush.bf16.msra.mxu3 %v1143_v57  ;;  %v1135_v6 = vor.u32 %v1188_v63, %v1132_v0  ;;  %v1187_v7 = vld [vmem:[%s1432_s5 + $0xc4] sm:$0xf0]  ;;  %v1170_v8 = vld [vmem:[%s1432_s5 + $0x44] sm:$0xf]  ;;  %v1060_v9 = vld [vmem:[%s1432_s5 + $0x48] sm:$0xf0]  ;;  %v1059_v12 = vor.u32 %v1171_v4, %v1058_v3 }
  0x47   : > { %v1186_v10 = vld [vmem:[%s1432_s5 + $0xc4] sm:$0xf]  ;;  %v1124_v11 = vld [vmem:[%s1432_s5 + $0xc8] sm:$0xf0]  ;;  %v1123_v13 = vor.u32 %v1187_v7, %v1122_v5  ;;  %v1063_v14 = vor.u32 %v1170_v8, %v1060_v9  ;;  %v1050_v15 = vld [vmem:[%s1432_s5 + $0x30] sm:$0xf] }
  0x48   : > { %653 = vmatpush.bf16.msra.mxu0 %v1067_v61  ;;  %v1169_v16 = vld [vmem:[%s1432_s5 + $0x34] sm:$0xf0]  ;;  %v1114_v17 = vld [vmem:[%s1432_s5 + $0xb0] sm:$0xf]  ;;  %v1127_v18 = vor.u32 %v1186_v10, %v1124_v11  ;;  %v1168_v20 = vld [vmem:[%s1432_s5 + $0x34] sm:$0xf] }
  0x49   : > { %672 = vmatpush.bf16.msra.mxu1 %v1131_v1  ;;  %691 = vmatpush.bf16.msra.mxu2 %v1071_v2  ;;  %v1185_v19 = vld [vmem:[%s1432_s5 + $0xb4] sm:$0xf0]  ;;  %v1052_v21 = vld [vmem:[%s1432_s5 + $0x38] sm:$0xf0]  ;;  %v1184_v22 = vld [vmem:[%s1432_s5 + $0xb4] sm:$0xf]  ;;  %v1051_v24 = vor.u32 %v1169_v16, %v1050_v15 }
  0x4a   : > { %710 = vmatpush.bf16.msra.mxu3 %v1135_v6  ;;  %v1116_v23 = vld [vmem:[%s1432_s5 + $0xb8] sm:$0xf0]  ;;  %v1115_v25 = vor.u32 %v1185_v19, %v1114_v17  ;;  %v1055_v26 = vor.u32 %v1168_v20, %v1052_v21  ;;  %v1042_v27 = vld [vmem:[%s1432_s5 + $0x20] sm:$0xf]  ;;  %v1167_v28 = vld [vmem:[%s1432_s5 + $0x24] sm:$0xf0] }
  0x4b   : > { %v1106_v29 = vld [vmem:[%s1432_s5 + $0xa0] sm:$0xf]  ;;  %v1119_v30 = vor.u32 %v1184_v22, %v1116_v23  ;;  %v1183_v31 = vld [vmem:[%s1432_s5 + $0xa4] sm:$0xf0]  ;;  %v1166_v32 = vld [vmem:[%s1432_s5 + $0x24] sm:$0xf]  ;;  %v1043_v36 = vor.u32 %v1167_v28, %v1042_v27 }
  0x4c   : > { %654 = vmatpush.bf16.msra.mxu0 %v1059_v12  ;;  %v1044_v33 = vld [vmem:[%s1432_s5 + $0x28] sm:$0xf0]  ;;  %v1182_v34 = vld [vmem:[%s1432_s5 + $0xa4] sm:$0xf]  ;;  %v1107_v37 = vor.u32 %v1183_v31, %v1106_v29  ;;  %v1034_v39 = vld [vmem:[%s1432_s5 + $0x10] sm:$0xf] }
  0x4d   : > { %673 = vmatpush.bf16.msra.mxu1 %v1123_v13  ;;  %692 = vmatpush.bf16.msra.mxu2 %v1063_v14  ;;  %v1108_v35 = vld [vmem:[%s1432_s5 + $0xa8] sm:$0xf0]  ;;  %v1047_v38 = vor.u32 %v1166_v32, %v1044_v33  ;;  %v1165_v40 = vld [vmem:[%s1432_s5 + $0x14] sm:$0xf0]  ;;  %v1098_v41 = vld [vmem:[%s1432_s5 + $0x90] sm:$0xf] }
  0x4e   : > { %711 = vmatpush.bf16.msra.mxu3 %v1127_v18  ;;  %v1111_v42 = vor.u32 %v1182_v34, %v1108_v35  ;;  %v1181_v43 = vld [vmem:[%s1432_s5 + $0x94] sm:$0xf0]  ;;  %v1164_v44 = vld [vmem:[%s1432_s5 + $0x14] sm:$0xf]  ;;  %v1036_v45 = vld [vmem:[%s1432_s5 + $0x18] sm:$0xf0]  ;;  %v1035_v48 = vor.u32 %v1165_v40, %v1034_v39 }
  0x4f   : > { %v1180_v46 = vld [vmem:[%s1432_s5 + $0x94] sm:$0xf]  ;;  %v1100_v47 = vld [vmem:[%s1432_s5 + $0x98] sm:$0xf0]  ;;  %v1099_v49 = vor.u32 %v1181_v43, %v1098_v41  ;;  %v1039_v50 = vor.u32 %v1164_v44, %v1036_v45  ;;  %v1026_v51 = vld [vmem:[%s1432_s5] sm:$0xf] }
  0x50   : > { %655 = vmatpush.bf16.msra.mxu0 %v1051_v24  ;;  %v1163_v52 = vld [vmem:[%s1432_s5 + $0x4] sm:$0xf0]  ;;  %v1090_v53 = vld [vmem:[%s1432_s5 + $0x80] sm:$0xf]  ;;  %v1103_v54 = vor.u32 %v1180_v46, %v1100_v47  ;;  %v1162_v56 = vld [vmem:[%s1432_s5 + $0x4] sm:$0xf] }
  0x51   : > { %674 = vmatpush.bf16.msra.mxu1 %v1115_v25  ;;  %693 = vmatpush.bf16.msra.mxu2 %v1055_v26  ;;  %v1179_v55 = vld [vmem:[%s1432_s5 + $0x84] sm:$0xf0]  ;;  %v1028_v57 = vld [vmem:[%s1432_s5 + $0x8] sm:$0xf0]  ;;  %v1178_v58 = vld [vmem:[%s1432_s5 + $0x84] sm:$0xf]  ;;  %v1027_v60 = vor.u32 %v1163_v52, %v1026_v51 }
  0x52   : > { %712 = vmatpush.bf16.msra.mxu3 %v1119_v30  ;;  %v1092_v59 = vld [vmem:[%s1432_s5 + $0x88] sm:$0xf0]  ;;  %v1010_v61 = vld [vmem:[%s1601_s0] sm:$0xf]  ;;  %v1159_v62 = vld [vmem:[%s1601_s0 + $0x4] sm:$0xf0]  ;;  %v1091_v63 = vor.u32 %v1179_v55, %v1090_v53  ;;  %v1031_v0 = vor.u32 %v1162_v56, %v1028_v57 }
  0x53   : > { %v1158_v1 = vld [vmem:[%s1601_s0 + $0x4] sm:$0xf]  ;;  %v1012_v2 = vld [vmem:[%s1601_s0 + $0x8] sm:$0xf0]  ;;  %v1095_v3 = vor.u32 %v1178_v58, %v1092_v59  ;;  %v1011_v4 = vor.u32 %v1159_v62, %v1010_v61  ;;  %v1018_v6 = vld [vmem:[%s1601_s0 + $0x10] sm:$0xf] }
  0x54   : > { %656 = vmatpush.bf16.msra.mxu0 %v1043_v36  ;;  %v1015_v5 = vor.u32 %v1158_v1, %v1012_v2  ;;  %v1161_v7 = vld [vmem:[%s1601_s0 + $0x14] sm:$0xf0]  ;;  %v1160_v8 = vld [vmem:[%s1601_s0 + $0x14] sm:$0xf]  ;;  %v1020_v9 = vld [vmem:[%s1601_s0 + $0x18] sm:$0xf0] }
  0x55   : > { %675 = vmatpush.bf16.msra.mxu1 %v1107_v37  ;;  %694 = vmatpush.bf16.msra.mxu2 %v1047_v38  ;;  %v1019_v10 = vor.u32 %v1161_v7, %v1018_v6  ;;  %v1023_v11 = vor.u32 %v1160_v8, %v1020_v9  ;;  %s1613_s4 = smov (!%p409_p11, %s1007_s4), 7  ;;  %s1194_s30 = sshll.u32 (%p1346_p6), %s1281_s14, 4 }
  0x56   : > { %713 = vmatpush.bf16.msra.mxu3 %v1111_v42  ;;  %s411_s7 = scalar_lea.vmem %s1603_s2, %s1613_s4  ;;  %s860_s11 = scalar_lea.vmem (%p1346_p6), %s1604_s3, %s1194_s30 }
  0x57   : > { %v754_v12 = vld [vmem:[%s411_s7] sm:$0x3] }
  0x58   : > { %657 = vmatpush.bf16.msra.mxu0 %v1035_v48  ;;  %v756_v14 = vperm.slane %v754_v12, 0  ;;  %v1526_v20 = vperm.slane %v754_v12, 1 }
  0x59   : > { %676 = vmatpush.bf16.msra.mxu1 %v1099_v49  ;;  %695 = vmatpush.bf16.msra.mxu2 %v1039_v50 }
  0x5a   : > { %714 = vmatpush.bf16.msra.mxu3 %v1103_v54 }
  0x5c   : > { %658 = vmatpush.bf16.msra.mxu0 %v1027_v60 }
  0x5d   : > { %677 = vmatpush.bf16.msra.mxu1 %v1091_v63  ;;  %696 = vmatpush.bf16.msra.mxu2 %v1031_v0 }
  0x5e   : > { %715 = vmatpush.bf16.msra.mxu3 %v1095_v3 }
  0x5f   : > { %659 = vmatmul.bf16.vlgmr.msra.gmra.mxu0 %v1011_v4 }
  0x60   : > { %678 = vmatmul.bf16.vlgmr.msra.gmra.mxu1 %v1015_v5  ;;  %697 = vmatmul.bf16.vlgmr.msra.gmra.mxu2 %v1011_v4 }
  0x61   : > { %716 = vmatmul.bf16.vlgmr.msra.gmra.mxu3 %v1015_v5 }
  0x6f   : > { %664 = vmatmul.bf16.gmra.mxu0 %v1019_v10 }
  0x70   : > { %683 = vmatmul.bf16.gmra.mxu1 %v1023_v11  ;;  %702 = vmatmul.bf16.gmra.mxu2 %v1019_v10 }
  0x71   : > { %721 = vmatmul.bf16.gmra.mxu3 %v1023_v11 }
  0xdc   : > { %v660_v13 = vpop.f32.mrf.mxu0 }
  0xdd   : > { %v679_v15 = vpop.f32.mrf.mxu1 }
  0xde   : > { %v680_v16 = vadd.f32 %v679_v15, %v660_v13 }
  0xe0   : > { %v760_v17 = vadd.f32 %v756_v14, %v680_v16 }
  0xe2   : > { %v768_v18 = vmul.f32 %v760_v17, %v760_v17 }
  0xe3   : > { %v698_v19 = vpop.f32.mrf.mxu2 }
  0xe4   : > { %v776_v21 = vmul.f32 %v768_v18, %v760_v17  ;;  %v717_v22 = vpop.f32.mrf.mxu3  ;;  %v662_v23 = vpop.f32.mrf.mxu0 }
  0xe5   : > { %v718_v24 = vadd.f32 %v717_v22, %v698_v19  ;;  %v681_v25 = vpop.f32.mrf.mxu1 }
  0xe6   : > { %v784_v26 = vmul.f32 0.044715, %v776_v21  ;;  %v682_v27 = vadd.f32 %v681_v25, %v662_v23 }
  0xe7   : > { %v1529_v28 = vadd.f32 %v1526_v20, %v718_v24 }
  0xe8   : > { %v792_v29 = vadd.f32 %v784_v26, %v760_v17  ;;  %v1531_v30 = vadd.f32 %v756_v14, %v682_v27 }
  0xe9   : > { %v769_v31 = vmul.f32 %v1529_v28, %v1529_v28 }
  0xea   : > { %v800_v32 = vmul.f32 0.7978846, %v792_v29  ;;  %v770_v33 = vmul.f32 %v1531_v30, %v1531_v30 }
  0xeb   : > { %v777_v34 = vmul.f32 %v769_v31, %v1529_v28  ;;  %v700_v35 = vpop.f32.mrf.mxu2 }
  0xec   : > { %1235 = vtanh.f32 %v800_v32  ;;  %v778_v36 = vmul.f32 %v770_v33, %v1531_v30  ;;  %v719_v37 = vpop.f32.mrf.mxu3  ;;  %v665_v38 = vpop.f32.mrf.mxu0 }
  0xed   : > { %v785_v39 = vmul.f32 0.044715, %v777_v34  ;;  %v720_v40 = vadd.f32 %v719_v37, %v700_v35  ;;  %v684_v41 = vpop.f32.mrf.mxu1 }
  0xee   : > { %v786_v42 = vmul.f32 0.044715, %v778_v36  ;;  %v685_v43 = vadd.f32 %v684_v41, %v665_v38 }
  0xef   : > { %v793_v44 = vadd.f32 %v785_v39, %v1529_v28  ;;  %v1541_v45 = vadd.f32 %v1526_v20, %v720_v40 }
  0xf0   : > { %v794_v46 = vadd.f32 %v786_v42, %v1531_v30  ;;  %v1544_v47 = vadd.f32 %v756_v14, %v685_v43 }
  0xf1   : > { %v801_v48 = vmul.f32 0.7978846, %v793_v44  ;;  %v771_v49 = vmul.f32 %v1541_v45, %v1541_v45 }
  0xf2   : > { %v1236_v50 = vpop.eup %1235  ;;  %v802_v51 = vmul.f32 0.7978846, %v794_v46  ;;  %v772_v52 = vmul.f32 %v1544_v47, %v1544_v47 }
  0xf3   : > { %v816_v53 = vadd.f32 1.0, %v1236_v50  ;;  %1237 = vtanh.f32 %v801_v48  ;;  %v779_v54 = vmul.f32 %v771_v49, %v1541_v45  ;;  %v703_v55 = vpop.f32.mrf.mxu2 }
  0xf4   : > { %1239 = vtanh.f32 %v802_v51  ;;  %v780_v56 = vmul.f32 %v772_v52, %v1544_v47  ;;  %v722_v57 = vpop.f32.mrf.mxu3  ;;  %v667_v58 = vpop.f32.mrf.mxu0 }
  0xf5   : > { %v824_v59 = vmul.f32 0.5, %v816_v53  ;;  %v787_v60 = vmul.f32 0.044715, %v779_v54  ;;  %v723_v61 = vadd.f32 %v722_v57, %v703_v55  ;;  %v686_v62 = vpop.f32.mrf.mxu1 }
  0xf6   : > { %v788_v63 = vmul.f32 0.044715, %v780_v56  ;;  %v687_v0 = vadd.f32 %v686_v62, %v667_v58 }
  0xf7   : > { %v832_v1 = vmul.f32 %v824_v59, %v760_v17  ;;  %v795_v2 = vadd.f32 %v787_v60, %v1541_v45  ;;  %v765_v3 = vadd.f32 %v1526_v20, %v723_v61 }
  0xf8   : > { %v796_v4 = vadd.f32 %v788_v63, %v1544_v47  ;;  %v766_v5 = vadd.f32 %v756_v14, %v687_v0 }
  0xf9   : > { %v1238_v6 = vpop.eup %1237  ;;  %840 = vst [vmem:[%s1557_s12] sm:$0xff] %v832_v1  ;;  %v803_v7 = vmul.f32 0.7978846, %v795_v2  ;;  %v773_v8 = vmul.f32 %v765_v3, %v765_v3 }
  0xfa   : > { %v1240_v9 = vpop.eup %1239  ;;  %v817_v10 = vadd.f32 1.0, %v1238_v6  ;;  %v804_v11 = vmul.f32 0.7978846, %v796_v4  ;;  %v774_v12 = vmul.f32 %v766_v5, %v766_v5 }
  0xfb   : > { %v818_v13 = vadd.f32 1.0, %v1240_v9  ;;  %1241 = vtanh.f32 %v803_v7  ;;  %v781_v15 = vmul.f32 %v773_v8, %v765_v3  ;;  %v705_v16 = vpop.f32.mrf.mxu2 }
  0xfc   : > { %v825_v17 = vmul.f32 0.5, %v817_v10  ;;  %1243 = vtanh.f32 %v804_v11  ;;  %v782_v14 = vmul.f32 %v774_v12, %v766_v5  ;;  %v724_v18 = vpop.f32.mrf.mxu3 }
  0xfd   : > { %v826_v19 = vmul.f32 0.5, %v818_v13  ;;  %v789_v21 = vmul.f32 0.044715, %v781_v15  ;;  %v725_v22 = vadd.f32 %v724_v18, %v705_v16 }
  0xfe   : > { %v833_v23 = vmul.f32 %v825_v17, %v1529_v28  ;;  %v790_v24 = vmul.f32 0.044715, %v782_v14 }
  0xff   : > { %v834_v25 = vmul.f32 %v826_v19, %v1531_v30  ;;  %v797_v26 = vadd.f32 %v789_v21, %v765_v3  ;;  %v767_v27 = vadd.f32 %v1526_v20, %v725_v22 }
 0x100   : > { %841 = vst [vmem:[%s1557_s12 + $0x8] sm:$0xff] %v833_v23  ;;  %v798_v29 = vadd.f32 %v790_v24, %v766_v5  ;;  %v873_v55 = vld [vmem:[%s1557_s12] sm:$0xff] (%p1346_p6) }
 0x101   : > { %v1242_v31 = vpop.eup %1241  ;;  %842 = vst [vmem:[%s1557_s12 + $0x10] sm:$0xff] %v834_v25  ;;  %v805_v32 = vmul.f32 0.7978846, %v797_v26  ;;  %v775_v33 = vmul.f32 %v767_v27, %v767_v27 }
 0x102   : > { %v1244_v34 = vpop.eup %1243  ;;  %v819_v35 = vadd.f32 1.0, %v1242_v31  ;;  %v806_v36 = vmul.f32 0.7978846, %v798_v29  ;;  %874 = vst [vmem:[%s860_s11] sm:$0xff] (%p1346_p6), %v873_v55 }
 0x103   : > { %v820_v37 = vadd.f32 1.0, %v1244_v34  ;;  %1245 = vtanh.f32 %v805_v32  ;;  %v783_v28 = vmul.f32 %v775_v33, %v767_v27 }
 0x104   : > { %v827_v38 = vmul.f32 0.5, %v819_v35  ;;  %1247 = vtanh.f32 %v806_v36 }
 0x105   : > { %v828_v30 = vmul.f32 0.5, %v820_v37  ;;  %v791_v39 = vmul.f32 0.044715, %v783_v28 }
 0x106   : > { %v835_v20 = vmul.f32 %v827_v38, %v1541_v45 }
 0x107   : > { %v836_v40 = vmul.f32 %v828_v30, %v1544_v47  ;;  %v799_v41 = vadd.f32 %v791_v39, %v767_v27  ;;  %v875_v56 = vld [vmem:[%s1557_s12 + $0x8] sm:$0xff] (%p1346_p6) }
 0x108   : > { %843 = vst [vmem:[%s1557_s12 + $0x18] sm:$0xff] %v835_v20  ;;  %v877_v57 = vld [vmem:[%s1557_s12 + $0x10] sm:$0xff] (%p1346_p6) }
 0x109   : > { %v1246_v42 = vpop.eup %1245  ;;  %844 = vst [vmem:[%s1557_s12 + $0x20] sm:$0xff] %v836_v40  ;;  %v807_v43 = vmul.f32 0.7978846, %v799_v41 }
 0x10a   : > { %v1248_v44 = vpop.eup %1247  ;;  %v821_v46 = vadd.f32 1.0, %v1246_v42  ;;  %876 = vst [vmem:[%s860_s11 + $0x8] sm:$0xff] (%p1346_p6), %v875_v56 }
 0x10b   : > { %v822_v48 = vadd.f32 1.0, %v1248_v44  ;;  %1249 = vtanh.f32 %v807_v43  ;;  %878 = vst [vmem:[%s860_s11 + $0x40] sm:$0xff] (%p1346_p6), %v877_v57 }
 0x10c   : > { %v829_v49 = vmul.f32 0.5, %v821_v46 }
 0x10d   : > { %v830_v50 = vmul.f32 0.5, %v822_v48 }
 0x10e   : > { %v837_v51 = vmul.f32 %v829_v49, %v765_v3 }
 0x10f   : > { %v838_v52 = vmul.f32 %v830_v50, %v766_v5  ;;  %v879_v58 = vld [vmem:[%s1557_s12 + $0x18] sm:$0xff] (%p1346_p6) }
 0x110   : > { %845 = vst [vmem:[%s1557_s12 + $0x28] sm:$0xff] %v837_v51  ;;  %v881_v59 = vld [vmem:[%s1557_s12 + $0x20] sm:$0xff] (%p1346_p6) }
 0x111   : > { %v1250_v53 = vpop.eup %1249  ;;  %846 = vst [vmem:[%s1557_s12 + $0x30] sm:$0xff] %v838_v52 }
 0x112   : > { %v823_v45 = vadd.f32 1.0, %v1250_v53  ;;  %880 = vst [vmem:[%s860_s11 + $0x48] sm:$0xff] (%p1346_p6), %v879_v58 }
 0x113   : > { %882 = vst [vmem:[%s860_s11 + $0x80] sm:$0xff] (%p1346_p6), %v881_v59 }
 0x114   : > { %v831_v47 = vmul.f32 0.5, %v823_v45  ;;  %854 = sbr.rel (!%p1346_p6) target bundleno = 289 (0x121), region = 82 }
 0x116   : > { %v839_v54 = vmul.f32 %v831_v47, %v767_v27 }
 0x117   : > { %v883_v60 = vld [vmem:[%s1557_s12 + $0x28] sm:$0xff] (%p1346_p6) }
 0x118   : > { %847 = vst [vmem:[%s1557_s12 + $0x38] sm:$0xff] %v839_v54  ;;  %v885_v61 = vld [vmem:[%s1557_s12 + $0x30] sm:$0xff] (%p1346_p6) }
 0x119   : > { %884 = vst [vmem:[%s860_s11 + $0x88] sm:$0xff] %v883_v60 }
 0x11a   : > { %886 = vst [vmem:[%s860_s11 + $0xc0] sm:$0xff] %v885_v61 }
 0x11f   : > { %v887_v62 = vld [vmem:[%s1557_s12 + $0x38] sm:$0xff] }
 0x120   : > { %888 = vst [vmem:[%s860_s11 + $0xc8] sm:$0xff] %v887_v62 }
 0x121 PF: > { %s13_s16 = sadd.s32 1, %s1289_s16   ;;  %s1606_s12 = smov %s1277_s13 }
 0x122   : > { %p10_p12 = scmp.ge.s32.totalorder %s13_s16, 6   ;;  %s1607_s13 = smov %s1351_s22 }
 0x123   : > { %s1608_s14 = smov %s1285_s15  ;;  %s1609_s15 = smov %s1611_s17 }
 0x124   :  { %12 = sbr.rel (!%p10_p12) target bundleno = 3 (0x3), region = 142 }

// kernel: dualnet_forward.63
= control target key start
LH: loop header
LB: loop body
LE: loop exit
PB: predicated region body
PF: predicated region fallthrough
CT: control target
= control target key end

     0   :  { %s1564_s12 = smov 0   ;;  %s1566_s13 = smov 0   ;;  %s1834_s0 = inlined_call_operand.vmem [shape: bf16[32,1024], index: 0, kind: input, shape index: {}]   ;;  %s1835_s1 = inlined_call_operand.vmem [shape: bf16[1024,256], index: 1, kind: input, shape index: {}]   ;;  %s1836_s2 = inlined_call_operand.vmem [shape: f32[1,256], index: 2, kind: input, shape index: {}]   ;;  %s1837_s3 = inlined_call_operand.vmem [shape: f32[32,256], index: 3, kind: output, shape index: {}]  }
   0x1   :  { %s1568_s14 = smov 0   ;;  %s1570_s15 = smov 0  }
   0x2   :  { %s1572_s16 = smov 0  }
   0x3 LB: > { %s25_s17 = sadd.s32 1, %s1537_s15  ;;  %p48_p1 = scmp.ne.s32.totalorder %s1529_s13, %s1525_s12  ;;  %s1541_s16 = sphi %s1572_s16, %s13_s16   ;;  %s1537_s15 = sphi %s1570_s15, %s1841_s15   ;;  %s1533_s14 = sphi %s1568_s14, %s1840_s14   ;;  %s1529_s13 = sphi %s1566_s13, %s1839_s13   ;;  %s1525_s12 = sphi %s1564_s12, %s1838_s12  }
   0x4   : > { %p26_p0 = scmp.ge.s32.totalorder %s25_s17, 2  ;;  %p49_p2 = scmp.eq.s32.totalorder %s1541_s16, 0 }
   0x5   : > { %s41_s19 = sadd.s32 1, %s1529_s13  ;;  %p1085_p5 = scmp.ge.s32.totalorder %s1541_s16, 2 }
   0x6   : > { %s1843_s17 = smov (%p26_p0, %s25_s17), 0  ;;  %p50_p3 = por %p49_p2, %p48_p1 }
   0x7   : > { %s37_s18 = ssub.s32 %s1537_s15, %s1843_s17  ;;  %164 = sbr.rel (%p1085_p5) target bundleno = 24 (0x18), region = 20 }
   0x8   : > { %p39_p4 = scmp.eq.s32.totalorder %s37_s18, 0 }
   0xa   : > { %s1599_s20 = scalar_select %p39_p4, %s1529_s13, %s41_s19  }
   0xc   : > { %167 = sbr.rel (!%p50_p3) target bundleno = 24 (0x18), region = 24  ;;  %s169_s21 = sand.u32 (%p50_p3), 1, %s1529_s13  }
   0xd   : > { %s1388_s22 = sshll.u32 (%p50_p3), %s1537_s15, 4  ;;  %s1086_s23 = sshll.u32 (%p50_p3), %s169_s21, 6 }
   0xe   : > { %s177_s26 = scalar_lea.vmem (%p50_p3), %s1834_s0, %s1388_s22  ;;  %s171_s27 = scalar_lea.vmem (%p50_p3), [#allocation3], %s1086_s23 }
   0xf   : > { %v190_v0 = vld [vmem:[%s177_s26] sm:$0xff] (%p50_p3)  ;;  %v192_v1 = vld [vmem:[%s177_s26 + $0x8] sm:$0xff] (%p50_p3) }
  0x10   : > { %v194_v2 = vld [vmem:[%s177_s26 + $0x20] sm:$0xff] (%p50_p3)  ;;  %191 = vst [vmem:[%s171_s27] sm:$0xff] (%p50_p3), %v190_v0  ;;  %v196_v3 = vld [vmem:[%s177_s26 + $0x28] sm:$0xff] (%p50_p3) }
  0x11   : > { %193 = vst [vmem:[%s171_s27 + $0x8] sm:$0xff] %v192_v1  ;;  %v198_v4 = vld [vmem:[%s177_s26 + $0x40] sm:$0xff]  ;;  %v200_v5 = vld [vmem:[%s177_s26 + $0x48] sm:$0xff] }
  0x12   : > { %195 = vst [vmem:[%s171_s27 + $0x10] sm:$0xff] %v194_v2  ;;  %v202_v6 = vld [vmem:[%s177_s26 + $0x60] sm:$0xff]  ;;  %v204_v7 = vld [vmem:[%s177_s26 + $0x68] sm:$0xff] }
  0x13   : > { %197 = vst [vmem:[%s171_s27 + $0x18] sm:$0xff] %v196_v3 }
  0x14   : > { %199 = vst [vmem:[%s171_s27 + $0x20] sm:$0xff] %v198_v4 }
  0x15   : > { %201 = vst [vmem:[%s171_s27 + $0x28] sm:$0xff] %v200_v5 }
  0x16   : > { %203 = vst [vmem:[%s171_s27 + $0x30] sm:$0xff] %v202_v6 }
  0x17   : > { %205 = vst [vmem:[%s171_s27 + $0x38] sm:$0xff] %v204_v7 }
  0x18 PF: > { %p1089_p6 = scmp.ge.s32.totalorder %s1541_s16, 1  ;;  %p225_p7 = scmp.lt.s32.totalorder %s1541_s16, 3 }
  0x1a   : > { %p226_p8 = pnand %p1089_p6, %p225_p7 }
  0x1b   : > { %s232_s28 = sand.u32 (!%p226_p8), 1, %s1525_s12   ;;  %s1091_s29 = sshll.u32 (!%p226_p8), %s1533_s14, 6 }
  0x1c   : > { %229 = sbr.rel (%p226_p8) target bundleno = 291 (0x123), region = 51  ;;  %s1090_s30 = sshll.u32 (!%p226_p8), %s232_s28, 6 }
  0x1d   : > { %p278_p9 = scmp.lt.s32.totalorder (!%p226_p8), %s1091_s29, 127  ;;  %s1616_s8 = scalar_lea.vmem (!%p226_p8), [#allocation3], %s1090_s30 }
  0x1e   : > { %p1094_p10 = scmp.ne.s32.totalorder (!%p226_p8), %s1533_s14, 0 }
  0x21   : > { %s1845_s29 = smov (!%p278_p9, %s1091_s29), 127  ;;  %308 = sbr.rel (%p1094_p10) target bundleno = 47 (0x2f), region = 59 }
  0x22   : > { %s1389_s4 = sshll.u32 %s1845_s29, 3 }
  0x23   : > { %s1614_s7 = scalar_lea.vmem %s1835_s1, %s1389_s4 }
  0x26   : > { %v1543_v8 = vmov 0.0  }
  0x27   : > { %309 = vst [vmem:[#allocation2 + $0x30] sm:$0xff] %v1543_v8 }
  0x28   : > { %310 = vst [vmem:[#allocation2] sm:$0xff] %v1543_v8 }
  0x29   : > { %311 = vst [vmem:[#allocation2 + $0x18] sm:$0xff] %v1543_v8 }
  0x2a   : > { %312 = vst [vmem:[#allocation2 + $0x10] sm:$0xff] %v1543_v8 }
  0x2b   : > { %313 = vst [vmem:[#allocation2 + $0x8] sm:$0xff] %v1543_v8 }
  0x2c   : > { %314 = vst [vmem:[#allocation2 + $0x20] sm:$0xff] %v1543_v8 }
  0x2d   : > { %315 = vst [vmem:[#allocation2 + $0x28] sm:$0xff] %v1543_v8 }
  0x2e   : > { %316 = vst [vmem:[#allocation2 + $0x38] sm:$0xff] %v1543_v8 }
  0x2f PF: > { %v1185_v9 = vld [vmem:[%s1614_s7 + $0x70] sm:$0xf]  ;;  %v1413_v10 = vld [vmem:[%s1614_s7 + $0x74] sm:$0xf0]  ;;  %v1177_v20 = vld [vmem:[%s1614_s7 + $0x60] sm:$0xf] }
  0x30   : > { %v1249_v11 = vld [vmem:[%s1614_s7 + $0xf0] sm:$0xf]  ;;  %v1186_v12 = vor.u32 %v1413_v10, %v1185_v9  ;;  %v1429_v13 = vld [vmem:[%s1614_s7 + $0xf4] sm:$0xf0]  ;;  %v1411_v22 = vld [vmem:[%s1614_s7 + $0x64] sm:$0xf0] }
  0x31   : > { %v1313_v14 = vld [vmem:[%s1614_s7 + $0x170] sm:$0xf]  ;;  %v1445_v15 = vld [vmem:[%s1614_s7 + $0x174] sm:$0xf0]  ;;  %v1250_v16 = vor.u32 %v1429_v13, %v1249_v11  ;;  %v1241_v23 = vld [vmem:[%s1614_s7 + $0xe0] sm:$0xf]  ;;  %v1178_v25 = vor.u32 %v1411_v22, %v1177_v20 }
  0x32   : > { %v1314_v17 = vor.u32 %v1445_v15, %v1313_v14  ;;  %v1377_v18 = vld [vmem:[%s1614_s7 + $0x1f0] sm:$0xf]  ;;  %v1461_v19 = vld [vmem:[%s1614_s7 + $0x1f4] sm:$0xf0]  ;;  %757 = vmatpush.bf16.msra.mxu0 %v1186_v12  ;;  %v1427_v24 = vld [vmem:[%s1614_s7 + $0xe4] sm:$0xf0] }
  0x33   : > { %v1378_v21 = vor.u32 %v1461_v19, %v1377_v18  ;;  %776 = vmatpush.bf16.msra.mxu1 %v1250_v16  ;;  %v1242_v26 = vor.u32 %v1427_v24, %v1241_v23  ;;  %v1305_v27 = vld [vmem:[%s1614_s7 + $0x160] sm:$0xf]  ;;  %v1443_v28 = vld [vmem:[%s1614_s7 + $0x164] sm:$0xf0]  ;;  %v1169_v32 = vld [vmem:[%s1614_s7 + $0x50] sm:$0xf] }
  0x34   : > { %795 = vmatpush.bf16.msra.mxu2 %v1314_v17  ;;  %v1369_v29 = vld [vmem:[%s1614_s7 + $0x1e0] sm:$0xf]  ;;  %v1306_v30 = vor.u32 %v1443_v28, %v1305_v27  ;;  %v1459_v31 = vld [vmem:[%s1614_s7 + $0x1e4] sm:$0xf0]  ;;  %v1409_v33 = vld [vmem:[%s1614_s7 + $0x54] sm:$0xf0] }
  0x35   : > { %814 = vmatpush.bf16.msra.mxu3 %v1378_v21  ;;  %v1370_v34 = vor.u32 %v1459_v31, %v1369_v29  ;;  %v1233_v35 = vld [vmem:[%s1614_s7 + $0xd0] sm:$0xf]  ;;  %v1425_v36 = vld [vmem:[%s1614_s7 + $0xd4] sm:$0xf0]  ;;  %v1170_v38 = vor.u32 %v1409_v33, %v1169_v32  ;;  %v1161_v44 = vld [vmem:[%s1614_s7 + $0x40] sm:$0xf] }
  0x36   : > { %v1297_v37 = vld [vmem:[%s1614_s7 + $0x150] sm:$0xf]  ;;  %758 = vmatpush.bf16.msra.mxu0 %v1178_v25  ;;  %v1441_v39 = vld [vmem:[%s1614_s7 + $0x154] sm:$0xf0]  ;;  %v1234_v42 = vor.u32 %v1425_v36, %v1233_v35  ;;  %v1407_v45 = vld [vmem:[%s1614_s7 + $0x44] sm:$0xf0] }
  0x37   : > { %v1361_v40 = vld [vmem:[%s1614_s7 + $0x1d0] sm:$0xf]  ;;  %v1457_v41 = vld [vmem:[%s1614_s7 + $0x1d4] sm:$0xf0]  ;;  %777 = vmatpush.bf16.msra.mxu1 %v1242_v26  ;;  %v1298_v43 = vor.u32 %v1441_v39, %v1297_v37  ;;  %v1225_v46 = vld [vmem:[%s1614_s7 + $0xc0] sm:$0xf]  ;;  %v1162_v53 = vor.u32 %v1407_v45, %v1161_v44 }
  0x38   : > { %796 = vmatpush.bf16.msra.mxu2 %v1306_v30  ;;  %v1362_v47 = vor.u32 %v1457_v41, %v1361_v40  ;;  %v1423_v48 = vld [vmem:[%s1614_s7 + $0xc4] sm:$0xf0]  ;;  %v1289_v49 = vld [vmem:[%s1614_s7 + $0x140] sm:$0xf]  ;;  %v1153_v56 = vld [vmem:[%s1614_s7 + $0x30] sm:$0xf] }
  0x39   : > { %815 = vmatpush.bf16.msra.mxu3 %v1370_v34  ;;  %v1439_v50 = vld [vmem:[%s1614_s7 + $0x144] sm:$0xf0]  ;;  %v1353_v51 = vld [vmem:[%s1614_s7 + $0x1c0] sm:$0xf]  ;;  %v1226_v54 = vor.u32 %v1423_v48, %v1225_v46  ;;  %v1405_v57 = vld [vmem:[%s1614_s7 + $0x34] sm:$0xf0] }
  0x3a   : > { %v1455_v52 = vld [vmem:[%s1614_s7 + $0x1c4] sm:$0xf0]  ;;  %759 = vmatpush.bf16.msra.mxu0 %v1170_v38  ;;  %v1290_v55 = vor.u32 %v1439_v50, %v1289_v49  ;;  %v1217_v58 = vld [vmem:[%s1614_s7 + $0xb0] sm:$0xf]  ;;  %v1421_v60 = vld [vmem:[%s1614_s7 + $0xb4] sm:$0xf0]  ;;  %v1154_v1 = vor.u32 %v1405_v57, %v1153_v56 }
  0x3b   : > { %778 = vmatpush.bf16.msra.mxu1 %v1234_v42  ;;  %v1354_v59 = vor.u32 %v1455_v52, %v1353_v51  ;;  %v1281_v61 = vld [vmem:[%s1614_s7 + $0x130] sm:$0xf]  ;;  %v1437_v62 = vld [vmem:[%s1614_s7 + $0x134] sm:$0xf0]  ;;  %v1218_v2 = vor.u32 %v1421_v60, %v1217_v58  ;;  %v1145_v4 = vld [vmem:[%s1614_s7 + $0x20] sm:$0xf] }
  0x3c   : > { %797 = vmatpush.bf16.msra.mxu2 %v1298_v43  ;;  %v1345_v63 = vld [vmem:[%s1614_s7 + $0x1b0] sm:$0xf]  ;;  %v1453_v0 = vld [vmem:[%s1614_s7 + $0x1b4] sm:$0xf0]  ;;  %v1282_v3 = vor.u32 %v1437_v62, %v1281_v61  ;;  %v1403_v5 = vld [vmem:[%s1614_s7 + $0x24] sm:$0xf0] }
  0x3d   : > { %816 = vmatpush.bf16.msra.mxu3 %v1362_v47  ;;  %v1209_v6 = vld [vmem:[%s1614_s7 + $0xa0] sm:$0xf]  ;;  %v1346_v7 = vor.u32 %v1453_v0, %v1345_v63  ;;  %v1419_v8 = vld [vmem:[%s1614_s7 + $0xa4] sm:$0xf0]  ;;  %v1146_v13 = vor.u32 %v1403_v5, %v1145_v4  ;;  %v1137_v16 = vld [vmem:[%s1614_s7 + $0x10] sm:$0xf] }
  0x3e   : > { %760 = vmatpush.bf16.msra.mxu0 %v1162_v53  ;;  %v1273_v9 = vld [vmem:[%s1614_s7 + $0x120] sm:$0xf]  ;;  %v1435_v10 = vld [vmem:[%s1614_s7 + $0x124] sm:$0xf0]  ;;  %v1210_v14 = vor.u32 %v1419_v8, %v1209_v6  ;;  %v1401_v17 = vld [vmem:[%s1614_s7 + $0x14] sm:$0xf0] }
  0x3f   : > { %779 = vmatpush.bf16.msra.mxu1 %v1226_v54  ;;  %v1337_v11 = vld [vmem:[%s1614_s7 + $0x1a0] sm:$0xf]  ;;  %v1451_v12 = vld [vmem:[%s1614_s7 + $0x1a4] sm:$0xf0]  ;;  %v1274_v15 = vor.u32 %v1435_v10, %v1273_v9  ;;  %v1201_v18 = vld [vmem:[%s1614_s7 + $0x90] sm:$0xf]  ;;  %v1138_v26 = vor.u32 %v1401_v17, %v1137_v16 }
  0x40   : > { %798 = vmatpush.bf16.msra.mxu2 %v1290_v55  ;;  %v1338_v19 = vor.u32 %v1451_v12, %v1337_v11  ;;  %v1417_v20 = vld [vmem:[%s1614_s7 + $0x94] sm:$0xf0]  ;;  %v1265_v21 = vld [vmem:[%s1614_s7 + $0x110] sm:$0xf]  ;;  %v1129_v25 = vld [vmem:[%s1614_s7] sm:$0xf] }
  0x41   : > { %817 = vmatpush.bf16.msra.mxu3 %v1354_v59  ;;  %v1433_v22 = vld [vmem:[%s1614_s7 + $0x114] sm:$0xf0]  ;;  %v1329_v23 = vld [vmem:[%s1614_s7 + $0x190] sm:$0xf]  ;;  %v1399_v27 = vld [vmem:[%s1614_s7 + $0x4] sm:$0xf0]  ;;  %v1202_v30 = vor.u32 %v1417_v20, %v1201_v18 }
  0x42   : > { %761 = vmatpush.bf16.msra.mxu0 %v1154_v1  ;;  %v1449_v24 = vld [vmem:[%s1614_s7 + $0x194] sm:$0xf0]  ;;  %v1193_v28 = vld [vmem:[%s1614_s7 + $0x80] sm:$0xf]  ;;  %v1415_v29 = vld [vmem:[%s1614_s7 + $0x84] sm:$0xf0]  ;;  %v1266_v31 = vor.u32 %v1433_v22, %v1265_v21  ;;  %v1130_v43 = vor.u32 %v1399_v27, %v1129_v25 }
  0x43   : > { %780 = vmatpush.bf16.msra.mxu1 %v1218_v2  ;;  %v1257_v32 = vld [vmem:[%s1614_s7 + $0x100] sm:$0xf]  ;;  %v1431_v33 = vld [vmem:[%s1614_s7 + $0x104] sm:$0xf0]  ;;  %v1330_v35 = vor.u32 %v1449_v24, %v1329_v23  ;;  %v1392_v38 = vld [vmem:[%s1616_s8 + $0xc] sm:$0xf0]  ;;  %v1194_v47 = vor.u32 %v1415_v29, %v1193_v28 }
  0x44   : > { %799 = vmatpush.bf16.msra.mxu2 %v1282_v3  ;;  %v1321_v34 = vld [vmem:[%s1614_s7 + $0x180] sm:$0xf]  ;;  %v1447_v36 = vld [vmem:[%s1614_s7 + $0x184] sm:$0xf0]  ;;  %v1390_v39 = vld [vmem:[%s1616_s8 + $0x4] sm:$0xf]  ;;  %v1258_v48 = vor.u32 %v1431_v33, %v1257_v32 }
  0x45   : > { %818 = vmatpush.bf16.msra.mxu3 %v1346_v7  ;;  %v1097_v37 = vld [vmem:[%s1616_s8] sm:$0xf]  ;;  %v1099_v40 = vld [vmem:[%s1616_s8 + $0x10] sm:$0xf0]  ;;  %v1315_v42 = vld [vmem:[%s1614_s7 + $0x178] sm:$0xf0]  ;;  %v1322_v52 = vor.u32 %v1447_v36, %v1321_v34 }
  0x46   : > { %762 = vmatpush.bf16.msra.mxu0 %v1146_v13  ;;  %v1444_v41 = vld [vmem:[%s1614_s7 + $0x174] sm:$0xf]  ;;  %v1105_v44 = vld [vmem:[%s1616_s8 + $0x8] sm:$0xf]  ;;  %v1251_v46 = vld [vmem:[%s1614_s7 + $0xf8] sm:$0xf0]  ;;  %v1698_v57 = vor.u32 %v1392_v38, %v1097_v37  ;;  %v1703_v62 = vor.u32 %v1390_v39, %v1099_v40 }
  0x47   : > { %781 = vmatpush.bf16.msra.mxu1 %v1210_v14  ;;  %v1428_v45 = vld [vmem:[%s1614_s7 + $0xf4] sm:$0xf]  ;;  %v1393_v49 = vld [vmem:[%s1616_s8 + $0x14] sm:$0xf0]  ;;  %v1391_v50 = vld [vmem:[%s1616_s8 + $0xc] sm:$0xf]  ;;  %v1318_v53 = vor.u32 %v1444_v41, %v1315_v42 }
  0x48   : > { %800 = vmatpush.bf16.msra.mxu2 %v1274_v15  ;;  %v1107_v51 = vld [vmem:[%s1616_s8 + $0x18] sm:$0xf0]  ;;  %v1412_v54 = vld [vmem:[%s1614_s7 + $0x74] sm:$0xf]  ;;  %v1254_v58 = vor.u32 %v1428_v45, %v1251_v46  ;;  %v1442_v60 = vld [vmem:[%s1614_s7 + $0x164] sm:$0xf]  ;;  %v1705_v63 = vor.u32 %v1393_v49, %v1105_v44 }
  0x49   : > { %819 = vmatpush.bf16.msra.mxu3 %v1338_v19  ;;  %v1187_v55 = vld [vmem:[%s1614_s7 + $0x78] sm:$0xf0]  ;;  %v1460_v56 = vld [vmem:[%s1614_s7 + $0x1f4] sm:$0xf]  ;;  %v1307_v61 = vld [vmem:[%s1614_s7 + $0x168] sm:$0xf0]  ;;  %v1709_v2 = vor.u32 %v1391_v50, %v1107_v51 }
  0x4a   : > { %763 = vmatpush.bf16.msra.mxu0 %v1138_v26  ;;  %v1379_v59 = vld [vmem:[%s1614_s7 + $0x1f8] sm:$0xf0]  ;;  %v1426_v0 = vld [vmem:[%s1614_s7 + $0xe4] sm:$0xf]  ;;  %v1243_v1 = vld [vmem:[%s1614_s7 + $0xe8] sm:$0xf0]  ;;  %v1190_v3 = vor.u32 %v1412_v54, %v1187_v55  ;;  %v1310_v5 = vor.u32 %v1442_v60, %v1307_v61 }
  0x4b   : > { %782 = vmatpush.bf16.msra.mxu1 %v1202_v30  ;;  %v1382_v4 = vor.u32 %v1460_v56, %v1379_v59  ;;  %v1410_v6 = vld [vmem:[%s1614_s7 + $0x64] sm:$0xf]  ;;  %v1179_v7 = vld [vmem:[%s1614_s7 + $0x68] sm:$0xf0]  ;;  %v1246_v9 = vor.u32 %v1426_v0, %v1243_v1  ;;  %v1440_v11 = vld [vmem:[%s1614_s7 + $0x154] sm:$0xf] }
  0x4c   : > { %801 = vmatpush.bf16.msra.mxu2 %v1266_v31  ;;  %v1458_v8 = vld [vmem:[%s1614_s7 + $0x1e4] sm:$0xf]  ;;  %v1371_v10 = vld [vmem:[%s1614_s7 + $0x1e8] sm:$0xf0]  ;;  %v1299_v12 = vld [vmem:[%s1614_s7 + $0x158] sm:$0xf0]  ;;  %v1182_v15 = vor.u32 %v1410_v6, %v1179_v7 }
  0x4d   : > { %820 = vmatpush.bf16.msra.mxu3 %v1330_v35  ;;  %v1424_v13 = vld [vmem:[%s1614_s7 + $0xd4] sm:$0xf]  ;;  %v1235_v14 = vld [vmem:[%s1614_s7 + $0xd8] sm:$0xf0]  ;;  %v1374_v16 = vor.u32 %v1458_v8, %v1371_v10  ;;  %v1302_v17 = vor.u32 %v1440_v11, %v1299_v12  ;;  %v1438_v23 = vld [vmem:[%s1614_s7 + $0x144] sm:$0xf] }
  0x4e   : > { %764 = vmatpush.bf16.msra.mxu0 %v1130_v43  ;;  %v1408_v18 = vld [vmem:[%s1614_s7 + $0x54] sm:$0xf]  ;;  %v1171_v19 = vld [vmem:[%s1614_s7 + $0x58] sm:$0xf0]  ;;  %v1238_v21 = vor.u32 %v1424_v13, %v1235_v14  ;;  %v1291_v24 = vld [vmem:[%s1614_s7 + $0x148] sm:$0xf0] }
  0x4f   : > { %783 = vmatpush.bf16.msra.mxu1 %v1194_v47  ;;  %v1456_v20 = vld [vmem:[%s1614_s7 + $0x1d4] sm:$0xf]  ;;  %v1363_v22 = vld [vmem:[%s1614_s7 + $0x1d8] sm:$0xf0]  ;;  %v1422_v25 = vld [vmem:[%s1614_s7 + $0xc4] sm:$0xf]  ;;  %v1174_v27 = vor.u32 %v1408_v18, %v1171_v19  ;;  %v1294_v32 = vor.u32 %v1438_v23, %v1291_v24 }
  0x50   : > { %802 = vmatpush.bf16.msra.mxu2 %v1258_v48  ;;  %v1227_v26 = vld [vmem:[%s1614_s7 + $0xc8] sm:$0xf0]  ;;  %v1406_v28 = vld [vmem:[%s1614_s7 + $0x44] sm:$0xf]  ;;  %v1366_v31 = vor.u32 %v1456_v20, %v1363_v22  ;;  %v1113_v34 = vld [vmem:[%s1616_s8 + $0x20] sm:$0xf] }
  0x51   : > { %821 = vmatpush.bf16.msra.mxu3 %v1322_v52  ;;  %765 = vmatmul.bf16.vlgmr.msra.gmra.mxu0 %v1698_v57  ;;  %v1163_v29 = vld [vmem:[%s1614_s7 + $0x48] sm:$0xf0]  ;;  %v1454_v30 = vld [vmem:[%s1614_s7 + $0x1c4] sm:$0xf]  ;;  %v1396_v35 = vld [vmem:[%s1616_s8 + $0x2c] sm:$0xf0]  ;;  %v1230_v36 = vor.u32 %v1422_v25, %v1227_v26 }
  0x52   : > { %784 = vmatmul.bf16.vlgmr.msra.gmra.mxu1 %v1703_v62  ;;  %833 = vmatpush.bf16.msrb.mxu0 %v1190_v3  ;;  %v1355_v33 = vld [vmem:[%s1614_s7 + $0x1c8] sm:$0xf0]  ;;  %v1394_v37 = vld [vmem:[%s1616_s8 + $0x24] sm:$0xf]  ;;  %v1115_v38 = vld [vmem:[%s1616_s8 + $0x30] sm:$0xf0]  ;;  %v1166_v44 = vor.u32 %v1406_v28, %v1163_v29 }
  0x53   : > { %852 = vmatpush.bf16.msrb.mxu1 %v1254_v58  ;;  %803 = vmatmul.bf16.vlgmr.msra.gmra.mxu2 %v1705_v63  ;;  %v1436_v39 = vld [vmem:[%s1614_s7 + $0x134] sm:$0xf]  ;;  %v1283_v40 = vld [vmem:[%s1614_s7 + $0x138] sm:$0xf0]  ;;  %v1121_v41 = vld [vmem:[%s1616_s8 + $0x28] sm:$0xf]  ;;  %v1358_v48 = vor.u32 %v1454_v30, %v1355_v33  ;;  %v1755_v59 = vor.u32 %v1394_v37, %v1115_v38 }
  0x54   : > { %871 = vmatpush.bf16.msrb.mxu2 %v1318_v53  ;;  %822 = vmatmul.bf16.vlgmr.msra.gmra.mxu3 %v1709_v2  ;;  %v1420_v42 = vld [vmem:[%s1614_s7 + $0xb4] sm:$0xf]  ;;  %v1219_v43 = vld [vmem:[%s1614_s7 + $0xb8] sm:$0xf0]  ;;  %v1397_v45 = vld [vmem:[%s1616_s8 + $0x34] sm:$0xf0]  ;;  %v1286_v49 = vor.u32 %v1436_v39, %v1283_v40  ;;  %v1750_v53 = vor.u32 %v1396_v35, %v1113_v34 }
  0x55   : > { %890 = vmatpush.bf16.msrb.mxu3 %v1382_v4  ;;  %v1395_v46 = vld [vmem:[%s1616_s8 + $0x2c] sm:$0xf]  ;;  %v1123_v47 = vld [vmem:[%s1616_s8 + $0x38] sm:$0xf0]  ;;  %v1404_v50 = vld [vmem:[%s1614_s7 + $0x34] sm:$0xf]  ;;  %v1222_v54 = vor.u32 %v1420_v42, %v1219_v43  ;;  %v1757_v60 = vor.u32 %v1397_v45, %v1121_v41 }
  0x56   : > { %834 = vmatpush.bf16.msrb.mxu0 %v1182_v15  ;;  %v1155_v51 = vld [vmem:[%s1614_s7 + $0x38] sm:$0xf0]  ;;  %v1452_v52 = vld [vmem:[%s1614_s7 + $0x1b4] sm:$0xf]  ;;  %v1434_v56 = vld [vmem:[%s1614_s7 + $0x124] sm:$0xf]  ;;  %v1126_v1 = vor.u32 %v1395_v46, %v1123_v47 }
  0x57   : > { %853 = vmatpush.bf16.msrb.mxu1 %v1246_v9  ;;  %v1347_v55 = vld [vmem:[%s1614_s7 + $0x1b8] sm:$0xf0]  ;;  %v1275_v58 = vld [vmem:[%s1614_s7 + $0x128] sm:$0xf0]  ;;  %v1418_v61 = vld [vmem:[%s1614_s7 + $0xa4] sm:$0xf]  ;;  %v1158_v3 = vor.u32 %v1404_v50, %v1155_v51 }
  0x58   : > { %872 = vmatpush.bf16.msrb.mxu2 %v1310_v5  ;;  %v1211_v0 = vld [vmem:[%s1614_s7 + $0xa8] sm:$0xf0]  ;;  %v1350_v4 = vor.u32 %v1452_v52, %v1347_v55  ;;  %v1278_v5 = vor.u32 %v1434_v56, %v1275_v58  ;;  %v1402_v6 = vld [vmem:[%s1614_s7 + $0x24] sm:$0xf]  ;;  %v1432_v11 = vld [vmem:[%s1614_s7 + $0x114] sm:$0xf] }
  0x59   : > { %891 = vmatpush.bf16.msrb.mxu3 %v1374_v16  ;;  %v1147_v7 = vld [vmem:[%s1614_s7 + $0x28] sm:$0xf0]  ;;  %v1450_v8 = vld [vmem:[%s1614_s7 + $0x1a4] sm:$0xf]  ;;  %v1214_v9 = vor.u32 %v1418_v61, %v1211_v0  ;;  %v1267_v12 = vld [vmem:[%s1614_s7 + $0x118] sm:$0xf0] }
  0x5a   : > { %835 = vmatpush.bf16.msrb.mxu0 %v1174_v27  ;;  %v1339_v10 = vld [vmem:[%s1614_s7 + $0x1a8] sm:$0xf0]  ;;  %v1416_v13 = vld [vmem:[%s1614_s7 + $0x94] sm:$0xf]  ;;  %v1203_v14 = vld [vmem:[%s1614_s7 + $0x98] sm:$0xf0]  ;;  %v1150_v15 = vor.u32 %v1402_v6, %v1147_v7 }
  0x5b   : > { %854 = vmatpush.bf16.msrb.mxu1 %v1238_v21  ;;  %v1342_v16 = vor.u32 %v1450_v8, %v1339_v10  ;;  %v1400_v18 = vld [vmem:[%s1614_s7 + $0x14] sm:$0xf]  ;;  %v1139_v19 = vld [vmem:[%s1614_s7 + $0x18] sm:$0xf0]  ;;  %v1206_v21 = vor.u32 %v1416_v13, %v1203_v14  ;;  %v1430_v23 = vld [vmem:[%s1614_s7 + $0x104] sm:$0xf] }
  0x5c   : > { %873 = vmatpush.bf16.msrb.mxu2 %v1302_v17  ;;  %v1270_v17 = vor.u32 %v1432_v11, %v1267_v12  ;;  %v1448_v20 = vld [vmem:[%s1614_s7 + $0x194] sm:$0xf]  ;;  %v1331_v22 = vld [vmem:[%s1614_s7 + $0x198] sm:$0xf0]  ;;  %v1259_v24 = vld [vmem:[%s1614_s7 + $0x108] sm:$0xf0]  ;;  %v1142_v27 = vor.u32 %v1400_v18, %v1139_v19 }
  0x5d   : > { %892 = vmatpush.bf16.msrb.mxu3 %v1366_v31  ;;  %v1414_v25 = vld [vmem:[%s1614_s7 + $0x84] sm:$0xf]  ;;  %v1195_v26 = vld [vmem:[%s1614_s7 + $0x88] sm:$0xf0]  ;;  %v1334_v28 = vor.u32 %v1448_v20, %v1331_v22  ;;  %v1262_v29 = vor.u32 %v1430_v23, %v1259_v24  ;;  %v317_v43 = vld [vmem:[#allocation2 + $0x30] sm:$0xff]  ;;  %p1383_p11 = scmp.ne.s32.totalorder %s1533_s14, 1 }
  0x5e   : > { %836 = vmatpush.bf16.msrb.mxu0 %v1166_v44  ;;  %v1398_v30 = vld [vmem:[%s1614_s7 + $0x4] sm:$0xf]  ;;  %v1131_v31 = vld [vmem:[%s1614_s7 + $0x8] sm:$0xf0]  ;;  %v320_v24 = vld [vmem:[#allocation2 + $0x10] sm:$0xff] }
  0x5f   : > { %855 = vmatpush.bf16.msrb.mxu1 %v1230_v36  ;;  %v1446_v33 = vld [vmem:[%s1614_s7 + $0x184] sm:$0xf]  ;;  %v1323_v34 = vld [vmem:[%s1614_s7 + $0x188] sm:$0xf0]  ;;  %v1134_v35 = vor.u32 %v1398_v30, %v1131_v31 }
  0x60   : > { %874 = vmatpush.bf16.msrb.mxu2 %v1294_v32  ;;  %v1198_v32 = vor.u32 %v1414_v25, %v1195_v26  ;;  %v1326_v36 = vor.u32 %v1446_v33, %v1323_v34  ;;  %v323_v6 = vld [vmem:[#allocation2 + $0x28] sm:$0xff]  ;;  %v322_v33 = vld [vmem:[#allocation2 + $0x20] sm:$0xff] }
  0x61   : > { %893 = vmatpush.bf16.msrb.mxu3 %v1358_v48  ;;  %770 = vmatmul.bf16.gmra.mxu0 %v1750_v53 }
  0x62   : > { %789 = vmatmul.bf16.gmra.mxu1 %v1755_v59  ;;  %837 = vmatpush.bf16.msrb.mxu0 %v1158_v3 }
  0x63   : > { %856 = vmatpush.bf16.msrb.mxu1 %v1222_v54  ;;  %808 = vmatmul.bf16.gmra.mxu2 %v1757_v60 }
  0x64   : > { %875 = vmatpush.bf16.msrb.mxu2 %v1286_v49  ;;  %827 = vmatmul.bf16.gmra.mxu3 %v1126_v1  ;;  %v319_v49 = vld [vmem:[#allocation2 + $0x18] sm:$0xff] }
  0x65   : > { %894 = vmatpush.bf16.msrb.mxu3 %v1350_v4 }
  0x66   : > { %838 = vmatpush.bf16.msrb.mxu0 %v1150_v15 }
  0x67   : > { %857 = vmatpush.bf16.msrb.mxu1 %v1214_v9 }
  0x68   : > { %876 = vmatpush.bf16.msrb.mxu2 %v1278_v5 }
  0x69   : > { %895 = vmatpush.bf16.msrb.mxu3 %v1342_v16 }
  0x6a   : > { %839 = vmatpush.bf16.msrb.mxu0 %v1142_v27 }
  0x6b   : > { %858 = vmatpush.bf16.msrb.mxu1 %v1206_v21 }
  0x6c   : > { %877 = vmatpush.bf16.msrb.mxu2 %v1270_v17  ;;  %v318_v17 = vld [vmem:[#allocation2] sm:$0xff] }
  0x6d   : > { %896 = vmatpush.bf16.msrb.mxu3 %v1334_v28 }
  0x6e   : > { %840 = vmatpush.bf16.msrb.mxu0 %v1134_v35 }
  0x6f   : > { %859 = vmatpush.bf16.msrb.mxu1 %v1198_v32 }
  0x70   : > { %878 = vmatpush.bf16.msrb.mxu2 %v1262_v29 }
  0x71   : > { %897 = vmatpush.bf16.msrb.mxu3 %v1326_v36  ;;  %841 = vmatmul.bf16.vlgmr.msrb.gmra.mxu0 %v1698_v57 }
  0x72   : > { %860 = vmatmul.bf16.vlgmr.msrb.gmra.mxu1 %v1703_v62 }
  0x73   : > { %879 = vmatmul.bf16.vlgmr.msrb.gmra.mxu2 %v1705_v63 }
  0x74   : > { %898 = vmatmul.bf16.vlgmr.msrb.gmra.mxu3 %v1709_v2 }
  0x81   : > { %846 = vmatmul.bf16.gmra.mxu0 %v1750_v53 }
  0x82   : > { %865 = vmatmul.bf16.gmra.mxu1 %v1755_v59  ;;  %v321_v59 = vld [vmem:[#allocation2 + $0x8] sm:$0xff] }
  0x83   : > { %884 = vmatmul.bf16.gmra.mxu2 %v1757_v60 }
  0x84   : > { %903 = vmatmul.bf16.gmra.mxu3 %v1126_v1 }
  0xce   : > { %v766_v37 = vpop.f32.mrf.mxu0 }
  0xcf   : > { %v785_v38 = vpop.f32.mrf.mxu1 }
  0xd0   : > { %v786_v39 = vadd.f32 %v785_v38, %v766_v37 }
  0xd6   : > { %v804_v40 = vpop.f32.mrf.mxu2  ;;  %v768_v57 = vpop.f32.mrf.mxu0 }
  0xd7   : > { %v805_v41 = vadd.f32 %v804_v40, %v786_v39  ;;  %v823_v42 = vpop.f32.mrf.mxu3  ;;  %v787_v62 = vpop.f32.mrf.mxu1 }
  0xd8   : > { %v788_v2 = vadd.f32 %v787_v62, %v768_v57 }
  0xd9   : > { %v824_v44 = vadd.f32 %v823_v42, %v805_v41  ;;  %v324_v41 = vld [vmem:[#allocation2 + $0x38] sm:$0xff] }
  0xdb   : > { %v909_v63 = vadd.f32 %v824_v44, %v317_v43 }
  0xdd   : > { %917 = vst [vmem:[#allocation2 + $0x30] sm:$0xff] %v909_v63 }
  0xde   : > { %v806_v45 = vpop.f32.mrf.mxu2  ;;  %v771_v48 = vpop.f32.mrf.mxu0 }
  0xdf   : > { %v807_v46 = vadd.f32 %v806_v45, %v788_v2  ;;  %v825_v47 = vpop.f32.mrf.mxu3  ;;  %v790_v50 = vpop.f32.mrf.mxu1 }
  0xe0   : > { %v791_v53 = vadd.f32 %v790_v50, %v771_v48 }
  0xe1   : > { %v826_v51 = vadd.f32 %v825_v47, %v807_v46 }
  0xe3   : > { %v911_v52 = vadd.f32 %v826_v51, %v319_v49 }
  0xe5   : > { %919 = vst [vmem:[#allocation2 + $0x18] sm:$0xff] %v911_v52 }
  0xe6   : > { %v809_v54 = vpop.f32.mrf.mxu2  ;;  %v773_v58 = vpop.f32.mrf.mxu0 }
  0xe7   : > { %v810_v55 = vadd.f32 %v809_v54, %v791_v53  ;;  %v828_v56 = vpop.f32.mrf.mxu3  ;;  %v792_v60 = vpop.f32.mrf.mxu1 }
  0xe8   : > { %v793_v1 = vadd.f32 %v792_v60, %v773_v58 }
  0xe9   : > { %v829_v61 = vadd.f32 %v828_v56, %v810_v55 }
  0xeb   : > { %v913_v0 = vadd.f32 %v829_v61, %v321_v59 }
  0xed   : > { %921 = vst [vmem:[#allocation2 + $0x8] sm:$0xff] %v913_v0 }
  0xee   : > { %v811_v3 = vpop.f32.mrf.mxu2  ;;  %v842_v7 = vpop.f32.mrf.mxu0 }
  0xef   : > { %v812_v4 = vadd.f32 %v811_v3, %v793_v1  ;;  %v830_v5 = vpop.f32.mrf.mxu3  ;;  %v861_v8 = vpop.f32.mrf.mxu1 }
  0xf0   : > { %v862_v11 = vadd.f32 %v861_v8, %v842_v7 }
  0xf1   : > { %v831_v9 = vadd.f32 %v830_v5, %v812_v4 }
  0xf3   : > { %v915_v10 = vadd.f32 %v831_v9, %v323_v6 }
  0xf5   : > { %923 = vst [vmem:[#allocation2 + $0x28] sm:$0xff] %v915_v10 }
  0xf6   : > { %v880_v12 = vpop.f32.mrf.mxu2  ;;  %v844_v15 = vpop.f32.mrf.mxu0 }
  0xf7   : > { %v899_v13 = vpop.f32.mrf.mxu3  ;;  %v881_v14 = vadd.f32 %v880_v12, %v862_v11  ;;  %v863_v16 = vpop.f32.mrf.mxu1 }
  0xf8   : > { %v864_v20 = vadd.f32 %v863_v16, %v844_v15 }
  0xf9   : > { %v900_v18 = vadd.f32 %v899_v13, %v881_v14 }
  0xfb   : > { %v910_v19 = vadd.f32 %v900_v18, %v318_v17 }
  0xfd   : > { %918 = vst [vmem:[#allocation2] sm:$0xff] %v910_v19 }
  0xfe   : > { %v882_v21 = vpop.f32.mrf.mxu2  ;;  %v847_v25 = vpop.f32.mrf.mxu0 }
  0xff   : > { %v901_v22 = vpop.f32.mrf.mxu3  ;;  %v883_v23 = vadd.f32 %v882_v21, %v864_v20  ;;  %v866_v26 = vpop.f32.mrf.mxu1 }
 0x100   : > { %v867_v29 = vadd.f32 %v866_v26, %v847_v25 }
 0x101   : > { %v902_v27 = vadd.f32 %v901_v22, %v883_v23 }
 0x103   : > { %v912_v28 = vadd.f32 %v902_v27, %v320_v24 }
 0x105   : > { %920 = vst [vmem:[#allocation2 + $0x10] sm:$0xff] %v912_v28 }
 0x106   : > { %v885_v30 = vpop.f32.mrf.mxu2  ;;  %v849_v35 = vpop.f32.mrf.mxu0 }
 0x107   : > { %v904_v31 = vpop.f32.mrf.mxu3  ;;  %v886_v32 = vadd.f32 %v885_v30, %v867_v29  ;;  %v868_v36 = vpop.f32.mrf.mxu1 }
 0x108   : > { %v869_v38 = vadd.f32 %v868_v36, %v849_v35 }
 0x109   : > { %v905_v34 = vadd.f32 %v904_v31, %v886_v32 }
 0x10b   : > { %v914_v37 = vadd.f32 %v905_v34, %v322_v33 }
 0x10d   : > { %922 = vst [vmem:[#allocation2 + $0x20] sm:$0xff] %v914_v37 }
 0x10e   : > { %v887_v39 = vpop.f32.mrf.mxu2 }
 0x10f   : > { %v888_v40 = vadd.f32 %v887_v39, %v869_v38  ;;  %v906_v42 = vpop.f32.mrf.mxu3 }
 0x111   : > { %v907_v57 = vadd.f32 %v906_v42, %v888_v40  ;;  %928 = sbr.rel (%p1383_p11) target bundleno = 291 (0x123), region = 63 }
 0x113   : > { %v916_v43 = vadd.f32 %v907_v57, %v324_v41 }
 0x115   : > { %924 = vst [vmem:[#allocation2 + $0x38] sm:$0xff] %v916_v43 }
 0x116   : > { %v929_v62 = vld [vmem:[#allocation2 + $0x30] sm:$0xff]  ;;  %v937_v44 = vld [vmem:[%s1836_s2] sm:$0x3]  ;;  %v931_v46 = vld [vmem:[#allocation2 + $0x18] sm:$0xff] }
 0x117   : > { %v930_v63 = vld [vmem:[#allocation2] sm:$0xff]  ;;  %v939_v2 = vperm.slane %v937_v44, 0  ;;  %v940_v45 = vperm.slane %v937_v44, 1  ;;  %v932_v47 = vld [vmem:[#allocation2 + $0x10] sm:$0xff]  ;;  %v933_v48 = vld [vmem:[#allocation2 + $0x8] sm:$0xff] }
 0x118   : > { %v934_v52 = vld [vmem:[#allocation2 + $0x20] sm:$0xff]  ;;  %v935_v54 = vld [vmem:[#allocation2 + $0x28] sm:$0xff] }
 0x119   : > { %v943_v49 = vadd.f32 %v939_v2, %v929_v62  ;;  %v944_v50 = vadd.f32 %v940_v45, %v930_v63  ;;  %v945_v51 = vadd.f32 %v939_v2, %v931_v46  ;;  %v946_v53 = vadd.f32 %v940_v45, %v932_v47 }
 0x11a   : > { %v947_v55 = vadd.f32 %v939_v2, %v933_v48  ;;  %v948_v58 = vadd.f32 %v940_v45, %v934_v52  ;;  %v949_v59 = vadd.f32 %v939_v2, %v935_v54 }
 0x11b   : > { %951 = vst [vmem:[%s1837_s3] sm:$0xff] %v943_v49 }
 0x11c   : > { %v936_v56 = vld [vmem:[#allocation2 + $0x38] sm:$0xff]  ;;  %952 = vst [vmem:[%s1837_s3 + $0x8] sm:$0xff] %v944_v50 }
 0x11d   : > { %953 = vst [vmem:[%s1837_s3 + $0x10] sm:$0xff] %v945_v51  ;;  %v950_v60 = vadd.f32 %v940_v45, %v936_v56 }
 0x11e   : > { %954 = vst [vmem:[%s1837_s3 + $0x18] sm:$0xff] %v946_v53 }
 0x11f   : > { %955 = vst [vmem:[%s1837_s3 + $0x20] sm:$0xff] %v947_v55 }
 0x120   : > { %956 = vst [vmem:[%s1837_s3 + $0x28] sm:$0xff] %v948_v58 }
 0x121   : > { %957 = vst [vmem:[%s1837_s3 + $0x30] sm:$0xff] %v949_v59 }
 0x122   : > { %958 = vst [vmem:[%s1837_s3 + $0x38] sm:$0xff] %v950_v60 }
 0x123 PF: > { %s13_s16 = sadd.s32 1, %s1541_s16   ;;  %s1838_s12 = smov %s1529_s13 }
 0x124   : > { %p10_p12 = scmp.ge.s32.totalorder %s13_s16, 4   ;;  %s1839_s13 = smov %s1599_s20 }
 0x125   : > { %s1840_s14 = smov %s1537_s15  ;;  %s1841_s15 = smov %s1843_s17 }
 0x126   :  { %12 = sbr.rel (!%p10_p12) target bundleno = 3 (0x3), region = 104 }

// kernel: dualnet_forward.87
= control target key start
LH: loop header
LB: loop body
LE: loop exit
PB: predicated region body
PF: predicated region fallthrough
CT: control target
= control target key end

     0   :  { %s1376_s12 = smov 0   ;;  %s1378_s13 = smov 0   ;;  %s1590_s0 = inlined_call_operand.vmem [shape: bf16[32,2304], index: 0, kind: input, shape index: {}]   ;;  %s1591_s1 = inlined_call_operand.vmem [shape: bf16[2304,256], index: 1, kind: input, shape index: {}]   ;;  %s1592_s2 = inlined_call_operand.vmem [shape: f32[1,256], index: 2, kind: input, shape index: {}]   ;;  %s1593_s3 = inlined_call_operand.vmem [shape: f32[32,256], index: 3, kind: output, shape index: {}]  }
   0x1   :  { %s1380_s14 = smov 0   ;;  %s1382_s15 = smov 0  }
   0x2   :  { %s1384_s16 = smov 0  }
   0x3 LB: > { %s25_s17 = sadd.s32 1, %s1349_s15  ;;  %p48_p1 = scmp.ne.s32.totalorder %s1341_s13, %s1337_s12  ;;  %s1353_s16 = sphi %s1384_s16, %s13_s16   ;;  %s1349_s15 = sphi %s1382_s15, %s1597_s15   ;;  %s1345_s14 = sphi %s1380_s14, %s1596_s14   ;;  %s1341_s13 = sphi %s1378_s13, %s1595_s13   ;;  %s1337_s12 = sphi %s1376_s12, %s1594_s12  }
   0x4   : > { %p26_p0 = scmp.ge.s32.totalorder %s25_s17, 6  ;;  %p49_p2 = scmp.eq.s32.totalorder %s1353_s16, 0 }
   0x5   : > { %s41_s19 = sadd.s32 1, %s1341_s13  ;;  %p965_p5 = scmp.ge.s32.totalorder %s1353_s16, 6 }
   0x6   : > { %s1599_s17 = smov (%p26_p0, %s25_s17), 0  ;;  %p50_p3 = por %p49_p2, %p48_p1 }
   0x7   : > { %s37_s18 = ssub.s32 %s1349_s15, %s1599_s17  ;;  %164 = sbr.rel (%p965_p5) target bundleno = 25 (0x19), region = 20 }
   0x8   : > { %p39_p4 = scmp.eq.s32.totalorder %s37_s18, 0 }
   0xa   : > { %s1411_s20 = scalar_select %p39_p4, %s1341_s13, %s41_s19  }
   0xc   : > { %167 = sbr.rel (!%p50_p3) target bundleno = 25 (0x19), region = 24  ;;  %s169_s21 = sand.u32 (%p50_p3), 1, %s1341_s13  }
   0xd   : > { %s1200_s22 = smul.u32 (%p50_p3), 12, %s1349_s15 }
   0xe   : > { %s1272_s23 = smul.u32 (%p50_p3), 48, %s169_s21 }
   0xf   : > { %s177_s26 = scalar_lea.vmem (%p50_p3), %s1590_s0, %s1200_s22 }
  0x10   : > { %v192_v0 = vld [vmem:[%s177_s26] sm:$0xff] (%p50_p3)  ;;  %v194_v1 = vld [vmem:[%s177_s26 + $0x48] sm:$0xff] (%p50_p3)  ;;  %v196_v2 = vld [vmem:[%s177_s26 + $0x90] sm:$0xff] (%p50_p3)  ;;  %s171_s27 = scalar_lea.vmem (%p50_p3), [#allocation3], %s1272_s23 }
  0x11   : > { %193 = vst [vmem:[%s171_s27] sm:$0xff] %v192_v0  ;;  %v198_v3 = vld [vmem:[%s177_s26 + $0xd8] sm:$0xff]  ;;  %v967_v4 = vld [vmem:[%s177_s26 + $0x8] sm:$0xf]  ;;  %v969_v5 = vld [vmem:[%s177_s26 + $0x50] sm:$0xf] }
  0x12   : > { %195 = vst [vmem:[%s171_s27 + $0xc] sm:$0xff] %v194_v1  ;;  %v971_v6 = vld [vmem:[%s177_s26 + $0x98] sm:$0xf]  ;;  %v973_v7 = vld [vmem:[%s177_s26 + $0xe0] sm:$0xf] }
  0x13   : > { %197 = vst [vmem:[%s171_s27 + $0x18] sm:$0xff] %v196_v2 }
  0x14   : > { %199 = vst [vmem:[%s171_s27 + $0x24] sm:$0xff] %v198_v3 }
  0x15   : > { %968 = vst [vmem:[%s171_s27 + $0x8] sm:$0xf] %v967_v4 }
  0x16   : > { %970 = vst [vmem:[%s171_s27 + $0x14] sm:$0xf] %v969_v5 }
  0x17   : > { %972 = vst [vmem:[%s171_s27 + $0x20] sm:$0xf] %v971_v6 }
  0x18   : > { %974 = vst [vmem:[%s171_s27 + $0x2c] sm:$0xf] %v973_v7 }
  0x19 PF: > { %p975_p6 = scmp.ge.s32.totalorder %s1353_s16, 1  ;;  %p235_p7 = scmp.lt.s32.totalorder %s1353_s16, 7 }
  0x1b   : > { %p236_p8 = pnand %p975_p6, %p235_p7 }
  0x1c   : > { %s242_s28 = sand.u32 (!%p236_p8), 1, %s1337_s12   ;;  %s286_s29 = smul.u32 (!%p236_p8), 48, %s1345_s14 }
  0x1d   : > { %239 = sbr.rel (%p236_p8) target bundleno = 278 (0x116), region = 54  ;;  %p978_p10 = scmp.ne.s32.totalorder (!%p236_p8), %s1345_s14, 0 }
  0x1e   : > { %s1273_s30 = smul.u32 (!%p236_p8), 48, %s242_s28  ;;  %p288_p9 = scmp.lt.s32.totalorder (!%p236_p8), %s286_s29, 287 }
  0x20   : > { %s1428_s8 = scalar_lea.vmem (!%p236_p8), [#allocation3], %s1273_s30 }
  0x22   : > { %s1601_s29 = smov (!%p288_p9, %s286_s29), 287  ;;  %318 = sbr.rel (%p978_p10) target bundleno = 48 (0x30), region = 62 }
  0x23   : > { %s1201_s4 = sshll.u32 %s1601_s29, 3 }
  0x24   : > { %s1426_s7 = scalar_lea.vmem %s1591_s1, %s1201_s4 }
  0x27   : > { %v1355_v8 = vmov 0.0  }
  0x28   : > { %319 = vst [vmem:[#allocation2 + $0x30] sm:$0xff] %v1355_v8 }
  0x29   : > { %320 = vst [vmem:[#allocation2] sm:$0xff] %v1355_v8 }
  0x2a   : > { %321 = vst [vmem:[#allocation2 + $0x18] sm:$0xff] %v1355_v8 }
  0x2b   : > { %322 = vst [vmem:[#allocation2 + $0x10] sm:$0xff] %v1355_v8 }
  0x2c   : > { %323 = vst [vmem:[#allocation2 + $0x8] sm:$0xff] %v1355_v8 }
  0x2d   : > { %324 = vst [vmem:[#allocation2 + $0x20] sm:$0xff] %v1355_v8 }
  0x2e   : > { %325 = vst [vmem:[#allocation2 + $0x28] sm:$0xff] %v1355_v8 }
  0x2f   : > { %326 = vst [vmem:[#allocation2 + $0x38] sm:$0xff] %v1355_v8 }
  0x30 PF: > { %v1061_v9 = vld [vmem:[%s1426_s7 + $0x70] sm:$0xf]  ;;  %v1223_v10 = vld [vmem:[%s1426_s7 + $0x74] sm:$0xf0]  ;;  %v1222_v18 = vld [vmem:[%s1426_s7 + $0x74] sm:$0xf] }
  0x31   : > { %v1125_v11 = vld [vmem:[%s1426_s7 + $0xf0] sm:$0xf]  ;;  %v1062_v12 = vor.u32 %v1223_v10, %v1061_v9  ;;  %v1239_v13 = vld [vmem:[%s1426_s7 + $0xf4] sm:$0xf0]  ;;  %v1063_v19 = vld [vmem:[%s1426_s7 + $0x78] sm:$0xf0] }
  0x32   : > { %v1189_v14 = vld [vmem:[%s1426_s7 + $0x170] sm:$0xf]  ;;  %v1255_v15 = vld [vmem:[%s1426_s7 + $0x174] sm:$0xf0]  ;;  %v1126_v16 = vor.u32 %v1239_v13, %v1125_v11  ;;  %v1053_v20 = vld [vmem:[%s1426_s7 + $0x60] sm:$0xf]  ;;  %v1066_v21 = vor.u32 %v1222_v18, %v1063_v19 }
  0x33   : > { %v1190_v17 = vor.u32 %v1255_v15, %v1189_v14  ;;  %663 = vmatpush.bf16.msra.mxu0 %v1062_v12  ;;  %v1221_v22 = vld [vmem:[%s1426_s7 + $0x64] sm:$0xf0]  ;;  %v1117_v23 = vld [vmem:[%s1426_s7 + $0xe0] sm:$0xf]  ;;  %v1220_v29 = vld [vmem:[%s1426_s7 + $0x64] sm:$0xf] }
  0x34   : > { %v1237_v24 = vld [vmem:[%s1426_s7 + $0xe4] sm:$0xf0]  ;;  %682 = vmatpush.bf16.msra.mxu1 %v1126_v16  ;;  %v1054_v25 = vor.u32 %v1221_v22, %v1053_v20  ;;  %v1181_v27 = vld [vmem:[%s1426_s7 + $0x160] sm:$0xf]  ;;  %720 = vmatpush.bf16.msra.mxu3 %v1066_v21  ;;  %v1055_v31 = vld [vmem:[%s1426_s7 + $0x68] sm:$0xf0] }
  0x35   : > { %701 = vmatpush.bf16.msra.mxu2 %v1190_v17  ;;  %v1118_v26 = vor.u32 %v1237_v24, %v1117_v23  ;;  %v1253_v28 = vld [vmem:[%s1426_s7 + $0x164] sm:$0xf0]  ;;  %v1045_v32 = vld [vmem:[%s1426_s7 + $0x50] sm:$0xf]  ;;  %v1219_v33 = vld [vmem:[%s1426_s7 + $0x54] sm:$0xf0]  ;;  %v1058_v34 = vor.u32 %v1220_v29, %v1055_v31 }
  0x36   : > { %v1182_v30 = vor.u32 %v1253_v28, %v1181_v27  ;;  %v1109_v35 = vld [vmem:[%s1426_s7 + $0xd0] sm:$0xf]  ;;  %v1235_v36 = vld [vmem:[%s1426_s7 + $0xd4] sm:$0xf0]  ;;  %v1046_v38 = vor.u32 %v1219_v33, %v1045_v32  ;;  %v1218_v40 = vld [vmem:[%s1426_s7 + $0x54] sm:$0xf] }
  0x37   : > { %v1173_v37 = vld [vmem:[%s1426_s7 + $0x150] sm:$0xf]  ;;  %664 = vmatpush.bf16.msra.mxu0 %v1054_v25  ;;  %v1251_v39 = vld [vmem:[%s1426_s7 + $0x154] sm:$0xf0]  ;;  %v1047_v41 = vld [vmem:[%s1426_s7 + $0x58] sm:$0xf0]  ;;  %v1110_v42 = vor.u32 %v1235_v36, %v1109_v35 }
  0x38   : > { %683 = vmatpush.bf16.msra.mxu1 %v1118_v26  ;;  %v1174_v43 = vor.u32 %v1251_v39, %v1173_v37  ;;  %v1037_v44 = vld [vmem:[%s1426_s7 + $0x40] sm:$0xf]  ;;  %v1217_v45 = vld [vmem:[%s1426_s7 + $0x44] sm:$0xf0]  ;;  %721 = vmatpush.bf16.msra.mxu3 %v1058_v34  ;;  %v1050_v47 = vor.u32 %v1218_v40, %v1047_v41  ;;  %v1216_v51 = vld [vmem:[%s1426_s7 + $0x44] sm:$0xf] }
  0x39   : > { %702 = vmatpush.bf16.msra.mxu2 %v1182_v30  ;;  %v1101_v46 = vld [vmem:[%s1426_s7 + $0xc0] sm:$0xf]  ;;  %v1233_v48 = vld [vmem:[%s1426_s7 + $0xc4] sm:$0xf0]  ;;  %v1039_v52 = vld [vmem:[%s1426_s7 + $0x48] sm:$0xf0]  ;;  %v1038_v53 = vor.u32 %v1217_v45, %v1037_v44 }
  0x3a   : > { %v1165_v49 = vld [vmem:[%s1426_s7 + $0x140] sm:$0xf]  ;;  %v1249_v50 = vld [vmem:[%s1426_s7 + $0x144] sm:$0xf0]  ;;  %v1102_v54 = vor.u32 %v1233_v48, %v1101_v46  ;;  %v1029_v56 = vld [vmem:[%s1426_s7 + $0x30] sm:$0xf]  ;;  %v1042_v59 = vor.u32 %v1216_v51, %v1039_v52 }
  0x3b   : > { %665 = vmatpush.bf16.msra.mxu0 %v1046_v38  ;;  %v1166_v55 = vor.u32 %v1249_v50, %v1165_v49  ;;  %v1215_v57 = vld [vmem:[%s1426_s7 + $0x34] sm:$0xf0]  ;;  %v1093_v58 = vld [vmem:[%s1426_s7 + $0xb0] sm:$0xf]  ;;  %v1214_v63 = vld [vmem:[%s1426_s7 + $0x34] sm:$0xf] }
  0x3c   : > { %684 = vmatpush.bf16.msra.mxu1 %v1110_v42  ;;  %722 = vmatpush.bf16.msra.mxu3 %v1050_v47  ;;  %v1231_v60 = vld [vmem:[%s1426_s7 + $0xb4] sm:$0xf0]  ;;  %v1157_v61 = vld [vmem:[%s1426_s7 + $0x130] sm:$0xf]  ;;  %v1031_v0 = vld [vmem:[%s1426_s7 + $0x38] sm:$0xf0]  ;;  %v1030_v1 = vor.u32 %v1215_v57, %v1029_v56 }
  0x3d   : > { %703 = vmatpush.bf16.msra.mxu2 %v1174_v43  ;;  %v1247_v62 = vld [vmem:[%s1426_s7 + $0x134] sm:$0xf0]  ;;  %v1094_v2 = vor.u32 %v1231_v60, %v1093_v58  ;;  %v1021_v4 = vld [vmem:[%s1426_s7 + $0x20] sm:$0xf]  ;;  %v1213_v5 = vld [vmem:[%s1426_s7 + $0x24] sm:$0xf0]  ;;  %v1034_v7 = vor.u32 %v1214_v63, %v1031_v0 }
  0x3e   : > { %v1158_v3 = vor.u32 %v1247_v62, %v1157_v61  ;;  %v1085_v6 = vld [vmem:[%s1426_s7 + $0xa0] sm:$0xf]  ;;  %v1229_v8 = vld [vmem:[%s1426_s7 + $0xa4] sm:$0xf0]  ;;  %v1212_v11 = vld [vmem:[%s1426_s7 + $0x24] sm:$0xf]  ;;  %v1022_v13 = vor.u32 %v1213_v5, %v1021_v4 }
  0x3f   : > { %666 = vmatpush.bf16.msra.mxu0 %v1038_v53  ;;  %v1149_v9 = vld [vmem:[%s1426_s7 + $0x120] sm:$0xf]  ;;  %v1245_v10 = vld [vmem:[%s1426_s7 + $0x124] sm:$0xf0]  ;;  %v1023_v12 = vld [vmem:[%s1426_s7 + $0x28] sm:$0xf0]  ;;  %v1086_v14 = vor.u32 %v1229_v8, %v1085_v6 }
  0x40   : > { %685 = vmatpush.bf16.msra.mxu1 %v1102_v54  ;;  %723 = vmatpush.bf16.msra.mxu3 %v1042_v59  ;;  %v1150_v15 = vor.u32 %v1245_v10, %v1149_v9  ;;  %v1013_v16 = vld [vmem:[%s1426_s7 + $0x10] sm:$0xf]  ;;  %v1211_v17 = vld [vmem:[%s1426_s7 + $0x14] sm:$0xf0]  ;;  %v1026_v19 = vor.u32 %v1212_v11, %v1023_v12  ;;  %v1210_v23 = vld [vmem:[%s1426_s7 + $0x14] sm:$0xf] }
  0x41   : > { %704 = vmatpush.bf16.msra.mxu2 %v1166_v55  ;;  %v1077_v18 = vld [vmem:[%s1426_s7 + $0x90] sm:$0xf]  ;;  %v1227_v20 = vld [vmem:[%s1426_s7 + $0x94] sm:$0xf0]  ;;  %v1015_v24 = vld [vmem:[%s1426_s7 + $0x18] sm:$0xf0]  ;;  %v1014_v25 = vor.u32 %v1211_v17, %v1013_v16 }
  0x42   : > { %v1141_v21 = vld [vmem:[%s1426_s7 + $0x110] sm:$0xf]  ;;  %v1243_v22 = vld [vmem:[%s1426_s7 + $0x114] sm:$0xf0]  ;;  %v1005_v26 = vld [vmem:[%s1426_s7] sm:$0xf]  ;;  %v1078_v29 = vor.u32 %v1227_v20, %v1077_v18  ;;  %v1018_v34 = vor.u32 %v1210_v23, %v1015_v24 }
  0x43   : > { %667 = vmatpush.bf16.msra.mxu0 %v1030_v1  ;;  %v1209_v27 = vld [vmem:[%s1426_s7 + $0x4] sm:$0xf0]  ;;  %v1069_v28 = vld [vmem:[%s1426_s7 + $0x80] sm:$0xf]  ;;  %v1142_v30 = vor.u32 %v1243_v22, %v1141_v21  ;;  %v1208_v35 = vld [vmem:[%s1426_s7 + $0x4] sm:$0xf] }
  0x44   : > { %686 = vmatpush.bf16.msra.mxu1 %v1094_v2  ;;  %724 = vmatpush.bf16.msra.mxu3 %v1034_v7  ;;  %v1225_v31 = vld [vmem:[%s1426_s7 + $0x84] sm:$0xf0]  ;;  %v1133_v32 = vld [vmem:[%s1426_s7 + $0x100] sm:$0xf]  ;;  %v1007_v36 = vld [vmem:[%s1426_s7 + $0x8] sm:$0xf0]  ;;  %v1006_v41 = vor.u32 %v1209_v27, %v1005_v26 }
  0x45   : > { %705 = vmatpush.bf16.msra.mxu2 %v1158_v3  ;;  %v1241_v33 = vld [vmem:[%s1426_s7 + $0x104] sm:$0xf0]  ;;  %v981_v37 = vld [vmem:[%s1428_s8] sm:$0xf]  ;;  %v1203_v38 = vld [vmem:[%s1428_s8 + $0x8] sm:$0xf0]  ;;  %v1070_v45 = vor.u32 %v1225_v31, %v1069_v28  ;;  %v1010_v50 = vor.u32 %v1208_v35, %v1007_v36 }
  0x46   : > { %v1238_v39 = vld [vmem:[%s1426_s7 + $0xf4] sm:$0xf]  ;;  %v1127_v40 = vld [vmem:[%s1426_s7 + $0xf8] sm:$0xf0]  ;;  %v1134_v46 = vor.u32 %v1241_v33, %v1133_v32  ;;  %v983_v47 = vld [vmem:[%s1428_s8 + $0xc] sm:$0xf0]  ;;  %v982_v52 = vor.u32 %v1203_v38, %v981_v37 }
  0x47   : > { %668 = vmatpush.bf16.msra.mxu0 %v1022_v13  ;;  %v1202_v42 = vld [vmem:[%s1428_s8 + $0x4] sm:$0xf]  ;;  %v1191_v44 = vld [vmem:[%s1426_s7 + $0x178] sm:$0xf0]  ;;  %v989_v48 = vld [vmem:[%s1428_s8 + $0x8] sm:$0xf]  ;;  %v1130_v51 = vor.u32 %v1238_v39, %v1127_v40 }
  0x48   : > { %687 = vmatpush.bf16.msra.mxu1 %v1086_v14  ;;  %725 = vmatpush.bf16.msra.mxu3 %v1026_v19  ;;  %v1254_v43 = vld [vmem:[%s1426_s7 + $0x174] sm:$0xf]  ;;  %v1236_v54 = vld [vmem:[%s1426_s7 + $0xe4] sm:$0xf]  ;;  %v1119_v55 = vld [vmem:[%s1426_s7 + $0xe8] sm:$0xf0]  ;;  %v1507_v56 = vor.u32 %v1202_v42, %v983_v47 }
  0x49   : > { %706 = vmatpush.bf16.msra.mxu2 %v1150_v15  ;;  %v1204_v49 = vld [vmem:[%s1428_s8 + $0x10] sm:$0xf0]  ;;  %v1194_v53 = vor.u32 %v1254_v43, %v1191_v44  ;;  %v1183_v59 = vld [vmem:[%s1426_s7 + $0x168] sm:$0xf0]  ;;  %v1122_v60 = vor.u32 %v1236_v54, %v1119_v55  ;;  %v1111_v63 = vld [vmem:[%s1426_s7 + $0xd8] sm:$0xf0] }
  0x4a   : > { %v1509_v57 = vor.u32 %v1204_v49, %v989_v48  ;;  %v1252_v58 = vld [vmem:[%s1426_s7 + $0x164] sm:$0xf]  ;;  %v1234_v62 = vld [vmem:[%s1426_s7 + $0xd4] sm:$0xf]  ;;  %v1175_v1 = vld [vmem:[%s1426_s7 + $0x158] sm:$0xf0] }
  0x4b   : > { %669 = vmatpush.bf16.msra.mxu0 %v1014_v25  ;;  %v1186_v61 = vor.u32 %v1252_v58, %v1183_v59  ;;  %v1250_v0 = vld [vmem:[%s1426_s7 + $0x154] sm:$0xf]  ;;  %v1114_v2 = vor.u32 %v1234_v62, %v1111_v63  ;;  %v1232_v4 = vld [vmem:[%s1426_s7 + $0xc4] sm:$0xf]  ;;  %v1103_v5 = vld [vmem:[%s1426_s7 + $0xc8] sm:$0xf0] }
  0x4c   : > { %688 = vmatpush.bf16.msra.mxu1 %v1078_v29  ;;  %726 = vmatpush.bf16.msra.mxu3 %v1018_v34  ;;  %v1178_v3 = vor.u32 %v1250_v0, %v1175_v1  ;;  %v1248_v6 = vld [vmem:[%s1426_s7 + $0x144] sm:$0xf]  ;;  %v1167_v7 = vld [vmem:[%s1426_s7 + $0x148] sm:$0xf0]  ;;  %v1106_v8 = vor.u32 %v1232_v4, %v1103_v5  ;;  %v993_v9 = vld [vmem:[%s1428_s8 + $0x18] sm:$0xf] }
  0x4d   : > { %707 = vmatpush.bf16.msra.mxu2 %v1142_v30  ;;  %v1170_v10 = vor.u32 %v1248_v6, %v1167_v7  ;;  %v1206_v11 = vld [vmem:[%s1428_s8 + $0x20] sm:$0xf0]  ;;  %v1095_v13 = vld [vmem:[%s1426_s7 + $0xb8] sm:$0xf0]  ;;  %v995_v17 = vld [vmem:[%s1428_s8 + $0x24] sm:$0xf0] }
  0x4e   : > { %v1230_v12 = vld [vmem:[%s1426_s7 + $0xb4] sm:$0xf]  ;;  %v1205_v14 = vld [vmem:[%s1428_s8 + $0x1c] sm:$0xf]  ;;  %v1001_v18 = vld [vmem:[%s1428_s8 + $0x20] sm:$0xf]  ;;  %v994_v21 = vor.u32 %v1206_v11, %v993_v9 }
  0x4f   : > { %670 = vmatpush.bf16.msra.mxu0 %v1006_v41  ;;  %v1246_v15 = vld [vmem:[%s1426_s7 + $0x134] sm:$0xf]  ;;  %v1159_v16 = vld [vmem:[%s1426_s7 + $0x138] sm:$0xf0]  ;;  %v1098_v20 = vor.u32 %v1230_v12, %v1095_v13  ;;  %v1228_v23 = vld [vmem:[%s1426_s7 + $0xa4] sm:$0xf]  ;;  %v998_v25 = vor.u32 %v1205_v14, %v995_v17 }
  0x50   : > { %689 = vmatpush.bf16.msra.mxu1 %v1070_v45  ;;  %727 = vmatpush.bf16.msra.mxu3 %v1010_v50  ;;  %v1207_v19 = vld [vmem:[%s1428_s8 + $0x28] sm:$0xf0]  ;;  %v1162_v22 = vor.u32 %v1246_v15, %v1159_v16  ;;  %v1244_v27 = vld [vmem:[%s1426_s7 + $0x124] sm:$0xf]  ;;  %v1226_v31 = vld [vmem:[%s1426_s7 + $0x94] sm:$0xf] }
  0x51   : > { %708 = vmatpush.bf16.msra.mxu2 %v1134_v46  ;;  %v1087_v24 = vld [vmem:[%s1426_s7 + $0xa8] sm:$0xf0]  ;;  %v1002_v26 = vor.u32 %v1207_v19, %v1001_v18  ;;  %v1079_v32 = vld [vmem:[%s1426_s7 + $0x98] sm:$0xf0]  ;;  %v1242_v33 = vld [vmem:[%s1426_s7 + $0x114] sm:$0xf] }
  0x52   : > { %671 = vmatmul.bf16.vlgmr.msra.gmra.mxu0 %v982_v52  ;;  %v1151_v28 = vld [vmem:[%s1426_s7 + $0x128] sm:$0xf0]  ;;  %v1090_v29 = vor.u32 %v1228_v23, %v1087_v24  ;;  %v1143_v34 = vld [vmem:[%s1426_s7 + $0x118] sm:$0xf0]  ;;  %v1082_v35 = vor.u32 %v1226_v31, %v1079_v32  ;;  %v1224_v37 = vld [vmem:[%s1426_s7 + $0x84] sm:$0xf] }
  0x53   : > { %690 = vmatmul.bf16.vlgmr.msra.gmra.mxu1 %v1507_v56  ;;  %728 = vmatmul.bf16.vlgmr.msra.gmra.mxu3 %v982_v52  ;;  %v1154_v30 = vor.u32 %v1244_v27, %v1151_v28  ;;  %v1146_v36 = vor.u32 %v1242_v33, %v1143_v34  ;;  %v1071_v38 = vld [vmem:[%s1426_s7 + $0x88] sm:$0xf0]  ;;  %v1240_v39 = vld [vmem:[%s1426_s7 + $0x104] sm:$0xf]  ;;  %v327_v46 = vld [vmem:[#allocation2 + $0x30] sm:$0xff]  ;;  %p1195_p11 = scmp.ne.s32.totalorder %s1345_s14, 5 }
  0x54   : > { %758 = vmatpush.bf16.msrb.mxu1 %v1194_v53  ;;  %709 = vmatmul.bf16.vlgmr.msra.gmra.mxu2 %v1509_v57  ;;  %v1135_v40 = vld [vmem:[%s1426_s7 + $0x108] sm:$0xf0]  ;;  %v1074_v41 = vor.u32 %v1224_v37, %v1071_v38  ;;  %v329_v54 = vld [vmem:[#allocation2 + $0x18] sm:$0xff]  ;;  %v328_v14 = vld [vmem:[#allocation2] sm:$0xff] }
  0x55   : > { %1256 = vmatpush.bf16.msrb.mxu2 %v1130_v51  ;;  %739 = vmatpush.bf16.msrb.mxu0 %v1130_v51  ;;  %v1138_v42 = vor.u32 %v1240_v39, %v1135_v40  ;;  %v331_v62 = vld [vmem:[#allocation2 + $0x8] sm:$0xff]  ;;  %v330_v24 = vld [vmem:[#allocation2 + $0x10] sm:$0xff]  ;;  %v334_v31 = vld [vmem:[#allocation2 + $0x38] sm:$0xff] }
  0x56   : > { %1264 = vmatpush.bf16.msrb.mxu3 %v1194_v53  ;;  %v333_v6 = vld [vmem:[#allocation2 + $0x28] sm:$0xff] }
  0x58   : > { %759 = vmatpush.bf16.msrb.mxu1 %v1186_v61 }
  0x59   : > { %1257 = vmatpush.bf16.msrb.mxu2 %v1122_v60  ;;  %740 = vmatpush.bf16.msrb.mxu0 %v1122_v60 }
  0x5a   : > { %1265 = vmatpush.bf16.msrb.mxu3 %v1186_v61 }
  0x5c   : > { %760 = vmatpush.bf16.msrb.mxu1 %v1178_v3 }
  0x5d   : > { %1258 = vmatpush.bf16.msrb.mxu2 %v1114_v2  ;;  %741 = vmatpush.bf16.msrb.mxu0 %v1114_v2 }
  0x5e   : > { %1266 = vmatpush.bf16.msrb.mxu3 %v1178_v3 }
  0x60   : > { %761 = vmatpush.bf16.msrb.mxu1 %v1170_v10 }
  0x61   : > { %1259 = vmatpush.bf16.msrb.mxu2 %v1106_v8  ;;  %742 = vmatpush.bf16.msrb.mxu0 %v1106_v8 }
  0x62   : > { %1267 = vmatpush.bf16.msrb.mxu3 %v1170_v10  ;;  %676 = vmatmul.bf16.gmra.mxu0 %v994_v21 }
  0x63   : > { %695 = vmatmul.bf16.gmra.mxu1 %v998_v25  ;;  %733 = vmatmul.bf16.gmra.mxu3 %v994_v21 }
  0x64   : > { %762 = vmatpush.bf16.msrb.mxu1 %v1162_v22  ;;  %714 = vmatmul.bf16.gmra.mxu2 %v1002_v26 }
  0x65   : > { %1260 = vmatpush.bf16.msrb.mxu2 %v1098_v20  ;;  %743 = vmatpush.bf16.msrb.mxu0 %v1098_v20  ;;  %v332_v20 = vld [vmem:[#allocation2 + $0x20] sm:$0xff] }
  0x66   : > { %1268 = vmatpush.bf16.msrb.mxu3 %v1162_v22 }
  0x68   : > { %763 = vmatpush.bf16.msrb.mxu1 %v1154_v30 }
  0x69   : > { %1261 = vmatpush.bf16.msrb.mxu2 %v1090_v29  ;;  %744 = vmatpush.bf16.msrb.mxu0 %v1090_v29 }
  0x6a   : > { %1269 = vmatpush.bf16.msrb.mxu3 %v1154_v30 }
  0x6c   : > { %764 = vmatpush.bf16.msrb.mxu1 %v1146_v36 }
  0x6d   : > { %1262 = vmatpush.bf16.msrb.mxu2 %v1082_v35  ;;  %745 = vmatpush.bf16.msrb.mxu0 %v1082_v35 }
  0x6e   : > { %1270 = vmatpush.bf16.msrb.mxu3 %v1146_v36 }
  0x70   : > { %765 = vmatpush.bf16.msrb.mxu1 %v1138_v42 }
  0x71   : > { %1263 = vmatpush.bf16.msrb.mxu2 %v1074_v41  ;;  %746 = vmatpush.bf16.msrb.mxu0 %v1074_v41 }
  0x72   : > { %1271 = vmatpush.bf16.msrb.mxu3 %v1138_v42 }
  0x73   : > { %766 = vmatmul.bf16.vlgmr.msrb.gmra.mxu1 %v1509_v57 }
  0x74   : > { %747 = vmatmul.bf16.vlgmr.msrb.gmra.mxu0 %v1507_v56  ;;  %752 = vmatmul.bf16.vlgmr.msrb.gmra.mxu2 %v998_v25 }
  0x75   : > { %771 = vmatmul.bf16.vlgmr.msrb.gmra.mxu3 %v1002_v26 }
  0xcf   : > { %v672_v43 = vpop.f32.mrf.mxu0 }
  0xd0   : > { %v691_v44 = vpop.f32.mrf.mxu1 }
  0xd1   : > { %v692_v45 = vadd.f32 %v691_v44, %v672_v43 }
  0xd6   : > { %v729_v49 = vpop.f32.mrf.mxu3 }
  0xd7   : > { %v710_v47 = vpop.f32.mrf.mxu2  ;;  %v674_v50 = vpop.f32.mrf.mxu0 }
  0xd8   : > { %v711_v48 = vadd.f32 %v710_v47, %v692_v45  ;;  %v693_v51 = vpop.f32.mrf.mxu1 }
  0xd9   : > { %v694_v53 = vadd.f32 %v693_v51, %v674_v50 }
  0xda   : > { %v777_v52 = vadd.f32 %v711_v48, %v327_v46 }
  0xdc   : > { %785 = vst [vmem:[#allocation2 + $0x30] sm:$0xff] %v777_v52 }
  0xde   : > { %v731_v56 = vpop.f32.mrf.mxu3 }
  0xdf   : > { %v712_v55 = vpop.f32.mrf.mxu2  ;;  %v677_v59 = vpop.f32.mrf.mxu0 }
  0xe0   : > { %v713_v58 = vadd.f32 %v712_v55, %v694_v53  ;;  %v696_v60 = vpop.f32.mrf.mxu1 }
  0xe1   : > { %v697_v61 = vadd.f32 %v696_v60, %v677_v59 }
  0xe2   : > { %v779_v57 = vadd.f32 %v713_v58, %v329_v54 }
  0xe4   : > { %787 = vst [vmem:[#allocation2 + $0x18] sm:$0xff] %v779_v57 }
  0xe6   : > { %v734_v1 = vpop.f32.mrf.mxu3 }
  0xe7   : > { %v715_v63 = vpop.f32.mrf.mxu2  ;;  %v679_v2 = vpop.f32.mrf.mxu0 }
  0xe8   : > { %v716_v0 = vadd.f32 %v715_v63, %v697_v61  ;;  %v698_v3 = vpop.f32.mrf.mxu1 }
  0xe9   : > { %v699_v5 = vadd.f32 %v698_v3, %v679_v2 }
  0xea   : > { %v781_v4 = vadd.f32 %v716_v0, %v331_v62 }
  0xec   : > { %789 = vst [vmem:[#allocation2 + $0x8] sm:$0xff] %v781_v4 }
  0xee   : > { %v736_v9 = vpop.f32.mrf.mxu3 }
  0xef   : > { %v717_v7 = vpop.f32.mrf.mxu2 }
  0xf0   : > { %v718_v8 = vadd.f32 %v717_v7, %v699_v5  ;;  %v767_v13 = vpop.f32.mrf.mxu1 }
  0xf1   : > { %v748_v10 = vpop.f32.mrf.mxu0 }
  0xf2   : > { %v783_v11 = vadd.f32 %v718_v8, %v333_v6  ;;  %v749_v12 = vadd.f32 %v748_v10, %v729_v49 }
  0xf4   : > { %791 = vst [vmem:[#allocation2 + $0x28] sm:$0xff] %v783_v11  ;;  %v768_v15 = vadd.f32 %v767_v13, %v749_v12 }
  0xf6   : > { %v778_v16 = vadd.f32 %v768_v15, %v328_v14 }
  0xf7   : > { %v753_v17 = vpop.f32.mrf.mxu2 }
  0xf8   : > { %786 = vst [vmem:[#allocation2] sm:$0xff] %v778_v16  ;;  %v754_v18 = vadd.f32 %v753_v17, %v734_v1  ;;  %v772_v19 = vpop.f32.mrf.mxu3  ;;  %v769_v25 = vpop.f32.mrf.mxu1 }
  0xf9   : > { %v750_v21 = vpop.f32.mrf.mxu0 }
  0xfa   : > { %v773_v22 = vadd.f32 %v772_v19, %v754_v18  ;;  %v751_v23 = vadd.f32 %v750_v21, %v731_v56 }
  0xfc   : > { %v782_v26 = vadd.f32 %v773_v22, %v332_v20  ;;  %v770_v27 = vadd.f32 %v769_v25, %v751_v23 }
  0xfe   : > { %790 = vst [vmem:[#allocation2 + $0x20] sm:$0xff] %v782_v26  ;;  %v780_v28 = vadd.f32 %v770_v27, %v330_v24 }
  0xff   : > { %v755_v29 = vpop.f32.mrf.mxu2 }
 0x100   : > { %788 = vst [vmem:[#allocation2 + $0x10] sm:$0xff] %v780_v28  ;;  %v756_v30 = vadd.f32 %v755_v29, %v736_v9  ;;  %v774_v32 = vpop.f32.mrf.mxu3 }
 0x102   : > { %v775_v33 = vadd.f32 %v774_v32, %v756_v30  ;;  %796 = sbr.rel (%p1195_p11) target bundleno = 278 (0x116), region = 66 }
 0x104   : > { %v784_v34 = vadd.f32 %v775_v33, %v334_v31 }
 0x106   : > { %792 = vst [vmem:[#allocation2 + $0x38] sm:$0xff] %v784_v34 }
 0x107   : > { %v797_v35 = vld [vmem:[#allocation2 + $0x30] sm:$0xff]  ;;  %v805_v36 = vld [vmem:[%s1592_s2] sm:$0x3]  ;;  %v799_v40 = vld [vmem:[#allocation2 + $0x18] sm:$0xff] }
 0x108   : > { %v798_v37 = vld [vmem:[#allocation2] sm:$0xff]  ;;  %v807_v38 = vperm.slane %v805_v36, 0  ;;  %v808_v39 = vperm.slane %v805_v36, 1  ;;  %v800_v41 = vld [vmem:[#allocation2 + $0x10] sm:$0xff]  ;;  %v801_v42 = vld [vmem:[#allocation2 + $0x8] sm:$0xff] }
 0x109   : > { %v802_v43 = vld [vmem:[#allocation2 + $0x20] sm:$0xff]  ;;  %v803_v44 = vld [vmem:[#allocation2 + $0x28] sm:$0xff] }
 0x10a   : > { %v811_v45 = vadd.f32 %v807_v38, %v797_v35  ;;  %v812_v46 = vadd.f32 %v808_v39, %v798_v37  ;;  %v813_v47 = vadd.f32 %v807_v38, %v799_v40  ;;  %v814_v48 = vadd.f32 %v808_v39, %v800_v41 }
 0x10b   : > { %v815_v50 = vadd.f32 %v807_v38, %v801_v42  ;;  %v816_v51 = vadd.f32 %v808_v39, %v802_v43  ;;  %v817_v55 = vadd.f32 %v807_v38, %v803_v44 }
 0x10c   : > { %v819_v52 = vmax.f32 %v811_v45, 0.0  ;;  %v820_v53 = vmax.f32 %v812_v46, 0.0  ;;  %v821_v54 = vmax.f32 %v813_v47, 0.0  ;;  %v822_v58 = vmax.f32 %v814_v48, 0.0 }
 0x10d   : > { %v804_v49 = vld [vmem:[#allocation2 + $0x38] sm:$0xff]  ;;  %v823_v59 = vmax.f32 %v815_v50, 0.0  ;;  %v824_v60 = vmax.f32 %v816_v51, 0.0  ;;  %v825_v57 = vmax.f32 %v817_v55, 0.0 }
 0x10e   : > { %v818_v56 = vadd.f32 %v808_v39, %v804_v49  ;;  %827 = vst [vmem:[%s1593_s3] sm:$0xff] %v819_v52 }
 0x10f   : > { %828 = vst [vmem:[%s1593_s3 + $0x8] sm:$0xff] %v820_v53 }
 0x110   : > { %829 = vst [vmem:[%s1593_s3 + $0x10] sm:$0xff] %v821_v54  ;;  %v826_v61 = vmax.f32 %v818_v56, 0.0 }
 0x111   : > { %830 = vst [vmem:[%s1593_s3 + $0x18] sm:$0xff] %v822_v58 }
 0x112   : > { %831 = vst [vmem:[%s1593_s3 + $0x20] sm:$0xff] %v823_v59 }
 0x113   : > { %832 = vst [vmem:[%s1593_s3 + $0x28] sm:$0xff] %v824_v60 }
 0x114   : > { %833 = vst [vmem:[%s1593_s3 + $0x30] sm:$0xff] %v825_v57 }
 0x115   : > { %834 = vst [vmem:[%s1593_s3 + $0x38] sm:$0xff] %v826_v61 }
 0x116 PF: > { %s13_s16 = sadd.s32 1, %s1353_s16   ;;  %s1594_s12 = smov %s1341_s13 }
 0x117   : > { %p10_p12 = scmp.ge.s32.totalorder %s13_s16, 8   ;;  %s1595_s13 = smov %s1411_s20 }
 0x118   : > { %s1596_s14 = smov %s1349_s15  ;;  %s1597_s15 = smov %s1599_s17 }
 0x119   :  { %12 = sbr.rel (!%p10_p12) target bundleno = 3 (0x3), region = 113 }

// kernel: dualnet_forward.84
= control target key start
LH: loop header
LB: loop body
LE: loop exit
PB: predicated region body
PF: predicated region fallthrough
CT: control target
= control target key end

     0   :  { %s1368_s12 = smov 0   ;;  %s1370_s13 = smov 0   ;;  %s1582_s0 = inlined_call_operand.vmem [shape: bf16[32,2304], index: 0, kind: input, shape index: {}]   ;;  %s1583_s1 = inlined_call_operand.vmem [shape: bf16[2304,256], index: 1, kind: input, shape index: {}]   ;;  %s1584_s2 = inlined_call_operand.vmem [shape: f32[1,256], index: 2, kind: input, shape index: {}]   ;;  %s1585_s3 = inlined_call_operand.vmem [shape: f32[32,256], index: 3, kind: output, shape index: {}]  }
   0x1   :  { %s1372_s14 = smov 0   ;;  %s1374_s15 = smov 0  }
   0x2   :  { %s1376_s16 = smov 0  }
   0x3 LB: > { %s25_s17 = sadd.s32 1, %s1341_s15  ;;  %p48_p1 = scmp.ne.s32.totalorder %s1333_s13, %s1329_s12  ;;  %s1345_s16 = sphi %s1376_s16, %s13_s16   ;;  %s1341_s15 = sphi %s1374_s15, %s1589_s15   ;;  %s1337_s14 = sphi %s1372_s14, %s1588_s14   ;;  %s1333_s13 = sphi %s1370_s13, %s1587_s13   ;;  %s1329_s12 = sphi %s1368_s12, %s1586_s12  }
   0x4   : > { %p26_p0 = scmp.ge.s32.totalorder %s25_s17, 6  ;;  %p49_p2 = scmp.eq.s32.totalorder %s1345_s16, 0 }
   0x5   : > { %s41_s19 = sadd.s32 1, %s1333_s13  ;;  %p957_p5 = scmp.ge.s32.totalorder %s1345_s16, 6 }
   0x6   : > { %s1591_s17 = smov (%p26_p0, %s25_s17), 0  ;;  %p50_p3 = por %p49_p2, %p48_p1 }
   0x7   : > { %s37_s18 = ssub.s32 %s1341_s15, %s1591_s17  ;;  %164 = sbr.rel (%p957_p5) target bundleno = 25 (0x19), region = 20 }
   0x8   : > { %p39_p4 = scmp.eq.s32.totalorder %s37_s18, 0 }
   0xa   : > { %s1403_s20 = scalar_select %p39_p4, %s1333_s13, %s41_s19  }
   0xc   : > { %167 = sbr.rel (!%p50_p3) target bundleno = 25 (0x19), region = 24  ;;  %s169_s21 = sand.u32 (%p50_p3), 1, %s1333_s13  }
   0xd   : > { %s1192_s22 = smul.u32 (%p50_p3), 12, %s1341_s15 }
   0xe   : > { %s1264_s23 = smul.u32 (%p50_p3), 48, %s169_s21 }
   0xf   : > { %s177_s26 = scalar_lea.vmem (%p50_p3), %s1582_s0, %s1192_s22 }
  0x10   : > { %v192_v0 = vld [vmem:[%s177_s26] sm:$0xff] (%p50_p3)  ;;  %v194_v1 = vld [vmem:[%s177_s26 + $0x48] sm:$0xff] (%p50_p3)  ;;  %v196_v2 = vld [vmem:[%s177_s26 + $0x90] sm:$0xff] (%p50_p3)  ;;  %s171_s27 = scalar_lea.vmem (%p50_p3), [#allocation3], %s1264_s23 }
  0x11   : > { %193 = vst [vmem:[%s171_s27] sm:$0xff] %v192_v0  ;;  %v198_v3 = vld [vmem:[%s177_s26 + $0xd8] sm:$0xff]  ;;  %v959_v4 = vld [vmem:[%s177_s26 + $0x8] sm:$0xf]  ;;  %v961_v5 = vld [vmem:[%s177_s26 + $0x50] sm:$0xf] }
  0x12   : > { %195 = vst [vmem:[%s171_s27 + $0xc] sm:$0xff] %v194_v1  ;;  %v963_v6 = vld [vmem:[%s177_s26 + $0x98] sm:$0xf]  ;;  %v965_v7 = vld [vmem:[%s177_s26 + $0xe0] sm:$0xf] }
  0x13   : > { %197 = vst [vmem:[%s171_s27 + $0x18] sm:$0xff] %v196_v2 }
  0x14   : > { %199 = vst [vmem:[%s171_s27 + $0x24] sm:$0xff] %v198_v3 }
  0x15   : > { %960 = vst [vmem:[%s171_s27 + $0x8] sm:$0xf] %v959_v4 }
  0x16   : > { %962 = vst [vmem:[%s171_s27 + $0x14] sm:$0xf] %v961_v5 }
  0x17   : > { %964 = vst [vmem:[%s171_s27 + $0x20] sm:$0xf] %v963_v6 }
  0x18   : > { %966 = vst [vmem:[%s171_s27 + $0x2c] sm:$0xf] %v965_v7 }
  0x19 PF: > { %p967_p6 = scmp.ge.s32.totalorder %s1345_s16, 1  ;;  %p235_p7 = scmp.lt.s32.totalorder %s1345_s16, 7 }
  0x1b   : > { %p236_p8 = pnand %p967_p6, %p235_p7 }
  0x1c   : > { %s242_s28 = sand.u32 (!%p236_p8), 1, %s1329_s12   ;;  %s286_s29 = smul.u32 (!%p236_p8), 48, %s1337_s14 }
  0x1d   : > { %239 = sbr.rel (%p236_p8) target bundleno = 276 (0x114), region = 54  ;;  %p970_p10 = scmp.ne.s32.totalorder (!%p236_p8), %s1337_s14, 0 }
  0x1e   : > { %s1265_s30 = smul.u32 (!%p236_p8), 48, %s242_s28  ;;  %p288_p9 = scmp.lt.s32.totalorder (!%p236_p8), %s286_s29, 287 }
  0x20   : > { %s1420_s8 = scalar_lea.vmem (!%p236_p8), [#allocation3], %s1265_s30 }
  0x22   : > { %s1593_s29 = smov (!%p288_p9, %s286_s29), 287  ;;  %318 = sbr.rel (%p970_p10) target bundleno = 48 (0x30), region = 62 }
  0x23   : > { %s1193_s4 = sshll.u32 %s1593_s29, 3 }
  0x24   : > { %s1418_s7 = scalar_lea.vmem %s1583_s1, %s1193_s4 }
  0x27   : > { %v1347_v8 = vmov 0.0  }
  0x28   : > { %319 = vst [vmem:[#allocation2 + $0x30] sm:$0xff] %v1347_v8 }
  0x29   : > { %320 = vst [vmem:[#allocation2] sm:$0xff] %v1347_v8 }
  0x2a   : > { %321 = vst [vmem:[#allocation2 + $0x18] sm:$0xff] %v1347_v8 }
  0x2b   : > { %322 = vst [vmem:[#allocation2 + $0x10] sm:$0xff] %v1347_v8 }
  0x2c   : > { %323 = vst [vmem:[#allocation2 + $0x8] sm:$0xff] %v1347_v8 }
  0x2d   : > { %324 = vst [vmem:[#allocation2 + $0x20] sm:$0xff] %v1347_v8 }
  0x2e   : > { %325 = vst [vmem:[#allocation2 + $0x28] sm:$0xff] %v1347_v8 }
  0x2f   : > { %326 = vst [vmem:[#allocation2 + $0x38] sm:$0xff] %v1347_v8 }
  0x30 PF: > { %v1053_v9 = vld [vmem:[%s1418_s7 + $0x70] sm:$0xf]  ;;  %v1215_v10 = vld [vmem:[%s1418_s7 + $0x74] sm:$0xf0]  ;;  %v1214_v18 = vld [vmem:[%s1418_s7 + $0x74] sm:$0xf] }
  0x31   : > { %v1117_v11 = vld [vmem:[%s1418_s7 + $0xf0] sm:$0xf]  ;;  %v1054_v12 = vor.u32 %v1215_v10, %v1053_v9  ;;  %v1231_v13 = vld [vmem:[%s1418_s7 + $0xf4] sm:$0xf0]  ;;  %v1055_v19 = vld [vmem:[%s1418_s7 + $0x78] sm:$0xf0] }
  0x32   : > { %v1181_v14 = vld [vmem:[%s1418_s7 + $0x170] sm:$0xf]  ;;  %v1247_v15 = vld [vmem:[%s1418_s7 + $0x174] sm:$0xf0]  ;;  %v1118_v16 = vor.u32 %v1231_v13, %v1117_v11  ;;  %v1045_v20 = vld [vmem:[%s1418_s7 + $0x60] sm:$0xf]  ;;  %v1058_v21 = vor.u32 %v1214_v18, %v1055_v19 }
  0x33   : > { %v1182_v17 = vor.u32 %v1247_v15, %v1181_v14  ;;  %663 = vmatpush.bf16.msra.mxu0 %v1054_v12  ;;  %v1213_v22 = vld [vmem:[%s1418_s7 + $0x64] sm:$0xf0]  ;;  %v1109_v23 = vld [vmem:[%s1418_s7 + $0xe0] sm:$0xf]  ;;  %v1212_v29 = vld [vmem:[%s1418_s7 + $0x64] sm:$0xf] }
  0x34   : > { %v1229_v24 = vld [vmem:[%s1418_s7 + $0xe4] sm:$0xf0]  ;;  %682 = vmatpush.bf16.msra.mxu1 %v1118_v16  ;;  %v1046_v25 = vor.u32 %v1213_v22, %v1045_v20  ;;  %v1173_v27 = vld [vmem:[%s1418_s7 + $0x160] sm:$0xf]  ;;  %720 = vmatpush.bf16.msra.mxu3 %v1058_v21  ;;  %v1047_v31 = vld [vmem:[%s1418_s7 + $0x68] sm:$0xf0] }
  0x35   : > { %701 = vmatpush.bf16.msra.mxu2 %v1182_v17  ;;  %v1110_v26 = vor.u32 %v1229_v24, %v1109_v23  ;;  %v1245_v28 = vld [vmem:[%s1418_s7 + $0x164] sm:$0xf0]  ;;  %v1037_v32 = vld [vmem:[%s1418_s7 + $0x50] sm:$0xf]  ;;  %v1211_v33 = vld [vmem:[%s1418_s7 + $0x54] sm:$0xf0]  ;;  %v1050_v34 = vor.u32 %v1212_v29, %v1047_v31 }
  0x36   : > { %v1174_v30 = vor.u32 %v1245_v28, %v1173_v27  ;;  %v1101_v35 = vld [vmem:[%s1418_s7 + $0xd0] sm:$0xf]  ;;  %v1227_v36 = vld [vmem:[%s1418_s7 + $0xd4] sm:$0xf0]  ;;  %v1038_v38 = vor.u32 %v1211_v33, %v1037_v32  ;;  %v1210_v40 = vld [vmem:[%s1418_s7 + $0x54] sm:$0xf] }
  0x37   : > { %v1165_v37 = vld [vmem:[%s1418_s7 + $0x150] sm:$0xf]  ;;  %664 = vmatpush.bf16.msra.mxu0 %v1046_v25  ;;  %v1243_v39 = vld [vmem:[%s1418_s7 + $0x154] sm:$0xf0]  ;;  %v1039_v41 = vld [vmem:[%s1418_s7 + $0x58] sm:$0xf0]  ;;  %v1102_v42 = vor.u32 %v1227_v36, %v1101_v35 }
  0x38   : > { %683 = vmatpush.bf16.msra.mxu1 %v1110_v26  ;;  %v1166_v43 = vor.u32 %v1243_v39, %v1165_v37  ;;  %v1029_v44 = vld [vmem:[%s1418_s7 + $0x40] sm:$0xf]  ;;  %v1209_v45 = vld [vmem:[%s1418_s7 + $0x44] sm:$0xf0]  ;;  %721 = vmatpush.bf16.msra.mxu3 %v1050_v34  ;;  %v1042_v47 = vor.u32 %v1210_v40, %v1039_v41  ;;  %v1208_v51 = vld [vmem:[%s1418_s7 + $0x44] sm:$0xf] }
  0x39   : > { %702 = vmatpush.bf16.msra.mxu2 %v1174_v30  ;;  %v1093_v46 = vld [vmem:[%s1418_s7 + $0xc0] sm:$0xf]  ;;  %v1225_v48 = vld [vmem:[%s1418_s7 + $0xc4] sm:$0xf0]  ;;  %v1031_v52 = vld [vmem:[%s1418_s7 + $0x48] sm:$0xf0]  ;;  %v1030_v53 = vor.u32 %v1209_v45, %v1029_v44 }
  0x3a   : > { %v1157_v49 = vld [vmem:[%s1418_s7 + $0x140] sm:$0xf]  ;;  %v1241_v50 = vld [vmem:[%s1418_s7 + $0x144] sm:$0xf0]  ;;  %v1094_v54 = vor.u32 %v1225_v48, %v1093_v46  ;;  %v1021_v56 = vld [vmem:[%s1418_s7 + $0x30] sm:$0xf]  ;;  %v1034_v59 = vor.u32 %v1208_v51, %v1031_v52 }
  0x3b   : > { %665 = vmatpush.bf16.msra.mxu0 %v1038_v38  ;;  %v1158_v55 = vor.u32 %v1241_v50, %v1157_v49  ;;  %v1207_v57 = vld [vmem:[%s1418_s7 + $0x34] sm:$0xf0]  ;;  %v1085_v58 = vld [vmem:[%s1418_s7 + $0xb0] sm:$0xf]  ;;  %v1206_v63 = vld [vmem:[%s1418_s7 + $0x34] sm:$0xf] }
  0x3c   : > { %684 = vmatpush.bf16.msra.mxu1 %v1102_v42  ;;  %722 = vmatpush.bf16.msra.mxu3 %v1042_v47  ;;  %v1223_v60 = vld [vmem:[%s1418_s7 + $0xb4] sm:$0xf0]  ;;  %v1149_v61 = vld [vmem:[%s1418_s7 + $0x130] sm:$0xf]  ;;  %v1023_v0 = vld [vmem:[%s1418_s7 + $0x38] sm:$0xf0]  ;;  %v1022_v1 = vor.u32 %v1207_v57, %v1021_v56 }
  0x3d   : > { %703 = vmatpush.bf16.msra.mxu2 %v1166_v43  ;;  %v1239_v62 = vld [vmem:[%s1418_s7 + $0x134] sm:$0xf0]  ;;  %v1086_v2 = vor.u32 %v1223_v60, %v1085_v58  ;;  %v1013_v4 = vld [vmem:[%s1418_s7 + $0x20] sm:$0xf]  ;;  %v1205_v5 = vld [vmem:[%s1418_s7 + $0x24] sm:$0xf0]  ;;  %v1026_v7 = vor.u32 %v1206_v63, %v1023_v0 }
  0x3e   : > { %v1150_v3 = vor.u32 %v1239_v62, %v1149_v61  ;;  %v1077_v6 = vld [vmem:[%s1418_s7 + $0xa0] sm:$0xf]  ;;  %v1221_v8 = vld [vmem:[%s1418_s7 + $0xa4] sm:$0xf0]  ;;  %v1204_v11 = vld [vmem:[%s1418_s7 + $0x24] sm:$0xf]  ;;  %v1014_v13 = vor.u32 %v1205_v5, %v1013_v4 }
  0x3f   : > { %666 = vmatpush.bf16.msra.mxu0 %v1030_v53  ;;  %v1141_v9 = vld [vmem:[%s1418_s7 + $0x120] sm:$0xf]  ;;  %v1237_v10 = vld [vmem:[%s1418_s7 + $0x124] sm:$0xf0]  ;;  %v1015_v12 = vld [vmem:[%s1418_s7 + $0x28] sm:$0xf0]  ;;  %v1078_v14 = vor.u32 %v1221_v8, %v1077_v6 }
  0x40   : > { %685 = vmatpush.bf16.msra.mxu1 %v1094_v54  ;;  %723 = vmatpush.bf16.msra.mxu3 %v1034_v59  ;;  %v1142_v15 = vor.u32 %v1237_v10, %v1141_v9  ;;  %v1005_v16 = vld [vmem:[%s1418_s7 + $0x10] sm:$0xf]  ;;  %v1203_v17 = vld [vmem:[%s1418_s7 + $0x14] sm:$0xf0]  ;;  %v1018_v19 = vor.u32 %v1204_v11, %v1015_v12  ;;  %v1202_v23 = vld [vmem:[%s1418_s7 + $0x14] sm:$0xf] }
  0x41   : > { %704 = vmatpush.bf16.msra.mxu2 %v1158_v55  ;;  %v1069_v18 = vld [vmem:[%s1418_s7 + $0x90] sm:$0xf]  ;;  %v1219_v20 = vld [vmem:[%s1418_s7 + $0x94] sm:$0xf0]  ;;  %v1007_v24 = vld [vmem:[%s1418_s7 + $0x18] sm:$0xf0]  ;;  %v1006_v25 = vor.u32 %v1203_v17, %v1005_v16 }
  0x42   : > { %v1133_v21 = vld [vmem:[%s1418_s7 + $0x110] sm:$0xf]  ;;  %v1235_v22 = vld [vmem:[%s1418_s7 + $0x114] sm:$0xf0]  ;;  %v997_v26 = vld [vmem:[%s1418_s7] sm:$0xf]  ;;  %v1070_v29 = vor.u32 %v1219_v20, %v1069_v18  ;;  %v1010_v34 = vor.u32 %v1202_v23, %v1007_v24 }
  0x43   : > { %667 = vmatpush.bf16.msra.mxu0 %v1022_v1  ;;  %v1201_v27 = vld [vmem:[%s1418_s7 + $0x4] sm:$0xf0]  ;;  %v1061_v28 = vld [vmem:[%s1418_s7 + $0x80] sm:$0xf]  ;;  %v1134_v30 = vor.u32 %v1235_v22, %v1133_v21  ;;  %v1200_v35 = vld [vmem:[%s1418_s7 + $0x4] sm:$0xf] }
  0x44   : > { %686 = vmatpush.bf16.msra.mxu1 %v1086_v2  ;;  %724 = vmatpush.bf16.msra.mxu3 %v1026_v7  ;;  %v1217_v31 = vld [vmem:[%s1418_s7 + $0x84] sm:$0xf0]  ;;  %v1125_v32 = vld [vmem:[%s1418_s7 + $0x100] sm:$0xf]  ;;  %v999_v36 = vld [vmem:[%s1418_s7 + $0x8] sm:$0xf0]  ;;  %v998_v41 = vor.u32 %v1201_v27, %v997_v26 }
  0x45   : > { %705 = vmatpush.bf16.msra.mxu2 %v1150_v3  ;;  %v1233_v33 = vld [vmem:[%s1418_s7 + $0x104] sm:$0xf0]  ;;  %v973_v37 = vld [vmem:[%s1420_s8] sm:$0xf]  ;;  %v1195_v38 = vld [vmem:[%s1420_s8 + $0x8] sm:$0xf0]  ;;  %v1062_v45 = vor.u32 %v1217_v31, %v1061_v28  ;;  %v1002_v50 = vor.u32 %v1200_v35, %v999_v36 }
  0x46   : > { %v1230_v39 = vld [vmem:[%s1418_s7 + $0xf4] sm:$0xf]  ;;  %v1119_v40 = vld [vmem:[%s1418_s7 + $0xf8] sm:$0xf0]  ;;  %v1126_v46 = vor.u32 %v1233_v33, %v1125_v32  ;;  %v975_v47 = vld [vmem:[%s1420_s8 + $0xc] sm:$0xf0]  ;;  %v974_v52 = vor.u32 %v1195_v38, %v973_v37 }
  0x47   : > { %668 = vmatpush.bf16.msra.mxu0 %v1014_v13  ;;  %v1194_v42 = vld [vmem:[%s1420_s8 + $0x4] sm:$0xf]  ;;  %v1183_v44 = vld [vmem:[%s1418_s7 + $0x178] sm:$0xf0]  ;;  %v981_v48 = vld [vmem:[%s1420_s8 + $0x8] sm:$0xf]  ;;  %v1122_v51 = vor.u32 %v1230_v39, %v1119_v40 }
  0x48   : > { %687 = vmatpush.bf16.msra.mxu1 %v1078_v14  ;;  %725 = vmatpush.bf16.msra.mxu3 %v1018_v19  ;;  %v1246_v43 = vld [vmem:[%s1418_s7 + $0x174] sm:$0xf]  ;;  %v1228_v54 = vld [vmem:[%s1418_s7 + $0xe4] sm:$0xf]  ;;  %v1111_v55 = vld [vmem:[%s1418_s7 + $0xe8] sm:$0xf0]  ;;  %v1499_v56 = vor.u32 %v1194_v42, %v975_v47 }
  0x49   : > { %706 = vmatpush.bf16.msra.mxu2 %v1142_v15  ;;  %v1196_v49 = vld [vmem:[%s1420_s8 + $0x10] sm:$0xf0]  ;;  %v1186_v53 = vor.u32 %v1246_v43, %v1183_v44  ;;  %v1175_v59 = vld [vmem:[%s1418_s7 + $0x168] sm:$0xf0]  ;;  %v1114_v60 = vor.u32 %v1228_v54, %v1111_v55  ;;  %v1103_v63 = vld [vmem:[%s1418_s7 + $0xd8] sm:$0xf0] }
  0x4a   : > { %v1501_v57 = vor.u32 %v1196_v49, %v981_v48  ;;  %v1244_v58 = vld [vmem:[%s1418_s7 + $0x164] sm:$0xf]  ;;  %v1226_v62 = vld [vmem:[%s1418_s7 + $0xd4] sm:$0xf]  ;;  %v1167_v1 = vld [vmem:[%s1418_s7 + $0x158] sm:$0xf0] }
  0x4b   : > { %669 = vmatpush.bf16.msra.mxu0 %v1006_v25  ;;  %v1178_v61 = vor.u32 %v1244_v58, %v1175_v59  ;;  %v1242_v0 = vld [vmem:[%s1418_s7 + $0x154] sm:$0xf]  ;;  %v1106_v2 = vor.u32 %v1226_v62, %v1103_v63  ;;  %v1224_v4 = vld [vmem:[%s1418_s7 + $0xc4] sm:$0xf]  ;;  %v1095_v5 = vld [vmem:[%s1418_s7 + $0xc8] sm:$0xf0] }
  0x4c   : > { %688 = vmatpush.bf16.msra.mxu1 %v1070_v29  ;;  %726 = vmatpush.bf16.msra.mxu3 %v1010_v34  ;;  %v1170_v3 = vor.u32 %v1242_v0, %v1167_v1  ;;  %v1240_v6 = vld [vmem:[%s1418_s7 + $0x144] sm:$0xf]  ;;  %v1159_v7 = vld [vmem:[%s1418_s7 + $0x148] sm:$0xf0]  ;;  %v1098_v8 = vor.u32 %v1224_v4, %v1095_v5  ;;  %v985_v9 = vld [vmem:[%s1420_s8 + $0x18] sm:$0xf] }
  0x4d   : > { %707 = vmatpush.bf16.msra.mxu2 %v1134_v30  ;;  %v1162_v10 = vor.u32 %v1240_v6, %v1159_v7  ;;  %v1198_v11 = vld [vmem:[%s1420_s8 + $0x20] sm:$0xf0]  ;;  %v1087_v13 = vld [vmem:[%s1418_s7 + $0xb8] sm:$0xf0]  ;;  %v987_v17 = vld [vmem:[%s1420_s8 + $0x24] sm:$0xf0] }
  0x4e   : > { %v1222_v12 = vld [vmem:[%s1418_s7 + $0xb4] sm:$0xf]  ;;  %v1197_v14 = vld [vmem:[%s1420_s8 + $0x1c] sm:$0xf]  ;;  %v993_v18 = vld [vmem:[%s1420_s8 + $0x20] sm:$0xf]  ;;  %v986_v21 = vor.u32 %v1198_v11, %v985_v9 }
  0x4f   : > { %670 = vmatpush.bf16.msra.mxu0 %v998_v41  ;;  %v1238_v15 = vld [vmem:[%s1418_s7 + $0x134] sm:$0xf]  ;;  %v1151_v16 = vld [vmem:[%s1418_s7 + $0x138] sm:$0xf0]  ;;  %v1090_v20 = vor.u32 %v1222_v12, %v1087_v13  ;;  %v1220_v23 = vld [vmem:[%s1418_s7 + $0xa4] sm:$0xf]  ;;  %v990_v25 = vor.u32 %v1197_v14, %v987_v17 }
  0x50   : > { %689 = vmatpush.bf16.msra.mxu1 %v1062_v45  ;;  %727 = vmatpush.bf16.msra.mxu3 %v1002_v50  ;;  %v1199_v19 = vld [vmem:[%s1420_s8 + $0x28] sm:$0xf0]  ;;  %v1154_v22 = vor.u32 %v1238_v15, %v1151_v16  ;;  %v1236_v27 = vld [vmem:[%s1418_s7 + $0x124] sm:$0xf]  ;;  %v1218_v31 = vld [vmem:[%s1418_s7 + $0x94] sm:$0xf] }
  0x51   : > { %708 = vmatpush.bf16.msra.mxu2 %v1126_v46  ;;  %v1079_v24 = vld [vmem:[%s1418_s7 + $0xa8] sm:$0xf0]  ;;  %v994_v26 = vor.u32 %v1199_v19, %v993_v18  ;;  %v1071_v32 = vld [vmem:[%s1418_s7 + $0x98] sm:$0xf0]  ;;  %v1234_v33 = vld [vmem:[%s1418_s7 + $0x114] sm:$0xf] }
  0x52   : > { %671 = vmatmul.bf16.vlgmr.msra.gmra.mxu0 %v974_v52  ;;  %v1143_v28 = vld [vmem:[%s1418_s7 + $0x128] sm:$0xf0]  ;;  %v1082_v29 = vor.u32 %v1220_v23, %v1079_v24  ;;  %v1135_v34 = vld [vmem:[%s1418_s7 + $0x118] sm:$0xf0]  ;;  %v1074_v35 = vor.u32 %v1218_v31, %v1071_v32  ;;  %v1216_v37 = vld [vmem:[%s1418_s7 + $0x84] sm:$0xf] }
  0x53   : > { %690 = vmatmul.bf16.vlgmr.msra.gmra.mxu1 %v1499_v56  ;;  %728 = vmatmul.bf16.vlgmr.msra.gmra.mxu3 %v974_v52  ;;  %v1146_v30 = vor.u32 %v1236_v27, %v1143_v28  ;;  %v1138_v36 = vor.u32 %v1234_v33, %v1135_v34  ;;  %v1063_v38 = vld [vmem:[%s1418_s7 + $0x88] sm:$0xf0]  ;;  %v1232_v39 = vld [vmem:[%s1418_s7 + $0x104] sm:$0xf]  ;;  %v327_v46 = vld [vmem:[#allocation2 + $0x30] sm:$0xff]  ;;  %p1187_p11 = scmp.ne.s32.totalorder %s1337_s14, 5 }
  0x54   : > { %758 = vmatpush.bf16.msrb.mxu1 %v1186_v53  ;;  %709 = vmatmul.bf16.vlgmr.msra.gmra.mxu2 %v1501_v57  ;;  %v1127_v40 = vld [vmem:[%s1418_s7 + $0x108] sm:$0xf0]  ;;  %v1066_v41 = vor.u32 %v1216_v37, %v1063_v38  ;;  %v329_v54 = vld [vmem:[#allocation2 + $0x18] sm:$0xff]  ;;  %v328_v14 = vld [vmem:[#allocation2] sm:$0xff] }
  0x55   : > { %1248 = vmatpush.bf16.msrb.mxu2 %v1122_v51  ;;  %739 = vmatpush.bf16.msrb.mxu0 %v1122_v51  ;;  %v1130_v42 = vor.u32 %v1232_v39, %v1127_v40  ;;  %v331_v62 = vld [vmem:[#allocation2 + $0x8] sm:$0xff]  ;;  %v330_v24 = vld [vmem:[#allocation2 + $0x10] sm:$0xff]  ;;  %v334_v31 = vld [vmem:[#allocation2 + $0x38] sm:$0xff] }
  0x56   : > { %1256 = vmatpush.bf16.msrb.mxu3 %v1186_v53  ;;  %v333_v6 = vld [vmem:[#allocation2 + $0x28] sm:$0xff] }
  0x58   : > { %759 = vmatpush.bf16.msrb.mxu1 %v1178_v61 }
  0x59   : > { %1249 = vmatpush.bf16.msrb.mxu2 %v1114_v60  ;;  %740 = vmatpush.bf16.msrb.mxu0 %v1114_v60 }
  0x5a   : > { %1257 = vmatpush.bf16.msrb.mxu3 %v1178_v61 }
  0x5c   : > { %760 = vmatpush.bf16.msrb.mxu1 %v1170_v3 }
  0x5d   : > { %1250 = vmatpush.bf16.msrb.mxu2 %v1106_v2  ;;  %741 = vmatpush.bf16.msrb.mxu0 %v1106_v2 }
  0x5e   : > { %1258 = vmatpush.bf16.msrb.mxu3 %v1170_v3 }
  0x60   : > { %761 = vmatpush.bf16.msrb.mxu1 %v1162_v10 }
  0x61   : > { %1251 = vmatpush.bf16.msrb.mxu2 %v1098_v8  ;;  %742 = vmatpush.bf16.msrb.mxu0 %v1098_v8 }
  0x62   : > { %1259 = vmatpush.bf16.msrb.mxu3 %v1162_v10  ;;  %676 = vmatmul.bf16.gmra.mxu0 %v986_v21 }
  0x63   : > { %695 = vmatmul.bf16.gmra.mxu1 %v990_v25  ;;  %733 = vmatmul.bf16.gmra.mxu3 %v986_v21 }
  0x64   : > { %762 = vmatpush.bf16.msrb.mxu1 %v1154_v22  ;;  %714 = vmatmul.bf16.gmra.mxu2 %v994_v26 }
  0x65   : > { %1252 = vmatpush.bf16.msrb.mxu2 %v1090_v20  ;;  %743 = vmatpush.bf16.msrb.mxu0 %v1090_v20  ;;  %v332_v20 = vld [vmem:[#allocation2 + $0x20] sm:$0xff] }
  0x66   : > { %1260 = vmatpush.bf16.msrb.mxu3 %v1154_v22 }
  0x68   : > { %763 = vmatpush.bf16.msrb.mxu1 %v1146_v30 }
  0x69   : > { %1253 = vmatpush.bf16.msrb.mxu2 %v1082_v29  ;;  %744 = vmatpush.bf16.msrb.mxu0 %v1082_v29 }
  0x6a   : > { %1261 = vmatpush.bf16.msrb.mxu3 %v1146_v30 }
  0x6c   : > { %764 = vmatpush.bf16.msrb.mxu1 %v1138_v36 }
  0x6d   : > { %1254 = vmatpush.bf16.msrb.mxu2 %v1074_v35  ;;  %745 = vmatpush.bf16.msrb.mxu0 %v1074_v35 }
  0x6e   : > { %1262 = vmatpush.bf16.msrb.mxu3 %v1138_v36 }
  0x70   : > { %765 = vmatpush.bf16.msrb.mxu1 %v1130_v42 }
  0x71   : > { %1255 = vmatpush.bf16.msrb.mxu2 %v1066_v41  ;;  %746 = vmatpush.bf16.msrb.mxu0 %v1066_v41 }
  0x72   : > { %1263 = vmatpush.bf16.msrb.mxu3 %v1130_v42 }
  0x73   : > { %766 = vmatmul.bf16.vlgmr.msrb.gmra.mxu1 %v1501_v57 }
  0x74   : > { %747 = vmatmul.bf16.vlgmr.msrb.gmra.mxu0 %v1499_v56  ;;  %752 = vmatmul.bf16.vlgmr.msrb.gmra.mxu2 %v990_v25 }
  0x75   : > { %771 = vmatmul.bf16.vlgmr.msrb.gmra.mxu3 %v994_v26 }
  0xcf   : > { %v672_v43 = vpop.f32.mrf.mxu0 }
  0xd0   : > { %v691_v44 = vpop.f32.mrf.mxu1 }
  0xd1   : > { %v692_v45 = vadd.f32 %v691_v44, %v672_v43 }
  0xd6   : > { %v729_v49 = vpop.f32.mrf.mxu3 }
  0xd7   : > { %v710_v47 = vpop.f32.mrf.mxu2  ;;  %v674_v50 = vpop.f32.mrf.mxu0 }
  0xd8   : > { %v711_v48 = vadd.f32 %v710_v47, %v692_v45  ;;  %v693_v51 = vpop.f32.mrf.mxu1 }
  0xd9   : > { %v694_v53 = vadd.f32 %v693_v51, %v674_v50 }
  0xda   : > { %v777_v52 = vadd.f32 %v711_v48, %v327_v46 }
  0xdc   : > { %785 = vst [vmem:[#allocation2 + $0x30] sm:$0xff] %v777_v52 }
  0xde   : > { %v731_v56 = vpop.f32.mrf.mxu3 }
  0xdf   : > { %v712_v55 = vpop.f32.mrf.mxu2  ;;  %v677_v59 = vpop.f32.mrf.mxu0 }
  0xe0   : > { %v713_v58 = vadd.f32 %v712_v55, %v694_v53  ;;  %v696_v60 = vpop.f32.mrf.mxu1 }
  0xe1   : > { %v697_v61 = vadd.f32 %v696_v60, %v677_v59 }
  0xe2   : > { %v779_v57 = vadd.f32 %v713_v58, %v329_v54 }
  0xe4   : > { %787 = vst [vmem:[#allocation2 + $0x18] sm:$0xff] %v779_v57 }
  0xe6   : > { %v734_v1 = vpop.f32.mrf.mxu3 }
  0xe7   : > { %v715_v63 = vpop.f32.mrf.mxu2  ;;  %v679_v2 = vpop.f32.mrf.mxu0 }
  0xe8   : > { %v716_v0 = vadd.f32 %v715_v63, %v697_v61  ;;  %v698_v3 = vpop.f32.mrf.mxu1 }
  0xe9   : > { %v699_v5 = vadd.f32 %v698_v3, %v679_v2 }
  0xea   : > { %v781_v4 = vadd.f32 %v716_v0, %v331_v62 }
  0xec   : > { %789 = vst [vmem:[#allocation2 + $0x8] sm:$0xff] %v781_v4 }
  0xee   : > { %v736_v9 = vpop.f32.mrf.mxu3 }
  0xef   : > { %v717_v7 = vpop.f32.mrf.mxu2 }
  0xf0   : > { %v718_v8 = vadd.f32 %v717_v7, %v699_v5  ;;  %v767_v13 = vpop.f32.mrf.mxu1 }
  0xf1   : > { %v748_v10 = vpop.f32.mrf.mxu0 }
  0xf2   : > { %v783_v11 = vadd.f32 %v718_v8, %v333_v6  ;;  %v749_v12 = vadd.f32 %v748_v10, %v729_v49 }
  0xf4   : > { %791 = vst [vmem:[#allocation2 + $0x28] sm:$0xff] %v783_v11  ;;  %v768_v15 = vadd.f32 %v767_v13, %v749_v12 }
  0xf6   : > { %v778_v16 = vadd.f32 %v768_v15, %v328_v14 }
  0xf7   : > { %v753_v17 = vpop.f32.mrf.mxu2 }
  0xf8   : > { %786 = vst [vmem:[#allocation2] sm:$0xff] %v778_v16  ;;  %v754_v18 = vadd.f32 %v753_v17, %v734_v1  ;;  %v772_v19 = vpop.f32.mrf.mxu3  ;;  %v769_v25 = vpop.f32.mrf.mxu1 }
  0xf9   : > { %v750_v21 = vpop.f32.mrf.mxu0 }
  0xfa   : > { %v773_v22 = vadd.f32 %v772_v19, %v754_v18  ;;  %v751_v23 = vadd.f32 %v750_v21, %v731_v56 }
  0xfc   : > { %v782_v26 = vadd.f32 %v773_v22, %v332_v20  ;;  %v770_v27 = vadd.f32 %v769_v25, %v751_v23 }
  0xfe   : > { %790 = vst [vmem:[#allocation2 + $0x20] sm:$0xff] %v782_v26  ;;  %v780_v28 = vadd.f32 %v770_v27, %v330_v24 }
  0xff   : > { %v755_v29 = vpop.f32.mrf.mxu2 }
 0x100   : > { %788 = vst [vmem:[#allocation2 + $0x10] sm:$0xff] %v780_v28  ;;  %v756_v30 = vadd.f32 %v755_v29, %v736_v9  ;;  %v774_v32 = vpop.f32.mrf.mxu3 }
 0x102   : > { %v775_v33 = vadd.f32 %v774_v32, %v756_v30  ;;  %796 = sbr.rel (%p1187_p11) target bundleno = 276 (0x114), region = 66 }
 0x104   : > { %v784_v34 = vadd.f32 %v775_v33, %v334_v31 }
 0x106   : > { %792 = vst [vmem:[#allocation2 + $0x38] sm:$0xff] %v784_v34 }
 0x107   : > { %v797_v35 = vld [vmem:[#allocation2 + $0x30] sm:$0xff]  ;;  %v805_v36 = vld [vmem:[%s1584_s2] sm:$0x3]  ;;  %v799_v40 = vld [vmem:[#allocation2 + $0x18] sm:$0xff] }
 0x108   : > { %v798_v37 = vld [vmem:[#allocation2] sm:$0xff]  ;;  %v807_v38 = vperm.slane %v805_v36, 0  ;;  %v808_v39 = vperm.slane %v805_v36, 1  ;;  %v800_v41 = vld [vmem:[#allocation2 + $0x10] sm:$0xff]  ;;  %v801_v42 = vld [vmem:[#allocation2 + $0x8] sm:$0xff] }
 0x109   : > { %v802_v46 = vld [vmem:[#allocation2 + $0x20] sm:$0xff]  ;;  %v803_v48 = vld [vmem:[#allocation2 + $0x28] sm:$0xff] }
 0x10a   : > { %v811_v43 = vadd.f32 %v807_v38, %v797_v35  ;;  %v812_v44 = vadd.f32 %v808_v39, %v798_v37  ;;  %v813_v45 = vadd.f32 %v807_v38, %v799_v40  ;;  %v814_v47 = vadd.f32 %v808_v39, %v800_v41 }
 0x10b   : > { %v815_v49 = vadd.f32 %v807_v38, %v801_v42  ;;  %v816_v51 = vadd.f32 %v808_v39, %v802_v46  ;;  %v817_v52 = vadd.f32 %v807_v38, %v803_v48 }
 0x10c   : > { %819 = vst [vmem:[%s1585_s3] sm:$0xff] %v811_v43 }
 0x10d   : > { %v804_v50 = vld [vmem:[#allocation2 + $0x38] sm:$0xff]  ;;  %820 = vst [vmem:[%s1585_s3 + $0x8] sm:$0xff] %v812_v44 }
 0x10e   : > { %821 = vst [vmem:[%s1585_s3 + $0x10] sm:$0xff] %v813_v45  ;;  %v818_v53 = vadd.f32 %v808_v39, %v804_v50 }
 0x10f   : > { %822 = vst [vmem:[%s1585_s3 + $0x18] sm:$0xff] %v814_v47 }
 0x110   : > { %823 = vst [vmem:[%s1585_s3 + $0x20] sm:$0xff] %v815_v49 }
 0x111   : > { %824 = vst [vmem:[%s1585_s3 + $0x28] sm:$0xff] %v816_v51 }
 0x112   : > { %825 = vst [vmem:[%s1585_s3 + $0x30] sm:$0xff] %v817_v52 }
 0x113   : > { %826 = vst [vmem:[%s1585_s3 + $0x38] sm:$0xff] %v818_v53 }
 0x114 PF: > { %s13_s16 = sadd.s32 1, %s1345_s16   ;;  %s1586_s12 = smov %s1333_s13 }
 0x115   : > { %p10_p12 = scmp.ge.s32.totalorder %s13_s16, 8   ;;  %s1587_s13 = smov %s1403_s20 }
 0x116   : > { %s1588_s14 = smov %s1341_s15  ;;  %s1589_s15 = smov %s1591_s17 }
 0x117   :  { %12 = sbr.rel (!%p10_p12) target bundleno = 3 (0x3), region = 113 }

// kernel: dualnet_forward.91
= control target key start
LH: loop header
LB: loop body
LE: loop exit
PB: predicated region body
PF: predicated region fallthrough
CT: control target
= control target key end

     0   :  { %v323_v6 = vmov 16.0   ;;  %vm176_vm1 = vcmask 1041409   ;;  %s624_s0 = inlined_call_operand.vmem [shape: f32[2,16,256], index: 0, kind: input, shape index: {}]   ;;  %s625_s1 = inlined_call_operand.vmem [shape: f32[2,16,256], index: 1, kind: input, shape index: {}]   ;;  %s626_s2 = inlined_call_operand.vmem [shape: f32[256,2], index: 2, kind: input, shape index: {}]   ;;  %s627_s3 = inlined_call_operand.vmem [shape: f32[256,2], index: 3, kind: input, shape index: {}]   ;;  %s628_s4 = inlined_call_operand.vmem [shape: f32[1,2], index: 4, kind: input, shape index: {}]   ;;  %s629_s5 = inlined_call_operand.hbm [shape: f32[2,2], index: 5, kind: output, shape index: {}]  }
   0x1   :  { %v123_v0 = vld [vmem:[%s626_s2 + $0x78] sm:$0xff]  ;;  %v122_v1 = vld [vmem:[%s626_s2 + $0x70] sm:$0xff]  ;;  %v121_v5 = vld [vmem:[%s626_s2 + $0x68] sm:$0xff]  ;;  %295 = vrcp.f32 %v323_v6 }
   0x2   :  { %v139_v2 = vld [vmem:[%s626_s2 + $0xf8] sm:$0xff]  ;;  %229 = vmatpush.msra.mxu2 %v123_v0  ;;  %v138_v7 = vld [vmem:[%s626_s2 + $0xf0] sm:$0xff]  ;;  %v137_v10 = vld [vmem:[%s626_s2 + $0xe8] sm:$0xff] }
   0x3   :  { %249 = vmatpush.msra.mxu3 %v139_v2  ;;  %v155_v3 = vld [vmem:[%s627_s3 + $0x78] sm:$0xff]  ;;  %v154_v8 = vld [vmem:[%s627_s3 + $0x70] sm:$0xff]  ;;  %v153_v11 = vld [vmem:[%s627_s3 + $0x68] sm:$0xff] }
   0x4   :  { %v171_v4 = vld [vmem:[%s627_s3 + $0xf8] sm:$0xff]  ;;  %181 = vmatpush.msra.mxu0 %v155_v3  ;;  %v170_v9 = vld [vmem:[%s627_s3 + $0xf0] sm:$0xff]  ;;  %230 = vmatpush.msra.mxu2 %v122_v1  ;;  %v120_v12 = vld [vmem:[%s626_s2 + $0x60] sm:$0xff] }
   0x5   :  { %201 = vmatpush.msra.mxu1 %v171_v4  ;;  %250 = vmatpush.msra.mxu3 %v138_v7  ;;  %v169_v13 = vld [vmem:[%s627_s3 + $0xe8] sm:$0xff]  ;;  %v136_v14 = vld [vmem:[%s626_s2 + $0xe0] sm:$0xff]  ;;  %v119_v17 = vld [vmem:[%s626_s2 + $0x58] sm:$0xff] }
   0x6   :  { %182 = vmatpush.msra.mxu0 %v154_v8  ;;  %231 = vmatpush.msra.mxu2 %v121_v5  ;;  %v152_v15 = vld [vmem:[%s627_s3 + $0x60] sm:$0xff]  ;;  %v135_v18 = vld [vmem:[%s626_s2 + $0xd8] sm:$0xff]  ;;  %v118_v22 = vld [vmem:[%s626_s2 + $0x50] sm:$0xff] }
   0x7   :  { %202 = vmatpush.msra.mxu1 %v170_v9  ;;  %251 = vmatpush.msra.mxu3 %v137_v10  ;;  %v168_v16 = vld [vmem:[%s627_s3 + $0xe0] sm:$0xff]  ;;  %v409_v19 = vpop.eup %295  ;;  %v151_v20 = vld [vmem:[%s627_s3 + $0x58] sm:$0xff]  ;;  %v134_v23 = vld [vmem:[%s626_s2 + $0xd0] sm:$0xff] }
   0x8   :  { %183 = vmatpush.msra.mxu0 %v153_v11  ;;  %232 = vmatpush.msra.mxu2 %v120_v12  ;;  %v167_v21 = vld [vmem:[%s627_s3 + $0xd8] sm:$0xff]  ;;  %v150_v24 = vld [vmem:[%s627_s3 + $0x50] sm:$0xff]  ;;  %v117_v26 = vld [vmem:[%s626_s2 + $0x48] sm:$0xff]  ;;  %v58_v28 = vmul.f32 16.0, %v409_v19  ;;  %vm62_vm0 = vweird.f32 %v409_v19 }
   0x9   :  { %203 = vmatpush.msra.mxu1 %v169_v13  ;;  %252 = vmatpush.msra.mxu3 %v136_v14  ;;  %v166_v25 = vld [vmem:[%s627_s3 + $0xd0] sm:$0xff]  ;;  %v133_v27 = vld [vmem:[%s626_s2 + $0xc8] sm:$0xff]  ;;  %v116_v31 = vld [vmem:[%s626_s2 + $0x40] sm:$0xff] }
   0xa   :  { %184 = vmatpush.msra.mxu0 %v152_v15  ;;  %233 = vmatpush.msra.mxu2 %v119_v17  ;;  %v149_v29 = vld [vmem:[%s627_s3 + $0x48] sm:$0xff]  ;;  %v132_v32 = vld [vmem:[%s626_s2 + $0xc0] sm:$0xff]  ;;  %v115_v35 = vld [vmem:[%s626_s2 + $0x38] sm:$0xff]  ;;  %v59_v37 = vsub.f32 1.0, %v58_v28 }
   0xb   :  { %204 = vmatpush.msra.mxu1 %v168_v16  ;;  %253 = vmatpush.msra.mxu3 %v135_v18  ;;  %v165_v30 = vld [vmem:[%s627_s3 + $0xc8] sm:$0xff]  ;;  %v148_v33 = vld [vmem:[%s627_s3 + $0x40] sm:$0xff]  ;;  %v131_v36 = vld [vmem:[%s626_s2 + $0xb8] sm:$0xff] }
   0xc   :  { %185 = vmatpush.msra.mxu0 %v151_v20  ;;  %234 = vmatpush.msra.mxu2 %v118_v22  ;;  %v164_v34 = vld [vmem:[%s627_s3 + $0xc0] sm:$0xff]  ;;  %v147_v38 = vld [vmem:[%s627_s3 + $0x38] sm:$0xff]  ;;  %v114_v40 = vld [vmem:[%s626_s2 + $0x30] sm:$0xff]  ;;  %v60_v50 = vmul.f32 %v409_v19, %v59_v37 }
   0xd   :  { %205 = vmatpush.msra.mxu1 %v167_v21  ;;  %254 = vmatpush.msra.mxu3 %v134_v23  ;;  %v163_v39 = vld [vmem:[%s627_s3 + $0xb8] sm:$0xff]  ;;  %v113_v41 = vld [vmem:[%s626_s2 + $0x28] sm:$0xff]  ;;  %v130_v42 = vld [vmem:[%s626_s2 + $0xb0] sm:$0xff] }
   0xe   :  { %186 = vmatpush.msra.mxu0 %v150_v24  ;;  %235 = vmatpush.msra.mxu2 %v117_v26  ;;  %v146_v43 = vld [vmem:[%s627_s3 + $0x30] sm:$0xff]  ;;  %v129_v45 = vld [vmem:[%s626_s2 + $0xa8] sm:$0xff]  ;;  %v112_v46 = vld [vmem:[%s626_s2 + $0x20] sm:$0xff]  ;;  %v61_v1 = vadd.f32 %v409_v19, %v60_v50 }
   0xf   :  { %206 = vmatpush.msra.mxu1 %v166_v25  ;;  %255 = vmatpush.msra.mxu3 %v133_v27  ;;  %v162_v44 = vld [vmem:[%s627_s3 + $0xb0] sm:$0xff]  ;;  %v145_v47 = vld [vmem:[%s627_s3 + $0x28] sm:$0xff]  ;;  %v128_v49 = vld [vmem:[%s626_s2 + $0xa0] sm:$0xff] }
  0x10   :  { %187 = vmatpush.msra.mxu0 %v149_v29  ;;  %236 = vmatpush.msra.mxu2 %v116_v31  ;;  %v161_v48 = vld [vmem:[%s627_s3 + $0xa8] sm:$0xff]  ;;  %v144_v51 = vld [vmem:[%s627_s3 + $0x20] sm:$0xff]  ;;  %v111_v54 = vld [vmem:[%s626_s2 + $0x18] sm:$0xff]  ;;  %v583_v26 = vsel %vm62_vm0, %v409_v19, %v61_v1 }
  0x11   :  { %207 = vmatpush.msra.mxu1 %v165_v30  ;;  %256 = vmatpush.msra.mxu3 %v132_v32  ;;  %v160_v52 = vld [vmem:[%s627_s3 + $0xa0] sm:$0xff]  ;;  %v23_v55 = vld [vmem:[%s624_s0 + $0x10] sm:$0xff]  ;;  %v127_v58 = vld [vmem:[%s626_s2 + $0x98] sm:$0xff] }
  0x12   :  { %188 = vmatpush.msra.mxu0 %v148_v33  ;;  %237 = vmatpush.msra.mxu2 %v115_v35  ;;  %v21_v53 = vld [vmem:[%s624_s0] sm:$0xff]  ;;  %v27_v57 = vld [vmem:[%s624_s0 + $0x30] sm:$0xff]  ;;  %v143_v59 = vld [vmem:[%s627_s3 + $0x18] sm:$0xff] }
  0x13   :  { %208 = vmatpush.msra.mxu1 %v164_v34  ;;  %257 = vmatpush.msra.mxu3 %v131_v36  ;;  %v25_v56 = vld [vmem:[%s624_s0 + $0x20] sm:$0xff]  ;;  %v159_v60 = vld [vmem:[%s627_s3 + $0x98] sm:$0xff]  ;;  %v29_v61 = vadd.f32 %v23_v55, %v21_v53  ;;  %v110_v63 = vld [vmem:[%s626_s2 + $0x10] sm:$0xff] }
  0x14   :  { %189 = vmatpush.msra.mxu0 %v147_v38  ;;  %238 = vmatpush.msra.mxu2 %v114_v40  ;;  %v43_v62 = vadd.f32 %v27_v57, %v25_v56  ;;  %v126_v0 = vld [vmem:[%s626_s2 + $0x90] sm:$0xff]  ;;  %v22_v2 = vld [vmem:[%s624_s0 + $0x8] sm:$0xff]  ;;  %v24_v3 = vld [vmem:[%s624_s0 + $0x18] sm:$0xff] }
  0x15   :  { %209 = vmatpush.msra.mxu1 %v163_v39  ;;  %258 = vmatpush.msra.mxu3 %v130_v42  ;;  %v26_v4 = vld [vmem:[%s624_s0 + $0x28] sm:$0xff]  ;;  %v142_v5 = vld [vmem:[%s627_s3 + $0x10] sm:$0xff]  ;;  %v30_v7 = vrot.slane %v29_v61, 4  ;;  %v28_v9 = vld [vmem:[%s624_s0 + $0x38] sm:$0xff]  ;;  %v36_v10 = vadd.f32 %v24_v3, %v22_v2 }
  0x16   :  { %190 = vmatpush.msra.mxu0 %v146_v43  ;;  %239 = vmatpush.msra.mxu2 %v113_v41  ;;  %v158_v6 = vld [vmem:[%s627_s3 + $0x90] sm:$0xff]  ;;  %v44_v8 = vrot.slane %v43_v62, 4  ;;  %v109_v11 = vld [vmem:[%s626_s2 + $0x8] sm:$0xff]  ;;  %v50_v13 = vadd.f32 %v28_v9, %v26_v4  ;;  %v68_v14 = vld [vmem:[%s625_s1] sm:$0xff] }
  0x17   :  { %210 = vmatpush.msra.mxu1 %v162_v44  ;;  %259 = vmatpush.msra.mxu3 %v129_v45  ;;  %v125_v12 = vld [vmem:[%s626_s2 + $0x88] sm:$0xff]  ;;  %v70_v15 = vld [vmem:[%s625_s1 + $0x10] sm:$0xff]  ;;  %v72_v16 = vld [vmem:[%s625_s1 + $0x20] sm:$0xff]  ;;  %v31_v17 = vadd.f32 %v30_v7, %v29_v61  ;;  %v37_v21 = vrot.slane %v36_v10, 4 }
  0x18   :  { %191 = vmatpush.msra.mxu0 %v145_v47  ;;  %240 = vmatpush.msra.mxu2 %v112_v46  ;;  %v45_v18 = vadd.f32 %v44_v8, %v43_v62  ;;  %v141_v20 = vld [vmem:[%s627_s3 + $0x8] sm:$0xff]  ;;  %v74_v22 = vld [vmem:[%s625_s1 + $0x30] sm:$0xff]  ;;  %v76_v23 = vadd.f32 %v70_v15, %v68_v14  ;;  %v71_v25 = vld [vmem:[%s625_s1 + $0x18] sm:$0xff]  ;;  %v51_v27 = vrot.slane %v50_v13, 4 }
  0x19   :  { %211 = vmatpush.msra.mxu1 %v161_v48  ;;  %260 = vmatpush.msra.mxu3 %v128_v49  ;;  %v69_v24 = vld [vmem:[%s625_s1 + $0x8] sm:$0xff]  ;;  %v90_v28 = vadd.f32 %v74_v22, %v72_v16  ;;  %v75_v30 = vld [vmem:[%s625_s1 + $0x38] sm:$0xff]  ;;  %v32_v32 = vrot.slane %v31_v17, 2  ;;  %v38_v34 = vadd.f32 %v37_v21, %v36_v10 }
  0x1a   :  { %192 = vmatpush.msra.mxu0 %v144_v51  ;;  %241 = vmatpush.msra.mxu2 %v111_v54  ;;  %v73_v29 = vld [vmem:[%s625_s1 + $0x28] sm:$0xff]  ;;  %v83_v31 = vadd.f32 %v71_v25, %v69_v24  ;;  %v46_v33 = vrot.slane %v45_v18, 2  ;;  %v77_v35 = vrot.slane %v76_v23, 4 }
  0x1b   :  { %212 = vmatpush.msra.mxu1 %v160_v52  ;;  %261 = vmatpush.msra.mxu3 %v127_v58  ;;  %v157_v19 = vld [vmem:[%s627_s3 + $0x88] sm:$0xff] }
  0x1c   :  { %193 = vmatpush.msra.mxu0 %v143_v59  ;;  %242 = vmatpush.msra.mxu2 %v110_v63 }
  0x1d   :  { %213 = vmatpush.msra.mxu1 %v159_v60  ;;  %262 = vmatpush.msra.mxu3 %v126_v0 }
  0x1e   :  { %10 = vsyncpa [#allocation3], 0  ;;  %194 = vmatpush.msra.mxu0 %v142_v5  ;;  %v108_v36 = vld [vmem:[%s626_s2] sm:$0xff]  ;;  %v52_v38 = vadd.f32 %v51_v27, %v50_v13  ;;  %v91_v39 = vrot.slane %v90_v28, 4  ;;  %v84_v40 = vrot.slane %v83_v31, 4  ;;  %v97_v41 = vadd.f32 %v75_v30, %v73_v29  ;;  %243 = vmatpush.msra.mxu2 %v109_v11  ;;  %s324_s26 = smov [#allocation2]  }
  0x1f   :  { %214 = vmatpush.msra.mxu1 %v158_v6  ;;  %v124_v37 = vld [vmem:[%s626_s2 + $0x80] sm:$0xff]  ;;  %263 = vmatpush.msra.mxu3 %v125_v12  ;;  %v33_v42 = vadd.f32 %v32_v32, %v31_v17  ;;  %v47_v43 = vadd.f32 %v46_v33, %v45_v18  ;;  %v39_v44 = vrot.slane %v38_v34, 2  ;;  %v78_v47 = vadd.f32 %v77_v35, %v76_v23  ;;  %s281_s27 = sshll.u32 %s324_s26, 4  ;;  %s283_s29 = sshll.u32 %s629_s5, 4  ;;  %s282_s27 = int_to_ptr.vmem [resolvable:$true] %s281_s27  ;;  %s284_s29 = int_to_ptr.hbm [resolvable:$true] %s283_s29 }
  0x20   :  { %v140_v45 = vld [vmem:[%s627_s3] sm:$0xff]  ;;  %195 = vmatpush.msra.mxu0 %v141_v20  ;;  %v53_v48 = vrot.slane %v52_v38, 2  ;;  %v92_v49 = vadd.f32 %v91_v39, %v90_v28  ;;  %v85_v50 = vadd.f32 %v84_v40, %v83_v31  ;;  %v98_v51 = vrot.slane %v97_v41, 4  ;;  %244 = vmatpush.msra.mxu2 %v108_v36 }
  0x21   :  { %v156_v46 = vld [vmem:[%s627_s3 + $0x80] sm:$0xff]  ;;  %215 = vmatpush.msra.mxu1 %v157_v19  ;;  %v34_v52 = vrot.slane %v33_v42, 1  ;;  %v48_v53 = vrot.slane %v47_v43, 1  ;;  %264 = vmatpush.msra.mxu3 %v124_v37  ;;  %v40_v54 = vadd.f32 %v39_v44, %v38_v34  ;;  %v79_v55 = vrot.slane %v78_v47, 2 }
  0x22   :  { %v54_v56 = vadd.f32 %v53_v48, %v52_v38  ;;  %196 = vmatpush.msra.mxu0 %v140_v45  ;;  %v93_v57 = vrot.slane %v92_v49, 2  ;;  %v86_v58 = vrot.slane %v85_v50, 2  ;;  %v99_v59 = vadd.f32 %v98_v51, %v97_v41  ;;  %v294_v34 = vld [vmem:[%s628_s4] ss:$0 sm:$0xff] }
  0x23   :  { %216 = vmatpush.msra.mxu1 %v156_v46  ;;  %v35_v60 = vadd.f32 %v34_v52, %v33_v42  ;;  %v49_v61 = vadd.f32 %v48_v53, %v47_v43  ;;  %v41_v62 = vrot.slane %v40_v54, 1  ;;  %v80_v63 = vadd.f32 %v79_v55, %v78_v47 }
  0x24   :  { %v55_v0 = vrot.slane %v54_v56, 1  ;;  %v94_v1 = vadd.f32 %v93_v57, %v92_v49  ;;  %v87_v2 = vadd.f32 %v86_v58, %v85_v50  ;;  %v100_v3 = vrot.slane %v99_v59, 2 }
  0x25   :  { %v64_v4 = vmul.f32 %v583_v26, %v35_v60  ;;  %v66_v5 = vmul.f32 %v583_v26, %v49_v61  ;;  %v42_v6 = vadd.f32 %v41_v62, %v40_v54  ;;  %v81_v7 = vrot.slane %v80_v63, 1 }
  0x26   :  { %v56_v8 = vadd.f32 %v55_v0, %v54_v56  ;;  %v95_v9 = vrot.slane %v94_v1, 1  ;;  %v88_v10 = vrot.slane %v87_v2, 1  ;;  %v101_v11 = vadd.f32 %v100_v3, %v99_v59 }
  0x27   :  { %v225_v12 = vsel %vm176_vm1, %v66_v5, %v64_v4  ;;  %v65_v13 = vmul.f32 %v583_v26, %v42_v6  ;;  %v82_v14 = vadd.f32 %v81_v7, %v80_v63  ;;  %vm274_vm2 = vcmask 9216  }
  0x28   :  { %245 = vmatmul.f32.vlgmr.msra.gmra.mxu2 %v225_v12  ;;  %v67_v15 = vmul.f32 %v583_v26, %v56_v8  ;;  %v96_v16 = vadd.f32 %v95_v9, %v94_v1  ;;  %v89_v17 = vadd.f32 %v88_v10, %v87_v2  ;;  %v102_v18 = vrot.slane %v101_v11, 1 }
  0x29   :  { %v104_v20 = vmul.f32 %v82_v14, %v583_v26 }
  0x2a   :  { %v226_v21 = vsel %vm176_vm1, %v67_v15, %v65_v13  ;;  %v106_v22 = vmul.f32 %v96_v16, %v583_v26  ;;  %v103_v23 = vadd.f32 %v102_v18, %v101_v11  ;;  %v105_v24 = vmul.f32 %v89_v17, %v583_v26 }
  0x2b   :  { %265 = vmatmul.f32.vlgmr.msra.gmra.mxu3 %v226_v21 }
  0x2c   :  { %v177_v25 = vsel %vm176_vm1, %v106_v22, %v104_v20  ;;  %v107_v27 = vmul.f32 %v103_v23, %v583_v26 }
  0x2d   :  { %197 = vmatmul.f32.vlgmr.msra.gmra.mxu0 %v177_v25 }
  0x2e   :  { %v178_v28 = vsel %vm176_vm1, %v107_v27, %v105_v24 }
  0x2f   :  { %217 = vmatmul.f32.vlgmr.msra.gmra.mxu1 %v178_v28 }
  0xaa   :  { %v198_v29 = vpop.f32.mrf.mxu0 }
  0xab   :  { %v246_v31 = vpop.f32.mrf.mxu2 }
  0xac   :  { %v218_v30 = vpop.f32.mrf.mxu1 }
  0xad   :  { %v219_v32 = vadd.f32 %v218_v30, %v198_v29 }
  0xae   :  { %v266_v33 = vpop.f32.mrf.mxu3 }
  0xaf   :  { %v247_v19 = vadd.f32 %v246_v31, %v219_v32 }
  0xb1   :  { %v267_v26 = vadd.f32 %v266_v33, %v247_v19 }
  0xb3   :  { %v273_v35 = vadd.f32 %v294_v34, %v267_v26 }
  0xb5   :  { %275 = vst.msk [vmem:[#allocation2] sm:$0x3] %vm274_vm2, %v273_v35 }
  0xb6   :  { %286 = dma.vmem_to_hbm [thread:$0]  %s282_s27, 32, %s284_s29, [#allocation3]  }
  0xb7   :  { %321 = dma.done.wait [#allocation3], 32  }
  0xb8   :  { %322 = vsyncadd [#allocation3], 4294967264 }
  0xb9   :  { %291 = vsyncpa [#allocation3], 1 }

</bundles_post_ra>
